<compile_context>
chip_gen: v5e
topology: v5e:2x2
jax: 0.10.0
libtpu: 0.0.40
codegen_flags: <defaults>
</compile_context>

<pallas_src>
import jax
import jax.numpy as jnp
from jax.experimental import pallas as pl
from jax.experimental.pallas import tpu as pltpu

EPS = 1e-5
NEG_SLOPE = 0.01  # F.leaky_relu default


def _bn_lrelu(y, g, b):
    """Training-mode BN (batch stats, biased var) + LeakyReLU on a (M, C) slab.

    One-pass statistics: var = E[y^2] - mean^2 (f32 accumulation)."""
    m = y.shape[0]
    inv_m = 1.0 / m
    s1 = jnp.sum(y, axis=0, keepdims=True)
    s2 = jnp.sum(y * y, axis=0, keepdims=True)
    mean = s1 * inv_m
    var = jnp.maximum(s2 * inv_m - mean * mean, 0.0)
    z = (y - mean) * jax.lax.rsqrt(var + EPS) * g + b
    return jnp.where(z >= 0, z, NEG_SLOPE * z)


# ---------------------------------------------------------------------------
# Fused kernel
#   x_ref : (M, Cin)          M = N*H*W
#   w1_ref: (Cin, Cin)        g1/b1: (1, Cin)
#   w2_ref: (9, Cin)          g2/b2: (1, Cin)     tap index = dh*3 + dw
#   w3_ref: (Cin, CoutP)      g3/b3: (1, CoutP)   CoutP = Cout padded to 128-mult
#   o_ref : (M, CoutP)
#   y1p_ref (scratch): (N, H+2, W+2, Cin)  -- halo-padded stage-1 output in VMEM
# ---------------------------------------------------------------------------
def _bottleneck_kernel(x_ref, w1_ref, g1_ref, b1_ref,
                       w2_ref, g2_ref, b2_ref,
                       w3_ref, g3_ref, b3_ref,
                       o_ref, y1p_ref):
    n, hp, wp, c = y1p_ref.shape
    h, w = hp - 2, wp - 2
    m = n * h * w

    # ---- stage 1: 1x1 conv (MXU, bf16 operands, f32 acc) + BN + LeakyReLU ----
    y1 = jnp.dot(x_ref[...].astype(jnp.bfloat16),
                 w1_ref[...].astype(jnp.bfloat16),
                 preferred_element_type=jnp.float32)
    z1 = _bn_lrelu(y1, g1_ref[...], b1_ref[...])

    # ---- halo pad: zero scratch, write interior (stays in VMEM, no HBM trip) ----
    y1p_ref[...] = jnp.zeros_like(y1p_ref)
    y1p_ref[:, 1:h + 1, 1:w + 1, :] = z1.reshape(n, h, w, c)

    # ---- stage 2: depthwise 3x3 (stride 1), taps sliced straight from the ref ----
    w_taps = [w2_ref[k, :] for k in range(9)]        # hoisted (C,) tap weights
    acc = y1p_ref[:, 0:h, 0:w, :] * w_taps[0]        # init with first tap product
    for dh in range(3):
        for dw in range(3):
            if dh == 0 and dw == 0:
                continue
            acc = acc + y1p_ref[:, dh:dh + h, dw:dw + w, :] * w_taps[dh * 3 + dw]
    z2 = _bn_lrelu(acc.reshape(m, c), g2_ref[...], b2_ref[...])

    # ---- stage 3: 1x1 conv (Cin -> CoutP) + BN + LeakyReLU, lane-dense output ----
    y3 = jnp.dot(z2.astype(jnp.bfloat16),
                 w3_ref[...].astype(jnp.bfloat16),
                 preferred_element_type=jnp.float32)
    o_ref[...] = _bn_lrelu(y3, g3_ref[...], b3_ref[...])


# ---------------------------------------------------------------------------
# BottleNeck forward (wrapper; transposes / weight reshapes are glue)
# ---------------------------------------------------------------------------
def bottleneck_forward(x_nchw, p, stride=1):
    assert stride == 1  # TODO(synk): stride>1 depthwise conv not implemented in-kernel
    n, cin, h, w = x_nchw.shape
    cout = p["w3"].shape[0]
    cout_p = ((cout + 127) // 128) * 128              # lane-dense output width
    m = n * h * w

    x2d = jnp.transpose(x_nchw, (0, 2, 3, 1)).reshape(m, cin)   # NCHW -> (M, Cin)

    w1t = p["w1"].reshape(cin, cin).T                 # (out,in,1,1) -> (in,out)
    w2 = p["w2"].reshape(cin, 9).T                    # (C,1,3,3)   -> (9, C)
    w3t = p["w3"].reshape(cout, cin).T                # (out,in,1,1) -> (in,out)
    w3p = jnp.pad(w3t, ((0, 0), (0, cout_p - cout)))  # pad Cout -> 128-multiple
    g3p = jnp.pad(p["g3"], (0, cout_p - cout)).reshape(1, cout_p)
    b3p = jnp.pad(p["b3"], (0, cout_p - cout)).reshape(1, cout_p)

    vmem_spec = pl.BlockSpec(memory_space=pltpu.MemorySpace.VMEM)
    out = pl.pallas_call(
        _bottleneck_kernel,
        out_shape=jax.ShapeDtypeStruct((m, cout_p), jnp.float32),
        in_specs=[vmem_spec] * 10,
        out_specs=vmem_spec,
        scratch_shapes=[pltpu.VMEM((n, h + 2, w + 2, cin), jnp.float32)],
        # explicit scoped-VMEM limit so the fused slab also compiles on v5e's
        # 16 MiB default (footprint here is < 1 MiB; limit is generous headroom)
        compiler_params=pltpu.CompilerParams(vmem_limit_bytes=32 * 1024 * 1024),
    )(x2d, w1t, p["g1"].reshape(1, cin), p["b1"].reshape(1, cin),
      w2, p["g2"].reshape(1, cin), p["b2"].reshape(1, cin),
      w3p, g3p, b3p)

    y3 = out[:, :cout]                                # drop padded lanes
    return jnp.transpose(y3.reshape(n, h, w, cout), (0, 3, 1, 2))   # NHWC -> NCHW


# ---------------------------------------------------------------------------
# Pure-JAX reference (lax convs, NCHW) for correctness checking
# ---------------------------------------------------------------------------
def reference_forward(x, p):
    def bn_lrelu(y, g, b):
        mean = y.mean(axis=(0, 2, 3), keepdims=True)
        var = ((y - mean) ** 2).mean(axis=(0, 2, 3), keepdims=True)
        z = (y - mean) / jnp.sqrt(var + EPS) * g.reshape(1, -1, 1, 1) + b.reshape(1, -1, 1, 1)
        return jnp.where(z >= 0, z, NEG_SLOPE * z)

    dn = ("NCHW", "OIHW", "NCHW")
    hp = jax.lax.Precision.HIGHEST
    y = jax.lax.conv_general_dilated(x, p["w1"], (1, 1), "VALID",
                                     dimension_numbers=dn, precision=hp)
    y = bn_lrelu(y, p["g1"], p["b1"])
    y = jax.lax.conv_general_dilated(y, p["w2"], (1, 1), ((1, 1), (1, 1)),
                                     dimension_numbers=dn,
                                     feature_group_count=y.shape[1], precision=hp)
    y = bn_lrelu(y, p["g2"], p["b2"])
    y = jax.lax.conv_general_dilated(y, p["w3"], (1, 1), "VALID",
                                     dimension_numbers=dn, precision=hp)
    y = bn_lrelu(y, p["g3"], p["b3"])
    return y


if __name__ == "__main__":
    cin, cout = 32, 64
    n, h, w = 2, 16, 16

    key = jax.random.PRNGKey(0)
    ks = jax.random.split(key, 10)
    params = {
        "w1": jax.random.normal(ks[0], (cin, cin, 1, 1), jnp.float32) * (1.0 / cin ** 0.5),
        "g1": 1.0 + 0.1 * jax.random.normal(ks[1], (cin,), jnp.float32),
        "b1": 0.1 * jax.random.normal(ks[2], (cin,), jnp.float32),
        "w2": jax.random.normal(ks[3], (cin, 1, 3, 3), jnp.float32) * (1.0 / 3.0),
        "g2": 1.0 + 0.1 * jax.random.normal(ks[4], (cin,), jnp.float32),
        "b2": 0.1 * jax.random.normal(ks[5], (cin,), jnp.float32),
        "w3": jax.random.normal(ks[6], (cout, cin, 1, 1), jnp.float32) * (1.0 / cin ** 0.5),
        "g3": 1.0 + 0.1 * jax.random.normal(ks[7], (cout,), jnp.float32),
        "b3": 0.1 * jax.random.normal(ks[8], (cout,), jnp.float32),
    }
    x = jax.random.normal(ks[9], (n, cin, h, w), jnp.float32)

    out = jax.jit(bottleneck_forward)(x, params)
    out = jax.block_until_ready(out)
    assert out.shape == (n, cout, h, w) and out.dtype == jnp.float32

    ref = jax.block_until_ready(reference_forward(x, params))
    assert jnp.allclose(out, ref, rtol=5e-2, atol=5e-2), (
        f"max abs err = {float(jnp.max(jnp.abs(out - ref)))}")

    print("KERNEL_OK")
</pallas_src>

<mosaic_0001>
module attributes {stable_mosaic.version = 11 : i64} {
  func.func @_bottleneck_kernel(%arg0: memref<512x32xf32, #tpu.memory_space<vmem>>, %arg1: memref<32x32xf32, #tpu.memory_space<vmem>>, %arg2: memref<1x32xf32, #tpu.memory_space<vmem>>, %arg3: memref<1x32xf32, #tpu.memory_space<vmem>>, %arg4: memref<9x32xf32, #tpu.memory_space<vmem>>, %arg5: memref<1x32xf32, #tpu.memory_space<vmem>>, %arg6: memref<1x32xf32, #tpu.memory_space<vmem>>, %arg7: memref<32x128xf32, #tpu.memory_space<vmem>>, %arg8: memref<1x128xf32, #tpu.memory_space<vmem>>, %arg9: memref<1x128xf32, #tpu.memory_space<vmem>>, %arg10: memref<512x128xf32, #tpu.memory_space<vmem>>, %arg11: memref<2x18x18x32xf32, #tpu.memory_space<vmem>>) attributes {dimension_semantics = [], scalar_prefetch = 0 : i64, scratch_operands = 1 : i64, tpu.core_type = #tpu.core_type<tc>} {
    %c0 = arith.constant 0 : index
    %c0_0 = arith.constant 0 : index
    %0 = vector.load %arg0[%c0, %c0_0] : memref<512x32xf32, #tpu.memory_space<vmem>>, vector<512x32xf32>
    %1 = arith.truncf %0 : vector<512x32xf32> to vector<512x32xbf16>
    %c0_1 = arith.constant 0 : index
    %c0_2 = arith.constant 0 : index
    %2 = vector.load %arg1[%c0_1, %c0_2] : memref<32x32xf32, #tpu.memory_space<vmem>>, vector<32x32xf32>
    %3 = arith.truncf %2 : vector<32x32xf32> to vector<32x32xbf16>
    %cst = arith.constant dense<0.000000e+00> : vector<512x32xf32>
    %4 = tpu.matmul %1, %3, %cst {dimension_numbers = #tpu.dot_dimension_numbers<[1], [0], [0], [1], [0, 0, 1, 1], [], []>} : vector<512x32xbf16>, vector<32x32xbf16>, vector<512x32xf32> -> vector<512x32xf32>
    %c0_3 = arith.constant 0 : index
    %c0_4 = arith.constant 0 : index
    %5 = vector.load %arg2[%c0_3, %c0_4] : memref<1x32xf32, #tpu.memory_space<vmem>>, vector<1x32xf32>
    %c0_5 = arith.constant 0 : index
    %c0_6 = arith.constant 0 : index
    %6 = vector.load %arg3[%c0_5, %c0_6] : memref<1x32xf32, #tpu.memory_space<vmem>>, vector<1x32xf32>
    %cst_7 = arith.constant dense<0.000000e+00> : vector<32xf32>
    %7 = vector.multi_reduction <add>, %4, %cst_7 [0] : vector<512x32xf32> to vector<32xf32>
    %8 = vector.shape_cast %7 : vector<32xf32> to vector<1x32xf32>
    %9 = arith.mulf %4, %4 : vector<512x32xf32>
    %cst_8 = arith.constant dense<0.000000e+00> : vector<32xf32>
    %10 = vector.multi_reduction <add>, %9, %cst_8 [0] : vector<512x32xf32> to vector<32xf32>
    %11 = vector.shape_cast %10 : vector<32xf32> to vector<1x32xf32>
    %cst_9 = arith.constant 0.001953125 : f32
    %12 = vector.broadcast %cst_9 : f32 to vector<1x32xf32>
    %13 = arith.mulf %8, %12 : vector<1x32xf32>
    %cst_10 = arith.constant 0.001953125 : f32
    %14 = vector.broadcast %cst_10 : f32 to vector<1x32xf32>
    %15 = arith.mulf %11, %14 : vector<1x32xf32>
    %16 = arith.mulf %13, %13 : vector<1x32xf32>
    %17 = arith.subf %15, %16 : vector<1x32xf32>
    %cst_11 = arith.constant 0.000000e+00 : f32
    %18 = vector.broadcast %cst_11 : f32 to vector<1x32xf32>
    %19 = arith.maximumf %17, %18 : vector<1x32xf32>
    %20 = vector.broadcast %13 : vector<1x32xf32> to vector<512x32xf32>
    %21 = arith.subf %4, %20 : vector<512x32xf32>
    %cst_12 = arith.constant 9.99999974E-6 : f32
    %22 = vector.broadcast %cst_12 : f32 to vector<1x32xf32>
    %23 = arith.addf %19, %22 : vector<1x32xf32>
    %24 = math.rsqrt %23 : vector<1x32xf32>
    %25 = vector.broadcast %24 : vector<1x32xf32> to vector<512x32xf32>
    %26 = arith.mulf %21, %25 : vector<512x32xf32>
    %27 = vector.broadcast %5 : vector<1x32xf32> to vector<512x32xf32>
    %28 = arith.mulf %26, %27 : vector<512x32xf32>
    %29 = vector.broadcast %6 : vector<1x32xf32> to vector<512x32xf32>
    %30 = arith.addf %28, %29 : vector<512x32xf32>
    %cst_13 = arith.constant 0.000000e+00 : f32
    %31 = vector.broadcast %cst_13 : f32 to vector<512x32xf32>
    %32 = arith.cmpf oge, %30, %31 : vector<512x32xf32>
    %cst_14 = arith.constant 0.00999999977 : f32
    %33 = vector.broadcast %cst_14 : f32 to vector<512x32xf32>
    %34 = arith.mulf %33, %30 : vector<512x32xf32>
    %35 = arith.select %32, %30, %34 : vector<512x32xi1>, vector<512x32xf32>
    %cst_15 = arith.constant 0.000000e+00 : f32
    %36 = vector.broadcast %cst_15 : f32 to vector<2x18x18x32xf32>
    %c0_16 = arith.constant 0 : index
    %c0_17 = arith.constant 0 : index
    %c0_18 = arith.constant 0 : index
    %c0_19 = arith.constant 0 : index
    %37 = vector.load %arg11[%c0_16, %c0_17, %c0_18, %c0_19] : memref<2x18x18x32xf32, #tpu.memory_space<vmem>>, vector<2x18x18x32xf32>
    tpu.vector_store %arg11[%c0_16, %c0_17, %c0_18, %c0_19], %36 {strides = array<i32>} : memref<2x18x18x32xf32, #tpu.memory_space<vmem>>, vector<2x18x18x32xf32>,
    %38 = vector.shape_cast %35 : vector<512x32xf32> to vector<2x16x16x32xf32>
    %c0_20 = arith.constant 0 : index
    %c1 = arith.constant 1 : index
    %c1_21 = arith.constant 1 : index
    %c0_22 = arith.constant 0 : index
    %39 = vector.load %arg11[%c0_20, %c1, %c1_21, %c0_22] : memref<2x18x18x32xf32, #tpu.memory_space<vmem>>, vector<2x16x16x32xf32>
    tpu.vector_store %arg11[%c0_20, %c1, %c1_21, %c0_22], %38 {strides = array<i32>} : memref<2x18x18x32xf32, #tpu.memory_space<vmem>>, vector<2x16x16x32xf32>,
    %c0_23 = arith.constant 0 : index
    %c0_24 = arith.constant 0 : index
    %40 = vector.load %arg4[%c0_23, %c0_24] : memref<9x32xf32, #tpu.memory_space<vmem>>, vector<1x32xf32>
    %41 = vector.shape_cast %40 : vector<1x32xf32> to vector<32xf32>
    %c1_25 = arith.constant 1 : index
    %c0_26 = arith.constant 0 : index
    %42 = vector.load %arg4[%c1_25, %c0_26] : memref<9x32xf32, #tpu.memory_space<vmem>>, vector<1x32xf32>
    %43 = vector.shape_cast %42 : vector<1x32xf32> to vector<32xf32>
    %c2 = arith.constant 2 : index
    %c0_27 = arith.constant 0 : index
    %44 = vector.load %arg4[%c2, %c0_27] : memref<9x32xf32, #tpu.memory_space<vmem>>, vector<1x32xf32>
    %45 = vector.shape_cast %44 : vector<1x32xf32> to vector<32xf32>
    %c3 = arith.constant 3 : index
    %c0_28 = arith.constant 0 : index
    %46 = vector.load %arg4[%c3, %c0_28] : memref<9x32xf32, #tpu.memory_space<vmem>>, vector<1x32xf32>
    %47 = vector.shape_cast %46 : vector<1x32xf32> to vector<32xf32>
    %c4 = arith.constant 4 : index
    %c0_29 = arith.constant 0 : index
    %48 = vector.load %arg4[%c4, %c0_29] : memref<9x32xf32, #tpu.memory_space<vmem>>, vector<1x32xf32>
    %49 = vector.shape_cast %48 : vector<1x32xf32> to vector<32xf32>
    %c5 = arith.constant 5 : index
    %c0_30 = arith.constant 0 : index
    %50 = vector.load %arg4[%c5, %c0_30] : memref<9x32xf32, #tpu.memory_space<vmem>>, vector<1x32xf32>
    %51 = vector.shape_cast %50 : vector<1x32xf32> to vector<32xf32>
    %c6 = arith.constant 6 : index
    %c0_31 = arith.constant 0 : index
    %52 = vector.load %arg4[%c6, %c0_31] : memref<9x32xf32, #tpu.memory_space<vmem>>, vector<1x32xf32>
    %53 = vector.shape_cast %52 : vector<1x32xf32> to vector<32xf32>
    %c7 = arith.constant 7 : index
    %c0_32 = arith.constant 0 : index
    %54 = vector.load %arg4[%c7, %c0_32] : memref<9x32xf32, #tpu.memory_space<vmem>>, vector<1x32xf32>
    %55 = vector.shape_cast %54 : vector<1x32xf32> to vector<32xf32>
    %c8 = arith.constant 8 : index
    %c0_33 = arith.constant 0 : index
    %56 = vector.load %arg4[%c8, %c0_33] : memref<9x32xf32, #tpu.memory_space<vmem>>, vector<1x32xf32>
    %57 = vector.shape_cast %56 : vector<1x32xf32> to vector<32xf32>
    %c0_34 = arith.constant 0 : index
    %c0_35 = arith.constant 0 : index
    %c0_36 = arith.constant 0 : index
    %c0_37 = arith.constant 0 : index
    %58 = vector.load %arg11[%c0_34, %c0_35, %c0_36, %c0_37] : memref<2x18x18x32xf32, #tpu.memory_space<vmem>>, vector<2x16x16x32xf32>
    %59 = vector.shape_cast %41 : vector<32xf32> to vector<1x1x1x32xf32>
    %60 = vector.broadcast %59 : vector<1x1x1x32xf32> to vector<2x16x16x32xf32>
    %61 = arith.mulf %58, %60 : vector<2x16x16x32xf32>
    %c0_38 = arith.constant 0 : index
    %c0_39 = arith.constant 0 : index
    %c1_40 = arith.constant 1 : index
    %c0_41 = arith.constant 0 : index
    %62 = vector.load %arg11[%c0_38, %c0_39, %c1_40, %c0_41] : memref<2x18x18x32xf32, #tpu.memory_space<vmem>>, vector<2x16x16x32xf32>
    %63 = vector.shape_cast %43 : vector<32xf32> to vector<1x1x1x32xf32>
    %64 = vector.broadcast %63 : vector<1x1x1x32xf32> to vector<2x16x16x32xf32>
    %65 = arith.mulf %62, %64 : vector<2x16x16x32xf32>
    %66 = arith.addf %61, %65 : vector<2x16x16x32xf32>
    %c0_42 = arith.constant 0 : index
    %c0_43 = arith.constant 0 : index
    %c2_44 = arith.constant 2 : index
    %c0_45 = arith.constant 0 : index
    %67 = vector.load %arg11[%c0_42, %c0_43, %c2_44, %c0_45] : memref<2x18x18x32xf32, #tpu.memory_space<vmem>>, vector<2x16x16x32xf32>
    %68 = vector.shape_cast %45 : vector<32xf32> to vector<1x1x1x32xf32>
    %69 = vector.broadcast %68 : vector<1x1x1x32xf32> to vector<2x16x16x32xf32>
    %70 = arith.mulf %67, %69 : vector<2x16x16x32xf32>
    %71 = arith.addf %66, %70 : vector<2x16x16x32xf32>
    %c0_46 = arith.constant 0 : index
    %c1_47 = arith.constant 1 : index
    %c0_48 = arith.constant 0 : index
    %c0_49 = arith.constant 0 : index
    %72 = vector.load %arg11[%c0_46, %c1_47, %c0_48, %c0_49] : memref<2x18x18x32xf32, #tpu.memory_space<vmem>>, vector<2x16x16x32xf32>
    %73 = vector.shape_cast %47 : vector<32xf32> to vector<1x1x1x32xf32>
    %74 = vector.broadcast %73 : vector<1x1x1x32xf32> to vector<2x16x16x32xf32>
    %75 = arith.mulf %72, %74 : vector<2x16x16x32xf32>
    %76 = arith.addf %71, %75 : vector<2x16x16x32xf32>
    %c0_50 = arith.constant 0 : index
    %c1_51 = arith.constant 1 : index
    %c1_52 = arith.constant 1 : index
    %c0_53 = arith.constant 0 : index
    %77 = vector.load %arg11[%c0_50, %c1_51, %c1_52, %c0_53] : memref<2x18x18x32xf32, #tpu.memory_space<vmem>>, vector<2x16x16x32xf32>
    %78 = vector.shape_cast %49 : vector<32xf32> to vector<1x1x1x32xf32>
    %79 = vector.broadcast %78 : vector<1x1x1x32xf32> to vector<2x16x16x32xf32>
    %80 = arith.mulf %77, %79 : vector<2x16x16x32xf32>
    %81 = arith.addf %76, %80 : vector<2x16x16x32xf32>
    %c0_54 = arith.constant 0 : index
    %c1_55 = arith.constant 1 : index
    %c2_56 = arith.constant 2 : index
    %c0_57 = arith.constant 0 : index
    %82 = vector.load %arg11[%c0_54, %c1_55, %c2_56, %c0_57] : memref<2x18x18x32xf32, #tpu.memory_space<vmem>>, vector<2x16x16x32xf32>
    %83 = vector.shape_cast %51 : vector<32xf32> to vector<1x1x1x32xf32>
    %84 = vector.broadcast %83 : vector<1x1x1x32xf32> to vector<2x16x16x32xf32>
    %85 = arith.mulf %82, %84 : vector<2x16x16x32xf32>
    %86 = arith.addf %81, %85 : vector<2x16x16x32xf32>
    %c0_58 = arith.constant 0 : index
    %c2_59 = arith.constant 2 : index
    %c0_60 = arith.constant 0 : index
    %c0_61 = arith.constant 0 : index
    %87 = vector.load %arg11[%c0_58, %c2_59, %c0_60, %c0_61] : memref<2x18x18x32xf32, #tpu.memory_space<vmem>>, vector<2x16x16x32xf32>
    %88 = vector.shape_cast %53 : vector<32xf32> to vector<1x1x1x32xf32>
    %89 = vector.broadcast %88 : vector<1x1x1x32xf32> to vector<2x16x16x32xf32>
    %90 = arith.mulf %87, %89 : vector<2x16x16x32xf32>
    %91 = arith.addf %86, %90 : vector<2x16x16x32xf32>
    %c0_62 = arith.constant 0 : index
    %c2_63 = arith.constant 2 : index
    %c1_64 = arith.constant 1 : index
    %c0_65 = arith.constant 0 : index
    %92 = vector.load %arg11[%c0_62, %c2_63, %c1_64, %c0_65] : memref<2x18x18x32xf32, #tpu.memory_space<vmem>>, vector<2x16x16x32xf32>
    %93 = vector.shape_cast %55 : vector<32xf32> to vector<1x1x1x32xf32>
    %94 = vector.broadcast %93 : vector<1x1x1x32xf32> to vector<2x16x16x32xf32>
    %95 = arith.mulf %92, %94 : vector<2x16x16x32xf32>
    %96 = arith.addf %91, %95 : vector<2x16x16x32xf32>
    %c0_66 = arith.constant 0 : index
    %c2_67 = arith.constant 2 : index
    %c2_68 = arith.constant 2 : index
    %c0_69 = arith.constant 0 : index
    %97 = vector.load %arg11[%c0_66, %c2_67, %c2_68, %c0_69] : memref<2x18x18x32xf32, #tpu.memory_space<vmem>>, vector<2x16x16x32xf32>
    %98 = vector.shape_cast %57 : vector<32xf32> to vector<1x1x1x32xf32>
    %99 = vector.broadcast %98 : vector<1x1x1x32xf32> to vector<2x16x16x32xf32>
    %100 = arith.mulf %97, %99 : vector<2x16x16x32xf32>
    %101 = arith.addf %96, %100 : vector<2x16x16x32xf32>
    %102 = vector.shape_cast %101 : vector<2x16x16x32xf32> to vector<512x32xf32>
    %c0_70 = arith.constant 0 : index
    %c0_71 = arith.constant 0 : index
    %103 = vector.load %arg5[%c0_70, %c0_71] : memref<1x32xf32, #tpu.memory_space<vmem>>, vector<1x32xf32>
    %c0_72 = arith.constant 0 : index
    %c0_73 = arith.constant 0 : index
    %104 = vector.load %arg6[%c0_72, %c0_73] : memref<1x32xf32, #tpu.memory_space<vmem>>, vector<1x32xf32>
    %cst_74 = arith.constant dense<0.000000e+00> : vector<32xf32>
    %105 = vector.multi_reduction <add>, %102, %cst_74 [0] : vector<512x32xf32> to vector<32xf32>
    %106 = vector.shape_cast %105 : vector<32xf32> to vector<1x32xf32>
    %107 = arith.mulf %102, %102 : vector<512x32xf32>
    %cst_75 = arith.constant dense<0.000000e+00> : vector<32xf32>
    %108 = vector.multi_reduction <add>, %107, %cst_75 [0] : vector<512x32xf32> to vector<32xf32>
    %109 = vector.shape_cast %108 : vector<32xf32> to vector<1x32xf32>
    %cst_76 = arith.constant 0.001953125 : f32
    %110 = vector.broadcast %cst_76 : f32 to vector<1x32xf32>
    %111 = arith.mulf %106, %110 : vector<1x32xf32>
    %cst_77 = arith.constant 0.001953125 : f32
    %112 = vector.broadcast %cst_77 : f32 to vector<1x32xf32>
    %113 = arith.mulf %109, %112 : vector<1x32xf32>
    %114 = arith.mulf %111, %111 : vector<1x32xf32>
    %115 = arith.subf %113, %114 : vector<1x32xf32>
    %cst_78 = arith.constant 0.000000e+00 : f32
    %116 = vector.broadcast %cst_78 : f32 to vector<1x32xf32>
    %117 = arith.maximumf %115, %116 : vector<1x32xf32>
    %118 = vector.broadcast %111 : vector<1x32xf32> to vector<512x32xf32>
    %119 = arith.subf %102, %118 : vector<512x32xf32>
    %cst_79 = arith.constant 9.99999974E-6 : f32
    %120 = vector.broadcast %cst_79 : f32 to vector<1x32xf32>
    %121 = arith.addf %117, %120 : vector<1x32xf32>
    %122 = math.rsqrt %121 : vector<1x32xf32>
    %123 = vector.broadcast %122 : vector<1x32xf32> to vector<512x32xf32>
    %124 = arith.mulf %119, %123 : vector<512x32xf32>
    %125 = vector.broadcast %103 : vector<1x32xf32> to vector<512x32xf32>
    %126 = arith.mulf %124, %125 : vector<512x32xf32>
    %127 = vector.broadcast %104 : vector<1x32xf32> to vector<512x32xf32>
    %128 = arith.addf %126, %127 : vector<512x32xf32>
    %cst_80 = arith.constant 0.000000e+00 : f32
    %129 = vector.broadcast %cst_80 : f32 to vector<512x32xf32>
    %130 = arith.cmpf oge, %128, %129 : vector<512x32xf32>
    %cst_81 = arith.constant 0.00999999977 : f32
    %131 = vector.broadcast %cst_81 : f32 to vector<512x32xf32>
    %132 = arith.mulf %131, %128 : vector<512x32xf32>
    %133 = arith.select %130, %128, %132 : vector<512x32xi1>, vector<512x32xf32>
    %134 = arith.truncf %133 : vector<512x32xf32> to vector<512x32xbf16>
    %c0_82 = arith.constant 0 : index
    %c0_83 = arith.constant 0 : index
    %135 = vector.load %arg7[%c0_82, %c0_83] : memref<32x128xf32, #tpu.memory_space<vmem>>, vector<32x128xf32>
    %136 = arith.truncf %135 : vector<32x128xf32> to vector<32x128xbf16>
    %cst_84 = arith.constant dense<0.000000e+00> : vector<512x128xf32>
    %137 = tpu.matmul %134, %136, %cst_84 {dimension_numbers = #tpu.dot_dimension_numbers<[1], [0], [0], [1], [0, 0, 1, 1], [], []>} : vector<512x32xbf16>, vector<32x128xbf16>, vector<512x128xf32> -> vector<512x128xf32>
    %c0_85 = arith.constant 0 : index
    %c0_86 = arith.constant 0 : index
    %138 = vector.load %arg8[%c0_85, %c0_86] : memref<1x128xf32, #tpu.memory_space<vmem>>, vector<1x128xf32>
    %c0_87 = arith.constant 0 : index
    %c0_88 = arith.constant 0 : index
    %139 = vector.load %arg9[%c0_87, %c0_88] : memref<1x128xf32, #tpu.memory_space<vmem>>, vector<1x128xf32>
    %cst_89 = arith.constant dense<0.000000e+00> : vector<128xf32>
    %140 = vector.multi_reduction <add>, %137, %cst_89 [0] : vector<512x128xf32> to vector<128xf32>
    %141 = vector.shape_cast %140 : vector<128xf32> to vector<1x128xf32>
    %142 = arith.mulf %137, %137 : vector<512x128xf32>
    %cst_90 = arith.constant dense<0.000000e+00> : vector<128xf32>
    %143 = vector.multi_reduction <add>, %142, %cst_90 [0] : vector<512x128xf32> to vector<128xf32>
    %144 = vector.shape_cast %143 : vector<128xf32> to vector<1x128xf32>
    %cst_91 = arith.constant 0.001953125 : f32
    %145 = vector.broadcast %cst_91 : f32 to vector<1x128xf32>
    %146 = arith.mulf %141, %145 : vector<1x128xf32>
    %cst_92 = arith.constant 0.001953125 : f32
    %147 = vector.broadcast %cst_92 : f32 to vector<1x128xf32>
    %148 = arith.mulf %144, %147 : vector<1x128xf32>
    %149 = arith.mulf %146, %146 : vector<1x128xf32>
    %150 = arith.subf %148, %149 : vector<1x128xf32>
    %cst_93 = arith.constant 0.000000e+00 : f32
    %151 = vector.broadcast %cst_93 : f32 to vector<1x128xf32>
    %152 = arith.maximumf %150, %151 : vector<1x128xf32>
    %153 = vector.broadcast %146 : vector<1x128xf32> to vector<512x128xf32>
    %154 = arith.subf %137, %153 : vector<512x128xf32>
    %cst_94 = arith.constant 9.99999974E-6 : f32
    %155 = vector.broadcast %cst_94 : f32 to vector<1x128xf32>
    %156 = arith.addf %152, %155 : vector<1x128xf32>
    %157 = math.rsqrt %156 : vector<1x128xf32>
    %158 = vector.broadcast %157 : vector<1x128xf32> to vector<512x128xf32>
    %159 = arith.mulf %154, %158 : vector<512x128xf32>
    %160 = vector.broadcast %138 : vector<1x128xf32> to vector<512x128xf32>
    %161 = arith.mulf %159, %160 : vector<512x128xf32>
    %162 = vector.broadcast %139 : vector<1x128xf32> to vector<512x128xf32>
    %163 = arith.addf %161, %162 : vector<512x128xf32>
    %cst_95 = arith.constant 0.000000e+00 : f32
    %164 = vector.broadcast %cst_95 : f32 to vector<512x128xf32>
    %165 = arith.cmpf oge, %163, %164 : vector<512x128xf32>
    %cst_96 = arith.constant 0.00999999977 : f32
    %166 = vector.broadcast %cst_96 : f32 to vector<512x128xf32>
    %167 = arith.mulf %166, %163 : vector<512x128xf32>
    %168 = arith.select %165, %163, %167 : vector<512x128xi1>, vector<512x128xf32>
    %c0_97 = arith.constant 0 : index
    %c0_98 = arith.constant 0 : index
    %169 = vector.load %arg10[%c0_97, %c0_98] : memref<512x128xf32, #tpu.memory_space<vmem>>, vector<512x128xf32>
    tpu.vector_store %arg10[%c0_97, %c0_98], %168 {strides = array<i32>} : memref<512x128xf32, #tpu.memory_space<vmem>>, vector<512x128xf32>,
    return
  }
}

</mosaic_0001>

<bundles_post_ra>
// kernel: bottleneck_forward.1
= control target key start
LH: loop header
LB: loop body
LE: loop exit
PB: predicated region body
PF: predicated region fallthrough
CT: control target
= control target key end

     0   :  { %15 = vsyncpa [#allocation4], 0  ;;  %s11825_s0 = inlined_call_operand.hbm [shape: f32[512,32], index: 0, kind: input, shape index: {}]   ;;  %s11826_s1 = inlined_call_operand.vmem [shape: f32[32,32], index: 1, kind: input, shape index: {}]   ;;  %s11827_s2 = inlined_call_operand.vmem [shape: f32[1,32], index: 2, kind: input, shape index: {}]   ;;  %s11828_s3 = inlined_call_operand.vmem [shape: f32[1,32], index: 3, kind: input, shape index: {}]   ;;  %s11829_s4 = inlined_call_operand.vmem [shape: f32[9,32], index: 4, kind: input, shape index: {}]   ;;  %s11830_s5 = inlined_call_operand.vmem [shape: f32[1,32], index: 5, kind: input, shape index: {}]   ;;  %s11831_s6 = inlined_call_operand.vmem [shape: f32[1,32], index: 6, kind: input, shape index: {}]   ;;  %s11832_s7 = inlined_call_operand.vmem [shape: f32[32,128], index: 7, kind: input, shape index: {}]   ;;  %s11833_s8 = inlined_call_operand.vmem [shape: f32[1,128], index: 8, kind: input, shape index: {}]   ;;  %s11834_s9 = inlined_call_operand.vmem [shape: f32[1,128], index: 9, kind: input, shape index: {}]   ;;  %s11835_s10 = inlined_call_operand.hbm [shape: f32[512,128], index: 10, kind: output, shape index: {}]  }
   0x1   :  { %16 = vsyncpa [#allocation5], 0  ;;  %s21_s15 = sshll.u32 %s11825_s0, 4  ;;  %s5124_s16 = smov [#allocation3]   ;;  %s22_s15 = int_to_ptr.hbm [resolvable:$true] %s21_s15 }
   0x2   :  { %s23_s17 = sshll.u32 %s5124_s16, 4  ;;  %s5125_s18 = smov 128   ;;  %s24_s17 = int_to_ptr.vmem [resolvable:$true] %s23_s17 }
   0x3   :  { %s5126_s19 = smov 8  }
   0x4   :  { %29 = dma.hbm_to_vmem [thread:$0]  %s22_s15, 8192, %s24_s17, [#allocation4], %s5125_s18, %s5125_s18, %s5126_s19  }
   0x5   :  { %5120 = dma.done.wait [#allocation4], 8192  }
   0x6   :  { %5121 = vsyncadd [#allocation4], 4294959104  ;;  %v151_v0 = vld [vmem:[%s11826_s1 + $0x10] sm:$0xff]  ;;  %v152_v1 = vld [vmem:[%s11826_s1 + $0x18] sm:$0xff]  ;;  %vm155_vm0 = vcmask 261120   ;;  %v5127_v45 = vmov 0.0  }
   0x7   :  { %v149_v2 = vld [vmem:[%s11826_s1] sm:$0xff]  ;;  %v154_v3 = vpack.c.bf16 %v152_v1, %v151_v0  ;;  %v150_v4 = vld [vmem:[%s11826_s1 + $0x8] sm:$0xff]  ;;  %v55_v9 = vld [vmem:[#allocation3 + $0x10] sm:$0xff]  ;;  %1227 = vst.msk [vmem:[#allocation2 + $0x18] sm:$0xff] %vm155_vm0, %v5127_v45  ;;  %vm1225_vm1 = vcmask 254976   ;;  %s4929_s24 = sshll.u32 %s11835_s10, 4  ;;  %s4930_s24 = int_to_ptr.hbm [resolvable:$true] %s4929_s24 }
   0x8   :  { %v53_v5 = vld [vmem:[#allocation3] sm:$0xff]  ;;  %v153_v6 = vpack.c.bf16 %v150_v4, %v149_v2  ;;  %v54_v7 = vld [vmem:[#allocation3 + $0x8] sm:$0xff]  ;;  %v56_v10 = vld [vmem:[#allocation3 + $0x18] sm:$0xff]  ;;  %1228 = vst.msk [vmem:[#allocation2 + $0x20] sm:$0xff] %vm155_vm0, %v5127_v45 }
   0x9   :  { %258 = vmatpush.bf16.msra.mxu0 %v154_v3  ;;  %5006 = vmatpush.bf16.msra.mxu2 %v154_v3  ;;  %v117_v8 = vpack.c.bf16 %v54_v7, %v53_v5  ;;  %v118_v11 = vpack.c.bf16 %v56_v10, %v55_v9  ;;  %v85_v12 = vld [vmem:[#allocation3 + $0x100] sm:$0xff]  ;;  %v86_v13 = vld [vmem:[#allocation3 + $0x108] sm:$0xff]  ;;  %v87_v18 = vld [vmem:[#allocation3 + $0x110] sm:$0xff]  ;;  %1223 = vst.msk [vmem:[#allocation2] sm:$0xff] %vm155_vm0, %v5127_v45 }
   0xa   :  { %v133_v14 = vpack.c.bf16 %v86_v13, %v85_v12  ;;  %v57_v15 = vld [vmem:[#allocation3 + $0x20] sm:$0xff]  ;;  %v58_v16 = vld [vmem:[#allocation3 + $0x28] sm:$0xff]  ;;  %v88_v19 = vld [vmem:[#allocation3 + $0x118] sm:$0xff]  ;;  %1224 = vst.msk [vmem:[#allocation2 + $0x8] sm:$0xff] %vm155_vm0, %v5127_v45 }
   0xb   :  { %v119_v17 = vpack.c.bf16 %v58_v16, %v57_v15  ;;  %v134_v20 = vpack.c.bf16 %v88_v19, %v87_v18  ;;  %v59_v21 = vld [vmem:[#allocation3 + $0x30] sm:$0xff]  ;;  %v60_v22 = vld [vmem:[#allocation3 + $0x38] sm:$0xff]  ;;  %v89_v24 = vld [vmem:[#allocation3 + $0x120] sm:$0xff]  ;;  %1230 = vst.msk [vmem:[#allocation2 + $0x30] sm:$0xff] %vm155_vm0, %v5127_v45 }
   0xc   :  { %v120_v23 = vpack.c.bf16 %v60_v22, %v59_v21  ;;  %v90_v25 = vld [vmem:[#allocation3 + $0x128] sm:$0xff]  ;;  %v61_v27 = vld [vmem:[#allocation3 + $0x40] sm:$0xff]  ;;  %v91_v30 = vld [vmem:[#allocation3 + $0x130] sm:$0xff]  ;;  %1231 = vst.msk [vmem:[#allocation2 + $0x38] sm:$0xff] %vm155_vm0, %v5127_v45 }
   0xd   :  { %259 = vmatpush.bf16.msra.mxu0 %v153_v6  ;;  %5007 = vmatpush.bf16.msra.mxu2 %v153_v6  ;;  %v135_v26 = vpack.c.bf16 %v90_v25, %v89_v24  ;;  %v62_v28 = vld [vmem:[#allocation3 + $0x48] sm:$0xff]  ;;  %v92_v31 = vld [vmem:[#allocation3 + $0x138] sm:$0xff]  ;;  %v63_v33 = vld [vmem:[#allocation3 + $0x50] sm:$0xff]  ;;  %1233 = vst.msk [vmem:[#allocation2 + $0x48] sm:$0xff] %vm155_vm0, %v5127_v45 }
   0xe   :  { %v121_v29 = vpack.c.bf16 %v62_v28, %v61_v27  ;;  %v136_v32 = vpack.c.bf16 %v92_v31, %v91_v30  ;;  %v64_v34 = vld [vmem:[#allocation3 + $0x58] sm:$0xff]  ;;  %v93_v36 = vld [vmem:[#allocation3 + $0x140] sm:$0xff]  ;;  %v94_v37 = vld [vmem:[#allocation3 + $0x148] sm:$0xff]  ;;  %1234 = vst.msk [vmem:[#allocation2 + $0x50] sm:$0xff] %vm155_vm0, %v5127_v45 }
   0xf   :  { %v122_v35 = vpack.c.bf16 %v64_v34, %v63_v33  ;;  %v137_v38 = vpack.c.bf16 %v94_v37, %v93_v36  ;;  %v65_v39 = vld [vmem:[#allocation3 + $0x60] sm:$0xff]  ;;  %v66_v40 = vld [vmem:[#allocation3 + $0x68] sm:$0xff]  ;;  %v95_v42 = vld [vmem:[#allocation3 + $0x150] sm:$0xff]  ;;  %1236 = vst.msk [vmem:[#allocation2 + $0x60] sm:$0xff] %vm155_vm0, %v5127_v45 }
  0x10   :  { %4942 = vmatmul.msk.bf16.vlgmr.msra.gmra.mxu0 %vm155_vm0, %v117_v8  ;;  %4958 = vmatmul.msk.bf16.vlgmr.msra.gmra.mxu2 %vm155_vm0, %v133_v14  ;;  %v123_v41 = vpack.c.bf16 %v66_v40, %v65_v39  ;;  %v96_v43 = vld [vmem:[#allocation3 + $0x158] sm:$0xff]  ;;  %v67_v46 = vld [vmem:[#allocation3 + $0x70] sm:$0xff]  ;;  %1237 = vst.msk [vmem:[#allocation2 + $0x68] sm:$0xff] %vm155_vm0, %v5127_v45  ;;  %v97_v49 = vld [vmem:[#allocation3 + $0x160] sm:$0xff] }
  0x11   :  { %v138_v44 = vpack.c.bf16 %v96_v43, %v95_v42  ;;  %v68_v47 = vld [vmem:[#allocation3 + $0x78] sm:$0xff]  ;;  %1239 = vst.msk [vmem:[#allocation2 + $0x78] sm:$0xff] %vm155_vm0, %v5127_v45  ;;  %v98_v50 = vld [vmem:[#allocation3 + $0x168] sm:$0xff]  ;;  %v69_v52 = vld [vmem:[#allocation3 + $0x80] sm:$0xff] }
  0x12   :  { %v124_v48 = vpack.c.bf16 %v68_v47, %v67_v46  ;;  %1240 = vst.msk [vmem:[#allocation2 + $0x80] sm:$0xff] %vm155_vm0, %v5127_v45  ;;  %v139_v51 = vpack.c.bf16 %v98_v50, %v97_v49  ;;  %v70_v53 = vld [vmem:[#allocation3 + $0x88] sm:$0xff]  ;;  %v99_v56 = vld [vmem:[#allocation3 + $0x170] sm:$0xff]  ;;  %v100_v57 = vld [vmem:[#allocation3 + $0x178] sm:$0xff] }
  0x13   :  { %1242 = vst.msk [vmem:[#allocation2 + $0x90] sm:$0xff] %vm155_vm0, %v5127_v45  ;;  %v125_v54 = vpack.c.bf16 %v70_v53, %v69_v52  ;;  %v140_v58 = vpack.c.bf16 %v100_v57, %v99_v56  ;;  %v71_v60 = vld [vmem:[#allocation3 + $0x90] sm:$0xff]  ;;  %v72_v61 = vld [vmem:[#allocation3 + $0x98] sm:$0xff]  ;;  %v101_v0 = vld [vmem:[#allocation3 + $0x180] sm:$0xff] }
  0x14   :  { %1243 = vst.msk [vmem:[#allocation2 + $0x98] sm:$0xff] %vm155_vm0, %v5127_v45  ;;  %v126_v62 = vpack.c.bf16 %v72_v61, %v71_v60  ;;  %v102_v1 = vld [vmem:[#allocation3 + $0x188] sm:$0xff]  ;;  %v73_v5 = vld [vmem:[#allocation3 + $0xa0] sm:$0xff]  ;;  %v103_v10 = vld [vmem:[#allocation3 + $0x190] sm:$0xff] }
  0x15   :  { %1245 = vst.msk [vmem:[#allocation2 + $0xa8] sm:$0xff] %vm155_vm0, %v5127_v45  ;;  %v141_v2 = vpack.c.bf16 %v102_v1, %v101_v0  ;;  %v74_v6 = vld [vmem:[#allocation3 + $0xa8] sm:$0xff]  ;;  %v75_v15 = vld [vmem:[#allocation3 + $0xb0] sm:$0xff]  ;;  %v76_v16 = vld [vmem:[#allocation3 + $0xb8] sm:$0xff] }
  0x16   :  { %1246 = vst.msk [vmem:[#allocation2 + $0xb0] sm:$0xff] %vm155_vm0, %v5127_v45  ;;  %v127_v7 = vpack.c.bf16 %v74_v6, %v73_v5  ;;  %v106_v21 = vld [vmem:[#allocation3 + $0x1a8] sm:$0xff]  ;;  %v77_v25 = vld [vmem:[#allocation3 + $0xc0] sm:$0xff]  ;;  %v107_v30 = vld [vmem:[#allocation3 + $0x1b0] sm:$0xff] }
  0x17   :  { %1248 = vst.msk [vmem:[#allocation2 + $0xc0] sm:$0xff] %vm155_vm0, %v5127_v45  ;;  %v108_v31 = vld [vmem:[#allocation3 + $0x1b8] sm:$0xff]  ;;  %v109_v40 = vld [vmem:[#allocation3 + $0x1c0] sm:$0xff]  ;;  %v82_v47 = vld [vmem:[#allocation3 + $0xe8] sm:$0xff] }
  0x18   :  { %1249 = vst.msk [vmem:[#allocation2 + $0xc8] sm:$0xff] %vm155_vm0, %v5127_v45  ;;  %v80_v36 = vld [vmem:[#allocation3 + $0xd8] sm:$0xff]  ;;  %v81_v46 = vld [vmem:[#allocation3 + $0xe0] sm:$0xff]  ;;  %v111_v50 = vld [vmem:[#allocation3 + $0x1d0] sm:$0xff] }
  0x19   :  { %1251 = vst.msk [vmem:[#allocation2 + $0xd8] sm:$0xff] %vm155_vm0, %v5127_v45  ;;  %v83_v56 = vld [vmem:[#allocation3 + $0xf0] sm:$0xff]  ;;  %v84_v57 = vld [vmem:[#allocation3 + $0xf8] sm:$0xff]  ;;  %v114_v0 = vld [vmem:[#allocation3 + $0x1e8] sm:$0xff] }
  0x1a   :  { %1252 = vst.msk [vmem:[#allocation2 + $0xe0] sm:$0xff] %vm155_vm0, %v5127_v45 }
  0x1b   :  { %1254 = vst.msk [vmem:[#allocation2 + $0xf0] sm:$0xff] %vm155_vm0, %v5127_v45 }
  0x1c   :  { %1255 = vst.msk [vmem:[#allocation2 + $0xf8] sm:$0xff] %vm155_vm0, %v5127_v45 }
  0x1d   :  { %1257 = vst.msk [vmem:[#allocation2 + $0x108] sm:$0xff] %vm155_vm0, %v5127_v45 }
  0x1e   :  { %1258 = vst.msk [vmem:[#allocation2 + $0x110] sm:$0xff] %vm155_vm0, %v5127_v45 }
  0x1f   :  { %1260 = vst.msk [vmem:[#allocation2 + $0x120] sm:$0xff] %vm155_vm0, %v5127_v45 }
  0x20   :  { %4943 = vmatmul.msk.bf16.gmra.mxu0 %vm155_vm0, %v118_v11  ;;  %4959 = vmatmul.msk.bf16.gmra.mxu2 %vm155_vm0, %v134_v20  ;;  %1261 = vst.msk [vmem:[#allocation2 + $0x128] sm:$0xff] %vm155_vm0, %v5127_v45  ;;  %v104_v11 = vld [vmem:[#allocation3 + $0x198] sm:$0xff]  ;;  %v105_v20 = vld [vmem:[#allocation3 + $0x1a0] sm:$0xff] }
  0x21   :  { %1263 = vst.msk [vmem:[#allocation2 + $0x138] sm:$0xff] %vm155_vm0, %v5127_v45  ;;  %v142_v12 = vpack.c.bf16 %v104_v11, %v103_v10  ;;  %v115_v10 = vld [vmem:[#allocation3 + $0x1f0] sm:$0xff]  ;;  %v116_v11 = vld [vmem:[#allocation3 + $0x1f8] sm:$0xff] }
  0x22   :  { %1264 = vst.msk [vmem:[#allocation2 + $0x140] sm:$0xff] %vm155_vm0, %v5127_v45 }
  0x23   :  { %1266 = vst.msk [vmem:[#allocation2 + $0x150] sm:$0xff] %vm155_vm0, %v5127_v45 }
  0x24   :  { %1267 = vst.msk [vmem:[#allocation2 + $0x158] sm:$0xff] %vm155_vm0, %v5127_v45 }
  0x25   :  { %1269 = vst.msk [vmem:[#allocation2 + $0x168] sm:$0xff] %vm155_vm0, %v5127_v45 }
  0x26   :  { %1270 = vst.msk [vmem:[#allocation2 + $0x170] sm:$0xff] %vm155_vm0, %v5127_v45 }
  0x27   :  { %1272 = vst.msk [vmem:[#allocation2 + $0x180] sm:$0xff] %vm155_vm0, %v5127_v45 }
  0x28   :  { %1273 = vst.msk [vmem:[#allocation2 + $0x188] sm:$0xff] %vm155_vm0, %v5127_v45 }
  0x29   :  { %1275 = vst.msk [vmem:[#allocation2 + $0x198] sm:$0xff] %vm155_vm0, %v5127_v45 }
  0x2a   :  { %1276 = vst.msk [vmem:[#allocation2 + $0x1a0] sm:$0xff] %vm155_vm0, %v5127_v45 }
  0x2b   :  { %1278 = vst.msk [vmem:[#allocation2 + $0x1b0] sm:$0xff] %vm155_vm0, %v5127_v45 }
  0x2c   :  { %1279 = vst.msk [vmem:[#allocation2 + $0x1b8] sm:$0xff] %vm155_vm0, %v5127_v45 }
  0x2d   :  { %1281 = vst.msk [vmem:[#allocation2 + $0x1c8] sm:$0xff] %vm155_vm0, %v5127_v45 }
  0x2e   :  { %1282 = vst.msk [vmem:[#allocation2 + $0x1d0] sm:$0xff] %vm155_vm0, %v5127_v45 }
  0x2f   :  { %1284 = vst.msk [vmem:[#allocation2 + $0x1e0] sm:$0xff] %vm155_vm0, %v5127_v45 }
  0x30   :  { %4944 = vmatmul.msk.bf16.gmra.mxu0 %vm155_vm0, %v119_v17  ;;  %4960 = vmatmul.msk.bf16.gmra.mxu2 %vm155_vm0, %v135_v26  ;;  %1285 = vst.msk [vmem:[#allocation2 + $0x1e8] sm:$0xff] %vm155_vm0, %v5127_v45  ;;  %v128_v17 = vpack.c.bf16 %v76_v16, %v75_v15  ;;  %v78_v26 = vld [vmem:[#allocation3 + $0xc8] sm:$0xff] }
  0x31   :  { %1287 = vst.msk [vmem:[#allocation2 + $0x1f8] sm:$0xff] %vm155_vm0, %v5127_v45  ;;  %v129_v27 = vpack.c.bf16 %v78_v26, %v77_v25 }
  0x32   :  { %1288 = vst.msk [vmem:[#allocation2 + $0x200] sm:$0xff] %vm155_vm0, %v5127_v45 }
  0x33   :  { %1290 = vst.msk [vmem:[#allocation2 + $0x210] sm:$0xff] %vm155_vm0, %v5127_v45 }
  0x34   :  { %1291 = vst.msk [vmem:[#allocation2 + $0x218] sm:$0xff] %vm155_vm0, %v5127_v45 }
  0x35   :  { %1293 = vst.msk [vmem:[#allocation2 + $0x228] sm:$0xff] %vm155_vm0, %v5127_v45 }
  0x36   :  { %1294 = vst.msk [vmem:[#allocation2 + $0x230] sm:$0xff] %vm155_vm0, %v5127_v45 }
  0x37   :  { %1296 = vst.msk [vmem:[#allocation2 + $0x240] sm:$0xff] %vm155_vm0, %v5127_v45 }
  0x38   :  { %1297 = vst.msk [vmem:[#allocation2 + $0x248] sm:$0xff] %vm155_vm0, %v5127_v45 }
  0x39   :  { %1299 = vst.msk [vmem:[#allocation2 + $0x258] sm:$0xff] %vm155_vm0, %v5127_v45 }
  0x3a   :  { %1300 = vst.msk [vmem:[#allocation2 + $0x260] sm:$0xff] %vm155_vm0, %v5127_v45 }
  0x3b   :  { %1302 = vst.msk [vmem:[#allocation2 + $0x270] sm:$0xff] %vm155_vm0, %v5127_v45 }
  0x3c   :  { %1303 = vst.msk [vmem:[#allocation2 + $0x278] sm:$0xff] %vm155_vm0, %v5127_v45 }
  0x3d   :  { %1305 = vst.msk [vmem:[#allocation2 + $0x288] sm:$0xff] %vm155_vm0, %v5127_v45 }
  0x3e   :  { %1306 = vst.msk [vmem:[#allocation2 + $0x290] sm:$0xff] %vm155_vm0, %v5127_v45 }
  0x3f   :  { %1308 = vst.msk [vmem:[#allocation2 + $0x2a0] sm:$0xff] %vm155_vm0, %v5127_v45 }
  0x40   :  { %4945 = vmatmul.msk.bf16.gmra.mxu0 %vm155_vm0, %v120_v23  ;;  %4961 = vmatmul.msk.bf16.gmra.mxu2 %vm155_vm0, %v136_v32  ;;  %1309 = vst.msk [vmem:[#allocation2 + $0x2a8] sm:$0xff] %vm155_vm0, %v5127_v45  ;;  %v143_v23 = vpack.c.bf16 %v106_v21, %v105_v20  ;;  %v144_v32 = vpack.c.bf16 %v108_v31, %v107_v30 }
  0x41   :  { %1311 = vst.msk [vmem:[#allocation2 + $0x2b8] sm:$0xff] %vm155_vm0, %v5127_v45 }
  0x42   :  { %1312 = vst.msk [vmem:[#allocation2 + $0x2c0] sm:$0xff] %vm155_vm0, %v5127_v45 }
  0x43   :  { %1314 = vst.msk [vmem:[#allocation2 + $0x2d0] sm:$0xff] %vm155_vm0, %v5127_v45 }
  0x44   :  { %1315 = vst.msk [vmem:[#allocation2 + $0x2d8] sm:$0xff] %vm155_vm0, %v5127_v45 }
  0x45   :  { %1317 = vst.msk [vmem:[#allocation2 + $0x2e8] sm:$0xff] %vm155_vm0, %v5127_v45 }
  0x46   :  { %1318 = vst.msk [vmem:[#allocation2 + $0x2f0] sm:$0xff] %vm155_vm0, %v5127_v45 }
  0x47   :  { %1320 = vst.msk [vmem:[#allocation2 + $0x300] sm:$0xff] %vm155_vm0, %v5127_v45 }
  0x48   :  { %1321 = vst.msk [vmem:[#allocation2 + $0x308] sm:$0xff] %vm155_vm0, %v5127_v45 }
  0x49   :  { %1323 = vst.msk [vmem:[#allocation2 + $0x318] sm:$0xff] %vm155_vm0, %v5127_v45 }
  0x4a   :  { %1324 = vst.msk [vmem:[#allocation2 + $0x320] sm:$0xff] %vm155_vm0, %v5127_v45 }
  0x4b   :  { %1326 = vst.msk [vmem:[#allocation2 + $0x330] sm:$0xff] %vm155_vm0, %v5127_v45 }
  0x4c   :  { %1327 = vst.msk [vmem:[#allocation2 + $0x338] sm:$0xff] %vm155_vm0, %v5127_v45 }
  0x4d   :  { %1329 = vst.msk [vmem:[#allocation2 + $0x348] sm:$0xff] %vm155_vm0, %v5127_v45 }
  0x4e   :  { %1330 = vst.msk [vmem:[#allocation2 + $0x350] sm:$0xff] %vm155_vm0, %v5127_v45 }
  0x4f   :  { %1229 = vst.msk [vmem:[#allocation2 + $0x28] sm:$0x3] %vm1225_vm1, %v5127_v45 }
  0x50   :  { %4946 = vmatmul.msk.bf16.gmra.mxu0 %vm155_vm0, %v121_v29  ;;  %4962 = vmatmul.msk.bf16.gmra.mxu2 %vm155_vm0, %v137_v38  ;;  %1226 = vst.msk [vmem:[#allocation2 + $0x10] sm:$0x3] %vm1225_vm1, %v5127_v45 }
  0x51   :  { %1232 = vst.msk [vmem:[#allocation2 + $0x40] sm:$0x3] %vm1225_vm1, %v5127_v45 }
  0x52   :  { %1235 = vst.msk [vmem:[#allocation2 + $0x58] sm:$0x3] %vm1225_vm1, %v5127_v45 }
  0x53   :  { %1238 = vst.msk [vmem:[#allocation2 + $0x70] sm:$0x3] %vm1225_vm1, %v5127_v45 }
  0x54   :  { %1241 = vst.msk [vmem:[#allocation2 + $0x88] sm:$0x3] %vm1225_vm1, %v5127_v45 }
  0x55   :  { %1244 = vst.msk [vmem:[#allocation2 + $0xa0] sm:$0x3] %vm1225_vm1, %v5127_v45 }
  0x56   :  { %1247 = vst.msk [vmem:[#allocation2 + $0xb8] sm:$0x3] %vm1225_vm1, %v5127_v45 }
  0x57   :  { %1250 = vst.msk [vmem:[#allocation2 + $0xd0] sm:$0x3] %vm1225_vm1, %v5127_v45 }
  0x58   :  { %1253 = vst.msk [vmem:[#allocation2 + $0xe8] sm:$0x3] %vm1225_vm1, %v5127_v45 }
  0x59   :  { %1256 = vst.msk [vmem:[#allocation2 + $0x100] sm:$0x3] %vm1225_vm1, %v5127_v45 }
  0x5a   :  { %1259 = vst.msk [vmem:[#allocation2 + $0x118] sm:$0x3] %vm1225_vm1, %v5127_v45 }
  0x5b   :  { %1262 = vst.msk [vmem:[#allocation2 + $0x130] sm:$0x3] %vm1225_vm1, %v5127_v45 }
  0x5c   :  { %1265 = vst.msk [vmem:[#allocation2 + $0x148] sm:$0x3] %vm1225_vm1, %v5127_v45 }
  0x5d   :  { %1268 = vst.msk [vmem:[#allocation2 + $0x160] sm:$0x3] %vm1225_vm1, %v5127_v45 }
  0x5e   :  { %1271 = vst.msk [vmem:[#allocation2 + $0x178] sm:$0x3] %vm1225_vm1, %v5127_v45 }
  0x5f   :  { %1274 = vst.msk [vmem:[#allocation2 + $0x190] sm:$0x3] %vm1225_vm1, %v5127_v45 }
  0x60   :  { %4947 = vmatmul.msk.bf16.gmra.mxu0 %vm155_vm0, %v122_v35  ;;  %4963 = vmatmul.msk.bf16.gmra.mxu2 %vm155_vm0, %v138_v44  ;;  %1277 = vst.msk [vmem:[#allocation2 + $0x1a8] sm:$0x3] %vm1225_vm1, %v5127_v45  ;;  %v79_v35 = vld [vmem:[#allocation3 + $0xd0] sm:$0xff] }
  0x61   :  { %1280 = vst.msk [vmem:[#allocation2 + $0x1c0] sm:$0x3] %vm1225_vm1, %v5127_v45  ;;  %v130_v37 = vpack.c.bf16 %v80_v36, %v79_v35 }
  0x62   :  { %1283 = vst.msk [vmem:[#allocation2 + $0x1d8] sm:$0x3] %vm1225_vm1, %v5127_v45 }
  0x63   :  { %1286 = vst.msk [vmem:[#allocation2 + $0x1f0] sm:$0x3] %vm1225_vm1, %v5127_v45 }
  0x64   :  { %1289 = vst.msk [vmem:[#allocation2 + $0x208] sm:$0x3] %vm1225_vm1, %v5127_v45 }
  0x65   :  { %1292 = vst.msk [vmem:[#allocation2 + $0x220] sm:$0x3] %vm1225_vm1, %v5127_v45 }
  0x66   :  { %1295 = vst.msk [vmem:[#allocation2 + $0x238] sm:$0x3] %vm1225_vm1, %v5127_v45 }
  0x67   :  { %1298 = vst.msk [vmem:[#allocation2 + $0x250] sm:$0x3] %vm1225_vm1, %v5127_v45 }
  0x68   :  { %1301 = vst.msk [vmem:[#allocation2 + $0x268] sm:$0x3] %vm1225_vm1, %v5127_v45 }
  0x69   :  { %1304 = vst.msk [vmem:[#allocation2 + $0x280] sm:$0x3] %vm1225_vm1, %v5127_v45 }
  0x6a   :  { %1307 = vst.msk [vmem:[#allocation2 + $0x298] sm:$0x3] %vm1225_vm1, %v5127_v45 }
  0x6b   :  { %1310 = vst.msk [vmem:[#allocation2 + $0x2b0] sm:$0x3] %vm1225_vm1, %v5127_v45 }
  0x6c   :  { %1313 = vst.msk [vmem:[#allocation2 + $0x2c8] sm:$0x3] %vm1225_vm1, %v5127_v45 }
  0x6d   :  { %1316 = vst.msk [vmem:[#allocation2 + $0x2e0] sm:$0x3] %vm1225_vm1, %v5127_v45 }
  0x6e   :  { %1319 = vst.msk [vmem:[#allocation2 + $0x2f8] sm:$0x3] %vm1225_vm1, %v5127_v45 }
  0x6f   :  { %1322 = vst.msk [vmem:[#allocation2 + $0x310] sm:$0x3] %vm1225_vm1, %v5127_v45 }
  0x70   :  { %4948 = vmatmul.msk.bf16.gmra.mxu0 %vm155_vm0, %v123_v41  ;;  %4964 = vmatmul.msk.bf16.gmra.mxu2 %vm155_vm0, %v139_v51  ;;  %1325 = vst.msk [vmem:[#allocation2 + $0x328] sm:$0x3] %vm1225_vm1, %v5127_v45  ;;  %v110_v41 = vld [vmem:[#allocation3 + $0x1c8] sm:$0xff]  ;;  %v112_v51 = vld [vmem:[#allocation3 + $0x1d8] sm:$0xff] }
  0x71   :  { %1328 = vst.msk [vmem:[#allocation2 + $0x340] sm:$0x3] %vm1225_vm1, %v5127_v45  ;;  %v145_v42 = vpack.c.bf16 %v110_v41, %v109_v40  ;;  %v146_v52 = vpack.c.bf16 %v112_v51, %v111_v50 }
  0x72   :  { %1331 = vst.msk [vmem:[#allocation2 + $0x358] sm:$0x3] %vm1225_vm1, %v5127_v45 }
  0x80   :  { %4949 = vmatmul.msk.bf16.gmra.mxu0 %vm155_vm0, %v124_v48  ;;  %4965 = vmatmul.msk.bf16.gmra.mxu2 %vm155_vm0, %v140_v58  ;;  %v131_v48 = vpack.c.bf16 %v82_v47, %v81_v46  ;;  %v132_v58 = vpack.c.bf16 %v84_v57, %v83_v56 }
  0x8d   :  { %v5273_v55 = vpop.f32.mrf.mxu0 }
  0x8e   :  { %v556_v36 = vmul.f32 %v5273_v55, %v5273_v55 }
  0x90   :  { %4950 = vmatmul.msk.bf16.gmra.mxu0 %vm155_vm0, %v125_v54  ;;  %4966 = vmatmul.msk.bf16.gmra.mxu2 %vm155_vm0, %v141_v2  ;;  %v620_v51 = vsel %vm155_vm0, %v556_v36, 0.0 }
  0x93   :  { %v5335_v4 = vpop.f32.mrf.mxu2 }
  0x95   :  { %v5295_v59 = vpop.f32.mrf.mxu0 }
  0x96   :  { %v557_v35 = vmul.f32 %v5295_v59, %v5295_v59 }
  0x98   :  { %v621_v46 = vsel %vm155_vm0, %v557_v35, 0.0 }
  0x9b   :  { %v5355_v9 = vpop.f32.mrf.mxu2 }
  0x9d   :  { %v5313_v63 = vpop.f32.mrf.mxu0 }
  0x9e   :  { %v558_v40 = vmul.f32 %v5313_v63, %v5313_v63  ;;  %v426_v47 = vsel %vm155_vm0, %v5313_v63, 0.0 }
  0xa0   :  { %4951 = vmatmul.msk.bf16.gmra.mxu0 %vm155_vm0, %v126_v62  ;;  %4967 = vmatmul.msk.bf16.gmra.mxu2 %vm155_vm0, %v142_v12  ;;  %v113_v62 = vld [vmem:[#allocation3 + $0x1e0] sm:$0xff]  ;;  %v148_v12 = vpack.c.bf16 %v116_v11, %v115_v10 }
  0xa1   :  { %v147_v1 = vpack.c.bf16 %v114_v0, %v113_v62  ;;  %v622_v62 = vadd.f32 %v621_v46, %v620_v51 }
  0xa3   :  { %v5377_v14 = vpop.f32.mrf.mxu2 }
  0xa5   :  { %v5333_v3 = vpop.f32.mrf.mxu0 }
  0xa6   :  { %v428_v56 = vsel %vm155_vm0, %v5333_v3, 0.0 }
  0xab   :  { %v5397_v19 = vpop.f32.mrf.mxu2 }
  0xad   :  { %v5353_v8 = vpop.f32.mrf.mxu0 }
  0xae   :  { %v560_v57 = vmul.f32 %v5353_v8, %v5353_v8  ;;  %v430_v10 = vsel %vm155_vm0, %v5353_v8, 0.0 }
  0xb0   :  { %4952 = vmatmul.msk.bf16.gmra.mxu0 %vm155_vm0, %v127_v7  ;;  %4968 = vmatmul.msk.bf16.gmra.mxu2 %vm155_vm0, %v143_v23  ;;  %v627_v36 = vsel %vm155_vm0, %v560_v57, 0.0 }
  0xb3   :  { %v5418_v24 = vpop.f32.mrf.mxu2 }
  0xb5   :  { %v5375_v13 = vpop.f32.mrf.mxu0 }
  0xb6   :  { %v561_v11 = vmul.f32 %v5375_v13, %v5375_v13 }
  0xbb   :  { %v5439_v29 = vpop.f32.mrf.mxu2 }
  0xbd   :  { %v5395_v18 = vpop.f32.mrf.mxu0 }
  0xc0   :  { %4953 = vmatmul.msk.bf16.gmra.mxu0 %vm155_vm0, %v128_v17  ;;  %4969 = vmatmul.msk.bf16.gmra.mxu2 %vm155_vm0, %v144_v32 }
  0xc3   :  { %v5460_v34 = vpop.f32.mrf.mxu2 }
  0xc5   :  { %v5416_v22 = vpop.f32.mrf.mxu0 }
  0xcb   :  { %v5479_v39 = vpop.f32.mrf.mxu2 }
  0xcd   :  { %v5437_v28 = vpop.f32.mrf.mxu0 }
  0xce   :  { %12123 = vst [vmem:[#allocation9_spill] sm:$0xff] %v5437_v28 }
  0xd0   :  { %4954 = vmatmul.msk.bf16.gmra.mxu0 %vm155_vm0, %v129_v27  ;;  %4970 = vmatmul.msk.bf16.gmra.mxu2 %vm155_vm0, %v145_v42  ;;  %v423_v42 = vsel %vm155_vm0, %v5273_v55, 0.0 }
  0xd3   :  { %v5484_v44 = vpop.f32.mrf.mxu2 }
  0xd5   :  { %v5458_v33 = vpop.f32.mrf.mxu0 }
  0xdb   :  { %v5489_v49 = vpop.f32.mrf.mxu2 }
  0xdc   :  { %12126 = vst [vmem:[#allocation12_spill] sm:$0xff] %v5489_v49 }
  0xdd   :  { %v5477_v38 = vpop.f32.mrf.mxu0 }
  0xe0   :  { %4955 = vmatmul.msk.bf16.gmra.mxu0 %vm155_vm0, %v130_v37  ;;  %4971 = vmatmul.msk.bf16.gmra.mxu2 %vm155_vm0, %v146_v52  ;;  %v424_v37 = vsel %vm155_vm0, %v5295_v59, 0.0  ;;  %v623_v52 = vsel %vm155_vm0, %v558_v40, 0.0  ;;  %v562_v40 = vmul.f32 %v5395_v18, %v5395_v18 }
  0xe1   :  { %v425_v50 = vadd.f32 %v424_v37, %v423_v42  ;;  %v432_v37 = vsel %vm155_vm0, %v5375_v13, 0.0 }
  0xe2   :  { %v631_v57 = vsel %vm155_vm0, %v562_v40, 0.0 }
  0xe3   :  { %v5494_v54 = vpop.f32.mrf.mxu2 }
  0xe4   :  { %12127 = vst [vmem:[#allocation13_spill] sm:$0xff] %v5494_v54 }
  0xe5   :  { %v5482_v43 = vpop.f32.mrf.mxu0 }
  0xe6   :  { %12124 = vst [vmem:[#allocation10_spill] sm:$0xff] %v5482_v43 }
  0xeb   :  { %v5499_v61 = vpop.f32.mrf.mxu2 }
  0xec   :  { %12128 = vst [vmem:[#allocation14_spill] sm:$0xff] %v5499_v61 }
  0xed   :  { %v5487_v45 = vpop.f32.mrf.mxu0 }
  0xee   :  { %12125 = vst [vmem:[#allocation11_spill] sm:$0xff] %v5487_v45 }
  0xf0   :  { %4956 = vmatmul.msk.bf16.gmra.mxu0 %vm155_vm0, %v131_v48  ;;  %4972 = vmatmul.msk.bf16.gmra.mxu2 %vm155_vm0, %v147_v1  ;;  %v559_v48 = vmul.f32 %v5333_v3, %v5333_v3 }
  0xf2   :  { %v625_v1 = vsel %vm155_vm0, %v559_v48, 0.0  ;;  %v434_v48 = vsel %vm155_vm0, %v5395_v18, 0.0 }
  0xf3   :  { %v5504_v5 = vpop.f32.mrf.mxu2 }
  0xf4   :  { %12129 = vst [vmem:[#allocation15_spill] sm:$0xff] %v5504_v5 }
  0xf5   :  { %v5492_v53 = vpop.f32.mrf.mxu0 }
  0xfb   :  { %v5509_v7 = vpop.f32.mrf.mxu2 }
  0xfc   :  { %12131 = vst [vmem:[#allocation17_spill] sm:$0xff] %v5509_v7 }
  0xfd   :  { %v5497_v60 = vpop.f32.mrf.mxu0 }
 0x100   :  { %4957 = vmatmul.msk.bf16.gmra.mxu0 %vm155_vm0, %v132_v58  ;;  %4973 = vmatmul.msk.bf16.gmra.mxu2 %vm155_vm0, %v148_v12  ;;  %v427_v58 = vadd.f32 %v426_v47, %v425_v50  ;;  %v624_v12 = vadd.f32 %v623_v52, %v622_v62  ;;  %v629_v47 = vsel %vm155_vm0, %v561_v11, 0.0  ;;  %v563_v50 = vmul.f32 %v5416_v22, %v5416_v22 }
 0x101   :  { %v564_v62 = vmul.f32 %v5437_v28, %v5437_v28 }
 0x102   :  { %v429_v35 = vadd.f32 %v428_v56, %v427_v58  ;;  %v626_v46 = vadd.f32 %v625_v1, %v624_v12  ;;  %v436_v58 = vsel %vm155_vm0, %v5416_v22, 0.0  ;;  %v633_v12 = vsel %vm155_vm0, %v563_v50, 0.0 }
 0x103   :  { %v5514_v16 = vpop.f32.mrf.mxu2 }
 0x104   :  { %12133 = vst [vmem:[#allocation19_spill] sm:$0xff] %v5514_v16  ;;  %v431_v42 = vadd.f32 %v430_v10, %v429_v35  ;;  %v628_v51 = vadd.f32 %v627_v36, %v626_v46  ;;  %v438_v35 = vsel %vm155_vm0, %v5437_v28, 0.0  ;;  %v565_v36 = vmul.f32 %v5458_v33, %v5458_v33 }
 0x105   :  { %v5502_v2 = vpop.f32.mrf.mxu0  ;;  %v440_v46 = vsel %vm155_vm0, %v5458_v33, 0.0  ;;  %v567_v28 = vmul.f32 %v5482_v43, %v5482_v43 }
 0x106   :  { %v433_v52 = vadd.f32 %v432_v37, %v431_v42  ;;  %v630_v10 = vadd.f32 %v629_v47, %v628_v51  ;;  %v635_v42 = vsel %vm155_vm0, %v564_v62, 0.0  ;;  %v566_v47 = vmul.f32 %v5477_v38, %v5477_v38 }
 0x107   :  { %v637_v50 = vsel %vm155_vm0, %v565_v36, 0.0 }
 0x108   :  { %v435_v1 = vadd.f32 %v434_v48, %v433_v52  ;;  %v632_v37 = vadd.f32 %v631_v57, %v630_v10  ;;  %v442_v52 = vsel %vm155_vm0, %v5477_v38, 0.0  ;;  %v639_v62 = vsel %vm155_vm0, %v566_v47, 0.0 }
 0x109   :  { %v568_v10 = vmul.f32 %v5487_v45, %v5487_v45 }
 0x10a   :  { %v437_v40 = vadd.f32 %v436_v58, %v435_v1  ;;  %v634_v51 = vadd.f32 %v633_v12, %v632_v37  ;;  %v444_v1 = vsel %vm155_vm0, %v5482_v43, 0.0  ;;  %v571_v43 = vmul.f32 %v5502_v2, %v5502_v2 }
 0x10b   :  { %v5518_v20 = vpop.f32.mrf.mxu2 }
 0x10c   :  { %12134 = vst [vmem:[#allocation20_spill] sm:$0xff] %v5518_v20  ;;  %v439_v48 = vadd.f32 %v438_v35, %v437_v40  ;;  %v636_v57 = vadd.f32 %v635_v42, %v634_v51  ;;  %v641_v40 = vsel %vm155_vm0, %v567_v28, 0.0  ;;  %v446_v42 = vsel %vm155_vm0, %v5487_v45, 0.0 }
 0x10d   :  { %v5507_v6 = vpop.f32.mrf.mxu0  ;;  %v643_v51 = vsel %vm155_vm0, %v568_v10, 0.0  ;;  %v450_v45 = vsel %vm155_vm0, %v5497_v60, 0.0 }
 0x10e   :  { %12130 = vst [vmem:[#allocation16_spill] sm:$0xff] %v5507_v6  ;;  %v441_v58 = vadd.f32 %v440_v46, %v439_v48  ;;  %v638_v35 = vadd.f32 %v637_v50, %v636_v57  ;;  %v569_v46 = vmul.f32 %v5492_v53, %v5492_v53  ;;  %v448_v50 = vsel %vm155_vm0, %v5492_v53, 0.0 }
 0x110   :  { %v443_v12 = vadd.f32 %v442_v52, %v441_v58  ;;  %v640_v47 = vadd.f32 %v639_v62, %v638_v35  ;;  %v570_v52 = vmul.f32 %v5497_v60, %v5497_v60  ;;  %v645_v28 = vsel %vm155_vm0, %v569_v46, 0.0 }
 0x111   :  { %v452_v35 = vsel %vm155_vm0, %v5502_v2, 0.0  ;;  %v649_v46 = vsel %vm155_vm0, %v571_v43, 0.0 }
 0x112   :  { %v445_v48 = vadd.f32 %v444_v1, %v443_v12  ;;  %v642_v57 = vadd.f32 %v641_v40, %v640_v47  ;;  %v647_v10 = vsel %vm155_vm0, %v570_v52, 0.0  ;;  %v572_v12 = vmul.f32 %v5507_v6, %v5507_v6 }
 0x113   :  { %v5522_v23 = vpop.f32.mrf.mxu2 }
 0x114   :  { %12135 = vst [vmem:[#allocation21_spill] sm:$0xff] %v5522_v23  ;;  %v447_v58 = vadd.f32 %v446_v42, %v445_v48  ;;  %v644_v62 = vadd.f32 %v643_v51, %v642_v57  ;;  %v454_v48 = vsel %vm155_vm0, %v5507_v6, 0.0 }
 0x115   :  { %v5511_v15 = vpop.f32.mrf.mxu0 }
 0x116   :  { %12132 = vst [vmem:[#allocation18_spill] sm:$0xff] %v5511_v15  ;;  %v449_v1 = vadd.f32 %v448_v50, %v447_v58  ;;  %v646_v40 = vadd.f32 %v645_v28, %v644_v62  ;;  %v573_v51 = vmul.f32 %v5511_v15, %v5511_v15  ;;  %v651_v58 = vsel %vm155_vm0, %v572_v12, 0.0 }
 0x117   :  { %v456_v28 = vsel %vm155_vm0, %v5511_v15, 0.0 }
 0x118   :  { %v451_v42 = vadd.f32 %v450_v45, %v449_v1  ;;  %v648_v50 = vadd.f32 %v647_v10, %v646_v40  ;;  %v653_v1 = vsel %vm155_vm0, %v573_v51, 0.0 }
 0x11a   :  { %v453_v52 = vadd.f32 %v452_v35, %v451_v42  ;;  %v650_v62 = vadd.f32 %v649_v46, %v648_v50 }
 0x11b   :  { %v5528_v27 = vpop.f32.mrf.mxu2 }
 0x11c   :  { %12137 = vst [vmem:[#allocation23_spill] sm:$0xff] %v5528_v27  ;;  %v455_v43 = vadd.f32 %v454_v48, %v453_v52  ;;  %v652_v35 = vadd.f32 %v651_v58, %v650_v62 }
 0x11d   :  { %v5516_v17 = vpop.f32.mrf.mxu0 }
 0x11e   :  { %v574_v45 = vmul.f32 %v5516_v17, %v5516_v17  ;;  %v458_v6 = vsel %vm155_vm0, %v5516_v17, 0.0  ;;  %v457_v40 = vadd.f32 %v456_v28, %v455_v43  ;;  %v654_v46 = vadd.f32 %v653_v1, %v652_v35 }
 0x120   :  { %v655_v12 = vsel %vm155_vm0, %v574_v45, 0.0  ;;  %v459_v48 = vadd.f32 %v458_v6, %v457_v40 }
 0x121   :  { %v656_v28 = vadd.f32 %v655_v12, %v654_v46 }
 0x123   :  { %v5532_v31 = vpop.f32.mrf.mxu2 }
 0x124   :  { %12139 = vst [vmem:[#allocation25_spill] sm:$0xff] %v5532_v31 }
 0x125   :  { %v5520_v21 = vpop.f32.mrf.mxu0 }
 0x126   :  { %v575_v10 = vmul.f32 %v5520_v21, %v5520_v21  ;;  %v460_v42 = vsel %vm155_vm0, %v5520_v21, 0.0 }
 0x127   :  { %v461_v45 = vadd.f32 %v460_v42, %v459_v48 }
 0x128   :  { %v657_v51 = vsel %vm155_vm0, %v575_v10, 0.0 }
 0x129   :  { %v658_v1 = vadd.f32 %v657_v51, %v656_v28 }
 0x12b   :  { %v5544_v41 = vpop.f32.mrf.mxu2 }
 0x12c   :  { %12140 = vst [vmem:[#allocation26_spill] sm:$0xff] %v5544_v41 }
 0x12d   :  { %v5524_v25 = vpop.f32.mrf.mxu0 }
 0x12e   :  { %12136 = vst [vmem:[#allocation22_spill] sm:$0xff] %v5524_v25  ;;  %v576_v15 = vmul.f32 %v5524_v25, %v5524_v25  ;;  %v462_v52 = vsel %vm155_vm0, %v5524_v25, 0.0 }
 0x12f   :  { %v463_v35 = vadd.f32 %v462_v52, %v461_v45 }
 0x130   :  { %v659_v62 = vsel %vm155_vm0, %v576_v15, 0.0 }
 0x131   :  { %v660_v42 = vadd.f32 %v659_v62, %v658_v1 }
 0x133   :  { %v5576_v56 = vpop.f32.mrf.mxu2 }
 0x134   :  { %12142 = vst [vmem:[#allocation28_spill] sm:$0xff] %v5576_v56 }
 0x135   :  { %v5526_v26 = vpop.f32.mrf.mxu0 }
 0x136   :  { %v577_v58 = vmul.f32 %v5526_v26, %v5526_v26  ;;  %v464_v43 = vsel %vm155_vm0, %v5526_v26, 0.0 }
 0x137   :  { %v465_v15 = vadd.f32 %v464_v43, %v463_v35 }
 0x138   :  { %v661_v10 = vsel %vm155_vm0, %v577_v58, 0.0 }
 0x139   :  { %v662_v52 = vadd.f32 %v661_v10, %v660_v42 }
 0x13b   :  { %v5607_v36 = vpop.f32.mrf.mxu2 }
 0x13c   :  { %12144 = vst [vmem:[#allocation30_spill] sm:$0xff] %v5607_v36 }
 0x13d   :  { %v5530_v30 = vpop.f32.mrf.mxu0 }
 0x13e   :  { %12138 = vst [vmem:[#allocation24_spill] sm:$0xff] %v5530_v30  ;;  %v578_v6 = vmul.f32 %v5530_v30, %v5530_v30  ;;  %v466_v25 = vsel %vm155_vm0, %v5530_v30, 0.0 }
 0x13f   :  { %v467_v28 = vadd.f32 %v466_v25, %v465_v15 }
 0x140   :  { %v663_v46 = vsel %vm155_vm0, %v578_v6, 0.0 }
 0x141   :  { %v664_v43 = vadd.f32 %v663_v46, %v662_v52 }
 0x143   :  { %v5636_v57 = vpop.f32.mrf.mxu2 }
 0x144   :  { %12146 = vst [vmem:[#allocation32_spill] sm:$0xff] %v5636_v57 }
 0x145   :  { %v5534_v32 = vpop.f32.mrf.mxu0 }
 0x146   :  { %v579_v12 = vmul.f32 %v5534_v32, %v5534_v32  ;;  %v468_v48 = vsel %vm155_vm0, %v5534_v32, 0.0 }
 0x147   :  { %v469_v6 = vadd.f32 %v468_v48, %v467_v28 }
 0x148   :  { %v665_v58 = vsel %vm155_vm0, %v579_v12, 0.0 }
 0x149   :  { %v666_v10 = vadd.f32 %v665_v58, %v664_v43 }
 0x14b   :  { %v5665_v40 = vpop.f32.mrf.mxu2 }
 0x14c   :  { %12148 = vst [vmem:[#allocation34_spill] sm:$0xff] %v5665_v40 }
 0x14d   :  { %v5559_v0 = vpop.f32.mrf.mxu0 }
 0x14e   :  { %12141 = vst [vmem:[#allocation27_spill] sm:$0xff] %v5559_v0  ;;  %v580_v51 = vmul.f32 %v5559_v0, %v5559_v0  ;;  %v470_v30 = vsel %vm155_vm0, %v5559_v0, 0.0 }
 0x14f   :  { %v471_v42 = vadd.f32 %v470_v30, %v469_v6 }
 0x150   :  { %v667_v1 = vsel %vm155_vm0, %v580_v51, 0.0 }
 0x151   :  { %v668_v46 = vadd.f32 %v667_v1, %v666_v10 }
 0x153   :  { %v5694_v52 = vpop.f32.mrf.mxu2 }
 0x154   :  { %12150 = vst [vmem:[#allocation36_spill] sm:$0xff] %v5694_v52 }
 0x155   :  { %v5583_v11 = vpop.f32.mrf.mxu0 }
 0x156   :  { %v581_v62 = vmul.f32 %v5583_v11, %v5583_v11  ;;  %v472_v35 = vsel %vm155_vm0, %v5583_v11, 0.0 }
 0x157   :  { %v473_v48 = vadd.f32 %v472_v35, %v471_v42 }
 0x158   :  { %v669_v12 = vsel %vm155_vm0, %v581_v62, 0.0 }
 0x159   :  { %v670_v58 = vadd.f32 %v669_v12, %v668_v46 }
 0x15d   :  { %v5605_v37 = vpop.f32.mrf.mxu0 }
 0x15e   :  { %12143 = vst [vmem:[#allocation29_spill] sm:$0xff] %v5605_v37  ;;  %v582_v25 = vmul.f32 %v5605_v37, %v5605_v37  ;;  %v474_v15 = vsel %vm155_vm0, %v5605_v37, 0.0 }
 0x15f   :  { %v475_v62 = vadd.f32 %v474_v15, %v473_v48 }
 0x160   :  { %v671_v51 = vsel %vm155_vm0, %v582_v25, 0.0 }
 0x161   :  { %v672_v10 = vadd.f32 %v671_v51, %v670_v58 }
 0x165   :  { %v5629_v47 = vpop.f32.mrf.mxu0 }
 0x166   :  { %12145 = vst [vmem:[#allocation31_spill] sm:$0xff] %v5629_v47  ;;  %v583_v0 = vmul.f32 %v5629_v47, %v5629_v47  ;;  %v476_v28 = vsel %vm155_vm0, %v5629_v47, 0.0 }
 0x167   :  { %v477_v25 = vadd.f32 %v476_v28, %v475_v62  ;;  %v5719_v62 = vpop.f32.mrf.mxu2 }
 0x168   :  { %v673_v6 = vsel %vm155_vm0, %v583_v0, 0.0  ;;  %12151 = vst [vmem:[#allocation37_spill] sm:$0xff] %v5719_v62 }
 0x169   :  { %v674_v15 = vadd.f32 %v673_v6, %v672_v10 }
 0x16d   :  { %v5653_v50 = vpop.f32.mrf.mxu0 }
 0x16e   :  { %12147 = vst [vmem:[#allocation33_spill] sm:$0xff] %v5653_v50  ;;  %v584_v30 = vmul.f32 %v5653_v50, %v5653_v50  ;;  %v478_v1 = vsel %vm155_vm0, %v5653_v50, 0.0 }
 0x16f   :  { %v479_v46 = vadd.f32 %v478_v1, %v477_v25 }
 0x170   :  { %v675_v42 = vsel %vm155_vm0, %v584_v30, 0.0 }
 0x171   :  { %v676_v50 = vadd.f32 %v675_v42, %v674_v15  ;;  %v488_v15 = vsel %vm155_vm0, %v5355_v9, 0.0 }
 0x175   :  { %v5677_v45 = vpop.f32.mrf.mxu0 }
 0x176   :  { %12149 = vst [vmem:[#allocation35_spill] sm:$0xff] %v5677_v45  ;;  %v585_v35 = vmul.f32 %v5677_v45, %v5677_v45  ;;  %v480_v47 = vsel %vm155_vm0, %v5677_v45, 0.0  ;;  %v588_v45 = vmul.f32 %v5335_v4, %v5335_v4 }
 0x177   :  { %v481_v37 = vadd.f32 %v480_v47, %v479_v46  ;;  %v486_v47 = vsel %vm155_vm0, %v5335_v4, 0.0  ;;  %v590_v46 = vmul.f32 %v5377_v14, %v5377_v14 }
 0x178   :  { %v677_v0 = vsel %vm155_vm0, %v585_v35, 0.0 }
 0x179   :  { %v678_v28 = vadd.f32 %v677_v0, %v676_v50 }
 0x17d   :  { %v5701_v43 = vpop.f32.mrf.mxu0 }
 0x17e   :  { %v586_v12 = vmul.f32 %v5701_v43, %v5701_v43  ;;  %v482_v48 = vsel %vm155_vm0, %v5701_v43, 0.0 }
 0x17f   :  { %v483_v58 = vadd.f32 %v482_v48, %v481_v37  ;;  %v589_v37 = vmul.f32 %v5355_v9, %v5355_v9 }
 0x180   :  { %v679_v51 = vsel %vm155_vm0, %v586_v12, 0.0  ;;  %v683_v12 = vsel %vm155_vm0, %v588_v45, 0.0  ;;  %v687_v45 = vsel %vm155_vm0, %v590_v46, 0.0 }
 0x181   :  { %v680_v35 = vadd.f32 %v679_v51, %v678_v28  ;;  %v685_v51 = vsel %vm155_vm0, %v589_v37, 0.0  ;;  %v490_v28 = vsel %vm155_vm0, %v5377_v14, 0.0 }
 0x185   :  { %v5717_v30 = vpop.f32.mrf.mxu0 }
 0x186   :  { %v484_v6 = vsel %vm155_vm0, %v5717_v30, 0.0  ;;  %v587_v1 = vmul.f32 %v5717_v30, %v5717_v30 }
 0x187   :  { %v485_v10 = vadd.f32 %v484_v6, %v483_v58  ;;  %v591_v58 = vmul.f32 %v5397_v19, %v5397_v19 }
 0x188   :  { %v681_v50 = vsel %vm155_vm0, %v587_v1, 0.0 }
 0x189   :  { %v487_v25 = vadd.f32 %v486_v47, %v485_v10  ;;  %v682_v42 = vadd.f32 %v681_v50, %v680_v35  ;;  %v492_v35 = vsel %vm155_vm0, %v5397_v19, 0.0  ;;  %v592_v10 = vmul.f32 %v5418_v24, %v5418_v24 }
 0x18a   :  { %v689_v37 = vsel %vm155_vm0, %v591_v58, 0.0 }
 0x18b   :  { %v489_v0 = vadd.f32 %v488_v15, %v487_v25  ;;  %v684_v48 = vadd.f32 %v683_v12, %v682_v42  ;;  %v5747_v25 = vpop.f32.mrf.mxu2  ;;  %v494_v42 = vsel %vm155_vm0, %v5418_v24, 0.0  ;;  %v593_v12 = vmul.f32 %v5439_v29, %v5439_v29 }
 0x18d   :  { %v491_v6 = vadd.f32 %v490_v28, %v489_v0  ;;  %v686_v1 = vadd.f32 %v685_v51, %v684_v48  ;;  %v691_v0 = vsel %vm155_vm0, %v592_v10, 0.0  ;;  %v496_v48 = vsel %vm155_vm0, %v5439_v29, 0.0 }
 0x18e   :  { %v594_v51 = vmul.f32 %v5460_v34, %v5460_v34  ;;  %v693_v58 = vsel %vm155_vm0, %v593_v12, 0.0 }
 0x18f   :  { %v493_v47 = vadd.f32 %v492_v35, %v491_v6  ;;  %v688_v50 = vadd.f32 %v687_v45, %v686_v1  ;;  %v498_v1 = vsel %vm155_vm0, %v5460_v34, 0.0  ;;  %v595_v45 = vmul.f32 %v5479_v39, %v5479_v39 }
 0x190   :  { %v695_v10 = vsel %vm155_vm0, %v594_v51, 0.0 }
 0x191   :  { %v495_v15 = vadd.f32 %v494_v42, %v493_v47  ;;  %v690_v46 = vadd.f32 %v689_v37, %v688_v50  ;;  %v500_v50 = vsel %vm155_vm0, %v5479_v39, 0.0  ;;  %v596_v37 = vmul.f32 %v5484_v44, %v5484_v44 }
 0x192   :  { %v697_v12 = vsel %vm155_vm0, %v595_v45, 0.0 }
 0x193   :  { %v497_v28 = vadd.f32 %v496_v48, %v495_v15  ;;  %v692_v6 = vadd.f32 %v691_v0, %v690_v46  ;;  %v502_v46 = vsel %vm155_vm0, %v5484_v44, 0.0  ;;  %v597_v0 = vmul.f32 %v5489_v49, %v5489_v49 }
 0x194   :  { %v699_v51 = vsel %vm155_vm0, %v596_v37, 0.0 }
 0x195   :  { %v499_v35 = vadd.f32 %v498_v1, %v497_v28  ;;  %v694_v47 = vadd.f32 %v693_v58, %v692_v6  ;;  %v5774_v6 = vpop.f32.mrf.mxu2  ;;  %v504_v58 = vsel %vm155_vm0, %v5489_v49, 0.0  ;;  %v598_v1 = vmul.f32 %v5494_v54, %v5494_v54 }
 0x197   :  { %v501_v42 = vadd.f32 %v500_v50, %v499_v35  ;;  %v696_v15 = vadd.f32 %v695_v10, %v694_v47  ;;  %v701_v47 = vsel %vm155_vm0, %v597_v0, 0.0  ;;  %v506_v10 = vsel %vm155_vm0, %v5494_v54, 0.0 }
 0x198   :  { %v599_v50 = vmul.f32 %v5499_v61, %v5499_v61  ;;  %v703_v37 = vsel %vm155_vm0, %v598_v1, 0.0 }
 0x199   :  { %v503_v48 = vadd.f32 %v502_v46, %v501_v42  ;;  %v698_v28 = vadd.f32 %v697_v12, %v696_v15  ;;  %v508_v12 = vsel %vm155_vm0, %v5499_v61, 0.0  ;;  %v600_v46 = vmul.f32 %v5504_v5, %v5504_v5 }
 0x19a   :  { %v705_v0 = vsel %vm155_vm0, %v599_v50, 0.0 }
 0x19b   :  { %v505_v35 = vadd.f32 %v504_v58, %v503_v48  ;;  %v700_v45 = vadd.f32 %v699_v51, %v698_v28  ;;  %v510_v51 = vsel %vm155_vm0, %v5504_v5, 0.0  ;;  %v601_v58 = vmul.f32 %v5509_v7, %v5509_v7 }
 0x19c   :  { %v707_v1 = vsel %vm155_vm0, %v600_v46, 0.0 }
 0x19d   :  { %v507_v42 = vadd.f32 %v506_v10, %v505_v35  ;;  %v702_v15 = vadd.f32 %v701_v47, %v700_v45  ;;  %v512_v47 = vsel %vm155_vm0, %v5509_v7, 0.0  ;;  %v602_v10 = vmul.f32 %v5514_v16, %v5514_v16 }
 0x19e   :  { %v709_v50 = vsel %vm155_vm0, %v601_v58, 0.0 }
 0x19f   :  { %v509_v48 = vadd.f32 %v508_v12, %v507_v42  ;;  %v704_v28 = vadd.f32 %v703_v37, %v702_v15  ;;  %v5801_v37 = vpop.f32.mrf.mxu2  ;;  %v514_v12 = vsel %vm155_vm0, %v5514_v16, 0.0  ;;  %v605_v16 = vmul.f32 %v5528_v27, %v5528_v27 }
 0x1a1   :  { %v706_v35 = vadd.f32 %v705_v0, %v704_v28  ;;  %v511_v45 = vadd.f32 %v510_v51, %v509_v48  ;;  %v603_v48 = vmul.f32 %v5518_v20, %v5518_v20  ;;  %v711_v0 = vsel %vm155_vm0, %v602_v10, 0.0 }
 0x1a2   :  { %v516_v51 = vsel %vm155_vm0, %v5518_v20, 0.0 }
 0x1a3   :  { %v513_v42 = vadd.f32 %v512_v47, %v511_v45  ;;  %v708_v15 = vadd.f32 %v707_v1, %v706_v35  ;;  %v604_v35 = vmul.f32 %v5522_v23, %v5522_v23  ;;  %v713_v58 = vsel %vm155_vm0, %v603_v48, 0.0 }
 0x1a4   :  { %v518_v47 = vsel %vm155_vm0, %v5522_v23, 0.0  ;;  %v717_v48 = vsel %vm155_vm0, %v605_v16, 0.0 }
 0x1a5   :  { %v515_v28 = vadd.f32 %v514_v12, %v513_v42  ;;  %v710_v46 = vadd.f32 %v709_v50, %v708_v15  ;;  %v715_v10 = vsel %vm155_vm0, %v604_v35, 0.0  ;;  %v520_v50 = vsel %vm155_vm0, %v5528_v27, 0.0 }
 0x1a6   :  { %v606_v12 = vmul.f32 %v5532_v31, %v5532_v31 }
 0x1a7   :  { %v517_v45 = vadd.f32 %v516_v51, %v515_v28  ;;  %v712_v1 = vadd.f32 %v711_v0, %v710_v46  ;;  %v522_v0 = vsel %vm155_vm0, %v5532_v31, 0.0  ;;  %v607_v51 = vmul.f32 %v5544_v41, %v5544_v41 }
 0x1a8   :  { %v719_v35 = vsel %vm155_vm0, %v606_v12, 0.0 }
 0x1a9   :  { %v519_v42 = vadd.f32 %v518_v47, %v517_v45  ;;  %v714_v15 = vadd.f32 %v713_v58, %v712_v1  ;;  %v5828_v58 = vpop.f32.mrf.mxu2  ;;  %v524_v47 = vsel %vm155_vm0, %v5544_v41, 0.0  ;;  %v610_v41 = vmul.f32 %v5636_v57, %v5636_v57 }
 0x1ab   :  { %v521_v28 = vadd.f32 %v520_v50, %v519_v42  ;;  %v716_v46 = vadd.f32 %v715_v10, %v714_v15  ;;  %v608_v42 = vmul.f32 %v5576_v56, %v5576_v56  ;;  %v721_v10 = vsel %vm155_vm0, %v607_v51, 0.0 }
 0x1ac   :  { %v526_v50 = vsel %vm155_vm0, %v5576_v56, 0.0 }
 0x1ad   :  { %v523_v45 = vadd.f32 %v522_v0, %v521_v28  ;;  %v718_v1 = vadd.f32 %v717_v48, %v716_v46  ;;  %v609_v28 = vmul.f32 %v5607_v36, %v5607_v36  ;;  %v723_v12 = vsel %vm155_vm0, %v608_v42, 0.0 }
 0x1ae   :  { %v528_v0 = vsel %vm155_vm0, %v5607_v36, 0.0  ;;  %v727_v42 = vsel %vm155_vm0, %v610_v41, 0.0 }
 0x1af   :  { %v525_v15 = vadd.f32 %v524_v47, %v523_v45  ;;  %v720_v16 = vadd.f32 %v719_v35, %v718_v1  ;;  %v725_v51 = vsel %vm155_vm0, %v609_v28, 0.0  ;;  %v530_v35 = vsel %vm155_vm0, %v5636_v57, 0.0 }
 0x1b0   :  { %v611_v47 = vmul.f32 %v5665_v40, %v5665_v40 }
 0x1b1   :  { %v527_v46 = vadd.f32 %v526_v50, %v525_v15  ;;  %v722_v48 = vadd.f32 %v721_v10, %v720_v16  ;;  %v532_v10 = vsel %vm155_vm0, %v5665_v40, 0.0  ;;  %v612_v50 = vmul.f32 %v5694_v52, %v5694_v52 }
 0x1b2   :  { %v729_v28 = vsel %vm155_vm0, %v611_v47, 0.0 }
 0x1b3   :  { %v529_v45 = vadd.f32 %v528_v0, %v527_v46  ;;  %v724_v1 = vadd.f32 %v723_v12, %v722_v48  ;;  %v5855_v12 = vpop.f32.mrf.mxu2  ;;  %v534_v0 = vsel %vm155_vm0, %v5694_v52, 0.0  ;;  %v615_v52 = vmul.f32 %v5774_v6, %v5774_v6 }
 0x1b5   :  { %v531_v15 = vadd.f32 %v530_v35, %v529_v45  ;;  %v726_v16 = vadd.f32 %v725_v51, %v724_v1  ;;  %v613_v45 = vmul.f32 %v5719_v62, %v5719_v62  ;;  %v731_v51 = vsel %vm155_vm0, %v612_v50, 0.0 }
 0x1b6   :  { %v536_v35 = vsel %vm155_vm0, %v5719_v62, 0.0 }
 0x1b7   :  { %v533_v46 = vadd.f32 %v532_v10, %v531_v15  ;;  %v728_v48 = vadd.f32 %v727_v42, %v726_v16  ;;  %v614_v15 = vmul.f32 %v5747_v25, %v5747_v25  ;;  %v733_v47 = vsel %vm155_vm0, %v613_v45, 0.0 }
 0x1b8   :  { %v538_v10 = vsel %vm155_vm0, %v5747_v25, 0.0  ;;  %v737_v45 = vsel %vm155_vm0, %v615_v52, 0.0 }
 0x1b9   :  { %v535_v1 = vadd.f32 %v534_v0, %v533_v46  ;;  %v730_v41 = vadd.f32 %v729_v28, %v728_v48  ;;  %v735_v50 = vsel %vm155_vm0, %v614_v15, 0.0  ;;  %v540_v28 = vsel %vm155_vm0, %v5774_v6, 0.0 }
 0x1ba   :  { %v616_v0 = vmul.f32 %v5801_v37, %v5801_v37 }
 0x1bb   :  { %v732_v16 = vadd.f32 %v731_v51, %v730_v41  ;;  %v537_v42 = vadd.f32 %v536_v35, %v535_v1  ;;  %v542_v51 = vsel %vm155_vm0, %v5801_v37, 0.0  ;;  %v617_v35 = vmul.f32 %v5828_v58, %v5828_v58 }
 0x1bc   :  { %v739_v15 = vsel %vm155_vm0, %v616_v0, 0.0 }
 0x1bd   :  { %v734_v46 = vadd.f32 %v733_v47, %v732_v16  ;;  %v539_v48 = vadd.f32 %v538_v10, %v537_v42  ;;  %v5882_v47 = vpop.f32.mrf.mxu2  ;;  %v544_v10 = vsel %vm155_vm0, %v5828_v58, 0.0 }
 0x1bf   :  { %v736_v41 = vadd.f32 %v735_v50, %v734_v46  ;;  %v541_v1 = vadd.f32 %v540_v28, %v539_v48  ;;  %v618_v46 = vmul.f32 %v5855_v12, %v5855_v12  ;;  %v741_v50 = vsel %vm155_vm0, %v617_v35, 0.0 }
 0x1c0   :  { %v546_v28 = vsel %vm155_vm0, %v5855_v12, 0.0 }
 0x1c1   :  { %v738_v16 = vadd.f32 %v737_v45, %v736_v41  ;;  %v543_v42 = vadd.f32 %v542_v51, %v541_v1  ;;  %v619_v41 = vmul.f32 %v5882_v47, %v5882_v47  ;;  %v743_v0 = vsel %vm155_vm0, %v618_v46, 0.0 }
 0x1c2   :  { %v548_v51 = vsel %vm155_vm0, %v5882_v47, 0.0 }
 0x1c3   :  { %v740_v48 = vadd.f32 %v739_v15, %v738_v16  ;;  %v545_v52 = vadd.f32 %v544_v10, %v543_v42  ;;  %v745_v16 = vsel %vm155_vm0, %v619_v41, 0.0 }
 0x1c5   :  { %v742_v1 = vadd.f32 %v741_v50, %v740_v48  ;;  %v547_v45 = vadd.f32 %v546_v28, %v545_v52 }
 0x1c7   :  { %v744_v62 = vadd.f32 %v743_v0, %v742_v1  ;;  %v549_v40 = vadd.f32 %v548_v51, %v547_v45 }
 0x1c9   :  { %v550_v42 = vrot.slane %v549_v40, 4  ;;  %v746_v15 = vadd.f32 %v745_v16, %v744_v62 }
 0x1cb   :  { %v551_v35 = vadd.f32 %v550_v42, %v549_v40  ;;  %v747_v10 = vrot.slane %v746_v15, 4 }
 0x1cd   :  { %v552_v57 = vrot.slane %v551_v35, 2  ;;  %v748_v36 = vadd.f32 %v747_v10, %v746_v15  ;;  %v12155_v10 = vld [vmem:[#allocation16_spill] sm:$0xff]  ;;  %v12156_v15 = vld [vmem:[#allocation18_spill] sm:$0xff] }
 0x1cf   :  { %v553_v56 = vadd.f32 %v552_v57, %v551_v35  ;;  %v749_v31 = vrot.slane %v748_v36, 2  ;;  %v12152_v35 = vld [vmem:[#allocation9_spill] sm:$0xff] }
 0x1d1   :  { %v554_v27 = vrot.slane %v553_v56, 1  ;;  %v750_v48 = vadd.f32 %v749_v31, %v748_v36 }
 0x1d3   :  { %v555_v52 = vadd.f32 %v554_v27, %v553_v56  ;;  %v751_v50 = vrot.slane %v750_v48, 1 }
 0x1d5   :  { %v752_v46 = vadd.f32 %v751_v50, %v750_v48  ;;  %v5898_v28 = vmul.f32 0.001953125, %v555_v52  ;;  %v12153_v50 = vld [vmem:[#allocation10_spill] sm:$0xff] }
 0x1d6   :  { %v12158_v48 = vld [vmem:[#allocation22_spill] sm:$0xff] }
 0x1d7   :  { %v754_v23 = vmul.f32 0.001953125, %v752_v46  ;;  %v755_v1 = vmul.f32 %v5898_v28, %v5898_v28  ;;  %v816_v57 = vsub.f32 %v5747_v25, %v5898_v28  ;;  %v817_v27 = vsub.f32 %v5774_v6, %v5898_v28  ;;  %v5978_v46 = vld [vmem:[%s11828_s3] ss:$0 sm:$0xff]  ;;  %v12163_v6 = vld [vmem:[#allocation31_spill] sm:$0xff] }
 0x1d8   :  { %v818_v31 = vsub.f32 %v5801_v37, %v5898_v28  ;;  %v819_v56 = vsub.f32 %v5828_v58, %v5898_v28  ;;  %v821_v36 = vsub.f32 %v5882_v47, %v5898_v28  ;;  %v12161_v37 = vld [vmem:[#allocation29_spill] sm:$0xff]  ;;  %12162 = vst [vmem:[#allocation10_spill] sm:$0xff] %v5978_v46  ;;  %v790_v7 = vsub.f32 %v5335_v4, %v5898_v28 }
 0x1d9   :  { %v756_v41 = vsub.f32 %v754_v23, %v755_v1  ;;  %v820_v23 = vsub.f32 %v5855_v12, %v5898_v28  ;;  %v12164_v25 = vld [vmem:[#allocation33_spill] sm:$0xff] }
 0x1db   :  { %v757_v45 = vmax.f32 %v756_v41, 0.0  ;;  %v12154_v41 = vld [vmem:[#allocation11_spill] sm:$0xff] }
 0x1dd   :  { %v822_v62 = vadd.f32 1e-05, %v757_v45 }
 0x1df   :  { %5030 = vrsqrt.f32 %v822_v62  ;;  %vm829_vm3 = vweird.f32 %v822_v62 }
 0x1e5   :  { %v5031_v40 = vpop.eup %5030 }
 0x1e6   :  { %v824_v0 = vmul.f32 %v5031_v40, %v822_v62  ;;  %vm830_vm2 = vweird.f32 %v5031_v40  ;;  %v12159_v62 = vld [vmem:[#allocation24_spill] sm:$0xff] }
 0x1e7   :  { %vm831_vm4 = vmor %vm829_vm3, %vm830_vm2 }
 0x1e8   :  { %v825_v51 = vmul.f32 %v5031_v40, %v824_v0  ;;  %v12160_v0 = vld [vmem:[#allocation27_spill] sm:$0xff] }
 0x1ea   :  { %v826_v12 = vmul.f32 0.5, %v825_v51  ;;  %v5957_v51 = vld [vmem:[%s11827_s2] ss:$0 sm:$0xff] }
 0x1eb   :  { %12157 = vst [vmem:[#allocation9_spill] sm:$0xff] %v5957_v51 }
 0x1ec   :  { %v827_v1 = vsub.f32 1.5, %v826_v12 }
 0x1ee   :  { %v828_v12 = vmul.f32 %v5031_v40, %v827_v1 }
 0x1f0   :  { %v5967_v42 = vsel %vm831_vm4, %v5031_v40, %v828_v12 }
 0x1f1   :  { %v891_v1 = vmul.f32 %v5967_v42, %v816_v57  ;;  %v892_v45 = vmul.f32 %v5967_v42, %v817_v27  ;;  %v893_v40 = vmul.f32 %v5967_v42, %v818_v31  ;;  %v894_v12 = vmul.f32 %v5967_v42, %v819_v56 }
 0x1f2   :  { %v895_v47 = vmul.f32 %v5967_v42, %v820_v23  ;;  %v896_v58 = vmul.f32 %v5967_v42, %v821_v36  ;;  %v12165_v36 = vld [vmem:[#allocation35_spill] sm:$0xff] }
 0x1f3   :  { %v958_v20 = vmul.f32 %v5957_v51, %v891_v1  ;;  %v959_v57 = vmul.f32 %v5957_v51, %v892_v45  ;;  %v960_v27 = vmul.f32 %v5957_v51, %v893_v40  ;;  %v961_v31 = vmul.f32 %v5957_v51, %v894_v12 }
 0x1f4   :  { %v962_v56 = vmul.f32 %v5957_v51, %v895_v47  ;;  %v963_v23 = vmul.f32 %v5957_v51, %v896_v58  ;;  %v789_v58 = vsub.f32 %v5717_v30, %v5898_v28  ;;  %v12167_v51 = vsub.f32 %v5295_v59, %v5898_v28 }
 0x1f5   :  { %v1025_v16 = vadd.f32 %v5978_v46, %v958_v20  ;;  %v1026_v1 = vadd.f32 %v5978_v46, %v959_v57  ;;  %v1027_v45 = vadd.f32 %v5978_v46, %v960_v27  ;;  %v1028_v40 = vadd.f32 %v5978_v46, %v961_v31 }
 0x1f6   :  { %v1029_v12 = vadd.f32 %v5978_v46, %v962_v56  ;;  %v1030_v47 = vadd.f32 %v5978_v46, %v963_v23  ;;  %v12166_v56 = vsub.f32 %v5273_v55, %v5898_v28  ;;  %v6020_v5 = vmul.f32 %v5967_v42, %v12167_v51 }
 0x1f7   :  { %vm1089_vm5 = vcmp.ge.f32.partialorder %v1025_v16, 0.0  ;;  %vm1090_vm6 = vcmp.ge.f32.partialorder %v1026_v1, 0.0  ;;  %vm1091_vm7 = vcmp.ge.f32.partialorder %v1027_v45, 0.0  ;;  %vm1092_vm8 = vcmp.ge.f32.partialorder %v1028_v40, 0.0 }
 0x1f8   :  { %vm1093_vm9 = vcmp.ge.f32.partialorder %v1029_v12, 0.0  ;;  %vm1094_vm10 = vcmp.ge.f32.partialorder %v1030_v47, 0.0  ;;  %v1153_v20 = vmul.f32 0.01, %v1025_v16  ;;  %v1154_v57 = vmul.f32 0.01, %v1026_v1 }
 0x1f9   :  { %v1155_v27 = vmul.f32 0.01, %v1027_v45  ;;  %v1156_v31 = vmul.f32 0.01, %v1028_v40  ;;  %v1157_v52 = vmul.f32 0.01, %v1029_v12  ;;  %v6014_v23 = vmul.f32 %v5967_v42, %v12166_v56 }
 0x1fa   :  { %v1158_v30 = vmul.f32 0.01, %v1030_v47  ;;  %v1217_v46 = vsel %vm1089_vm5, %v1025_v16, %v1153_v20  ;;  %v1218_v4 = vsel %vm1090_vm6, %v1026_v1, %v1154_v57  ;;  %v12168_v55 = vsub.f32 %v5313_v63, %v5898_v28 }
 0x1fb   :  { %v1219_v61 = vsel %vm1091_vm7, %v1027_v45, %v1155_v27  ;;  %v1220_v54 = vsel %vm1092_vm8, %v1028_v40, %v1156_v31  ;;  %v1221_v49 = vsel %vm1093_vm9, %v1029_v12, %v1157_v52  ;;  %1391 = vst.msk [vmem:[#allocation2 + $0x301] sm:$0xff] %vm155_vm0, %v1217_v46  ;;  %v12169_v59 = vsub.f32 %v5333_v3, %v5898_v28 }
 0x1fc   :  { %v6027_v56 = vmul.f32 %v5967_v42, %v12168_v55  ;;  %v1222_v16 = vsel %vm1094_vm10, %v1030_v47, %v1158_v30  ;;  %1392 = vst.msk [vmem:[#allocation2 + $0x309] sm:$0xff] %vm155_vm0, %v1218_v4  ;;  %v12170_v52 = vsub.f32 %v5353_v8, %v5898_v28  ;;  %v12171_v63 = vsub.f32 %v5375_v13, %v5898_v28 }
 0x1fd   :  { %v6035_v51 = vmul.f32 %v5967_v42, %v12169_v59  ;;  %1393 = vst.msk [vmem:[#allocation2 + $0x319] sm:$0xff] %vm155_vm0, %v1219_v61  ;;  %v12172_v3 = vsub.f32 %v5395_v18, %v5898_v28  ;;  %v12173_v8 = vsub.f32 %v5416_v22, %v5898_v28  ;;  %v12174_v13 = vsub.f32 %v12152_v35, %v5898_v28 }
 0x1fe   :  { %v6041_v46 = vmul.f32 %v5967_v42, %v12170_v52  ;;  %v6047_v1 = vmul.f32 %v5967_v42, %v12171_v63  ;;  %v12175_v61 = vsub.f32 %v5458_v33, %v5898_v28  ;;  %1394 = vst.msk [vmem:[#allocation2 + $0x321] sm:$0xff] %vm155_vm0, %v1220_v54  ;;  %v12176_v22 = vsub.f32 %v5477_v38, %v5898_v28 }
 0x1ff   :  { %v6054_v45 = vmul.f32 %v5967_v42, %v12172_v3  ;;  %v6060_v40 = vmul.f32 %v5967_v42, %v12173_v8  ;;  %v6066_v12 = vmul.f32 %v5967_v42, %v12174_v13  ;;  %v12177_v35 = vsub.f32 %v12153_v50, %v5898_v28  ;;  %1395 = vst.msk [vmem:[#allocation2 + $0x331] sm:$0xff] %vm155_vm0, %v1221_v49 }
 0x200   :  { %v6072_v18 = vmul.f32 %v5967_v42, %v12175_v61  ;;  %v6079_v47 = vmul.f32 %v5967_v42, %v12176_v22  ;;  %v12178_v33 = vsub.f32 %v12154_v41, %v5898_v28  ;;  %v12179_v54 = vsub.f32 %v5492_v53, %v5898_v28  ;;  %1396 = vst.msk [vmem:[#allocation2 + $0x339] sm:$0xff] %vm155_vm0, %v1222_v16 }
 0x201   :  { %v6085_v20 = vmul.f32 %v5967_v42, %v12177_v35  ;;  %v12180_v50 = vsub.f32 %v5497_v60, %v5898_v28  ;;  %v12181_v41 = vsub.f32 %v5502_v2, %v5898_v28  ;;  %v12182_v53 = vsub.f32 %v12155_v10, %v5898_v28 }
 0x202   :  { %v6091_v57 = vmul.f32 %v5967_v42, %v12178_v33  ;;  %v6097_v38 = vmul.f32 %v5967_v42, %v12179_v54  ;;  %v12183_v49 = vsub.f32 %v12156_v15, %v5898_v28  ;;  %v12184_v2 = vsub.f32 %v5516_v17, %v5898_v28 }
 0x203   :  { %v6104_v27 = vmul.f32 %v5967_v42, %v12180_v50  ;;  %v6110_v31 = vmul.f32 %v5967_v42, %v12181_v41  ;;  %v6116_v30 = vmul.f32 %v5967_v42, %v12182_v53  ;;  %v12185_v10 = vsub.f32 %v5520_v21, %v5898_v28 }
 0x204   :  { %v6122_v60 = vmul.f32 %v5967_v42, %v12183_v49  ;;  %v6129_v4 = vmul.f32 %v5967_v42, %v12184_v2  ;;  %v12186_v15 = vsub.f32 %v12158_v48, %v5898_v28  ;;  %v12187_v16 = vsub.f32 %v5526_v26, %v5898_v28 }
 0x205   :  { %v6135_v55 = vmul.f32 %v5967_v42, %v12185_v10  ;;  %v12188_v52 = vsub.f32 %v12159_v62, %v5898_v28  ;;  %v12189_v63 = vsub.f32 %v5534_v32, %v5898_v28  ;;  %v12190_v3 = vsub.f32 %v12160_v0, %v5898_v28 }
 0x206   :  { %v6141_v59 = vmul.f32 %v5967_v42, %v12186_v15  ;;  %v6147_v17 = vmul.f32 %v5967_v42, %v12187_v16  ;;  %v12191_v8 = vsub.f32 %v5583_v11, %v5898_v28  ;;  %v12192_v13 = vsub.f32 %v12161_v37, %v5898_v28 }
 0x207   :  { %v6153_v21 = vmul.f32 %v5967_v42, %v12188_v52  ;;  %v6159_v48 = vmul.f32 %v5967_v42, %v12189_v63  ;;  %v6165_v26 = vmul.f32 %v5967_v42, %v12190_v3  ;;  %v12193_v61 = vsub.f32 %v12163_v6, %v5898_v28 }
 0x208   :  { %v6171_v62 = vmul.f32 %v5967_v42, %v12191_v8  ;;  %v6177_v32 = vmul.f32 %v5967_v42, %v12192_v13  ;;  %v12194_v22 = vsub.f32 %v12164_v25, %v5898_v28  ;;  %v12195_v35 = vsub.f32 %v12165_v36, %v5898_v28  ;;  %v12203_v8 = vld [vmem:[#allocation15_spill] sm:$0xff] }
 0x209   :  { %v6183_v0 = vmul.f32 %v5967_v42, %v12193_v61  ;;  %v12196_v33 = vsub.f32 %v5701_v43, %v5898_v28  ;;  %v6204_v54 = vmul.f32 %v5967_v42, %v789_v58  ;;  %v6207_v25 = vmul.f32 %v5967_v42, %v790_v7  ;;  %v12204_v61 = vld [vmem:[#allocation17_spill] sm:$0xff] }
 0x20a   :  { %v6189_v11 = vmul.f32 %v5967_v42, %v12194_v22  ;;  %v6195_v37 = vmul.f32 %v5967_v42, %v12195_v35  ;;  %v791_v50 = vsub.f32 %v5355_v9, %v5898_v28  ;;  %v792_v36 = vsub.f32 %v5377_v14, %v5898_v28  ;;  %v12205_v35 = vld [vmem:[#allocation19_spill] sm:$0xff] }
 0x20b   :  { %v6201_v6 = vmul.f32 %v5967_v42, %v12196_v33  ;;  %v793_v41 = vsub.f32 %v5397_v19, %v5898_v28  ;;  %v794_v43 = vsub.f32 %v5418_v24, %v5898_v28  ;;  %v795_v53 = vsub.f32 %v5439_v29, %v5898_v28  ;;  %v12197_v29 = vld [vmem:[#allocation12_spill] sm:$0xff] }
 0x20c   :  { %v6220_v58 = vmul.f32 %v5967_v42, %v791_v50  ;;  %v796_v7 = vsub.f32 %v5460_v34, %v5898_v28  ;;  %v797_v9 = vsub.f32 %v5479_v39, %v5898_v28  ;;  %v6227_v14 = vmul.f32 %v5967_v42, %v792_v36  ;;  %v12198_v39 = vld [vmem:[#allocation13_spill] sm:$0xff]  ;;  %v12207_v36 = vld [vmem:[#allocation20_spill] sm:$0xff] }
 0x20d   :  { %v6230_v19 = vmul.f32 %v5967_v42, %v793_v41  ;;  %v798_v24 = vsub.f32 %v5484_v44, %v5898_v28  ;;  %v799_v49 = vsub.f32 %v12197_v29, %v5898_v28  ;;  %v6237_v2 = vmul.f32 %v5967_v42, %v794_v43  ;;  %v12200_v44 = vld [vmem:[#allocation14_spill] sm:$0xff]  ;;  %v12208_v43 = vld [vmem:[#allocation21_spill] sm:$0xff] }
 0x20e   :  { %v6240_v34 = vmul.f32 %v5967_v42, %v795_v53  ;;  %v800_v10 = vsub.f32 %v12198_v39, %v5898_v28  ;;  %v6245_v15 = vmul.f32 %v5967_v42, %v796_v7  ;;  %v6248_v16 = vmul.f32 %v5967_v42, %v797_v9  ;;  %v12209_v7 = vld [vmem:[#allocation23_spill] sm:$0xff]  ;;  %v12211_v29 = vld [vmem:[#allocation25_spill] sm:$0xff]  ;;  %v12212_v39 = vld [vmem:[#allocation26_spill] sm:$0xff] }
 0x20f   :  { %v801_v52 = vsub.f32 %v12200_v44, %v5898_v28  ;;  %v6253_v63 = vmul.f32 %v5967_v42, %v798_v24  ;;  %v6256_v3 = vmul.f32 %v5967_v42, %v799_v49  ;;  %v802_v13 = vsub.f32 %v12203_v8, %v5898_v28 }
 0x210   :  { %12199 = vst [vmem:[#allocation11_spill] sm:$0xff] %v6248_v16  ;;  %v803_v22 = vsub.f32 %v12204_v61, %v5898_v28  ;;  %v804_v33 = vsub.f32 %v12205_v35, %v5898_v28  ;;  %v6265_v50 = vmul.f32 %v5967_v42, %v800_v10  ;;  %v805_v41 = vsub.f32 %v12207_v36, %v5898_v28  ;;  %v12213_v10 = vld [vmem:[#allocation28_spill] sm:$0xff]  ;;  %v12215_v35 = vld [vmem:[#allocation30_spill] sm:$0xff] }
 0x211   :  { %12201 = vst [vmem:[#allocation16_spill] sm:$0xff] %v6253_v63  ;;  %v806_v53 = vsub.f32 %v12208_v43, %v5898_v28  ;;  %v807_v9 = vsub.f32 %v12209_v7, %v5898_v28  ;;  %v6274_v24 = vmul.f32 %v5967_v42, %v801_v52  ;;  %v808_v49 = vsub.f32 %v12211_v29, %v5898_v28  ;;  %v12216_v43 = vld [vmem:[#allocation32_spill] sm:$0xff]  ;;  %v12217_v52 = vld [vmem:[#allocation34_spill] sm:$0xff] }
 0x212   :  { %12202 = vst [vmem:[#allocation18_spill] sm:$0xff] %v6256_v3  ;;  %v809_v44 = vsub.f32 %v12212_v39, %v5898_v28  ;;  %v810_v8 = vsub.f32 %v12213_v10, %v5898_v28  ;;  %v6283_v61 = vmul.f32 %v5967_v42, %v802_v13  ;;  %v811_v36 = vsub.f32 %v12215_v35, %v5898_v28 }
 0x213   :  { %12206 = vst [vmem:[#allocation22_spill] sm:$0xff] %v6265_v50  ;;  %v812_v7 = vsub.f32 %v12216_v43, %v5898_v28  ;;  %v878_v29 = vmul.f32 %v5967_v42, %v803_v22  ;;  %v12218_v50 = vld [vmem:[#allocation36_spill] sm:$0xff]  ;;  %v879_v3 = vmul.f32 %v5967_v42, %v804_v33  ;;  %v880_v10 = vmul.f32 %v5967_v42, %v805_v41 }
 0x214   :  { %12210 = vst [vmem:[#allocation24_spill] sm:$0xff] %v6274_v24  ;;  %v813_v24 = vsub.f32 %v12217_v52, %v5898_v28  ;;  %v814_v39 = vsub.f32 %v12218_v50, %v5898_v28  ;;  %v881_v13 = vmul.f32 %v5967_v42, %v806_v53  ;;  %v882_v63 = vmul.f32 %v5967_v42, %v807_v9 }
 0x215   :  { %12214 = vst [vmem:[#allocation27_spill] sm:$0xff] %v6283_v61  ;;  %v12219_v61 = vld [vmem:[#allocation37_spill] sm:$0xff]  ;;  %v883_v43 = vmul.f32 %v5967_v42, %v808_v49  ;;  %v884_v52 = vmul.f32 %v5967_v42, %v809_v44  ;;  %v885_v22 = vmul.f32 %v5967_v42, %v810_v8  ;;  %v886_v16 = vmul.f32 %v5967_v42, %v811_v36 }
 0x216   :  { %v815_v35 = vsub.f32 %v12219_v61, %v5898_v28  ;;  %v887_v50 = vmul.f32 %v5967_v42, %v812_v7  ;;  %v888_v33 = vmul.f32 %v5967_v42, %v813_v24  ;;  %v889_v41 = vmul.f32 %v5967_v42, %v814_v39  ;;  %v12220_v28 = vld [vmem:[#allocation9_spill] sm:$0xff] }
 0x217   :  { %v900_v61 = vmul.f32 %v12220_v28, %v6014_v23  ;;  %v901_v9 = vmul.f32 %v12220_v28, %v6020_v5  ;;  %v902_v49 = vmul.f32 %v12220_v28, %v6027_v56  ;;  %v903_v44 = vmul.f32 %v12220_v28, %v6035_v51 }
 0x218   :  { %v890_v53 = vmul.f32 %v5967_v42, %v815_v35  ;;  %v904_v8 = vmul.f32 %v12220_v28, %v6041_v46  ;;  %v905_v24 = vmul.f32 %v12220_v28, %v6047_v1  ;;  %v906_v42 = vmul.f32 %v12220_v28, %v6054_v45 }
 0x219   :  { %v6324_v23 = vmul.f32 %v12220_v28, %v6060_v40  ;;  %v6328_v5 = vmul.f32 %v12220_v28, %v6066_v12  ;;  %v6332_v56 = vmul.f32 %v12220_v28, %v6072_v18  ;;  %v6336_v51 = vmul.f32 %v12220_v28, %v6079_v47  ;;  %v12224_v36 = vld [vmem:[#allocation18_spill] sm:$0xff] }
 0x21a   :  { %v6340_v46 = vmul.f32 %v12220_v28, %v6085_v20  ;;  %v6344_v1 = vmul.f32 %v12220_v28, %v6091_v57  ;;  %v6348_v45 = vmul.f32 %v12220_v28, %v6097_v38  ;;  %v6352_v40 = vmul.f32 %v12220_v28, %v6104_v27  ;;  %v12225_v7 = vld [vmem:[#allocation22_spill] sm:$0xff] }
 0x21b   :  { %v6356_v12 = vmul.f32 %v12220_v28, %v6110_v31  ;;  %v6360_v18 = vmul.f32 %v12220_v28, %v6116_v30  ;;  %v6364_v47 = vmul.f32 %v12220_v28, %v6122_v60  ;;  %v6368_v20 = vmul.f32 %v12220_v28, %v6129_v4  ;;  %v12227_v39 = vld [vmem:[#allocation24_spill] sm:$0xff] }
 0x21c   :  { %v6372_v57 = vmul.f32 %v12220_v28, %v6135_v55  ;;  %v6376_v38 = vmul.f32 %v12220_v28, %v6141_v59  ;;  %v6380_v27 = vmul.f32 %v12220_v28, %v6147_v17  ;;  %v6384_v31 = vmul.f32 %v12220_v28, %v6153_v21  ;;  %v12228_v35 = vld [vmem:[#allocation27_spill] sm:$0xff] }
 0x21d   :  { %v6388_v30 = vmul.f32 %v12220_v28, %v6159_v48  ;;  %v6392_v60 = vmul.f32 %v12220_v28, %v6165_v26  ;;  %v6396_v4 = vmul.f32 %v12220_v28, %v6171_v62  ;;  %v6400_v55 = vmul.f32 %v12220_v28, %v6177_v32 }
 0x21e   :  { %v6404_v59 = vmul.f32 %v12220_v28, %v6183_v0  ;;  %v6408_v17 = vmul.f32 %v12220_v28, %v6189_v11  ;;  %v6412_v21 = vmul.f32 %v12220_v28, %v6195_v37  ;;  %v6416_v48 = vmul.f32 %v12220_v28, %v6201_v6 }
 0x21f   :  { %v6420_v26 = vmul.f32 %v12220_v28, %v6204_v54  ;;  %v6424_v62 = vmul.f32 %v12220_v28, %v6207_v25  ;;  %v6428_v32 = vmul.f32 %v12220_v28, %v6220_v58  ;;  %v6432_v0 = vmul.f32 %v12220_v28, %v6227_v14  ;;  %v12221_v25 = vld [vmem:[#allocation11_spill] sm:$0xff]  ;;  %v12223_v14 = vld [vmem:[#allocation16_spill] sm:$0xff] }
 0x220   :  { %v6436_v11 = vmul.f32 %v12220_v28, %v6230_v19  ;;  %v6440_v37 = vmul.f32 %v12220_v28, %v6237_v2  ;;  %v6444_v6 = vmul.f32 %v12220_v28, %v6240_v34  ;;  %v6448_v54 = vmul.f32 %v12220_v28, %v6245_v15 }
 0x221   :  { %v6452_v58 = vmul.f32 %v12220_v28, %v12221_v25  ;;  %v6456_v19 = vmul.f32 %v12220_v28, %v12223_v14  ;;  %v6460_v2 = vmul.f32 %v12220_v28, %v12224_v36  ;;  %v6464_v34 = vmul.f32 %v12220_v28, %v12225_v7 }
 0x222   :  { %v6468_v15 = vmul.f32 %v12220_v28, %v12227_v39  ;;  %v6472_v25 = vmul.f32 %v12220_v28, %v12228_v35  ;;  %v6478_v14 = vmul.f32 %v12220_v28, %v879_v3  ;;  %v6481_v36 = vmul.f32 %v12220_v28, %v880_v10 }
 0x223   :  { %12222 = vst [vmem:[#allocation29_spill] sm:$0xff] %v6452_v58  ;;  %v6475_v58 = vmul.f32 %v12220_v28, %v878_v29  ;;  %v6484_v7 = vmul.f32 %v12220_v28, %v881_v13  ;;  %v6490_v39 = vmul.f32 %v12220_v28, %v883_v43  ;;  %v6493_v35 = vmul.f32 %v12220_v28, %v884_v52  ;;  %v12237_v52 = vld [vmem:[#allocation10_spill] sm:$0xff] }
 0x224   :  { %12226 = vst [vmem:[#allocation31_spill] sm:$0xff] %v6464_v34  ;;  %v6487_v34 = vmul.f32 %v12220_v28, %v882_v63  ;;  %v6496_v29 = vmul.f32 %v12220_v28, %v885_v22  ;;  %v6499_v3 = vmul.f32 %v12220_v28, %v886_v16  ;;  %v6502_v10 = vmul.f32 %v12220_v28, %v887_v50 }
 0x225   :  { %12229 = vst [vmem:[#allocation33_spill] sm:$0xff] %v6490_v39  ;;  %v6505_v13 = vmul.f32 %v12220_v28, %v888_v33  ;;  %v6508_v63 = vmul.f32 %v12220_v28, %v889_v41  ;;  %v6511_v43 = vmul.f32 %v12220_v28, %v890_v53  ;;  %v968_v22 = vadd.f32 %v12237_v52, %v901_v9 }
 0x226   :  { %12230 = vst [vmem:[#allocation35_spill] sm:$0xff] %v6493_v35  ;;  %v967_v35 = vadd.f32 %v12237_v52, %v900_v61  ;;  %v970_v16 = vadd.f32 %v12237_v52, %v903_v44  ;;  %v971_v50 = vadd.f32 %v12237_v52, %v904_v8  ;;  %v972_v33 = vadd.f32 %v12237_v52, %v905_v24 }
 0x227   :  { %12231 = vst [vmem:[#allocation12_spill] sm:$0xff] %v6496_v29  ;;  %v969_v29 = vadd.f32 %v12237_v52, %v902_v49  ;;  %v973_v41 = vadd.f32 %v12237_v52, %v906_v42  ;;  %vm1032_vm12 = vcmp.ge.f32.partialorder %v968_v22, 0.0  ;;  %v974_v28 = vadd.f32 %v12237_v52, %v6324_v23 }
 0x228   :  { %12232 = vst [vmem:[#allocation13_spill] sm:$0xff] %v6499_v3  ;;  %vm1031_vm11 = vcmp.ge.f32.partialorder %v967_v35, 0.0  ;;  %v1098_v61 = vmul.f32 0.01, %v970_v16  ;;  %v975_v9 = vadd.f32 %v12237_v52, %v6328_v5  ;;  %vm1034_vm14 = vcmp.ge.f32.partialorder %v970_v16, 0.0 }
 0x229   :  { %12233 = vst [vmem:[#allocation14_spill] sm:$0xff] %v6502_v10  ;;  %v1095_v10 = vmul.f32 0.01, %v967_v35  ;;  %v1097_v53 = vmul.f32 0.01, %v969_v29  ;;  %vm1033_vm13 = vcmp.ge.f32.partialorder %v969_v29, 0.0  ;;  %v976_v8 = vadd.f32 %v12237_v52, %v6332_v56 }
 0x22a   :  { %12234 = vst [vmem:[#allocation15_spill] sm:$0xff] %v6505_v13  ;;  %v1096_v13 = vmul.f32 0.01, %v968_v22  ;;  %v1099_v49 = vmul.f32 0.01, %v971_v50  ;;  %vm1035_vm15 = vcmp.ge.f32.partialorder %v971_v50, 0.0  ;;  %v977_v42 = vadd.f32 %v12237_v52, %v6336_v51 }
 0x22b   :  { %12235 = vst [vmem:[#allocation17_spill] sm:$0xff] %v6508_v63  ;;  %v1159_v44 = vsel %vm1031_vm11, %v967_v35, %v1095_v10  ;;  %v1100_v24 = vmul.f32 0.01, %v972_v33  ;;  %vm1036_vm1 = vcmp.ge.f32.partialorder %v972_v33, 0.0  ;;  %v1101_v63 = vmul.f32 0.01, %v973_v41 }
 0x22c   :  { %12236 = vst [vmem:[#allocation19_spill] sm:$0xff] %v6511_v43  ;;  %v1160_v43 = vsel %vm1032_vm12, %v968_v22, %v1096_v13  ;;  %v1161_v23 = vsel %vm1033_vm13, %v969_v29, %v1097_v53  ;;  %v978_v3 = vadd.f32 %v12237_v52, %v6340_v46  ;;  %vm1037_vm2 = vcmp.ge.f32.partialorder %v973_v41, 0.0 }
 0x22d   :  { %v1102_v5 = vmul.f32 0.01, %v974_v28  ;;  %v1162_v39 = vsel %vm1034_vm14, %v970_v16, %v1098_v61  ;;  %1333 = vst.msk [vmem:[#allocation2 + $0x19] sm:$0xff] %vm155_vm0, %v1159_v44  ;;  %v979_v56 = vadd.f32 %v12237_v52, %v6344_v1  ;;  %vm1038_vm3 = vcmp.ge.f32.partialorder %v974_v28, 0.0 }
 0x22e   :  { %v1103_v35 = vmul.f32 0.01, %v975_v9  ;;  %v1163_v10 = vsel %vm1035_vm15, %v971_v50, %v1099_v49  ;;  %1334 = vst.msk [vmem:[#allocation2 + $0x21] sm:$0xff] %vm155_vm0, %v1160_v43  ;;  %v980_v51 = vadd.f32 %v12237_v52, %v6348_v45  ;;  %vm1039_vm4 = vcmp.ge.f32.partialorder %v975_v9, 0.0 }
 0x22f   :  { %v1104_v29 = vmul.f32 0.01, %v976_v8  ;;  %v1164_v46 = vsel %vm1036_vm1, %v972_v33, %v1100_v24  ;;  %1335 = vst.msk [vmem:[#allocation2 + $0x31] sm:$0xff] %vm155_vm0, %v1161_v23  ;;  %v981_v13 = vadd.f32 %v12237_v52, %v6352_v40  ;;  %vm1040_vm5 = vcmp.ge.f32.partialorder %v976_v8, 0.0 }
 0x230   :  { %v1105_v22 = vmul.f32 0.01, %v977_v42  ;;  %v1165_v1 = vsel %vm1037_vm2, %v973_v41, %v1101_v63  ;;  %1336 = vst.msk [vmem:[#allocation2 + $0x39] sm:$0xff] %vm155_vm0, %v1162_v39  ;;  %v982_v43 = vadd.f32 %v12237_v52, %v6356_v12  ;;  %vm1041_vm6 = vcmp.ge.f32.partialorder %v977_v42, 0.0 }
 0x231   :  { %v1106_v45 = vmul.f32 0.01, %v978_v3  ;;  %v1166_v16 = vsel %vm1038_vm3, %v974_v28, %v1102_v5  ;;  %1337 = vst.msk [vmem:[#allocation2 + $0x49] sm:$0xff] %vm155_vm0, %v1163_v10  ;;  %v983_v50 = vadd.f32 %v12237_v52, %v6360_v18  ;;  %vm1042_vm7 = vcmp.ge.f32.partialorder %v978_v3, 0.0 }
 0x232   :  { %v1107_v40 = vmul.f32 0.01, %v979_v56  ;;  %v1167_v33 = vsel %vm1039_vm4, %v975_v9, %v1103_v35  ;;  %1338 = vst.msk [vmem:[#allocation2 + $0x51] sm:$0xff] %vm155_vm0, %v1164_v46  ;;  %v984_v39 = vadd.f32 %v12237_v52, %v6364_v47  ;;  %vm1043_vm8 = vcmp.ge.f32.partialorder %v979_v56, 0.0 }
 0x233   :  { %v1108_v12 = vmul.f32 0.01, %v980_v51  ;;  %v1168_v63 = vsel %vm1040_vm5, %v976_v8, %v1104_v29  ;;  %1339 = vst.msk [vmem:[#allocation2 + $0x61] sm:$0xff] %vm155_vm0, %v1165_v1  ;;  %v985_v41 = vadd.f32 %v12237_v52, %v6368_v20  ;;  %vm1044_vm9 = vcmp.ge.f32.partialorder %v980_v51, 0.0 }
 0x234   :  { %v1109_v18 = vmul.f32 0.01, %v981_v13  ;;  %v1169_v53 = vsel %vm1041_vm6, %v977_v42, %v1105_v22  ;;  %1340 = vst.msk [vmem:[#allocation2 + $0x69] sm:$0xff] %vm155_vm0, %v1166_v16  ;;  %v986_v28 = vadd.f32 %v12237_v52, %v6372_v57  ;;  %vm1045_vm10 = vcmp.ge.f32.partialorder %v981_v13, 0.0 }
 0x235   :  { %v1110_v47 = vmul.f32 0.01, %v982_v43  ;;  %v1170_v61 = vsel %vm1042_vm7, %v978_v3, %v1106_v45  ;;  %1341 = vst.msk [vmem:[#allocation2 + $0x79] sm:$0xff] %vm155_vm0, %v1167_v33  ;;  %v987_v9 = vadd.f32 %v12237_v52, %v6376_v38  ;;  %vm1046_vm11 = vcmp.ge.f32.partialorder %v982_v43, 0.0 }
 0x236   :  { %v1111_v20 = vmul.f32 0.01, %v983_v50  ;;  %v1171_v49 = vsel %vm1043_vm8, %v979_v56, %v1107_v40  ;;  %1342 = vst.msk [vmem:[#allocation2 + $0x81] sm:$0xff] %vm155_vm0, %v1168_v63  ;;  %v988_v44 = vadd.f32 %v12237_v52, %v6380_v27  ;;  %vm1047_vm12 = vcmp.ge.f32.partialorder %v983_v50, 0.0 }
 0x237   :  { %v1112_v57 = vmul.f32 0.01, %v984_v39  ;;  %v1172_v8 = vsel %vm1044_vm9, %v980_v51, %v1108_v12  ;;  %1343 = vst.msk [vmem:[#allocation2 + $0x91] sm:$0xff] %vm155_vm0, %v1169_v53  ;;  %v989_v3 = vadd.f32 %v12237_v52, %v6384_v31  ;;  %vm1048_vm13 = vcmp.ge.f32.partialorder %v984_v39, 0.0 }
 0x238   :  { %v1113_v38 = vmul.f32 0.01, %v985_v41  ;;  %v1173_v24 = vsel %vm1045_vm10, %v981_v13, %v1109_v18  ;;  %1344 = vst.msk [vmem:[#allocation2 + $0x99] sm:$0xff] %vm155_vm0, %v1170_v61  ;;  %v990_v42 = vadd.f32 %v12237_v52, %v6388_v30  ;;  %vm1049_vm14 = vcmp.ge.f32.partialorder %v985_v41, 0.0 }
 0x239   :  { %v1114_v27 = vmul.f32 0.01, %v986_v28  ;;  %v1174_v23 = vsel %vm1046_vm11, %v982_v43, %v1110_v47  ;;  %1345 = vst.msk [vmem:[#allocation2 + $0xa9] sm:$0xff] %vm155_vm0, %v1171_v49  ;;  %v991_v5 = vadd.f32 %v12237_v52, %v6392_v60  ;;  %vm1050_vm15 = vcmp.ge.f32.partialorder %v986_v28, 0.0 }
 0x23a   :  { %v1115_v31 = vmul.f32 0.01, %v987_v9  ;;  %v1175_v56 = vsel %vm1047_vm12, %v983_v50, %v1111_v20  ;;  %1346 = vst.msk [vmem:[#allocation2 + $0xb1] sm:$0xff] %vm155_vm0, %v1172_v8  ;;  %v992_v35 = vadd.f32 %v12237_v52, %v6396_v4  ;;  %vm1051_vm1 = vcmp.ge.f32.partialorder %v987_v9, 0.0  ;;  %v12238_v8 = vld [vmem:[#allocation29_spill] sm:$0xff] }
 0x23b   :  { %v1116_v30 = vmul.f32 0.01, %v988_v44  ;;  %v1176_v10 = vsel %vm1048_vm13, %v984_v39, %v1112_v57  ;;  %1347 = vst.msk [vmem:[#allocation2 + $0xc1] sm:$0xff] %vm155_vm0, %v1173_v24  ;;  %v993_v51 = vadd.f32 %v12237_v52, %v6400_v55  ;;  %vm1052_vm2 = vcmp.ge.f32.partialorder %v988_v44, 0.0 }
 0x23c   :  { %v1117_v60 = vmul.f32 0.01, %v989_v3  ;;  %v1177_v29 = vsel %vm1049_vm14, %v985_v41, %v1113_v38  ;;  %1348 = vst.msk [vmem:[#allocation2 + $0xc9] sm:$0xff] %vm155_vm0, %v1174_v23  ;;  %v994_v46 = vadd.f32 %v12237_v52, %v6404_v59  ;;  %vm1053_vm3 = vcmp.ge.f32.partialorder %v989_v3, 0.0 }
 0x23d   :  { %v1118_v4 = vmul.f32 0.01, %v990_v42  ;;  %v1178_v13 = vsel %vm1050_vm15, %v986_v28, %v1114_v27  ;;  %1349 = vst.msk [vmem:[#allocation2 + $0xd9] sm:$0xff] %vm155_vm0, %v1175_v56  ;;  %v995_v22 = vadd.f32 %v12237_v52, %v6408_v17  ;;  %vm1054_vm4 = vcmp.ge.f32.partialorder %v990_v42, 0.0 }
 0x23e   :  { %v1119_v55 = vmul.f32 0.01, %v991_v5  ;;  %v1179_v1 = vsel %vm1051_vm1, %v987_v9, %v1115_v31  ;;  %1350 = vst.msk [vmem:[#allocation2 + $0xe1] sm:$0xff] %vm155_vm0, %v1176_v10  ;;  %v996_v43 = vadd.f32 %v12237_v52, %v6412_v21  ;;  %vm1055_vm5 = vcmp.ge.f32.partialorder %v991_v5, 0.0  ;;  %v12239_v31 = vld [vmem:[#allocation31_spill] sm:$0xff] }
 0x23f   :  { %v1120_v59 = vmul.f32 0.01, %v992_v35  ;;  %v1180_v45 = vsel %vm1052_vm2, %v988_v44, %v1116_v30  ;;  %1351 = vst.msk [vmem:[#allocation2 + $0xf1] sm:$0xff] %vm155_vm0, %v1177_v29  ;;  %v997_v16 = vadd.f32 %v12237_v52, %v6416_v48  ;;  %vm1056_vm6 = vcmp.ge.f32.partialorder %v992_v35, 0.0 }
 0x240   :  { %v1121_v17 = vmul.f32 0.01, %v993_v51  ;;  %v1181_v50 = vsel %vm1053_vm3, %v989_v3, %v1117_v60  ;;  %1352 = vst.msk [vmem:[#allocation2 + $0xf9] sm:$0xff] %vm155_vm0, %v1178_v13  ;;  %v998_v40 = vadd.f32 %v12237_v52, %v6420_v26  ;;  %vm1057_vm7 = vcmp.ge.f32.partialorder %v993_v51, 0.0 }
 0x241   :  { %v1122_v21 = vmul.f32 0.01, %v994_v46  ;;  %v1182_v33 = vsel %vm1054_vm4, %v990_v42, %v1118_v4  ;;  %1353 = vst.msk [vmem:[#allocation2 + $0x109] sm:$0xff] %vm155_vm0, %v1179_v1  ;;  %v999_v39 = vadd.f32 %v12237_v52, %v6424_v62  ;;  %vm1058_vm8 = vcmp.ge.f32.partialorder %v994_v46, 0.0 }
 0x242   :  { %v1123_v48 = vmul.f32 0.01, %v995_v22  ;;  %v1183_v12 = vsel %vm1055_vm5, %v991_v5, %v1119_v55  ;;  %1354 = vst.msk [vmem:[#allocation2 + $0x111] sm:$0xff] %vm155_vm0, %v1180_v45  ;;  %v1000_v63 = vadd.f32 %v12237_v52, %v6428_v32  ;;  %vm1059_vm9 = vcmp.ge.f32.partialorder %v995_v22, 0.0 }
 0x243   :  { %v1124_v26 = vmul.f32 0.01, %v996_v43  ;;  %v1184_v41 = vsel %vm1056_vm6, %v992_v35, %v1120_v59  ;;  %1355 = vst.msk [vmem:[#allocation2 + $0x121] sm:$0xff] %vm155_vm0, %v1181_v50  ;;  %v1001_v18 = vadd.f32 %v12237_v52, %v6432_v0  ;;  %vm1060_vm10 = vcmp.ge.f32.partialorder %v996_v43, 0.0 }
 0x244   :  { %v1125_v62 = vmul.f32 0.01, %v997_v16  ;;  %v1185_v53 = vsel %vm1057_vm7, %v993_v51, %v1121_v17  ;;  %1356 = vst.msk [vmem:[#allocation2 + $0x129] sm:$0xff] %vm155_vm0, %v1182_v33  ;;  %v1002_v28 = vadd.f32 %v12237_v52, %v6436_v11  ;;  %vm1061_vm11 = vcmp.ge.f32.partialorder %v997_v16, 0.0  ;;  %v12240_v17 = vld [vmem:[#allocation33_spill] sm:$0xff] }
 0x245   :  { %v1126_v32 = vmul.f32 0.01, %v998_v40  ;;  %v1186_v47 = vsel %vm1058_vm8, %v994_v46, %v1122_v21  ;;  %1357 = vst.msk [vmem:[#allocation2 + $0x139] sm:$0xff] %vm155_vm0, %v1183_v12  ;;  %v1003_v61 = vadd.f32 %v12237_v52, %v6440_v37  ;;  %vm1062_vm12 = vcmp.ge.f32.partialorder %v998_v40, 0.0  ;;  %v12241_v21 = vld [vmem:[#allocation35_spill] sm:$0xff] }
 0x246   :  { %v1127_v0 = vmul.f32 0.01, %v999_v39  ;;  %v1187_v9 = vsel %vm1059_vm9, %v995_v22, %v1123_v48  ;;  %1358 = vst.msk [vmem:[#allocation2 + $0x141] sm:$0xff] %vm155_vm0, %v1184_v41  ;;  %v1004_v20 = vadd.f32 %v12237_v52, %v6444_v6  ;;  %vm1063_vm13 = vcmp.ge.f32.partialorder %v999_v39, 0.0  ;;  %v12242_v48 = vld [vmem:[#allocation12_spill] sm:$0xff]  ;;  %v12243_v41 = vld [vmem:[#allocation13_spill] sm:$0xff] }
 0x247   :  { %v1128_v11 = vmul.f32 0.01, %v1000_v63  ;;  %v1188_v49 = vsel %vm1060_vm10, %v996_v43, %v1124_v26  ;;  %1359 = vst.msk [vmem:[#allocation2 + $0x151] sm:$0xff] %vm155_vm0, %v1185_v53  ;;  %v1005_v44 = vadd.f32 %v12237_v52, %v6448_v54  ;;  %vm1064_vm14 = vcmp.ge.f32.partialorder %v1000_v63, 0.0 }
 0x248   :  { %v1129_v37 = vmul.f32 0.01, %v1001_v18  ;;  %v1189_v57 = vsel %vm1061_vm11, %v997_v16, %v1125_v62  ;;  %1360 = vst.msk [vmem:[#allocation2 + $0x159] sm:$0xff] %vm155_vm0, %v1186_v47  ;;  %v1006_v3 = vadd.f32 %v12237_v52, %v12238_v8  ;;  %vm1065_vm15 = vcmp.ge.f32.partialorder %v1001_v18, 0.0  ;;  %v12247_v8 = vld [vmem:[#allocation19_spill] sm:$0xff] }
 0x249   :  { %v1130_v6 = vmul.f32 0.01, %v1002_v28  ;;  %v1190_v38 = vsel %vm1062_vm12, %v998_v40, %v1126_v32  ;;  %1361 = vst.msk [vmem:[#allocation2 + $0x169] sm:$0xff] %vm155_vm0, %v1187_v9  ;;  %v1007_v24 = vadd.f32 %v12237_v52, %v6456_v19  ;;  %vm1066_vm1 = vcmp.ge.f32.partialorder %v1002_v28, 0.0 }
 0x24a   :  { %v1131_v54 = vmul.f32 0.01, %v1003_v61  ;;  %v1191_v42 = vsel %vm1063_vm13, %v999_v39, %v1127_v0  ;;  %1362 = vst.msk [vmem:[#allocation2 + $0x171] sm:$0xff] %vm155_vm0, %v1188_v49  ;;  %v1008_v27 = vadd.f32 %v12237_v52, %v6460_v2  ;;  %vm1067_vm2 = vcmp.ge.f32.partialorder %v1003_v61, 0.0  ;;  %v12245_v0 = vld [vmem:[#allocation15_spill] sm:$0xff]  ;;  %v12246_v49 = vld [vmem:[#allocation17_spill] sm:$0xff] }
 0x24b   :  { %v1132_v23 = vmul.f32 0.01, %v1004_v20  ;;  %v1192_v5 = vsel %vm1064_vm14, %v1000_v63, %v1128_v11  ;;  %1363 = vst.msk [vmem:[#allocation2 + $0x181] sm:$0xff] %vm155_vm0, %v1189_v57  ;;  %v1009_v56 = vadd.f32 %v12237_v52, %v12239_v31  ;;  %vm1068_vm3 = vcmp.ge.f32.partialorder %v1004_v20, 0.0 }
 0x24c   :  { %v1133_v19 = vmul.f32 0.01, %v1005_v44  ;;  %v1193_v35 = vsel %vm1065_vm15, %v1001_v18, %v1129_v37  ;;  %1364 = vst.msk [vmem:[#allocation2 + $0x189] sm:$0xff] %vm155_vm0, %v1190_v38  ;;  %v1010_v30 = vadd.f32 %v12237_v52, %v6468_v15  ;;  %vm1069_vm4 = vcmp.ge.f32.partialorder %v1005_v44, 0.0 }
 0x24d   :  { %v1134_v2 = vmul.f32 0.01, %v1006_v3  ;;  %v1194_v10 = vsel %vm1066_vm1, %v1002_v28, %v1130_v6  ;;  %1365 = vst.msk [vmem:[#allocation2 + $0x1c9] sm:$0xff] %vm155_vm0, %v1191_v42  ;;  %v1011_v51 = vadd.f32 %v12237_v52, %v6472_v25  ;;  %vm1070_vm5 = vcmp.ge.f32.partialorder %v1006_v3, 0.0  ;;  %v12244_v28 = vld [vmem:[#allocation14_spill] sm:$0xff] }
 0x24e   :  { %v1135_v60 = vmul.f32 0.01, %v1007_v24  ;;  %v1195_v29 = vsel %vm1067_vm2, %v1003_v61, %v1131_v54  ;;  %1366 = vst.msk [vmem:[#allocation2 + $0x1d1] sm:$0xff] %vm155_vm0, %v1192_v5  ;;  %v1012_v46 = vadd.f32 %v12237_v52, %v6475_v58  ;;  %vm1071_vm6 = vcmp.ge.f32.partialorder %v1007_v24, 0.0 }
 0x24f   :  { %v1136_v15 = vmul.f32 0.01, %v1008_v27  ;;  %v1196_v4 = vsel %vm1068_vm3, %v1004_v20, %v1132_v23  ;;  %1367 = vst.msk [vmem:[#allocation2 + $0x1e1] sm:$0xff] %vm155_vm0, %v1193_v35  ;;  %v1013_v13 = vadd.f32 %v12237_v52, %v6478_v14  ;;  %vm1072_vm7 = vcmp.ge.f32.partialorder %v1008_v27, 0.0 }
 0x250   :  { %v1137_v25 = vmul.f32 0.01, %v1009_v56  ;;  %v1197_v22 = vsel %vm1069_vm4, %v1005_v44, %v1133_v19  ;;  %1368 = vst.msk [vmem:[#allocation2 + $0x1e9] sm:$0xff] %vm155_vm0, %v1194_v10  ;;  %v1014_v55 = vadd.f32 %v12237_v52, %v6481_v36  ;;  %vm1073_vm8 = vcmp.ge.f32.partialorder %v1009_v56, 0.0  ;;  %v6734_v10 = vld [vmem:[%s11829_s4 + $0x1] ss:$0 sm:$0xff] }
 0x251   :  { %v1138_v58 = vmul.f32 0.01, %v1010_v30  ;;  %v1198_v1 = vsel %vm1070_vm5, %v1006_v3, %v1134_v2  ;;  %1369 = vst.msk [vmem:[#allocation2 + $0x1f9] sm:$0xff] %vm155_vm0, %v1195_v29  ;;  %v1015_v43 = vadd.f32 %v12237_v52, %v6484_v7  ;;  %vm1074_vm9 = vcmp.ge.f32.partialorder %v1010_v30, 0.0  ;;  %v6729_v2 = vld [vmem:[%s11829_s4] ss:$0 sm:$0xff] }
 0x252   :  { %v1139_v14 = vmul.f32 0.01, %v1011_v51  ;;  %v1199_v59 = vsel %vm1071_vm6, %v1007_v24, %v1135_v60  ;;  %1370 = vst.msk [vmem:[#allocation2 + $0x201] sm:$0xff] %vm155_vm0, %v1196_v4  ;;  %v1016_v45 = vadd.f32 %v12237_v52, %v6487_v34  ;;  %vm1075_vm10 = vcmp.ge.f32.partialorder %v1011_v51, 0.0  ;;  %v1467_v60 = vld [vmem:[#allocation2 + $0x308] sm:$0xff]  ;;  %v1597_v4 = vld [vmem:[#allocation2 + $0x319] sm:$0xff] }
 0x253   :  { %v1140_v36 = vmul.f32 0.01, %v1012_v46  ;;  %v1200_v16 = vsel %vm1072_vm7, %v1008_v27, %v1136_v15  ;;  %1371 = vst.msk [vmem:[#allocation2 + $0x211] sm:$0xff] %vm155_vm0, %v1197_v22  ;;  %v1017_v50 = vadd.f32 %v12237_v52, %v12240_v17  ;;  %vm1076_vm11 = vcmp.ge.f32.partialorder %v1012_v46, 0.0  ;;  %v1595_v29 = vld [vmem:[#allocation2 + $0x301] sm:$0xff]  ;;  %v1596_v15 = vld [vmem:[#allocation2 + $0x309] sm:$0xff] }
 0x254   :  { %v1141_v7 = vmul.f32 0.01, %v1013_v13  ;;  %v1201_v40 = vsel %vm1073_vm8, %v1009_v56, %v1137_v25  ;;  %1372 = vst.msk [vmem:[#allocation2 + $0x219] sm:$0xff] %vm155_vm0, %v1198_v1  ;;  %v1018_v33 = vadd.f32 %v12237_v52, %v12241_v21  ;;  %vm1077_vm12 = vcmp.ge.f32.partialorder %v1013_v13, 0.0  ;;  %v1790_v17 = vld [vmem:[#allocation2 + $0x31a] sm:$0xff] }
 0x255   :  { %v1142_v34 = vmul.f32 0.01, %v1014_v55  ;;  %v1202_v39 = vsel %vm1074_vm9, %v1010_v30, %v1138_v58  ;;  %1373 = vst.msk [vmem:[#allocation2 + $0x229] sm:$0xff] %vm155_vm0, %v1199_v59  ;;  %v1019_v12 = vadd.f32 %v12237_v52, %v12242_v48  ;;  %vm1078_vm13 = vcmp.ge.f32.partialorder %v1014_v55, 0.0  ;;  %v1788_v59 = vld [vmem:[#allocation2 + $0x302] sm:$0xff]  ;;  %v1567_v48 = vld [vmem:[#allocation2 + $0x1b1] sm:$0xff] }
 0x256   :  { %v1143_v63 = vmul.f32 0.01, %v1015_v43  ;;  %v1203_v26 = vsel %vm1075_vm10, %v1011_v51, %v1139_v14  ;;  %1374 = vst.msk [vmem:[#allocation2 + $0x231] sm:$0xff] %vm155_vm0, %v1200_v16  ;;  %v1020_v18 = vadd.f32 %v12237_v52, %v12243_v41  ;;  %vm1079_vm14 = vcmp.ge.f32.partialorder %v1015_v43, 0.0  ;;  %v1466_v51 = vld [vmem:[#allocation2 + $0x300] sm:$0xff]  ;;  %v1789_v16 = vld [vmem:[#allocation2 + $0x30a] sm:$0xff] }
 0x257   :  { %v1144_v62 = vmul.f32 0.01, %v1016_v45  ;;  %v1204_v53 = vsel %vm1076_vm11, %v1012_v46, %v1140_v36  ;;  %1375 = vst.msk [vmem:[#allocation2 + $0x241] sm:$0xff] %vm155_vm0, %v1201_v40  ;;  %v1021_v32 = vadd.f32 %v12237_v52, %v12244_v28  ;;  %vm1080_vm15 = vcmp.ge.f32.partialorder %v1016_v45, 0.0  ;;  %v1468_v46 = vld [vmem:[#allocation2 + $0x318] sm:$0xff]  ;;  %v1598_v14 = vld [vmem:[#allocation2 + $0x321] sm:$0xff] }
 0x258   :  { %v1145_v47 = vmul.f32 0.01, %v1017_v50  ;;  %v1205_v61 = vsel %vm1077_vm12, %v1013_v13, %v1141_v7  ;;  %1376 = vst.msk [vmem:[#allocation2 + $0x249] sm:$0xff] %vm155_vm0, %v1202_v39  ;;  %v1022_v9 = vadd.f32 %v12237_v52, %v12245_v0  ;;  %vm1081_vm1 = vcmp.ge.f32.partialorder %v1017_v50, 0.0 }
 0x259   :  { %v1146_v20 = vmul.f32 0.01, %v1018_v33  ;;  %v1206_v11 = vsel %vm1078_vm13, %v1014_v55, %v1142_v34  ;;  %1377 = vst.msk [vmem:[#allocation2 + $0x259] sm:$0xff] %vm155_vm0, %v1203_v26  ;;  %v1023_v44 = vadd.f32 %v12237_v52, %v12246_v49  ;;  %vm1082_vm2 = vcmp.ge.f32.partialorder %v1018_v33, 0.0  ;;  %v6752_v34 = vld [vmem:[%s11829_s4 + $0x3] ss:$0 sm:$0xff] }
 0x25a   :  { %v1147_v37 = vmul.f32 0.01, %v1019_v12  ;;  %v1207_v57 = vsel %vm1079_vm14, %v1015_v43, %v1143_v63  ;;  %1378 = vst.msk [vmem:[#allocation2 + $0x261] sm:$0xff] %vm155_vm0, %v1204_v53  ;;  %v1024_v3 = vadd.f32 %v12237_v52, %v12247_v8  ;;  %vm1083_vm3 = vcmp.ge.f32.partialorder %v1019_v12, 0.0  ;;  %v1469_v43 = vld [vmem:[#allocation2 + $0x320] sm:$0xff]  ;;  %v6757_v53 = vld [vmem:[#allocation2 + $0x330] sm:$0xff] }
 0x25b   :  { %v1148_v6 = vmul.f32 0.01, %v1020_v18  ;;  %v1208_v38 = vsel %vm1080_vm15, %v1016_v45, %v1144_v62  ;;  %1379 = vst.msk [vmem:[#allocation2 + $0x271] sm:$0xff] %vm155_vm0, %v1205_v61  ;;  %vm1084_vm4 = vcmp.ge.f32.partialorder %v1020_v18, 0.0  ;;  %v1149_v24 = vmul.f32 0.01, %v1021_v32 }
 0x25c   :  { %v1209_v54 = vsel %vm1081_vm1, %v1017_v50, %v1145_v47  ;;  %1380 = vst.msk [vmem:[#allocation2 + $0x279] sm:$0xff] %vm155_vm0, %v1206_v11  ;;  %vm1085_vm5 = vcmp.ge.f32.partialorder %v1021_v32, 0.0  ;;  %v1150_v42 = vmul.f32 0.01, %v1022_v9  ;;  %v1210_v27 = vsel %vm1082_vm2, %v1018_v33, %v1146_v20  ;;  %v6745_v45 = vld [vmem:[%s11829_s4 + $0x2] ss:$0 sm:$0xff] }
 0x25d   :  { %1381 = vst.msk [vmem:[#allocation2 + $0x289] sm:$0xff] %vm155_vm0, %v1207_v57  ;;  %vm1086_vm6 = vcmp.ge.f32.partialorder %v1022_v9, 0.0  ;;  %v1151_v23 = vmul.f32 0.01, %v1023_v44  ;;  %v1211_v52 = vsel %vm1083_vm3, %v1019_v12, %v1147_v37  ;;  %vm1087_vm7 = vcmp.ge.f32.partialorder %v1023_v44, 0.0  ;;  %v1438_v33 = vld [vmem:[#allocation2 + $0x1b0] sm:$0xff] }
 0x25e   :  { %1382 = vst.msk [vmem:[#allocation2 + $0x291] sm:$0xff] %vm155_vm0, %v1208_v38  ;;  %v1152_v5 = vmul.f32 0.01, %v1024_v3  ;;  %v1212_v31 = vsel %vm1084_vm4, %v1020_v18, %v1148_v6  ;;  %vm1088_vm8 = vcmp.ge.f32.partialorder %v1024_v3, 0.0  ;;  %v1213_v56 = vsel %vm1085_vm5, %v1021_v32, %v1149_v24  ;;  %v1439_v12 = vld [vmem:[#allocation2 + $0x1b8] sm:$0xff]  ;;  %v1791_v18 = vld [vmem:[#allocation2 + $0x322] sm:$0xff] }
 0x25f   :  { %1383 = vst.msk [vmem:[#allocation2 + $0x2a1] sm:$0xff] %vm155_vm0, %v1209_v54  ;;  %v1214_v19 = vsel %vm1086_vm6, %v1022_v9, %v1150_v42  ;;  %v1215_v35 = vsel %vm1087_vm7, %v1023_v44, %v1151_v23  ;;  %v1531_v13 = vmul.f32 %v6729_v2, %v1466_v51  ;;  %v1660_v25 = vmul.f32 %v6734_v10, %v1595_v29  ;;  %v1568_v63 = vld [vmem:[#allocation2 + $0x1b9] sm:$0xff]  ;;  %v5021_v20 = vld [vmem:[%s11829_s4 + $0x4] ss:$0 sm:$0xff]  ;;  %v6773_v24 = vld [vmem:[#allocation2 + $0x331] sm:$0xff] }
 0x260   :  { %1384 = vst.msk [vmem:[#allocation2 + $0x2a9] sm:$0xff] %vm155_vm0, %v1210_v27  ;;  %v1216_v30 = vsel %vm1088_vm8, %v1024_v3, %v1152_v5  ;;  %v1532_v22 = vmul.f32 %v6729_v2, %v1467_v60  ;;  %v1533_v55 = vmul.f32 %v6729_v2, %v1468_v46  ;;  %v1661_v58 = vmul.f32 %v6734_v10, %v1596_v15  ;;  %v1760_v9 = vld [vmem:[#allocation2 + $0x1b2] sm:$0xff]  ;;  %v1761_v37 = vld [vmem:[#allocation2 + $0x1ba] sm:$0xff]  ;;  %v5024_v29 = vld [vmem:[%s11829_s4 + $0x7] ss:$0 sm:$0xff] }
 0x261   :  { %1385 = vst.msk [vmem:[#allocation2 + $0x2b9] sm:$0xff] %vm155_vm0, %v1211_v52  ;;  %v1662_v1 = vmul.f32 %v6734_v10, %v1597_v4  ;;  %v1724_v36 = vadd.f32 %v1660_v25, %v1531_v13  ;;  %v1534_v50 = vmul.f32 %v6729_v2, %v1469_v43  ;;  %v1663_v7 = vmul.f32 %v6734_v10, %v1598_v14  ;;  %v6771_v6 = vld [vmem:[#allocation2 + $0x338] sm:$0xff] }
 0x262   :  { %1386 = vst.msk [vmem:[#allocation2 + $0x2c1] sm:$0xff] %vm155_vm0, %v1212_v31  ;;  %v1725_v40 = vadd.f32 %v1661_v58, %v1532_v22  ;;  %v1853_v39 = vmul.f32 %v6745_v45, %v1788_v59  ;;  %v1854_v26 = vmul.f32 %v6745_v45, %v1789_v16  ;;  %v1855_v41 = vmul.f32 %v6745_v45, %v1790_v17  ;;  %v2177_v15 = vld [vmem:[#allocation2 + $0x339] sm:$0xff] }
 0x263   :  { %1387 = vst.msk [vmem:[#allocation2 + $0x2d1] sm:$0xff] %vm155_vm0, %v1213_v56  ;;  %v1726_v21 = vadd.f32 %v1662_v1, %v1533_v55  ;;  %v1503_v28 = vmul.f32 %v6729_v2, %v1438_v33  ;;  %v1727_v32 = vadd.f32 %v1663_v7, %v1534_v50  ;;  %v1632_v0 = vmul.f32 %v6734_v10, %v1567_v48  ;;  %v5022_v56 = vld [vmem:[%s11829_s4 + $0x5] ss:$0 sm:$0xff]  ;;  %v2369_v25 = vld [vmem:[#allocation2 + $0x332] sm:$0xff]  ;;  %v2917_v16 = vld [vmem:[#allocation2 + $0x19a] sm:$0xff] }
 0x264   :  { %1388 = vst.msk [vmem:[#allocation2 + $0x2d9] sm:$0xff] %vm155_vm0, %v1214_v19  ;;  %v1917_v62 = vadd.f32 %v1853_v39, %v1724_v36  ;;  %v1918_v47 = vadd.f32 %v1854_v26, %v1725_v40  ;;  %v1504_v11 = vmul.f32 %v6729_v2, %v1439_v12  ;;  %v1633_v49 = vmul.f32 %v6734_v10, %v1568_v63  ;;  %v2532_v22 = vld [vmem:[#allocation2 + $0x1a0] sm:$0xff]  ;;  %v2563_v7 = vld [vmem:[#allocation2 + $0x348] sm:$0xff]  ;;  %v2564_v12 = vld [vmem:[#allocation2 + $0x350] sm:$0xff] }
 0x265   :  { %1389 = vst.msk [vmem:[#allocation2 + $0x2e9] sm:$0xff] %vm155_vm0, %v1215_v35  ;;  %v1919_v61 = vadd.f32 %v1855_v41, %v1726_v21  ;;  %v2046_v44 = vmul.f32 %v6752_v34, %v1468_v46  ;;  %v1856_v57 = vmul.f32 %v6745_v45, %v1791_v18  ;;  %v2047_v8 = vmul.f32 %v6752_v34, %v1469_v43  ;;  %v5023_v35 = vld [vmem:[%s11829_s4 + $0x6] ss:$0 sm:$0xff]  ;;  %v2531_v46 = vld [vmem:[#allocation2 + $0x198] sm:$0xff]  ;;  %v2756_v63 = vld [vmem:[#allocation2 + $0x349] sm:$0xff] }
 0x266   :  { %1390 = vst.msk [vmem:[#allocation2 + $0x2f1] sm:$0xff] %vm155_vm0, %v1216_v30  ;;  %v2048_v3 = vmul.f32 %v6752_v34, %v6757_v53  ;;  %v1825_v54 = vmul.f32 %v6745_v45, %v1760_v9  ;;  %v1696_v52 = vadd.f32 %v1632_v0, %v1503_v28  ;;  %v1697_v5 = vadd.f32 %v1633_v49, %v1504_v11  ;;  %v2725_v55 = vld [vmem:[#allocation2 + $0x1a1] sm:$0xff] }
 0x267   :  { %12248 = vst [vmem:[#allocation20_spill] sm:$0xff] %v6745_v45  ;;  %v2110_v38 = vadd.f32 %v2046_v44, %v1917_v62  ;;  %v1920_v42 = vadd.f32 %v1856_v57, %v1727_v32  ;;  %v2111_v27 = vadd.f32 %v2047_v8, %v1918_v47  ;;  %v1826_v31 = vmul.f32 %v6745_v45, %v1761_v37  ;;  %v2918_v21 = vld [vmem:[#allocation2 + $0x1a2] sm:$0xff]  ;;  %v2370_v28 = vld [vmem:[#allocation2 + $0x33a] sm:$0xff]  ;;  %v2757_v47 = vld [vmem:[#allocation2 + $0x351] sm:$0xff] }
 0x268   :  { %12249 = vst [vmem:[#allocation21_spill] sm:$0xff] %v6752_v34  ;;  %v2112_v23 = vadd.f32 %v2048_v3, %v1919_v61  ;;  %v2239_v19 = vmul.f32 %v5021_v20, %v1597_v4  ;;  %v2049_v30 = vmul.f32 %v6752_v34, %v6771_v6  ;;  %v2240_v51 = vmul.f32 %v5021_v20, %v1598_v14  ;;  %v2724_v4 = vld [vmem:[#allocation2 + $0x199] sm:$0xff]  ;;  %v5025_v14 = vld [vmem:[%s11829_s4 + $0x8] ss:$0 sm:$0xff]  ;;  %v2949_v61 = vld [vmem:[#allocation2 + $0x34a] sm:$0xff] }
 0x269   :  { %v2241_v60 = vmul.f32 %v5021_v20, %v6773_v24  ;;  %v6789_v59 = vadd.f32 %v1825_v54, %v1696_v52  ;;  %v6791_v36 = vadd.f32 %v1826_v31, %v1697_v5  ;;  %v2432_v50 = vmul.f32 %v5022_v56, %v1790_v17  ;;  %v1412_v49 = vld [vmem:[#allocation2 + $0x48] sm:$0xff]  ;;  %v6813_v54 = vld [vmem:[#allocation2 + $0x80] sm:$0xff]  ;;  %v7115_v34 = vld [vmem:[#allocation2 + $0x218] sm:$0xff] }
 0x26a   :  { %v2303_v13 = vadd.f32 %v2239_v19, %v2110_v38  ;;  %v2113_v58 = vadd.f32 %v2049_v30, %v1920_v42  ;;  %v2304_v1 = vadd.f32 %v2240_v51, %v2111_v27  ;;  %v6796_v40 = vmul.f32 %v5023_v35, %v2531_v46  ;;  %v1415_v44 = vld [vmem:[#allocation2 + $0x68] sm:$0xff]  ;;  %v6811_v38 = vld [vmem:[#allocation2 + $0x78] sm:$0xff]  ;;  %12260 = vst [vmem:[#allocation11_spill] sm:$0xff] %v6813_v54  ;;  %v6815_v42 = vld [vmem:[#allocation2 + $0x90] sm:$0xff] }
 0x26b   :  { %v2305_v43 = vadd.f32 %v2241_v60, %v2112_v23  ;;  %12250 = vst [vmem:[#allocation23_spill] sm:$0xff] %v6789_v59  ;;  %v2242_v33 = vmul.f32 %v5021_v20, %v2177_v15  ;;  %v2433_v39 = vmul.f32 %v5022_v56, %v1791_v18  ;;  %v2434_v48 = vmul.f32 %v5022_v56, %v2369_v25  ;;  %v1413_v20 = vld [vmem:[#allocation2 + $0x50] sm:$0xff]  ;;  %v1414_v18 = vld [vmem:[#allocation2 + $0x60] sm:$0xff]  ;;  %v6817_v27 = vld [vmem:[#allocation2 + $0x98] sm:$0xff] }
 0x26c   :  { %12251 = vst [vmem:[#allocation25_spill] sm:$0xff] %v6791_v36  ;;  %v6798_v26 = vmul.f32 %v5023_v35, %v2532_v22  ;;  %v6800_v41 = vmul.f32 %v5024_v29, %v2724_v4  ;;  %v6802_v62 = vmul.f32 %v5024_v29, %v2725_v55  ;;  %v2496_v32 = vadd.f32 %v2432_v50, %v2303_v13  ;;  %v6824_v19 = vld [vmem:[#allocation2 + $0xa8] sm:$0xff]  ;;  %v6828_v30 = vld [vmem:[#allocation2 + $0xc0] sm:$0xff]  ;;  %v6845_v22 = vld [vmem:[#allocation2 + $0xf0] sm:$0xff] }
 0x26d   :  { %12252 = vst [vmem:[#allocation26_spill] sm:$0xff] %v6796_v40  ;;  %v2306_v17 = vadd.f32 %v2242_v33, %v2113_v58  ;;  %v2497_v0 = vadd.f32 %v2433_v39, %v2304_v1  ;;  %v2498_v9 = vadd.f32 %v2434_v48, %v2305_v43  ;;  %v2628_v11 = vmul.f32 %v5023_v35, %v2563_v7  ;;  %v6830_v51 = vld [vmem:[#allocation2 + $0xc8] sm:$0xff]  ;;  %v6843_v13 = vld [vmem:[#allocation2 + $0xe0] sm:$0xff]  ;;  %v6847_v4 = vld [vmem:[#allocation2 + $0xf8] sm:$0xff] }
 0x26e   :  { %12253 = vst [vmem:[#allocation28_spill] sm:$0xff] %v6798_v26  ;;  %v6804_v37 = vmul.f32 %v5025_v14, %v2917_v16  ;;  %v6806_v57 = vmul.f32 %v5025_v14, %v2918_v21  ;;  %v2626_v8 = vmul.f32 %v5023_v35, %v6757_v53  ;;  %v6809_v3 = vmul.f32 %v5023_v35, %v2564_v12  ;;  %v6826_v53 = vld [vmem:[#allocation2 + $0xb0] sm:$0xff]  ;;  %v6861_v43 = vld [vmem:[#allocation2 + $0x120] sm:$0xff]  ;;  %v6863_v16 = vld [vmem:[#allocation2 + $0x128] sm:$0xff] }
 0x26f   :  { %12254 = vst [vmem:[#allocation30_spill] sm:$0xff] %v6800_v41  ;;  %v2435_v23 = vmul.f32 %v5022_v56, %v2370_v28  ;;  %v2627_v52 = vmul.f32 %v5023_v35, %v6771_v6  ;;  %v6820_v5 = vmul.f32 %v5024_v29, %v2756_v63  ;;  %v6822_v31 = vmul.f32 %v5024_v29, %v2757_v47  ;;  %v6841_v35 = vld [vmem:[#allocation2 + $0xd8] sm:$0xff]  ;;  %v6867_v7 = vld [vmem:[#allocation2 + $0x140] sm:$0xff]  ;;  %v6869_v21 = vld [vmem:[#allocation2 + $0x150] sm:$0xff] }
 0x270   :  { %12255 = vst [vmem:[#allocation32_spill] sm:$0xff] %v6802_v62  ;;  %v6832_v60 = vadd.f32 %v2626_v8, %v2496_v32  ;;  %v6835_v46 = vmul.f32 %v5024_v29, %v6773_v24  ;;  %v6837_v56 = vmul.f32 %v5024_v29, %v2177_v15  ;;  %v6839_v6 = vmul.f32 %v5025_v14, %v2949_v61  ;;  %v6857_v29 = vld [vmem:[#allocation2 + $0x108] sm:$0xff]  ;;  %v6859_v15 = vld [vmem:[#allocation2 + $0x110] sm:$0xff]  ;;  %v6865_v50 = vld [vmem:[#allocation2 + $0x138] sm:$0xff] }
 0x271   :  { %12256 = vst [vmem:[#allocation34_spill] sm:$0xff] %v6804_v37  ;;  %v6849_v55 = vadd.f32 %v2435_v23, %v2306_v17  ;;  %v6851_v58 = vadd.f32 %v2627_v52, %v2497_v0  ;;  %v6853_v1 = vadd.f32 %v2628_v11, %v2498_v9  ;;  %v6855_v24 = vmul.f32 %v5025_v14, %v2369_v25  ;;  %v6871_v33 = vld [vmem:[#allocation2 + $0x158] sm:$0xff]  ;;  %v6885_v12 = vld [vmem:[#allocation2 + $0x168] sm:$0xff]  ;;  %v6903_v0 = vld [vmem:[#allocation2 + $0x170] sm:$0xff] }
 0x272   :  { %12257 = vst [vmem:[#allocation36_spill] sm:$0xff] %v6806_v57  ;;  %v6874_v39 = vmul.f32 %v6729_v2, %v1412_v49  ;;  %v6877_v25 = vmul.f32 %v6729_v2, %v1413_v20  ;;  %v6880_v14 = vmul.f32 %v6729_v2, %v1414_v18  ;;  %v6883_v48 = vmul.f32 %v6729_v2, %v1415_v44  ;;  %v1541_v61 = vld [vmem:[#allocation2 + $0x49] sm:$0xff]  ;;  %v1542_v17 = vld [vmem:[#allocation2 + $0x51] sm:$0xff]  ;;  %v1543_v18 = vld [vmem:[#allocation2 + $0x61] sm:$0xff] }
 0x273   :  { %12258 = vst [vmem:[#allocation37_spill] sm:$0xff] %v6809_v3  ;;  %v6889_v63 = vmul.f32 %v6729_v2, %v6811_v38  ;;  %v6893_v28 = vmul.f32 %v6729_v2, %v6813_v54  ;;  %v6897_v32 = vmul.f32 %v6729_v2, %v6815_v42  ;;  %v6901_v47 = vmul.f32 %v6729_v2, %v6817_v27  ;;  %v1544_v44 = vld [vmem:[#allocation2 + $0x69] sm:$0xff]  ;;  %v6921_v8 = vld [vmem:[#allocation2 + $0x79] sm:$0xff]  ;;  %v6923_v23 = vld [vmem:[#allocation2 + $0x81] sm:$0xff] }
 0x274   :  { %12259 = vst [vmem:[#allocation9_spill] sm:$0xff] %v6811_v38  ;;  %v6907_v9 = vmul.f32 %v6729_v2, %v6824_v19  ;;  %v6911_v11 = vmul.f32 %v6729_v2, %v6826_v53  ;;  %v6915_v49 = vmul.f32 %v6729_v2, %v6828_v30  ;;  %v6919_v20 = vmul.f32 %v6729_v2, %v6830_v51  ;;  %v6965_v57 = vld [vmem:[#allocation2 + $0xc1] sm:$0xff]  ;;  %v6967_v37 = vld [vmem:[#allocation2 + $0xc9] sm:$0xff]  ;;  %v6987_v40 = vld [vmem:[#allocation2 + $0xd9] sm:$0xff] }
 0x275   :  { %12261 = vst [vmem:[#allocation16_spill] sm:$0xff] %v6815_v42  ;;  %v6927_v52 = vmul.f32 %v6729_v2, %v6841_v35  ;;  %v6953_v3 = vmul.f32 %v6729_v2, %v6859_v15  ;;  %v6969_v62 = vld [vmem:[#allocation2 + $0x1c8] sm:$0xff]  ;;  %v6973_v41 = vmul.f32 %v6729_v2, %v6865_v50  ;;  %v6985_v26 = vmul.f32 %v6729_v2, %v6871_v33  ;;  %v6991_v59 = vld [vmem:[#allocation2 + $0x1d0] sm:$0xff] }
 0x276   :  { %12262 = vst [vmem:[#allocation18_spill] sm:$0xff] %v6817_v27  ;;  %v6989_v36 = vld [vmem:[#allocation2 + $0xe1] sm:$0xff]  ;;  %v7093_v27 = vld [vmem:[#allocation2 + $0x210] sm:$0xff] }
 0x277   :  { %12263 = vst [vmem:[#allocation22_spill] sm:$0xff] %v6820_v5  ;;  %v6941_v5 = vld [vmem:[#allocation2 + $0x91] sm:$0xff]  ;;  %v7099_v42 = vld [vmem:[#allocation2 + $0x169] sm:$0xff] }
 0x278   :  { %12264 = vst [vmem:[#allocation24_spill] sm:$0xff] %v6822_v31  ;;  %v6935_v31 = vmul.f32 %v6729_v2, %v6845_v22  ;;  %v7101_v54 = vld [vmem:[#allocation2 + $0x171] sm:$0xff]  ;;  %v7121_v38 = vld [vmem:[#allocation2 + $0x1c9] sm:$0xff] }
 0x279   :  { %12265 = vst [vmem:[#allocation27_spill] sm:$0xff] %v6824_v19  ;;  %v7079_v19 = vld [vmem:[#allocation2 + $0x159] sm:$0xff]  ;;  %v7123_v45 = vld [vmem:[#allocation2 + $0x1d1] sm:$0xff] }
 0x27a   :  { %12266 = vst [vmem:[#allocation10_spill] sm:$0xff] %v6826_v53  ;;  %v7077_v53 = vld [vmem:[#allocation2 + $0x151] sm:$0xff] }
 0x27b   :  { %12267 = vst [vmem:[#allocation29_spill] sm:$0xff] %v6828_v30  ;;  %v7071_v30 = vld [vmem:[#allocation2 + $0x200] sm:$0xff] }
 0x27c   :  { %12268 = vst [vmem:[#allocation31_spill] sm:$0xff] %v6830_v51  ;;  %v7057_v51 = vld [vmem:[#allocation2 + $0x141] sm:$0xff] }
 0x27d   :  { %12269 = vst [vmem:[#allocation33_spill] sm:$0xff] %v6832_v60  ;;  %v6963_v60 = vld [vmem:[#allocation2 + $0xb1] sm:$0xff] }
 0x27e   :  { %12270 = vst [vmem:[#allocation35_spill] sm:$0xff] %v6835_v46  ;;  %v6961_v46 = vmul.f32 %v6729_v2, %v6863_v16 }
 0x27f   :  { %12271 = vst [vmem:[#allocation12_spill] sm:$0xff] %v6837_v56  ;;  %v6945_v56 = vld [vmem:[#allocation2 + $0xa9] sm:$0xff] }
 0x280   :  { %12272 = vst [vmem:[#allocation13_spill] sm:$0xff] %v6839_v6  ;;  %v6931_v6 = vmul.f32 %v6729_v2, %v6843_v13 }
 0x281   :  { %12273 = vst [vmem:[#allocation14_spill] sm:$0xff] %v6841_v35  ;;  %v7055_v35 = vld [vmem:[#allocation2 + $0x139] sm:$0xff] }
 0x282   :  { %12274 = vst [vmem:[#allocation15_spill] sm:$0xff] %v6843_v13  ;;  %v7035_v13 = vld [vmem:[#allocation2 + $0x129] sm:$0xff] }
 0x283   :  { %12275 = vst [vmem:[#allocation17_spill] sm:$0xff] %v6845_v22  ;;  %v7021_v22 = vmul.f32 %v6734_v10, %v6921_v8 }
 0x284   :  { %12276 = vst [vmem:[#allocation19_spill] sm:$0xff] %v6847_v4 }
 0x285   :  { %12277 = vst [vmem:[#allocation38_spill] sm:$0xff] %v6849_v55  ;;  %v6957_v55 = vmul.f32 %v6729_v2, %v6861_v43 }
 0x286   :  { %12278 = vst [vmem:[#allocation39_spill] sm:$0xff] %v6851_v58  ;;  %v6949_v58 = vmul.f32 %v6729_v2, %v6857_v29 }
 0x287   :  { %12279 = vst [vmem:[#allocation40_spill] sm:$0xff] %v6853_v1  ;;  %v6943_v1 = vld [vmem:[#allocation2 + $0x99] sm:$0xff] }
 0x288   :  { %12280 = vst [vmem:[#allocation41_spill] sm:$0xff] %v6855_v24  ;;  %v6939_v24 = vmul.f32 %v6729_v2, %v6847_v4  ;;  %v1608_v4 = vmul.f32 %v6734_v10, %v1543_v18  ;;  %v7039_v18 = vmul.f32 %v6734_v10, %v6941_v5 }
 0x289   :  { %12281 = vst [vmem:[#allocation42_spill] sm:$0xff] %v6857_v29  ;;  %v7013_v29 = vld [vmem:[#allocation2 + $0x109] sm:$0xff] }
 0x28a   :  { %12282 = vst [vmem:[#allocation43_spill] sm:$0xff] %v6859_v15  ;;  %v7011_v15 = vld [vmem:[#allocation2 + $0x1e0] sm:$0xff] }
 0x28b   :  { %12283 = vst [vmem:[#allocation44_spill] sm:$0xff] %v6861_v43  ;;  %v7009_v43 = vmul.f32 %v6734_v10, %v1542_v17  ;;  %v7027_v17 = vld [vmem:[#allocation2 + $0x1e8] sm:$0xff] }
 0x28c   :  { %12284 = vst [vmem:[#allocation45_spill] sm:$0xff] %v6863_v16  ;;  %v7003_v16 = vld [vmem:[#allocation2 + $0xf9] sm:$0xff] }
 0x28d   :  { %12285 = vst [vmem:[#allocation46_spill] sm:$0xff] %v6865_v50  ;;  %v6995_v50 = vmul.f32 %v6729_v2, %v6885_v12 }
 0x28e   :  { %12286 = vst [vmem:[#allocation47_spill] sm:$0xff] %v6867_v7 }
 0x28f   :  { %12287 = vst [vmem:[#allocation48_spill] sm:$0xff] %v6869_v21 }
 0x290   :  { %12288 = vst [vmem:[#allocation49_spill] sm:$0xff] %v6871_v33  ;;  %v7006_v33 = vmul.f32 %v6734_v10, %v1541_v61  ;;  %v7025_v61 = vmul.f32 %v6734_v10, %v6923_v23 }
 0x291   :  { %12289 = vst [vmem:[#allocation50_spill] sm:$0xff] %v6874_v39  ;;  %v6977_v39 = vmul.f32 %v6729_v2, %v6867_v7  ;;  %v6999_v7 = vmul.f32 %v6729_v2, %v6903_v0 }
 0x292   :  { %12290 = vst [vmem:[#allocation51_spill] sm:$0xff] %v6877_v25  ;;  %v6981_v25 = vmul.f32 %v6729_v2, %v6869_v21  ;;  %v7001_v21 = vld [vmem:[#allocation2 + $0xf1] sm:$0xff] }
 0x293   :  { %12291 = vst [vmem:[#allocation52_spill] sm:$0xff] %v6885_v12  ;;  %v7015_v12 = vld [vmem:[#allocation2 + $0x111] sm:$0xff] }
 0x294   :  { %12292 = vst [vmem:[#allocation53_spill] sm:$0xff] %v6903_v0  ;;  %v1609_v0 = vmul.f32 %v6734_v10, %v1544_v44  ;;  %v7043_v44 = vmul.f32 %v6734_v10, %v6943_v1 }
 0x295   :  { %12293 = vst [vmem:[#allocation54_spill] sm:$0xff] %v6921_v8  ;;  %v7049_v8 = vld [vmem:[#allocation2 + $0x1f8] sm:$0xff] }
 0x296   :  { %12294 = vst [vmem:[#allocation55_spill] sm:$0xff] %v6923_v23  ;;  %v7047_v23 = vmul.f32 %v6734_v10, %v6945_v56 }
 0x297   :  { %12295 = vst [vmem:[#allocation56_spill] sm:$0xff] %v6941_v5  ;;  %v7061_v5 = vmul.f32 %v6734_v10, %v6963_v60 }
 0x298   :  { %12296 = vst [vmem:[#allocation57_spill] sm:$0xff] %v6943_v1  ;;  %v7065_v1 = vmul.f32 %v6734_v10, %v6965_v57 }
 0x299   :  { %12297 = vst [vmem:[#allocation58_spill] sm:$0xff] %v6945_v56  ;;  %v7069_v56 = vmul.f32 %v6734_v10, %v6967_v37 }
 0x29a   :  { %12298 = vst [vmem:[#allocation59_spill] sm:$0xff] %v6963_v60  ;;  %v7083_v60 = vmul.f32 %v6734_v10, %v6987_v40 }
 0x29b   :  { %12299 = vst [vmem:[#allocation60_spill] sm:$0xff] %v6965_v57  ;;  %v7087_v57 = vmul.f32 %v6734_v10, %v6989_v36 }
 0x29c   :  { %12300 = vst [vmem:[#allocation61_spill] sm:$0xff] %v6967_v37  ;;  %v7091_v37 = vmul.f32 %v6734_v10, %v7001_v21 }
 0x29d   :  { %12301 = vst [vmem:[#allocation62_spill] sm:$0xff] %v6969_v62 }
 0x29e   :  { %12302 = vst [vmem:[#allocation63_spill] sm:$0xff] %v6987_v40  ;;  %v7105_v40 = vmul.f32 %v6734_v10, %v7003_v16 }
 0x29f   :  { %12303 = vst [vmem:[#allocation64_spill] sm:$0xff] %v6989_v36  ;;  %v7109_v36 = vmul.f32 %v6734_v10, %v7013_v29 }
 0x2a0   :  { %12304 = vst [vmem:[#allocation65_spill] sm:$0xff] %v6991_v59 }
 0x2a1   :  { %12305 = vst [vmem:[#allocation66_spill] sm:$0xff] %v6995_v50  ;;  %v7188_v50 = vld [vmem:[#allocation2 + $0x219] sm:$0xff] }
 0x2a2   :  { %12306 = vst [vmem:[#allocation67_spill] sm:$0xff] %v6999_v7  ;;  %v7180_v7 = vld [vmem:[#allocation2 + $0x240] sm:$0xff] }
 0x2a3   :  { %12307 = vst [vmem:[#allocation68_spill] sm:$0xff] %v7001_v21  ;;  %v7113_v21 = vmul.f32 %v6734_v10, %v7015_v12 }
 0x2a4   :  { %12308 = vst [vmem:[#allocation69_spill] sm:$0xff] %v7003_v16 }
 0x2a5   :  { %12309 = vst [vmem:[#allocation70_spill] sm:$0xff] %v7006_v33  ;;  %v7031_v33 = vmul.f32 %v6729_v2, %v6969_v62  ;;  %v7053_v62 = vmul.f32 %v6729_v2, %v6991_v59  ;;  %v7075_v59 = vmul.f32 %v6729_v2, %v7011_v15 }
 0x2a6   :  { %12310 = vst [vmem:[#allocation71_spill] sm:$0xff] %v7009_v43  ;;  %v7033_v43 = vld [vmem:[#allocation2 + $0x121] sm:$0xff] }
 0x2a7   :  { %12311 = vst [vmem:[#allocation72_spill] sm:$0xff] %v7011_v15  ;;  %v7097_v15 = vmul.f32 %v6729_v2, %v7027_v17  ;;  %v7127_v16 = vmul.f32 %v6734_v10, %v7033_v43 }
 0x2a8   :  { %12312 = vst [vmem:[#allocation73_spill] sm:$0xff] %v7013_v29  ;;  %v7131_v29 = vmul.f32 %v6734_v10, %v7035_v13 }
 0x2a9   :  { %12313 = vst [vmem:[#allocation74_spill] sm:$0xff] %v7015_v12  ;;  %v7135_v12 = vmul.f32 %v6734_v10, %v7055_v35 }
 0x2aa   :  { %12314 = vst [vmem:[#allocation75_spill] sm:$0xff] %v7027_v17  ;;  %v7119_v17 = vmul.f32 %v6729_v2, %v7049_v8 }
 0x2ab   :  { %12315 = vst [vmem:[#allocation76_spill] sm:$0xff] %v7031_v33  ;;  %v7167_v33 = vld [vmem:[#allocation2 + $0x201] sm:$0xff] }
 0x2ac   :  { %12316 = vst [vmem:[#allocation77_spill] sm:$0xff] %v7033_v43  ;;  %v7149_v43 = vmul.f32 %v6734_v10, %v7057_v51 }
 0x2ad   :  { %12317 = vst [vmem:[#allocation78_spill] sm:$0xff] %v7035_v13  ;;  %v7153_v13 = vmul.f32 %v6734_v10, %v7077_v53 }
 0x2ae   :  { %12318 = vst [vmem:[#allocation79_spill] sm:$0xff] %v7049_v8  ;;  %v7141_v8 = vmul.f32 %v6729_v2, %v7071_v30 }
 0x2af   :  { %12319 = vst [vmem:[#allocation80_spill] sm:$0xff] %v7053_v62  ;;  %v7159_v62 = vld [vmem:[#allocation2 + $0x230] sm:$0xff] }
 0x2b0   :  { %12320 = vst [vmem:[#allocation81_spill] sm:$0xff] %v7055_v35  ;;  %v7157_v35 = vmul.f32 %v6734_v10, %v7079_v19 }
 0x2b1   :  { %12321 = vst [vmem:[#allocation82_spill] sm:$0xff] %v7057_v51  ;;  %v7171_v51 = vmul.f32 %v6734_v10, %v7099_v42 }
 0x2b2   :  { %12322 = vst [vmem:[#allocation83_spill] sm:$0xff] %v7071_v30  ;;  %v7163_v30 = vmul.f32 %v6729_v2, %v7093_v27 }
 0x2b3   :  { %12323 = vst [vmem:[#allocation84_spill] sm:$0xff] %v7075_v59  ;;  %v7145_v59 = vld [vmem:[#allocation2 + $0x1e9] sm:$0xff] }
 0x2b4   :  { %12324 = vst [vmem:[#allocation85_spill] sm:$0xff] %v7077_v53  ;;  %v7175_v53 = vmul.f32 %v6734_v10, %v7101_v54 }
 0x2b5   :  { %12325 = vst [vmem:[#allocation86_spill] sm:$0xff] %v7079_v19  ;;  %v7178_v19 = vadd.f32 %v1608_v4, %v6880_v14  ;;  %v7199_v4 = vadd.f32 %v1609_v0, %v6883_v48  ;;  %v7201_v14 = vld [vmem:[#allocation2 + $0x248] sm:$0xff]  ;;  %v7221_v48 = vadd.f32 %v7021_v22, %v6889_v63  ;;  %v7223_v0 = vld [vmem:[#allocation2 + $0x258] sm:$0xff]  ;;  %v7243_v22 = vadd.f32 %v7025_v61, %v6893_v28  ;;  %v7245_v63 = vld [vmem:[#allocation2 + $0x260] sm:$0xff] }
 0x2b6   :  { %12326 = vst [vmem:[#allocation87_spill] sm:$0xff] %v7093_v27  ;;  %v7184_v27 = vmul.f32 %v6729_v2, %v7115_v34  ;;  %v7265_v28 = vadd.f32 %v7039_v18, %v6897_v32  ;;  %v7267_v61 = vld [vmem:[#allocation2 + $0x270] sm:$0xff]  ;;  %v7285_v32 = vadd.f32 %v7043_v44, %v6901_v47  ;;  %v7287_v18 = vld [vmem:[#allocation2 + $0x278] sm:$0xff]  ;;  %v7305_v47 = vadd.f32 %v7047_v23, %v6907_v9  ;;  %v7307_v44 = vld [vmem:[#allocation2 + $0x288] sm:$0xff] }
 0x2b7   :  { %12327 = vst [vmem:[#allocation88_spill] sm:$0xff] %v7097_v15  ;;  %v7137_v15 = vld [vmem:[#allocation2 + $0x228] sm:$0xff]  ;;  %v7325_v9 = vadd.f32 %v7061_v5, %v6911_v11  ;;  %v7327_v23 = vld [vmem:[#allocation2 + $0x290] sm:$0xff]  ;;  %v7345_v5 = vadd.f32 %v7069_v56, %v6919_v20  ;;  %v7347_v11 = vld [vmem:[#allocation2 + $0x2a0] sm:$0xff]  ;;  %v7365_v56 = vadd.f32 %v7087_v57, %v6931_v6  ;;  %v7371_v20 = vmul.f32 %v6729_v2, %v7307_v44 }
 0x2b8   :  { %12328 = vst [vmem:[#allocation89_spill] sm:$0xff] %v7099_v42  ;;  %v7192_v42 = vmul.f32 %v6734_v10, %v7121_v38  ;;  %v7385_v57 = vadd.f32 %v7105_v40, %v6939_v24  ;;  %v7387_v6 = vld [vmem:[#allocation2 + $0x2b8] sm:$0xff]  ;;  %v7405_v40 = vadd.f32 %v7113_v21, %v6953_v3  ;;  %v1523_v24 = vmul.f32 %v6729_v2, %v7347_v11  ;;  %v7423_v3 = vld [vmem:[#allocation2 + $0x2d0] sm:$0xff] }
 0x2b9   :  { %12329 = vst [vmem:[#allocation90_spill] sm:$0xff] %v7101_v54  ;;  %v7196_v54 = vmul.f32 %v6734_v10, %v7123_v45  ;;  %v7427_v21 = vld [vmem:[#allocation2 + $0x2d1] sm:$0xff] }
 0x2ba   :  { %12330 = vst [vmem:[#allocation91_spill] sm:$0xff] %v7115_v34  ;;  %v7207_v34 = vld [vmem:[#allocation2 + $0x229] sm:$0xff] }
 0x2bb   :  { %12331 = vst [vmem:[#allocation92_spill] sm:$0xff] %v7119_v17  ;;  %v7143_v17 = vld [vmem:[#allocation2 + $0x1e1] sm:$0xff] }
 0x2bc   :  { %12332 = vst [vmem:[#allocation93_spill] sm:$0xff] %v7121_v38  ;;  %v7213_v38 = vmul.f32 %v6734_v10, %v7143_v17 }
 0x2bd   :  { %12333 = vst [vmem:[#allocation94_spill] sm:$0xff] %v7123_v45  ;;  %v7217_v45 = vmul.f32 %v6734_v10, %v7145_v59 }
 0x2be   :  { %12334 = vst [vmem:[#allocation95_spill] sm:$0xff] %v7137_v15 }
 0x2bf   :  { %12335 = vst [vmem:[#allocation96_spill] sm:$0xff] %v7141_v8  ;;  %v7165_v8 = vld [vmem:[#allocation2 + $0x1f9] sm:$0xff] }
 0x2c0   :  { %12336 = vst [vmem:[#allocation97_spill] sm:$0xff] %v7143_v17  ;;  %v7235_v17 = vmul.f32 %v6734_v10, %v7165_v8 }
 0x2c1   :  { %12337 = vst [vmem:[#allocation98_spill] sm:$0xff] %v7145_v59  ;;  %v7239_v59 = vmul.f32 %v6734_v10, %v7167_v33 }
 0x2c2   :  { %12338 = vst [vmem:[#allocation99_spill] sm:$0xff] %v7159_v62 }
 0x2c3   :  { %12339 = vst [vmem:[#allocation100_spill] sm:$0xff] %v7163_v30  ;;  %v7186_v30 = vld [vmem:[#allocation2 + $0x211] sm:$0xff] }
 0x2c4   :  { %12340 = vst [vmem:[#allocation101_spill] sm:$0xff] %v7165_v8  ;;  %v7257_v8 = vmul.f32 %v6734_v10, %v7186_v30 }
 0x2c5   :  { %12341 = vst [vmem:[#allocation102_spill] sm:$0xff] %v7167_v33  ;;  %v7261_v33 = vmul.f32 %v6734_v10, %v7188_v50 }
 0x2c6   :  { %12342 = vst [vmem:[#allocation103_spill] sm:$0xff] %v7178_v19  ;;  %v7205_v19 = vmul.f32 %v6729_v2, %v7137_v15  ;;  %v7227_v15 = vmul.f32 %v6729_v2, %v7159_v62  ;;  %v7249_v62 = vmul.f32 %v6729_v2, %v7180_v7 }
 0x2c7   :  { %12343 = vst [vmem:[#allocation104_spill] sm:$0xff] %v7180_v7  ;;  %v7271_v7 = vmul.f32 %v6729_v2, %v7201_v14 }
 0x2c8   :  { %12344 = vst [vmem:[#allocation105_spill] sm:$0xff] %v7184_v27  ;;  %v7209_v27 = vld [vmem:[#allocation2 + $0x231] sm:$0xff] }
 0x2c9   :  { %12345 = vst [vmem:[#allocation106_spill] sm:$0xff] %v7186_v30  ;;  %v7277_v30 = vmul.f32 %v6734_v10, %v7207_v34 }
 0x2ca   :  { %12346 = vst [vmem:[#allocation107_spill] sm:$0xff] %v7188_v50  ;;  %v7281_v50 = vmul.f32 %v6734_v10, %v7209_v27 }
 0x2cb   :  { %12347 = vst [vmem:[#allocation108_spill] sm:$0xff] %v7199_v4  ;;  %v7229_v4 = vld [vmem:[#allocation2 + $0x241] sm:$0xff] }
 0x2cc   :  { %12348 = vst [vmem:[#allocation109_spill] sm:$0xff] %v7201_v14  ;;  %v7291_v14 = vmul.f32 %v6729_v2, %v7223_v0 }
 0x2cd   :  { %12349 = vst [vmem:[#allocation110_spill] sm:$0xff] %v7205_v19  ;;  %v7231_v19 = vld [vmem:[#allocation2 + $0x249] sm:$0xff] }
 0x2ce   :  { %12350 = vst [vmem:[#allocation111_spill] sm:$0xff] %v7207_v34  ;;  %v7297_v34 = vmul.f32 %v6734_v10, %v7229_v4 }
 0x2cf   :  { %12351 = vst [vmem:[#allocation112_spill] sm:$0xff] %v7209_v27  ;;  %v7301_v27 = vmul.f32 %v6734_v10, %v7231_v19 }
 0x2d0   :  { %12352 = vst [vmem:[#allocation113_spill] sm:$0xff] %v7221_v48  ;;  %v7251_v48 = vld [vmem:[#allocation2 + $0x259] sm:$0xff] }
 0x2d1   :  { %12353 = vst [vmem:[#allocation114_spill] sm:$0xff] %v7223_v0  ;;  %v7311_v0 = vmul.f32 %v6729_v2, %v7245_v63 }
 0x2d2   :  { %12354 = vst [vmem:[#allocation115_spill] sm:$0xff] %v7227_v15  ;;  %v7253_v15 = vld [vmem:[#allocation2 + $0x261] sm:$0xff] }
 0x2d3   :  { %12355 = vst [vmem:[#allocation116_spill] sm:$0xff] %v7229_v4  ;;  %v7317_v4 = vmul.f32 %v6734_v10, %v7251_v48 }
 0x2d4   :  { %12356 = vst [vmem:[#allocation117_spill] sm:$0xff] %v7231_v19  ;;  %v7321_v19 = vmul.f32 %v6734_v10, %v7253_v15 }
 0x2d5   :  { %12357 = vst [vmem:[#allocation118_spill] sm:$0xff] %v7243_v22  ;;  %v7273_v22 = vld [vmem:[#allocation2 + $0x271] sm:$0xff] }
 0x2d6   :  { %12358 = vst [vmem:[#allocation119_spill] sm:$0xff] %v7245_v63  ;;  %v7331_v63 = vmul.f32 %v6729_v2, %v7267_v61 }
 0x2d7   :  { %12359 = vst [vmem:[#allocation120_spill] sm:$0xff] %v7251_v48  ;;  %v7337_v48 = vmul.f32 %v6734_v10, %v7273_v22 }
 0x2d8   :  { %12360 = vst [vmem:[#allocation121_spill] sm:$0xff] %v7253_v15  ;;  %v7341_v15 = vadd.f32 %v7065_v1, %v6915_v49  ;;  %v7361_v1 = vadd.f32 %v7083_v60, %v6927_v52  ;;  %v7367_v49 = vld [vmem:[#allocation2 + $0x2a8] sm:$0xff]  ;;  %v7381_v60 = vadd.f32 %v7091_v37, %v6935_v31  ;;  %v7391_v52 = vmul.f32 %v6729_v2, %v7327_v23  ;;  %v7407_v31 = vld [vmem:[#allocation2 + $0x2c0] sm:$0xff] }
 0x2d9   :  { %12361 = vst [vmem:[#allocation122_spill] sm:$0xff] %v7265_v28  ;;  %v7293_v28 = vld [vmem:[#allocation2 + $0x279] sm:$0xff]  ;;  %v7401_v37 = vadd.f32 %v7109_v36, %v6949_v58  ;;  %v7421_v36 = vadd.f32 %v7131_v29, %v6961_v46  ;;  %v1524_v58 = vmul.f32 %v6729_v2, %v7367_v49  ;;  %v1525_v29 = vmul.f32 %v6729_v2, %v7387_v6 }
 0x2da   :  { %12362 = vst [vmem:[#allocation123_spill] sm:$0xff] %v7267_v61  ;;  %v7351_v61 = vmul.f32 %v6729_v2, %v7287_v18  ;;  %v7439_v46 = vld [vmem:[#allocation2 + $0x2d8] sm:$0xff] }
 0x2db   :  { %12363 = vst [vmem:[#allocation124_spill] sm:$0xff] %v7273_v22  ;;  %v7357_v22 = vmul.f32 %v6734_v10, %v7293_v28 }
 0x2dc   :  { %12364 = vst [vmem:[#allocation125_spill] sm:$0xff] %v7285_v32  ;;  %v7313_v32 = vld [vmem:[#allocation2 + $0x289] sm:$0xff] }
 0x2dd   :  { %12365 = vst [vmem:[#allocation126_spill] sm:$0xff] %v7287_v18  ;;  %v7373_v18 = vld [vmem:[#allocation2 + $0x2a9] sm:$0xff] }
 0x2de   :  { %12366 = vst [vmem:[#allocation127_spill] sm:$0xff] %v7293_v28  ;;  %v7377_v28 = vmul.f32 %v6734_v10, %v7313_v32 }
 0x2df   :  { %12367 = vst [vmem:[#allocation128_spill] sm:$0xff] %v7305_v47  ;;  %v7333_v47 = vld [vmem:[#allocation2 + $0x291] sm:$0xff] }
 0x2e0   :  { %12368 = vst [vmem:[#allocation129_spill] sm:$0xff] %v7307_v44  ;;  %v7393_v44 = vld [vmem:[#allocation2 + $0x2b9] sm:$0xff] }
 0x2e1   :  { %12369 = vst [vmem:[#allocation130_spill] sm:$0xff] %v7313_v32  ;;  %v7397_v32 = vmul.f32 %v6734_v10, %v7333_v47 }
 0x2e2   :  { %12370 = vst [vmem:[#allocation131_spill] sm:$0xff] %v7325_v9  ;;  %v7353_v9 = vld [vmem:[#allocation2 + $0x2a1] sm:$0xff] }
 0x2e3   :  { %12371 = vst [vmem:[#allocation132_spill] sm:$0xff] %v7327_v23  ;;  %v7411_v23 = vld [vmem:[#allocation2 + $0x2c1] sm:$0xff] }
 0x2e4   :  { %12372 = vst [vmem:[#allocation133_spill] sm:$0xff] %v7333_v47  ;;  %v7417_v47 = vadd.f32 %v7127_v16, %v6957_v55  ;;  %v7437_v55 = vadd.f32 %v7149_v43, %v6977_v39  ;;  %v7443_v16 = vld [vmem:[#allocation2 + $0x2d9] sm:$0xff]  ;;  %v7455_v43 = vld [vmem:[#allocation2 + $0x2e8] sm:$0xff]  ;;  %v1526_v39 = vmul.f32 %v6729_v2, %v7407_v31 }
 0x2e5   :  { %12373 = vst [vmem:[#allocation134_spill] sm:$0xff] %v7347_v11  ;;  %v1653_v11 = vmul.f32 %v6734_v10, %v7373_v18 }
 0x2e6   :  { %12374 = vst [vmem:[#allocation135_spill] sm:$0xff] %v7353_v9 }
 0x2e7   :  { %12375 = vst [vmem:[#allocation136_spill] sm:$0xff] %v7367_v49  ;;  %v1654_v49 = vmul.f32 %v6734_v10, %v7393_v44 }
 0x2e8   :  { %12376 = vst [vmem:[#allocation137_spill] sm:$0xff] %v7373_v18  ;;  %v7449_v18 = vadd.f32 %v7153_v13, %v6981_v25  ;;  %v12397_v13 = vld [vmem:[#allocation67_spill] sm:$0xff] }
 0x2e9   :  { %12377 = vst [vmem:[#allocation138_spill] sm:$0xff] %v7385_v57  ;;  %v1652_v57 = vmul.f32 %v6734_v10, %v7353_v9  ;;  %v7433_v9 = vadd.f32 %v7135_v12, %v6973_v41  ;;  %v7453_v41 = vadd.f32 %v7157_v35, %v6985_v26  ;;  %v7459_v12 = vld [vmem:[#allocation2 + $0x2e9] sm:$0xff]  ;;  %v7469_v25 = vadd.f32 %v7175_v53, %v12397_v13 }
 0x2ea   :  { %12378 = vst [vmem:[#allocation139_spill] sm:$0xff] %v7387_v6  ;;  %v1655_v6 = vmul.f32 %v6734_v10, %v7411_v23  ;;  %v7471_v26 = vld [vmem:[#allocation2 + $0x2f0] sm:$0xff]  ;;  %v1527_v35 = vmul.f32 %v6729_v2, %v7423_v3  ;;  %v1528_v53 = vmul.f32 %v6729_v2, %v7439_v46  ;;  %v1657_v13 = vmul.f32 %v6734_v10, %v7443_v16 }
 0x2eb   :  { %12379 = vst [vmem:[#allocation140_spill] sm:$0xff] %v7393_v44 }
 0x2ec   :  { %12380 = vst [vmem:[#allocation141_spill] sm:$0xff] %v7405_v40  ;;  %v12493_v40 = vld [vmem:[#allocation122_spill] sm:$0xff] }
 0x2ed   :  { %12381 = vst [vmem:[#allocation142_spill] sm:$0xff] %v7407_v31  ;;  %v1656_v31 = vmul.f32 %v6734_v10, %v7427_v21 }
 0x2ee   :  { %12382 = vst [vmem:[#allocation143_spill] sm:$0xff] %v7411_v23 }
 0x2ef   :  { %12383 = vst [vmem:[#allocation144_spill] sm:$0xff] %v7417_v47  ;;  %v12490_v47 = vld [vmem:[#allocation108_spill] sm:$0xff] }
 0x2f0   :  { %12384 = vst [vmem:[#allocation145_spill] sm:$0xff] %v7421_v36 }
 0x2f1   :  { %12385 = vst [vmem:[#allocation146_spill] sm:$0xff] %v7423_v3  ;;  %v12405_v3 = vld [vmem:[#allocation84_spill] sm:$0xff] }
 0x2f2   :  { %12386 = vst [vmem:[#allocation147_spill] sm:$0xff] %v7427_v21 }
 0x2f3   :  { %12387 = vst [vmem:[#allocation148_spill] sm:$0xff] %v7433_v9  ;;  %v7779_v9 = vld [vmem:[#allocation2 + $0x2f2] sm:$0xff] }
 0x2f4   :  { %12388 = vst [vmem:[#allocation149_spill] sm:$0xff] %v7437_v55  ;;  %v12395_v55 = vld [vmem:[#allocation66_spill] sm:$0xff] }
 0x2f5   :  { %12389 = vst [vmem:[#allocation150_spill] sm:$0xff] %v7439_v46  ;;  %v7465_v44 = vadd.f32 %v7171_v51, %v12395_v55  ;;  %v12403_v51 = vld [vmem:[#allocation80_spill] sm:$0xff] }
 0x2f6   :  { %12390 = vst [vmem:[#allocation151_spill] sm:$0xff] %v7443_v16  ;;  %v7485_v55 = vadd.f32 %v7196_v54, %v12403_v51  ;;  %v1658_v54 = vmul.f32 %v6734_v10, %v7459_v12  ;;  %v12411_v46 = vld [vmem:[#allocation96_spill] sm:$0xff] }
 0x2f7   :  { %12391 = vst [vmem:[#allocation152_spill] sm:$0xff] %v7449_v18  ;;  %v12401_v18 = vld [vmem:[#allocation76_spill] sm:$0xff]  ;;  %v7509_v16 = vadd.f32 %v7239_v59, %v12411_v46  ;;  %v12419_v46 = vld [vmem:[#allocation115_spill] sm:$0xff] }
 0x2f8   :  { %12392 = vst [vmem:[#allocation153_spill] sm:$0xff] %v7453_v41  ;;  %v7475_v41 = vld [vmem:[#allocation2 + $0x2f1] sm:$0xff]  ;;  %v7481_v23 = vadd.f32 %v7192_v42, %v12401_v18  ;;  %v1529_v42 = vmul.f32 %v6729_v2, %v7455_v43 }
 0x2f9   :  { %12393 = vst [vmem:[#allocation154_spill] sm:$0xff] %v7455_v43  ;;  %v12409_v18 = vld [vmem:[#allocation92_spill] sm:$0xff]  ;;  %v12415_v43 = vld [vmem:[#allocation105_spill] sm:$0xff] }
 0x2fa   :  { %12394 = vst [vmem:[#allocation155_spill] sm:$0xff] %v7459_v12  ;;  %v7505_v51 = vadd.f32 %v7235_v17, %v12409_v18  ;;  %v7521_v12 = vadd.f32 %v7261_v33, %v12415_v43  ;;  %v1735_v17 = vld [vmem:[#allocation2 + $0x52] sm:$0xff]  ;;  %v1736_v18 = vld [vmem:[#allocation2 + $0x62] sm:$0xff]  ;;  %v1737_v33 = vld [vmem:[#allocation2 + $0x6a] sm:$0xff] }
 0x2fb   :  { %12396 = vst [vmem:[#allocation66_spill] sm:$0xff] %v7465_v44  ;;  %v12407_v44 = vld [vmem:[#allocation88_spill] sm:$0xff] }
 0x2fc   :  { %12398 = vst [vmem:[#allocation67_spill] sm:$0xff] %v7469_v25  ;;  %v7493_v25 = vadd.f32 %v7213_v38, %v12405_v3  ;;  %v7497_v21 = vadd.f32 %v7217_v45, %v12407_v44  ;;  %v1530_v38 = vmul.f32 %v6729_v2, %v7471_v26  ;;  %v1659_v45 = vmul.f32 %v6734_v10, %v7475_v41  ;;  %v12413_v44 = vld [vmem:[#allocation100_spill] sm:$0xff] }
 0x2fd   :  { %12399 = vst [vmem:[#allocation156_spill] sm:$0xff] %v7471_v26  ;;  %v7517_v3 = vadd.f32 %v7257_v8, %v12413_v44  ;;  %v7529_v2 = vadd.f32 %v7281_v50, %v12419_v46  ;;  %v7533_v10 = vadd.f32 %v7297_v34, %v7249_v62  ;;  %v7537_v8 = vadd.f32 %v7301_v27, %v7271_v7  ;;  %v1738_v43 = vld [vmem:[#allocation2 + $0x7a] sm:$0xff]  ;;  %v7539_v44 = vld [vmem:[#allocation2 + $0x82] sm:$0xff]  ;;  %v7561_v7 = vld [vmem:[#allocation2 + $0xaa] sm:$0xff] }
 0x2fe   :  { %12400 = vst [vmem:[#allocation157_spill] sm:$0xff] %v7475_v41  ;;  %v7541_v41 = vld [vmem:[#allocation2 + $0x92] sm:$0xff]  ;;  %v7549_v50 = vadd.f32 %v7321_v19, %v7311_v0  ;;  %v7553_v34 = vadd.f32 %v7337_v48, %v7331_v63  ;;  %v7557_v62 = vadd.f32 %v7357_v22, %v7351_v61  ;;  %v7559_v27 = vld [vmem:[#allocation2 + $0x9a] sm:$0xff]  ;;  %v7569_v19 = vadd.f32 %v7377_v28, %v7371_v20  ;;  %v7579_v22 = vld [vmem:[#allocation2 + $0xca] sm:$0xff] }
 0x2ff   :  { %12402 = vst [vmem:[#allocation76_spill] sm:$0xff] %v7481_v23  ;;  %v7575_v48 = vadd.f32 %v1652_v57, %v1523_v24  ;;  %v7577_v0 = vadd.f32 %v1653_v11, %v1524_v58  ;;  %v7581_v63 = vld [vmem:[#allocation2 + $0xda] sm:$0xff]  ;;  %v7583_v61 = vld [vmem:[#allocation2 + $0xe2] sm:$0xff]  ;;  %v7585_v46 = vld [vmem:[#allocation2 + $0xf2] sm:$0xff]  ;;  %v7587_v26 = vadd.f32 %v1654_v49, %v1525_v29  ;;  %v7589_v28 = vadd.f32 %v1655_v6, %v1526_v39 }
 0x300   :  { %12404 = vst [vmem:[#allocation80_spill] sm:$0xff] %v7485_v55  ;;  %v7591_v20 = vadd.f32 %v1656_v31, %v1527_v35  ;;  %v7595_v57 = vld [vmem:[#allocation2 + $0xfa] sm:$0xff]  ;;  %v7597_v11 = vld [vmem:[#allocation2 + $0x10a] sm:$0xff]  ;;  %v7601_v24 = vld [vmem:[#allocation2 + $0x122] sm:$0xff]  ;;  %v7603_v58 = vadd.f32 %v1658_v54, %v1529_v42 }
 0x301   :  { %12406 = vst [vmem:[#allocation84_spill] sm:$0xff] %v7493_v25  ;;  %v7607_v49 = vld [vmem:[#allocation2 + $0x12a] sm:$0xff]  ;;  %v7609_v6 = vld [vmem:[#allocation2 + $0x13a] sm:$0xff]  ;;  %v7611_v31 = vld [vmem:[#allocation2 + $0x142] sm:$0xff] }
 0x302   :  { %12408 = vst [vmem:[#allocation88_spill] sm:$0xff] %v7497_v21  ;;  %v7613_v29 = vld [vmem:[#allocation2 + $0x152] sm:$0xff]  ;;  %v7623_v42 = vld [vmem:[#allocation2 + $0x16a] sm:$0xff] }
 0x303   :  { %12410 = vst [vmem:[#allocation92_spill] sm:$0xff] %v7505_v51  ;;  %v12417_v51 = vld [vmem:[#allocation110_spill] sm:$0xff]  ;;  %v12455_v39 = vld [vmem:[#allocation20_spill] sm:$0xff] }
 0x304   :  { %12412 = vst [vmem:[#allocation96_spill] sm:$0xff] %v7509_v16  ;;  %v7525_v59 = vadd.f32 %v7277_v30, %v12417_v51  ;;  %v7545_v30 = vadd.f32 %v7317_v4, %v7291_v14  ;;  %v7563_v51 = vld [vmem:[#allocation2 + $0xb2] sm:$0xff]  ;;  %v7565_v4 = vld [vmem:[#allocation2 + $0xc2] sm:$0xff]  ;;  %v7573_v14 = vadd.f32 %v7397_v32, %v7391_v52  ;;  %v7593_v32 = vadd.f32 %v1657_v13, %v1528_v53  ;;  %v7621_v13 = vld [vmem:[#allocation2 + $0x15a] sm:$0xff] }
 0x305   :  { %12414 = vst [vmem:[#allocation100_spill] sm:$0xff] %v7517_v3  ;;  %v7599_v52 = vld [vmem:[#allocation2 + $0x112] sm:$0xff]  ;;  %v7616_v35 = vmul.f32 %v12455_v39, %v1735_v17  ;;  %v7619_v53 = vmul.f32 %v12455_v39, %v1736_v18  ;;  %v7637_v17 = vmul.f32 %v12455_v39, %v7539_v44  ;;  %v7641_v18 = vmul.f32 %v12455_v39, %v7541_v41  ;;  %v7751_v3 = vld [vmem:[#allocation2 + $0x2aa] sm:$0xff]  ;;  %v7755_v16 = vld [vmem:[#allocation2 + $0x2c2] sm:$0xff] }
 0x306   :  { %12416 = vst [vmem:[#allocation105_spill] sm:$0xff] %v7521_v12  ;;  %v7625_v54 = vld [vmem:[#allocation2 + $0x172] sm:$0xff]  ;;  %v7769_v55 = vld [vmem:[#allocation2 + $0x2ea] sm:$0xff] }
 0x307   :  { %12418 = vst [vmem:[#allocation110_spill] sm:$0xff] %v7525_v59  ;;  %v7741_v59 = vld [vmem:[#allocation2 + $0x2a2] sm:$0xff]  ;;  %v7765_v25 = vld [vmem:[#allocation2 + $0x2d2] sm:$0xff] }
 0x308   :  { %12420 = vst [vmem:[#allocation115_spill] sm:$0xff] %v7529_v2  ;;  %v7737_v2 = vld [vmem:[#allocation2 + $0x28a] sm:$0xff] }
 0x309   :  { %12421 = vst [vmem:[#allocation158_spill] sm:$0xff] %v7533_v10  ;;  %v1822_v10 = vmul.f32 %v12455_v39, %v7621_v13 }
 0x30a   :  { %12422 = vst [vmem:[#allocation159_spill] sm:$0xff] %v7537_v8  ;;  %v7727_v8 = vld [vmem:[#allocation2 + $0x27a] sm:$0xff] }
 0x30b   :  { %12423 = vst [vmem:[#allocation160_spill] sm:$0xff] %v7539_v44  ;;  %v7659_v44 = vmul.f32 %v12455_v39, %v7563_v51 }
 0x30c   :  { %12424 = vst [vmem:[#allocation161_spill] sm:$0xff] %v7541_v41  ;;  %v7663_v41 = vmul.f32 %v12455_v39, %v7565_v4 }
 0x30d   :  { %12425 = vst [vmem:[#allocation162_spill] sm:$0xff] %v7545_v30  ;;  %v7725_v30 = vld [vmem:[#allocation2 + $0x272] sm:$0xff] }
 0x30e   :  { %12426 = vst [vmem:[#allocation163_spill] sm:$0xff] %v7549_v50  ;;  %v1821_v50 = vmul.f32 %v12455_v39, %v7613_v29  ;;  %v1841_v36 = vmul.f32 %v12455_v39, %v7725_v30 }
 0x30f   :  { %12427 = vst [vmem:[#allocation164_spill] sm:$0xff] %v7553_v34  ;;  %v7713_v34 = vld [vmem:[#allocation2 + $0x25a] sm:$0xff] }
 0x310   :  { %12428 = vst [vmem:[#allocation165_spill] sm:$0xff] %v7557_v62  ;;  %v7711_v62 = vld [vmem:[#allocation2 + $0x24a] sm:$0xff] }
 0x311   :  { %12429 = vst [vmem:[#allocation166_spill] sm:$0xff] %v7559_v27 }
 0x312   :  { %12430 = vst [vmem:[#allocation167_spill] sm:$0xff] %v7561_v7 }
 0x313   :  { %12431 = vst [vmem:[#allocation168_spill] sm:$0xff] %v7563_v51  ;;  %v7681_v51 = vmul.f32 %v12455_v39, %v7583_v61 }
 0x314   :  { %12432 = vst [vmem:[#allocation169_spill] sm:$0xff] %v7565_v4  ;;  %v7685_v4 = vmul.f32 %v12455_v39, %v7585_v46 }
 0x315   :  { %12433 = vst [vmem:[#allocation170_spill] sm:$0xff] %v7569_v19  ;;  %v7709_v19 = vld [vmem:[#allocation2 + $0x242] sm:$0xff] }
 0x316   :  { %12434 = vst [vmem:[#allocation171_spill] sm:$0xff] %v7573_v14  ;;  %v7691_v14 = vld [vmem:[#allocation2 + $0x232] sm:$0xff] }
 0x317   :  { %12435 = vst [vmem:[#allocation172_spill] sm:$0xff] %v7575_v48  ;;  %v7689_v48 = vld [vmem:[#allocation2 + $0x22a] sm:$0xff]  ;;  %v1836_v23 = vmul.f32 %v12455_v39, %v7691_v14 }
 0x318   :  { %12436 = vst [vmem:[#allocation173_spill] sm:$0xff] %v7577_v0  ;;  %v7605_v0 = vadd.f32 %v1659_v45, %v1530_v38  ;;  %v7627_v38 = vld [vmem:[#allocation2 + $0x1ca] sm:$0xff]  ;;  %v7630_v45 = vmul.f32 %v12455_v39, %v1737_v33  ;;  %v7651_v33 = vmul.f32 %v12455_v39, %v7559_v27  ;;  %v7673_v27 = vmul.f32 %v12455_v39, %v7579_v22 }
 0x319   :  { %12437 = vst [vmem:[#allocation174_spill] sm:$0xff] %v7579_v22  ;;  %v7695_v22 = vmul.f32 %v12455_v39, %v7595_v57 }
 0x31a   :  { %12438 = vst [vmem:[#allocation175_spill] sm:$0xff] %v7581_v63 }
 0x31b   :  { %12439 = vst [vmem:[#allocation176_spill] sm:$0xff] %v7583_v61  ;;  %v7703_v61 = vmul.f32 %v12455_v39, %v7599_v52 }
 0x31c   :  { %12440 = vst [vmem:[#allocation177_spill] sm:$0xff] %v7585_v46  ;;  %v7707_v46 = vmul.f32 %v12455_v39, %v7601_v24 }
 0x31d   :  { %12441 = vst [vmem:[#allocation178_spill] sm:$0xff] %v7587_v26  ;;  %v7687_v26 = vld [vmem:[#allocation2 + $0x21a] sm:$0xff] }
 0x31e   :  { %12442 = vst [vmem:[#allocation179_spill] sm:$0xff] %v7589_v28  ;;  %v7669_v28 = vld [vmem:[#allocation2 + $0x212] sm:$0xff] }
 0x31f   :  { %12443 = vst [vmem:[#allocation180_spill] sm:$0xff] %v7591_v20  ;;  %v7667_v20 = vld [vmem:[#allocation2 + $0x202] sm:$0xff] }
 0x320   :  { %12444 = vst [vmem:[#allocation181_spill] sm:$0xff] %v7593_v32  ;;  %v7665_v32 = vld [vmem:[#allocation2 + $0x1fa] sm:$0xff]  ;;  %v1832_v21 = vmul.f32 %v12455_v39, %v7667_v20 }
 0x321   :  { %12445 = vst [vmem:[#allocation182_spill] sm:$0xff] %v7595_v57  ;;  %v1818_v57 = vmul.f32 %v12455_v39, %v7607_v49 }
 0x322   :  { %12446 = vst [vmem:[#allocation183_spill] sm:$0xff] %v7597_v11 }
 0x323   :  { %12447 = vst [vmem:[#allocation184_spill] sm:$0xff] %v7599_v52  ;;  %v1820_v52 = vmul.f32 %v12455_v39, %v7611_v31 }
 0x324   :  { %12448 = vst [vmem:[#allocation185_spill] sm:$0xff] %v7601_v24  ;;  %v7723_v24 = vld [vmem:[#allocation2 + $0x262] sm:$0xff] }
 0x325   :  { %12449 = vst [vmem:[#allocation186_spill] sm:$0xff] %v7603_v58  ;;  %v7647_v58 = vld [vmem:[#allocation2 + $0x1ea] sm:$0xff] }
 0x326   :  { %12450 = vst [vmem:[#allocation187_spill] sm:$0xff] %v7605_v0  ;;  %v7633_v0 = vmul.f32 %v12455_v39, %v1738_v43  ;;  %v7655_v43 = vmul.f32 %v12455_v39, %v7561_v7  ;;  %v7677_v7 = vmul.f32 %v12455_v39, %v7581_v63  ;;  %v7699_v63 = vmul.f32 %v12455_v39, %v7597_v11 }
 0x327   :  { %12451 = vst [vmem:[#allocation188_spill] sm:$0xff] %v7607_v49  ;;  %v1819_v11 = vmul.f32 %v12455_v39, %v7609_v6  ;;  %v1823_v49 = vmul.f32 %v12455_v39, %v7623_v42 }
 0x328   :  { %12452 = vst [vmem:[#allocation189_spill] sm:$0xff] %v7609_v6  ;;  %v1824_v6 = vmul.f32 %v12455_v39, %v7625_v54 }
 0x329   :  { %12453 = vst [vmem:[#allocation190_spill] sm:$0xff] %v7611_v31  ;;  %v1827_v31 = vmul.f32 %v12455_v39, %v7627_v38 }
 0x32a   :  { %12454 = vst [vmem:[#allocation191_spill] sm:$0xff] %v7613_v29  ;;  %v7739_v29 = vld [vmem:[#allocation2 + $0x292] sm:$0xff] }
 0x32b   :  { %12456 = vst [vmem:[#allocation20_spill] sm:$0xff] %v7616_v35  ;;  %v7645_v35 = vld [vmem:[#allocation2 + $0x1e2] sm:$0xff] }
 0x32c   :  { %12457 = vst [vmem:[#allocation192_spill] sm:$0xff] %v7619_v53  ;;  %v7643_v53 = vld [vmem:[#allocation2 + $0x1d2] sm:$0xff] }
 0x32d   :  { %12458 = vst [vmem:[#allocation193_spill] sm:$0xff] %v7621_v13  ;;  %v1828_v12 = vmul.f32 %v12455_v39, %v7643_v53  ;;  %v1829_v13 = vmul.f32 %v12455_v39, %v7645_v35 }
 0x32e   :  { %12459 = vst [vmem:[#allocation194_spill] sm:$0xff] %v7623_v42  ;;  %v1830_v42 = vmul.f32 %v12455_v39, %v7647_v58 }
 0x32f   :  { %12460 = vst [vmem:[#allocation195_spill] sm:$0xff] %v7625_v54  ;;  %v1831_v54 = vmul.f32 %v12455_v39, %v7665_v32 }
 0x330   :  { %12461 = vst [vmem:[#allocation196_spill] sm:$0xff] %v7627_v38  ;;  %v7753_v38 = vld [vmem:[#allocation2 + $0x2ba] sm:$0xff] }
 0x331   :  { %12462 = vst [vmem:[#allocation197_spill] sm:$0xff] %v7643_v53  ;;  %v1833_v53 = vmul.f32 %v12455_v39, %v7669_v28 }
 0x332   :  { %12463 = vst [vmem:[#allocation198_spill] sm:$0xff] %v7645_v35  ;;  %v1834_v35 = vmul.f32 %v12455_v39, %v7687_v26 }
 0x333   :  { %12464 = vst [vmem:[#allocation199_spill] sm:$0xff] %v7647_v58  ;;  %v1835_v58 = vmul.f32 %v12455_v39, %v7689_v48 }
 0x334   :  { %12465 = vst [vmem:[#allocation200_spill] sm:$0xff] %v7665_v32  ;;  %v7767_v32 = vld [vmem:[#allocation2 + $0x2da] sm:$0xff] }
 0x335   :  { %12466 = vst [vmem:[#allocation201_spill] sm:$0xff] %v7667_v20  ;;  %v1837_v20 = vmul.f32 %v12455_v39, %v7709_v19 }
 0x336   :  { %12467 = vst [vmem:[#allocation202_spill] sm:$0xff] %v7669_v28  ;;  %v1838_v28 = vmul.f32 %v12455_v39, %v7711_v62 }
 0x337   :  { %12468 = vst [vmem:[#allocation203_spill] sm:$0xff] %v7687_v26  ;;  %v1839_v26 = vmul.f32 %v12455_v39, %v7713_v34 }
 0x338   :  { %12469 = vst [vmem:[#allocation204_spill] sm:$0xff] %v7689_v48  ;;  %v1840_v48 = vmul.f32 %v12455_v39, %v7723_v24 }
 0x339   :  { %12470 = vst [vmem:[#allocation205_spill] sm:$0xff] %v7691_v14  ;;  %v1842_v14 = vmul.f32 %v12455_v39, %v7727_v8 }
 0x33a   :  { %12471 = vst [vmem:[#allocation206_spill] sm:$0xff] %v7699_v63 }
 0x33b   :  { %12472 = vst [vmem:[#allocation207_spill] sm:$0xff] %v7703_v61 }
 0x33c   :  { %12473 = vst [vmem:[#allocation208_spill] sm:$0xff] %v7707_v46  ;;  %v1846_v46 = vmul.f32 %v12455_v39, %v7751_v3 }
 0x33d   :  { %12474 = vst [vmem:[#allocation209_spill] sm:$0xff] %v7709_v19  ;;  %v1843_v19 = vmul.f32 %v12455_v39, %v7737_v2 }
 0x33e   :  { %12475 = vst [vmem:[#allocation210_spill] sm:$0xff] %v7711_v62  ;;  %v1844_v62 = vmul.f32 %v12455_v39, %v7739_v29 }
 0x33f   :  { %12476 = vst [vmem:[#allocation211_spill] sm:$0xff] %v7713_v34  ;;  %v1845_v34 = vmul.f32 %v12455_v39, %v7741_v59 }
 0x340   :  { %12477 = vst [vmem:[#allocation212_spill] sm:$0xff] %v7723_v24  ;;  %v1847_v24 = vmul.f32 %v12455_v39, %v7753_v38 }
 0x341   :  { %12478 = vst [vmem:[#allocation213_spill] sm:$0xff] %v7725_v30  ;;  %v1848_v30 = vmul.f32 %v12455_v39, %v7755_v16 }
 0x342   :  { %12479 = vst [vmem:[#allocation214_spill] sm:$0xff] %v7727_v8  ;;  %v1849_v8 = vmul.f32 %v12455_v39, %v7765_v25 }
 0x343   :  { %12480 = vst [vmem:[#allocation215_spill] sm:$0xff] %v7737_v2  ;;  %v1850_v2 = vmul.f32 %v12455_v39, %v7767_v32 }
 0x344   :  { %12481 = vst [vmem:[#allocation216_spill] sm:$0xff] %v7739_v29  ;;  %v1851_v29 = vmul.f32 %v12455_v39, %v7769_v55 }
 0x345   :  { %12482 = vst [vmem:[#allocation217_spill] sm:$0xff] %v7741_v59  ;;  %v1852_v59 = vmul.f32 %v12455_v39, %v7779_v9  ;;  %v12497_v39 = vld [vmem:[#allocation128_spill] sm:$0xff] }
 0x346   :  { %12483 = vst [vmem:[#allocation218_spill] sm:$0xff] %v7751_v3  ;;  %v7809_v3 = vadd.f32 %v7630_v45, %v12490_v47  ;;  %v7829_v47 = vadd.f32 %v7655_v43, %v12497_v39  ;;  %v12499_v45 = vld [vmem:[#allocation131_spill] sm:$0xff] }
 0x347   :  { %12484 = vst [vmem:[#allocation219_spill] sm:$0xff] %v7753_v38  ;;  %v12491_v38 = vld [vmem:[#allocation113_spill] sm:$0xff] }
 0x348   :  { %12485 = vst [vmem:[#allocation220_spill] sm:$0xff] %v7755_v16  ;;  %v7813_v61 = vadd.f32 %v7633_v0, %v12491_v38  ;;  %v12492_v16 = vld [vmem:[#allocation118_spill] sm:$0xff]  ;;  %v7833_v0 = vadd.f32 %v7659_v44, %v12499_v45  ;;  %v7849_v38 = vadd.f32 %v7681_v51, %v7365_v56  ;;  %v7853_v44 = vadd.f32 %v7685_v4, %v7381_v60  ;;  %v12516_v51 = vld [vmem:[#allocation145_spill] sm:$0xff]  ;;  %v12518_v60 = vld [vmem:[#allocation148_spill] sm:$0xff] }
 0x349   :  { %12486 = vst [vmem:[#allocation221_spill] sm:$0xff] %v7765_v25  ;;  %v7817_v25 = vadd.f32 %v7637_v17, %v12492_v16  ;;  %v7837_v16 = vadd.f32 %v7663_v41, %v7341_v15  ;;  %v12506_v17 = vld [vmem:[#allocation138_spill] sm:$0xff]  ;;  %v7872_v43 = vadd.f32 %v1818_v57, %v12516_v51  ;;  %v7875_v4 = vadd.f32 %v1819_v11, %v12518_v60  ;;  %v12522_v45 = vld [vmem:[#allocation152_spill] sm:$0xff] }
 0x34a   :  { %12487 = vst [vmem:[#allocation222_spill] sm:$0xff] %v7767_v32  ;;  %v7821_v32 = vadd.f32 %v7641_v18, %v12493_v40  ;;  %v7841_v40 = vadd.f32 %v7673_v27, %v7345_v5  ;;  %v7857_v15 = vadd.f32 %v7695_v22, %v12506_v17  ;;  %v12508_v41 = vld [vmem:[#allocation206_spill] sm:$0xff]  ;;  %v12510_v27 = vld [vmem:[#allocation141_spill] sm:$0xff]  ;;  %v12511_v18 = vld [vmem:[#allocation207_spill] sm:$0xff] }
 0x34b   :  { %12488 = vst [vmem:[#allocation223_spill] sm:$0xff] %v7769_v55  ;;  %v12495_v55 = vld [vmem:[#allocation125_spill] sm:$0xff]  ;;  %v7861_v5 = vadd.f32 %v12508_v41, %v7401_v37  ;;  %v7881_v37 = vadd.f32 %v1821_v50, %v12522_v45  ;;  %v12530_v57 = vld [vmem:[#allocation76_spill] sm:$0xff] }
 0x34c   :  { %12489 = vst [vmem:[#allocation224_spill] sm:$0xff] %v7779_v9  ;;  %v7825_v63 = vadd.f32 %v7651_v33, %v12495_v55  ;;  %v7845_v55 = vadd.f32 %v7677_v7, %v7361_v1  ;;  %v7865_v1 = vadd.f32 %v12511_v18, %v12510_v27  ;;  %v12513_v7 = vld [vmem:[#allocation144_spill] sm:$0xff]  ;;  %v12520_v22 = vld [vmem:[#allocation149_spill] sm:$0xff]  ;;  %v12526_v27 = vld [vmem:[#allocation66_spill] sm:$0xff]  ;;  %v7893_v51 = vadd.f32 %v1827_v31, %v12530_v57 }
 0x34d   :  { %12494 = vst [vmem:[#allocation108_spill] sm:$0xff] %v7821_v32  ;;  %v12514_v33 = vld [vmem:[#allocation208_spill] sm:$0xff]  ;;  %v7878_v39 = vadd.f32 %v1820_v52, %v12520_v22  ;;  %v12524_v17 = vld [vmem:[#allocation153_spill] sm:$0xff]  ;;  %v7887_v18 = vadd.f32 %v1823_v49, %v12526_v27 }
 0x34e   :  { %12496 = vst [vmem:[#allocation113_spill] sm:$0xff] %v7825_v63  ;;  %v7869_v56 = vadd.f32 %v12514_v33, %v12513_v7  ;;  %v7884_v41 = vadd.f32 %v1822_v10, %v12524_v17  ;;  %v12528_v7 = vld [vmem:[#allocation67_spill] sm:$0xff]  ;;  %v12532_v11 = vld [vmem:[#allocation80_spill] sm:$0xff]  ;;  %v12544_v31 = vld [vmem:[#allocation105_spill] sm:$0xff] }
 0x34f   :  { %12498 = vst [vmem:[#allocation118_spill] sm:$0xff] %v7829_v47  ;;  %v7890_v33 = vadd.f32 %v1824_v6, %v12528_v7  ;;  %v7896_v60 = vadd.f32 %v1828_v12, %v12532_v11  ;;  %v12534_v52 = vld [vmem:[#allocation84_spill] sm:$0xff]  ;;  %v7914_v57 = vadd.f32 %v1834_v35, %v12544_v31  ;;  %v12546_v12 = vld [vmem:[#allocation110_spill] sm:$0xff]  ;;  %v8039_v32 = vld [vmem:[#allocation2 + $0x300] sm:$0xff] }
 0x350   :  { %12500 = vst [vmem:[#allocation122_spill] sm:$0xff] %v7833_v0  ;;  %v7899_v22 = vadd.f32 %v1829_v13, %v12534_v52  ;;  %v12536_v50 = vld [vmem:[#allocation88_spill] sm:$0xff]  ;;  %v7917_v11 = vadd.f32 %v1835_v58, %v12546_v12  ;;  %v12548_v13 = vld [vmem:[#allocation115_spill] sm:$0xff]  ;;  %v12560_v58 = vld [vmem:[#allocation165_spill] sm:$0xff] }
 0x351   :  { %12501 = vst [vmem:[#allocation125_spill] sm:$0xff] %v7837_v16  ;;  %v7902_v45 = vadd.f32 %v1830_v42, %v12536_v50  ;;  %v12538_v10 = vld [vmem:[#allocation92_spill] sm:$0xff]  ;;  %v7920_v52 = vadd.f32 %v1836_v23, %v12548_v13  ;;  %v12550_v42 = vld [vmem:[#allocation158_spill] sm:$0xff]  ;;  %v7938_v12 = vadd.f32 %v1842_v14, %v12560_v58 }
 0x352   :  { %12502 = vst [vmem:[#allocation128_spill] sm:$0xff] %v7841_v40  ;;  %v7905_v17 = vadd.f32 %v1831_v54, %v12538_v10  ;;  %v12540_v49 = vld [vmem:[#allocation96_spill] sm:$0xff]  ;;  %v7923_v50 = vadd.f32 %v1837_v20, %v12550_v42  ;;  %v12552_v54 = vld [vmem:[#allocation159_spill] sm:$0xff]  ;;  %v12562_v23 = vld [vmem:[#allocation170_spill] sm:$0xff] }
 0x353   :  { %12503 = vst [vmem:[#allocation131_spill] sm:$0xff] %v7845_v55  ;;  %v7908_v27 = vadd.f32 %v1832_v21, %v12540_v49  ;;  %v12542_v6 = vld [vmem:[#allocation100_spill] sm:$0xff]  ;;  %v7926_v10 = vadd.f32 %v1838_v28, %v12552_v54  ;;  %v12554_v21 = vld [vmem:[#allocation162_spill] sm:$0xff]  ;;  %v7941_v13 = vadd.f32 %v1843_v19, %v12562_v23  ;;  %v12564_v20 = vld [vmem:[#allocation171_spill] sm:$0xff] }
 0x354   :  { %12504 = vst [vmem:[#allocation225_spill] sm:$0xff] %v7849_v38  ;;  %v7911_v7 = vadd.f32 %v1833_v53, %v12542_v6  ;;  %v7929_v49 = vadd.f32 %v1839_v26, %v12554_v21  ;;  %v12556_v53 = vld [vmem:[#allocation163_spill] sm:$0xff]  ;;  %v12558_v35 = vld [vmem:[#allocation164_spill] sm:$0xff]  ;;  %v7944_v42 = vadd.f32 %v1844_v62, %v12564_v20  ;;  %v12568_v26 = vld [vmem:[#allocation173_spill] sm:$0xff] }
 0x355   :  { %12505 = vst [vmem:[#allocation226_spill] sm:$0xff] %v7853_v44  ;;  %v7932_v6 = vadd.f32 %v1840_v48, %v12556_v53  ;;  %v7935_v31 = vadd.f32 %v1841_v36, %v12558_v35  ;;  %v12566_v28 = vld [vmem:[#allocation172_spill] sm:$0xff]  ;;  %v7950_v21 = vadd.f32 %v1846_v46, %v12568_v26  ;;  %v12570_v48 = vld [vmem:[#allocation178_spill] sm:$0xff]  ;;  %v12572_v36 = vld [vmem:[#allocation179_spill] sm:$0xff] }
 0x356   :  { %12507 = vst [vmem:[#allocation138_spill] sm:$0xff] %v7857_v15  ;;  %v7947_v54 = vadd.f32 %v1845_v34, %v12566_v28  ;;  %v7953_v53 = vadd.f32 %v1847_v24, %v12570_v48  ;;  %v7956_v35 = vadd.f32 %v1848_v30, %v12572_v36  ;;  %v12574_v14 = vld [vmem:[#allocation180_spill] sm:$0xff]  ;;  %v12576_v19 = vld [vmem:[#allocation181_spill] sm:$0xff]  ;;  %v12578_v62 = vld [vmem:[#allocation186_spill] sm:$0xff] }
 0x357   :  { %12509 = vst [vmem:[#allocation206_spill] sm:$0xff] %v7861_v5  ;;  %v7959_v58 = vadd.f32 %v1849_v8, %v12574_v14  ;;  %v7962_v23 = vadd.f32 %v1850_v2, %v12576_v19  ;;  %v7965_v20 = vadd.f32 %v1851_v29, %v12578_v62  ;;  %v12580_v34 = vld [vmem:[#allocation187_spill] sm:$0xff]  ;;  %v12582_v46 = vld [vmem:[#allocation9_spill] sm:$0xff]  ;;  %v12586_v48 = vld [vmem:[#allocation16_spill] sm:$0xff] }
 0x358   :  { %12512 = vst [vmem:[#allocation141_spill] sm:$0xff] %v7865_v1  ;;  %v7968_v28 = vadd.f32 %v1852_v59, %v12580_v34  ;;  %v12583_v26 = vld [vmem:[#allocation21_spill] sm:$0xff]  ;;  %v12585_v24 = vld [vmem:[#allocation11_spill] sm:$0xff]  ;;  %v12587_v36 = vld [vmem:[#allocation18_spill] sm:$0xff] }
 0x359   :  { %12515 = vst [vmem:[#allocation207_spill] sm:$0xff] %v7869_v56  ;;  %v7972_v9 = vmul.f32 %v12583_v26, %v12582_v46  ;;  %v1995_v30 = vmul.f32 %v12583_v26, %v12585_v24  ;;  %v1996_v8 = vmul.f32 %v12583_v26, %v12586_v48  ;;  %v1997_v2 = vmul.f32 %v12583_v26, %v12587_v36  ;;  %v12588_v14 = vld [vmem:[#allocation27_spill] sm:$0xff]  ;;  %v12589_v19 = vld [vmem:[#allocation10_spill] sm:$0xff]  ;;  %v12590_v62 = vld [vmem:[#allocation29_spill] sm:$0xff] }
 0x35a   :  { %12517 = vst [vmem:[#allocation144_spill] sm:$0xff] %v7872_v43  ;;  %v1998_v29 = vmul.f32 %v12583_v26, %v12588_v14  ;;  %v1999_v59 = vmul.f32 %v12583_v26, %v12589_v19  ;;  %v2000_v34 = vmul.f32 %v12583_v26, %v12590_v62  ;;  %v12591_v46 = vld [vmem:[#allocation31_spill] sm:$0xff]  ;;  %v7994_v36 = vld [vmem:[#allocation2 + $0x188] sm:$0xff]  ;;  %v5036_v14 = vld [vmem:[%s11829_s4 + $0x3] ss:$0 sm:$0xff] }
 0x35b   :  { %12519 = vst [vmem:[#allocation208_spill] sm:$0xff] %v7875_v4  ;;  %v12596_v19 = vld [vmem:[#allocation17_spill] sm:$0xff]  ;;  %v12597_v62 = vld [vmem:[#allocation19_spill] sm:$0xff]  ;;  %v12620_v4 = vld [vmem:[#allocation114_spill] sm:$0xff] }
 0x35c   :  { %12521 = vst [vmem:[#allocation145_spill] sm:$0xff] %v7878_v39  ;;  %v12619_v39 = vld [vmem:[#allocation109_spill] sm:$0xff]  ;;  %v12621_v43 = vld [vmem:[#allocation119_spill] sm:$0xff]  ;;  %v12623_v1 = vld [vmem:[#allocation126_spill] sm:$0xff] }
 0x35d   :  { %12523 = vst [vmem:[#allocation148_spill] sm:$0xff] %v7881_v37  ;;  %v12618_v37 = vld [vmem:[#allocation104_spill] sm:$0xff]  ;;  %v12622_v56 = vld [vmem:[#allocation123_spill] sm:$0xff]  ;;  %v12624_v5 = vld [vmem:[#allocation129_spill] sm:$0xff] }
 0x35e   :  { %12525 = vst [vmem:[#allocation149_spill] sm:$0xff] %v7884_v41  ;;  %v12617_v41 = vld [vmem:[#allocation99_spill] sm:$0xff]  ;;  %v12625_v15 = vld [vmem:[#allocation132_spill] sm:$0xff]  ;;  %v12626_v44 = vld [vmem:[#allocation134_spill] sm:$0xff] }
 0x35f   :  { %12527 = vst [vmem:[#allocation152_spill] sm:$0xff] %v7887_v18  ;;  %v12616_v18 = vld [vmem:[#allocation95_spill] sm:$0xff]  ;;  %v12627_v38 = vld [vmem:[#allocation136_spill] sm:$0xff]  ;;  %v12629_v40 = vld [vmem:[#allocation142_spill] sm:$0xff] }
 0x360   :  { %12529 = vst [vmem:[#allocation153_spill] sm:$0xff] %v7890_v33  ;;  %v12615_v33 = vld [vmem:[#allocation91_spill] sm:$0xff]  ;;  %v12630_v16 = vld [vmem:[#allocation146_spill] sm:$0xff]  ;;  %v12633_v63 = vld [vmem:[#allocation156_spill] sm:$0xff] }
 0x361   :  { %12531 = vst [vmem:[#allocation66_spill] sm:$0xff] %v7893_v51  ;;  %v12614_v51 = vld [vmem:[#allocation87_spill] sm:$0xff]  ;;  %v12631_v0 = vld [vmem:[#allocation150_spill] sm:$0xff] }
 0x362   :  { %12533 = vst [vmem:[#allocation67_spill] sm:$0xff] %v7896_v60  ;;  %v12613_v60 = vld [vmem:[#allocation83_spill] sm:$0xff]  ;;  %v12632_v47 = vld [vmem:[#allocation154_spill] sm:$0xff] }
 0x363   :  { %12535 = vst [vmem:[#allocation76_spill] sm:$0xff] %v7899_v22  ;;  %v12612_v22 = vld [vmem:[#allocation79_spill] sm:$0xff] }
 0x364   :  { %12537 = vst [vmem:[#allocation80_spill] sm:$0xff] %v7902_v45  ;;  %v12611_v45 = vld [vmem:[#allocation75_spill] sm:$0xff] }
 0x365   :  { %12539 = vst [vmem:[#allocation84_spill] sm:$0xff] %v7905_v17  ;;  %v12610_v17 = vld [vmem:[#allocation72_spill] sm:$0xff]  ;;  %v12628_v55 = vld [vmem:[#allocation139_spill] sm:$0xff] }
 0x366   :  { %12541 = vst [vmem:[#allocation88_spill] sm:$0xff] %v7908_v27  ;;  %v12609_v27 = vld [vmem:[#allocation65_spill] sm:$0xff] }
 0x367   :  { %12543 = vst [vmem:[#allocation92_spill] sm:$0xff] %v7911_v7  ;;  %v12608_v7 = vld [vmem:[#allocation62_spill] sm:$0xff] }
 0x368   :  { %12545 = vst [vmem:[#allocation96_spill] sm:$0xff] %v7914_v57  ;;  %v12607_v57 = vld [vmem:[#allocation53_spill] sm:$0xff] }
 0x369   :  { %12547 = vst [vmem:[#allocation100_spill] sm:$0xff] %v7917_v11  ;;  %v12606_v11 = vld [vmem:[#allocation52_spill] sm:$0xff] }
 0x36a   :  { %12549 = vst [vmem:[#allocation105_spill] sm:$0xff] %v7920_v52 }
 0x36b   :  { %12551 = vst [vmem:[#allocation110_spill] sm:$0xff] %v7923_v50  ;;  %v12605_v50 = vld [vmem:[#allocation49_spill] sm:$0xff] }
 0x36c   :  { %12553 = vst [vmem:[#allocation115_spill] sm:$0xff] %v7926_v10  ;;  %v2013_v52 = vmul.f32 %v5036_v14, %v12605_v50  ;;  %v2023_v50 = vmul.f32 %v5036_v14, %v12613_v60  ;;  %v2033_v60 = vmul.f32 %v5036_v14, %v12623_v1  ;;  %v2043_v1 = vmul.f32 %v5036_v14, %v12633_v63  ;;  %v12638_v63 = vld [vmem:[#allocation113_spill] sm:$0xff] }
 0x36d   :  { %12555 = vst [vmem:[#allocation158_spill] sm:$0xff] %v7929_v49  ;;  %v12604_v49 = vld [vmem:[#allocation48_spill] sm:$0xff] }
 0x36e   :  { %12557 = vst [vmem:[#allocation159_spill] sm:$0xff] %v7932_v6  ;;  %v2012_v10 = vmul.f32 %v5036_v14, %v12604_v49  ;;  %v2022_v49 = vmul.f32 %v5036_v14, %v12612_v22  ;;  %v2032_v22 = vmul.f32 %v5036_v14, %v12622_v56  ;;  %v2042_v56 = vmul.f32 %v5036_v14, %v12632_v47  ;;  %v12637_v47 = vld [vmem:[#allocation108_spill] sm:$0xff] }
 0x36f   :  { %12559 = vst [vmem:[#allocation162_spill] sm:$0xff] %v7935_v31  ;;  %v12603_v31 = vld [vmem:[#allocation47_spill] sm:$0xff] }
 0x370   :  { %12561 = vst [vmem:[#allocation163_spill] sm:$0xff] %v7938_v12  ;;  %v2011_v6 = vmul.f32 %v5036_v14, %v12603_v31  ;;  %v2021_v31 = vmul.f32 %v5036_v14, %v12611_v45  ;;  %v2031_v45 = vmul.f32 %v5036_v14, %v12621_v43  ;;  %v2041_v43 = vmul.f32 %v5036_v14, %v12631_v0 }
 0x371   :  { %12563 = vst [vmem:[#allocation164_spill] sm:$0xff] %v7941_v13  ;;  %v12601_v13 = vld [vmem:[#allocation45_spill] sm:$0xff]  ;;  %v8052_v0 = vadd.f32 %v1997_v2, %v7817_v25  ;;  %v12645_v25 = vld [vmem:[#allocation131_spill] sm:$0xff] }
 0x372   :  { %12565 = vst [vmem:[#allocation165_spill] sm:$0xff] %v7944_v42 }
 0x373   :  { %12567 = vst [vmem:[#allocation170_spill] sm:$0xff] %v7947_v54 }
 0x374   :  { %12569 = vst [vmem:[#allocation171_spill] sm:$0xff] %v7950_v21  ;;  %v12599_v21 = vld [vmem:[#allocation43_spill] sm:$0xff] }
 0x375   :  { %12571 = vst [vmem:[#allocation172_spill] sm:$0xff] %v7953_v53  ;;  %v12598_v53 = vld [vmem:[#allocation42_spill] sm:$0xff]  ;;  %v2007_v54 = vmul.f32 %v5036_v14, %v12599_v21  ;;  %v2017_v21 = vmul.f32 %v5036_v14, %v7994_v36 }
 0x376   :  { %12573 = vst [vmem:[#allocation173_spill] sm:$0xff] %v7956_v35  ;;  %v2005_v35 = vmul.f32 %v5036_v14, %v12597_v62  ;;  %v2015_v62 = vmul.f32 %v5036_v14, %v12607_v57  ;;  %v2025_v57 = vmul.f32 %v5036_v14, %v12615_v33  ;;  %v2035_v33 = vmul.f32 %v5036_v14, %v12625_v15 }
 0x377   :  { %12575 = vst [vmem:[#allocation178_spill] sm:$0xff] %v7959_v58  ;;  %v2004_v58 = vmul.f32 %v5036_v14, %v12596_v19  ;;  %v2014_v19 = vmul.f32 %v5036_v14, %v12606_v11  ;;  %v2024_v11 = vmul.f32 %v5036_v14, %v12614_v51  ;;  %v2034_v51 = vmul.f32 %v5036_v14, %v12624_v5  ;;  %v8042_v5 = vld [vmem:[#allocation2 + $0x308] sm:$0xff] }
 0x378   :  { %12577 = vst [vmem:[#allocation179_spill] sm:$0xff] %v7962_v23  ;;  %v7992_v23 = vld [vmem:[#allocation2 + $0x180] sm:$0xff]  ;;  %v2044_v15 = vmul.f32 %v8039_v32, %v5036_v14 }
 0x379   :  { %12579 = vst [vmem:[#allocation180_spill] sm:$0xff] %v7965_v20  ;;  %v12593_v20 = vld [vmem:[#allocation15_spill] sm:$0xff]  ;;  %v8073_v2 = vadd.f32 %v2004_v58, %v12645_v25  ;;  %v12659_v58 = vld [vmem:[#allocation144_spill] sm:$0xff] }
 0x37a   :  { %12581 = vst [vmem:[#allocation181_spill] sm:$0xff] %v7968_v28  ;;  %v12592_v28 = vld [vmem:[#allocation14_spill] sm:$0xff]  ;;  %v2003_v48 = vmul.f32 %v12583_v26, %v12593_v20  ;;  %v2009_v20 = vmul.f32 %v5036_v14, %v12601_v13  ;;  %v2019_v13 = vmul.f32 %v5036_v14, %v12609_v27  ;;  %v2029_v27 = vmul.f32 %v5036_v14, %v12619_v39 }
 0x37b   :  { %12584 = vst [vmem:[#allocation186_spill] sm:$0xff] %v7972_v9  ;;  %v2001_v9 = vmul.f32 %v12583_v26, %v12591_v46  ;;  %v2002_v24 = vmul.f32 %v12583_v26, %v12592_v28  ;;  %v2006_v46 = vmul.f32 %v5036_v14, %v12598_v53  ;;  %v12600_v28 = vld [vmem:[#allocation44_spill] sm:$0xff]  ;;  %v12602_v26 = vld [vmem:[#allocation46_spill] sm:$0xff]  ;;  %v2016_v53 = vmul.f32 %v5036_v14, %v7992_v23 }
 0x37c   :  { %12594 = vst [vmem:[#allocation187_spill] sm:$0xff] %v7992_v23  ;;  %v2008_v42 = vmul.f32 %v5036_v14, %v12600_v28  ;;  %v2010_v12 = vmul.f32 %v5036_v14, %v12602_v26  ;;  %v2018_v28 = vmul.f32 %v5036_v14, %v12608_v7  ;;  %v2020_v26 = vmul.f32 %v5036_v14, %v12610_v17 }
 0x37d   :  { %12595 = vst [vmem:[#allocation9_spill] sm:$0xff] %v7994_v36  ;;  %v2026_v23 = vmul.f32 %v5036_v14, %v12616_v18  ;;  %v2027_v36 = vmul.f32 %v5036_v14, %v12617_v41  ;;  %v2028_v7 = vmul.f32 %v5036_v14, %v12618_v37  ;;  %v2030_v17 = vmul.f32 %v5036_v14, %v12620_v4 }
 0x37e   :  { %v2036_v18 = vmul.f32 %v5036_v14, %v12626_v44  ;;  %v2037_v41 = vmul.f32 %v5036_v14, %v12627_v38  ;;  %v2038_v37 = vmul.f32 %v5036_v14, %v12628_v55  ;;  %v2039_v39 = vmul.f32 %v5036_v14, %v12629_v40  ;;  %12634 = vst [vmem:[#allocation21_spill] sm:$0xff] %v8039_v32  ;;  %v12639_v32 = vld [vmem:[#allocation118_spill] sm:$0xff] }
 0x37f   :  { %v2040_v4 = vmul.f32 %v5036_v14, %v12630_v16  ;;  %12635 = vst [vmem:[#allocation11_spill] sm:$0xff] %v8042_v5  ;;  %v2045_v38 = vmul.f32 %v8042_v5, %v5036_v14  ;;  %v8046_v55 = vadd.f32 %v1995_v30, %v7809_v3  ;;  %v8049_v40 = vadd.f32 %v1996_v8, %v7813_v61  ;;  %v12640_v14 = vld [vmem:[#allocation122_spill] sm:$0xff]  ;;  %v12641_v30 = vld [vmem:[#allocation125_spill] sm:$0xff]  ;;  %v12643_v61 = vld [vmem:[#allocation128_spill] sm:$0xff] }
 0x380   :  { %v8055_v16 = vadd.f32 %v1998_v29, %v12637_v47  ;;  %v8058_v44 = vadd.f32 %v1999_v59, %v12638_v63  ;;  %v8061_v5 = vadd.f32 %v2000_v34, %v12639_v32  ;;  %v8064_v3 = vadd.f32 %v2001_v9, %v12640_v14  ;;  %12646 = vst [vmem:[#allocation10_spill] sm:$0xff] %v8073_v2  ;;  %v12647_v29 = vld [vmem:[#allocation225_spill] sm:$0xff]  ;;  %v12649_v59 = vld [vmem:[#allocation226_spill] sm:$0xff] }
 0x381   :  { %12636 = vst [vmem:[#allocation16_spill] sm:$0xff] %v8046_v55  ;;  %v8067_v55 = vadd.f32 %v2002_v24, %v12641_v30  ;;  %v8070_v8 = vadd.f32 %v2003_v48, %v12643_v61  ;;  %v8076_v47 = vadd.f32 %v2005_v35, %v12647_v29  ;;  %v8079_v63 = vadd.f32 %v2006_v46, %v12649_v59  ;;  %v12651_v32 = vld [vmem:[#allocation138_spill] sm:$0xff]  ;;  %v12655_v24 = vld [vmem:[#allocation141_spill] sm:$0xff]  ;;  %v12657_v48 = vld [vmem:[#allocation207_spill] sm:$0xff] }
 0x382   :  { %v8082_v34 = vadd.f32 %v2007_v54, %v12651_v32  ;;  %v12653_v9 = vld [vmem:[#allocation206_spill] sm:$0xff]  ;;  %v8088_v30 = vadd.f32 %v2009_v20, %v12655_v24  ;;  %v8091_v61 = vadd.f32 %v2010_v12, %v12657_v48  ;;  %v8094_v25 = vadd.f32 %v2011_v6, %v12659_v58  ;;  %v12661_v35 = vld [vmem:[#allocation208_spill] sm:$0xff]  ;;  %v12663_v46 = vld [vmem:[#allocation145_spill] sm:$0xff] }
 0x383   :  { %12642 = vst [vmem:[#allocation18_spill] sm:$0xff] %v8067_v55  ;;  %v8085_v14 = vadd.f32 %v2008_v42, %v12653_v9  ;;  %v8097_v29 = vadd.f32 %v2012_v10, %v12661_v35  ;;  %v8100_v59 = vadd.f32 %v2013_v52, %v12663_v46  ;;  %v12665_v54 = vld [vmem:[#allocation148_spill] sm:$0xff]  ;;  %v12667_v42 = vld [vmem:[#allocation149_spill] sm:$0xff]  ;;  %v12673_v6 = vld [vmem:[#allocation23_spill] sm:$0xff] }
 0x384   :  { %12644 = vst [vmem:[#allocation27_spill] sm:$0xff] %v8070_v8  ;;  %v8103_v32 = vadd.f32 %v2014_v19, %v12665_v54  ;;  %v8106_v9 = vadd.f32 %v2015_v62, %v12667_v42  ;;  %v12669_v20 = vld [vmem:[#allocation152_spill] sm:$0xff]  ;;  %v12671_v12 = vld [vmem:[#allocation153_spill] sm:$0xff]  ;;  %v8115_v58 = vadd.f32 %v2018_v28, %v12673_v6  ;;  %v12677_v52 = vld [vmem:[#allocation66_spill] sm:$0xff] }
 0x385   :  { %12648 = vst [vmem:[#allocation29_spill] sm:$0xff] %v8076_v47  ;;  %v8109_v24 = vadd.f32 %v2016_v53, %v12669_v20  ;;  %v8112_v48 = vadd.f32 %v2017_v21, %v12671_v12  ;;  %v12675_v10 = vld [vmem:[#allocation25_spill] sm:$0xff]  ;;  %v8121_v46 = vadd.f32 %v2020_v26, %v12677_v52  ;;  %v12679_v19 = vld [vmem:[#allocation67_spill] sm:$0xff]  ;;  %v12681_v62 = vld [vmem:[#allocation76_spill] sm:$0xff] }
 0x386   :  { %12650 = vst [vmem:[#allocation31_spill] sm:$0xff] %v8079_v63  ;;  %v8118_v35 = vadd.f32 %v2019_v13, %v12675_v10  ;;  %v8124_v54 = vadd.f32 %v2021_v31, %v12679_v19  ;;  %v8127_v42 = vadd.f32 %v2022_v49, %v12681_v62  ;;  %v12683_v53 = vld [vmem:[#allocation80_spill] sm:$0xff]  ;;  %v12695_v49 = vld [vmem:[#allocation105_spill] sm:$0xff]  ;;  %v12779_v63 = vld [vmem:[#allocation151_spill] sm:$0xff] }
 0x387   :  { %12652 = vst [vmem:[#allocation14_spill] sm:$0xff] %v8082_v34  ;;  %v8130_v20 = vadd.f32 %v2023_v50, %v12683_v53  ;;  %v12685_v21 = vld [vmem:[#allocation84_spill] sm:$0xff]  ;;  %v8148_v62 = vadd.f32 %v2029_v27, %v12695_v49  ;;  %v12697_v50 = vld [vmem:[#allocation110_spill] sm:$0xff]  ;;  %v12778_v34 = vld [vmem:[#allocation147_spill] sm:$0xff] }
 0x388   :  { %12654 = vst [vmem:[#allocation15_spill] sm:$0xff] %v8085_v14  ;;  %v8133_v12 = vadd.f32 %v2024_v11, %v12685_v21  ;;  %v12687_v28 = vld [vmem:[#allocation88_spill] sm:$0xff]  ;;  %v8151_v53 = vadd.f32 %v2030_v17, %v12697_v50  ;;  %v12699_v11 = vld [vmem:[#allocation115_spill] sm:$0xff]  ;;  %v12711_v17 = vld [vmem:[#allocation165_spill] sm:$0xff] }
 0x389   :  { %12656 = vst [vmem:[#allocation17_spill] sm:$0xff] %v8088_v30  ;;  %v8136_v6 = vadd.f32 %v2025_v57, %v12687_v28  ;;  %v12689_v13 = vld [vmem:[#allocation92_spill] sm:$0xff]  ;;  %v8154_v21 = vadd.f32 %v2031_v45, %v12699_v11  ;;  %v12701_v57 = vld [vmem:[#allocation158_spill] sm:$0xff]  ;;  %v8172_v50 = vadd.f32 %v2037_v41, %v12711_v17  ;;  %v12777_v14 = vld [vmem:[#allocation143_spill] sm:$0xff] }
 0x38a   :  { %12658 = vst [vmem:[#allocation19_spill] sm:$0xff] %v8091_v61  ;;  %v8139_v10 = vadd.f32 %v2026_v23, %v12689_v13  ;;  %v12691_v26 = vld [vmem:[#allocation96_spill] sm:$0xff]  ;;  %v8157_v28 = vadd.f32 %v2032_v22, %v12701_v57  ;;  %v12703_v23 = vld [vmem:[#allocation159_spill] sm:$0xff]  ;;  %v12713_v45 = vld [vmem:[#allocation170_spill] sm:$0xff] }
 0x38b   :  { %12660 = vst [vmem:[#allocation42_spill] sm:$0xff] %v8094_v25  ;;  %v8142_v52 = vadd.f32 %v2027_v36, %v12691_v26  ;;  %v12693_v31 = vld [vmem:[#allocation100_spill] sm:$0xff]  ;;  %v8160_v13 = vadd.f32 %v2033_v60, %v12703_v23  ;;  %v12705_v36 = vld [vmem:[#allocation162_spill] sm:$0xff]  ;;  %v8175_v11 = vadd.f32 %v2038_v37, %v12713_v45  ;;  %v12715_v22 = vld [vmem:[#allocation171_spill] sm:$0xff] }
 0x38c   :  { %12662 = vst [vmem:[#allocation43_spill] sm:$0xff] %v8097_v29  ;;  %v8145_v19 = vadd.f32 %v2028_v7, %v12693_v31  ;;  %v8163_v26 = vadd.f32 %v2034_v51, %v12705_v36  ;;  %v12707_v7 = vld [vmem:[#allocation163_spill] sm:$0xff]  ;;  %v12709_v27 = vld [vmem:[#allocation164_spill] sm:$0xff]  ;;  %v8178_v57 = vadd.f32 %v2039_v39, %v12715_v22  ;;  %v12719_v51 = vld [vmem:[#allocation173_spill] sm:$0xff] }
 0x38d   :  { %12664 = vst [vmem:[#allocation44_spill] sm:$0xff] %v8100_v59  ;;  %v8166_v31 = vadd.f32 %v2035_v33, %v12707_v7  ;;  %v8169_v49 = vadd.f32 %v2036_v18, %v12709_v27  ;;  %v12717_v60 = vld [vmem:[#allocation172_spill] sm:$0xff]  ;;  %v8184_v36 = vadd.f32 %v2041_v43, %v12719_v51  ;;  %v12721_v33 = vld [vmem:[#allocation178_spill] sm:$0xff]  ;;  %v12723_v18 = vld [vmem:[#allocation179_spill] sm:$0xff] }
 0x38e   :  { %12666 = vst [vmem:[#allocation45_spill] sm:$0xff] %v8103_v32  ;;  %v8181_v23 = vadd.f32 %v2040_v4, %v12717_v60  ;;  %v8187_v7 = vadd.f32 %v2042_v56, %v12721_v33  ;;  %v8190_v27 = vadd.f32 %v2043_v1, %v12723_v18  ;;  %v12725_v41 = vld [vmem:[#allocation180_spill] sm:$0xff]  ;;  %v12727_v37 = vld [vmem:[#allocation181_spill] sm:$0xff]  ;;  %v12730_v4 = vld [vmem:[#allocation54_spill] sm:$0xff] }
 0x38f   :  { %12668 = vst [vmem:[#allocation46_spill] sm:$0xff] %v8106_v9  ;;  %v8193_v17 = vadd.f32 %v2044_v15, %v12725_v41  ;;  %v8196_v45 = vadd.f32 %v2045_v38, %v12727_v37  ;;  %v8201_v39 = vld [vmem:[%s11829_s4 + $0x4] ss:$0 sm:$0xff]  ;;  %v12732_v56 = vld [vmem:[#allocation55_spill] sm:$0xff]  ;;  %v12734_v1 = vld [vmem:[#allocation56_spill] sm:$0xff] }
 0x390   :  { %12670 = vst [vmem:[#allocation47_spill] sm:$0xff] %v8109_v24  ;;  %v8205_v43 = vmul.f32 %v8201_v39, %v12730_v4  ;;  %v8209_v22 = vmul.f32 %v8201_v39, %v12732_v56  ;;  %v2189_v15 = vmul.f32 %v8201_v39, %v12734_v1  ;;  %v12735_v60 = vld [vmem:[#allocation57_spill] sm:$0xff]  ;;  %v12736_v51 = vld [vmem:[#allocation58_spill] sm:$0xff]  ;;  %v12737_v18 = vld [vmem:[#allocation59_spill] sm:$0xff] }
 0x391   :  { %12672 = vst [vmem:[#allocation48_spill] sm:$0xff] %v8112_v48  ;;  %v2190_v38 = vmul.f32 %v8201_v39, %v12735_v60  ;;  %v2191_v33 = vmul.f32 %v8201_v39, %v12736_v51  ;;  %v2192_v41 = vmul.f32 %v8201_v39, %v12737_v18  ;;  %v12738_v37 = vld [vmem:[#allocation60_spill] sm:$0xff]  ;;  %v12745_v18 = vld [vmem:[#allocation69_spill] sm:$0xff]  ;;  %v12771_v32 = vld [vmem:[#allocation127_spill] sm:$0xff] }
 0x392   :  { %12674 = vst [vmem:[#allocation49_spill] sm:$0xff] %v8115_v58  ;;  %v2193_v4 = vmul.f32 %v8201_v39, %v12738_v37  ;;  %v12746_v37 = vld [vmem:[#allocation73_spill] sm:$0xff]  ;;  %v12768_v48 = vld [vmem:[#allocation120_spill] sm:$0xff]  ;;  %v12772_v59 = vld [vmem:[#allocation130_spill] sm:$0xff] }
 0x393   :  { %12676 = vst [vmem:[#allocation52_spill] sm:$0xff] %v8118_v35  ;;  %v12766_v35 = vld [vmem:[#allocation116_spill] sm:$0xff]  ;;  %v12767_v58 = vld [vmem:[#allocation117_spill] sm:$0xff]  ;;  %v12774_v25 = vld [vmem:[#allocation135_spill] sm:$0xff] }
 0x394   :  { %12678 = vst [vmem:[#allocation53_spill] sm:$0xff] %v8121_v46  ;;  %v12765_v46 = vld [vmem:[#allocation112_spill] sm:$0xff]  ;;  %v12769_v24 = vld [vmem:[#allocation121_spill] sm:$0xff]  ;;  %v12780_v47 = vld [vmem:[#allocation155_spill] sm:$0xff] }
 0x395   :  { %12680 = vst [vmem:[#allocation62_spill] sm:$0xff] %v8124_v54  ;;  %v12764_v54 = vld [vmem:[#allocation111_spill] sm:$0xff]  ;;  %v12770_v9 = vld [vmem:[#allocation124_spill] sm:$0xff]  ;;  %v12773_v29 = vld [vmem:[#allocation133_spill] sm:$0xff] }
 0x396   :  { %12682 = vst [vmem:[#allocation65_spill] sm:$0xff] %v8127_v42  ;;  %v12763_v42 = vld [vmem:[#allocation107_spill] sm:$0xff]  ;;  %v12775_v61 = vld [vmem:[#allocation137_spill] sm:$0xff]  ;;  %v12776_v30 = vld [vmem:[#allocation140_spill] sm:$0xff] }
 0x397   :  { %12684 = vst [vmem:[#allocation72_spill] sm:$0xff] %v8130_v20  ;;  %v12762_v20 = vld [vmem:[#allocation106_spill] sm:$0xff]  ;;  %v12781_v2 = vld [vmem:[#allocation157_spill] sm:$0xff] }
 0x398   :  { %12686 = vst [vmem:[#allocation75_spill] sm:$0xff] %v8133_v12  ;;  %v12761_v12 = vld [vmem:[#allocation102_spill] sm:$0xff] }
 0x399   :  { %12688 = vst [vmem:[#allocation79_spill] sm:$0xff] %v8136_v6  ;;  %v12760_v6 = vld [vmem:[#allocation101_spill] sm:$0xff]  ;;  %v5041_v55 = vld [vmem:[#allocation2 + $0x309] sm:$0xff] }
 0x39a   :  { %12690 = vst [vmem:[#allocation83_spill] sm:$0xff] %v8139_v10  ;;  %v12759_v10 = vld [vmem:[#allocation98_spill] sm:$0xff] }
 0x39b   :  { %12692 = vst [vmem:[#allocation87_spill] sm:$0xff] %v8142_v52  ;;  %v12758_v52 = vld [vmem:[#allocation97_spill] sm:$0xff] }
 0x39c   :  { %12694 = vst [vmem:[#allocation91_spill] sm:$0xff] %v8145_v19  ;;  %v12757_v19 = vld [vmem:[#allocation94_spill] sm:$0xff] }
 0x39d   :  { %12696 = vst [vmem:[#allocation95_spill] sm:$0xff] %v8148_v62  ;;  %v12756_v62 = vld [vmem:[#allocation93_spill] sm:$0xff] }
 0x39e   :  { %12698 = vst [vmem:[#allocation99_spill] sm:$0xff] %v8151_v53  ;;  %v12755_v53 = vld [vmem:[#allocation90_spill] sm:$0xff] }
 0x39f   :  { %12700 = vst [vmem:[#allocation104_spill] sm:$0xff] %v8154_v21  ;;  %v12754_v21 = vld [vmem:[#allocation89_spill] sm:$0xff] }
 0x3a0   :  { %12702 = vst [vmem:[#allocation109_spill] sm:$0xff] %v8157_v28  ;;  %v12753_v28 = vld [vmem:[#allocation86_spill] sm:$0xff] }
 0x3a1   :  { %12704 = vst [vmem:[#allocation114_spill] sm:$0xff] %v8160_v13  ;;  %v12752_v13 = vld [vmem:[#allocation85_spill] sm:$0xff] }
 0x3a2   :  { %12706 = vst [vmem:[#allocation119_spill] sm:$0xff] %v8163_v26  ;;  %v5040_v8 = vld [vmem:[#allocation2 + $0x301] sm:$0xff] }
 0x3a3   :  { %12708 = vst [vmem:[#allocation123_spill] sm:$0xff] %v8166_v31  ;;  %v12751_v31 = vld [vmem:[#allocation82_spill] sm:$0xff] }
 0x3a4   :  { %12710 = vst [vmem:[#allocation126_spill] sm:$0xff] %v8169_v49  ;;  %v12750_v49 = vld [vmem:[#allocation81_spill] sm:$0xff]  ;;  %v2204_v26 = vmul.f32 %v8201_v39, %v12751_v31  ;;  %v2211_v31 = vmul.f32 %v8201_v39, %v12756_v62  ;;  %v2218_v62 = vmul.f32 %v8201_v39, %v12763_v42  ;;  %v2225_v42 = vmul.f32 %v8201_v39, %v12770_v9 }
 0x3a5   :  { %12712 = vst [vmem:[#allocation129_spill] sm:$0xff] %v8172_v50  ;;  %v12749_v50 = vld [vmem:[#allocation78_spill] sm:$0xff]  ;;  %v2232_v9 = vmul.f32 %v8201_v39, %v12777_v14  ;;  %v8314_v14 = vadd.f32 %v2189_v15, %v8049_v40  ;;  %v12784_v40 = vld [vmem:[#allocation27_spill] sm:$0xff] }
 0x3a6   :  { %12714 = vst [vmem:[#allocation132_spill] sm:$0xff] %v8175_v11  ;;  %v12748_v11 = vld [vmem:[#allocation77_spill] sm:$0xff] }
 0x3a7   :  { %12716 = vst [vmem:[#allocation134_spill] sm:$0xff] %v8178_v57  ;;  %v12747_v57 = vld [vmem:[#allocation74_spill] sm:$0xff] }
 0x3a8   :  { %12718 = vst [vmem:[#allocation136_spill] sm:$0xff] %v8181_v23  ;;  %v2199_v23 = vmul.f32 %v8201_v39, %v12746_v37  ;;  %v2206_v37 = vmul.f32 %v8201_v39, %v12753_v28  ;;  %v2213_v28 = vmul.f32 %v8201_v39, %v12758_v52  ;;  %v2220_v52 = vmul.f32 %v8201_v39, %v12765_v46 }
 0x3a9   :  { %12720 = vst [vmem:[#allocation139_spill] sm:$0xff] %v8184_v36  ;;  %v2198_v36 = vmul.f32 %v8201_v39, %v12745_v18  ;;  %v2205_v18 = vmul.f32 %v8201_v39, %v12752_v13  ;;  %v2212_v13 = vmul.f32 %v8201_v39, %v12757_v19  ;;  %v2219_v19 = vmul.f32 %v8201_v39, %v12764_v54 }
 0x3aa   :  { %12722 = vst [vmem:[#allocation142_spill] sm:$0xff] %v8187_v7  ;;  %v8231_v7 = vld [vmem:[#allocation2 + $0x189] sm:$0xff]  ;;  %v2226_v54 = vmul.f32 %v8201_v39, %v12771_v32  ;;  %v2227_v46 = vmul.f32 %v8201_v39, %v12772_v59  ;;  %v2233_v32 = vmul.f32 %v8201_v39, %v12778_v34  ;;  %v2234_v59 = vmul.f32 %v8201_v39, %v12779_v63 }
 0x3ab   :  { %12724 = vst [vmem:[#allocation146_spill] sm:$0xff] %v8190_v27  ;;  %v12743_v27 = vld [vmem:[#allocation68_spill] sm:$0xff]  ;;  %v8317_v34 = vadd.f32 %v2190_v38, %v8052_v0  ;;  %v8320_v63 = vadd.f32 %v2191_v33, %v8055_v16  ;;  %v12785_v0 = vld [vmem:[#allocation10_spill] sm:$0xff]  ;;  %v12786_v16 = vld [vmem:[#allocation29_spill] sm:$0xff] }
 0x3ac   :  { %12726 = vst [vmem:[#allocation150_spill] sm:$0xff] %v8193_v17  ;;  %v12742_v17 = vld [vmem:[#allocation64_spill] sm:$0xff]  ;;  %v2197_v51 = vmul.f32 %v8201_v39, %v12743_v27  ;;  %v2203_v27 = vmul.f32 %v8201_v39, %v12750_v49  ;;  %v2210_v49 = vmul.f32 %v8201_v39, %v8231_v7  ;;  %v8341_v33 = vadd.f32 %v2198_v36, %v12786_v16  ;;  %v12798_v36 = vld [vmem:[#allocation43_spill] sm:$0xff] }
 0x3ad   :  { %12728 = vst [vmem:[#allocation154_spill] sm:$0xff] %v8196_v45  ;;  %v12740_v45 = vld [vmem:[#allocation61_spill] sm:$0xff]  ;;  %v2196_v60 = vmul.f32 %v8201_v39, %v12742_v17  ;;  %v2202_v17 = vmul.f32 %v8201_v39, %v12749_v50  ;;  %v8362_v16 = vadd.f32 %v2205_v18, %v12798_v36  ;;  %v12812_v18 = vld [vmem:[#allocation52_spill] sm:$0xff] }
 0x3ae   :  { %12729 = vst [vmem:[#allocation156_spill] sm:$0xff] %v8201_v39  ;;  %v2194_v56 = vmul.f32 %v8201_v39, %v12740_v45  ;;  %v2200_v45 = vmul.f32 %v8201_v39, %v12747_v57  ;;  %v2207_v57 = vmul.f32 %v8201_v39, %v12754_v21  ;;  %v2214_v21 = vmul.f32 %v8201_v39, %v12759_v10 }
 0x3af   :  { %12731 = vst [vmem:[#allocation108_spill] sm:$0xff] %v8205_v43  ;;  %v8221_v43 = vld [vmem:[#allocation2 + $0x181] sm:$0xff]  ;;  %v2221_v10 = vmul.f32 %v8201_v39, %v12766_v35  ;;  %v2228_v35 = vmul.f32 %v8201_v39, %v12773_v29  ;;  %v2235_v29 = vmul.f32 %v8201_v39, %v12780_v47  ;;  %v8323_v47 = vadd.f32 %v2192_v41, %v8058_v44  ;;  %v12787_v44 = vld [vmem:[#allocation31_spill] sm:$0xff] }
 0x3b0   :  { %12733 = vst [vmem:[#allocation113_spill] sm:$0xff] %v8209_v22  ;;  %v12741_v22 = vld [vmem:[#allocation63_spill] sm:$0xff]  ;;  %v2209_v50 = vmul.f32 %v8201_v39, %v8221_v43  ;;  %v8335_v15 = vadd.f32 %v2196_v60, %v12784_v40  ;;  %v8338_v38 = vadd.f32 %v2197_v51, %v12785_v0  ;;  %v8344_v41 = vadd.f32 %v2199_v23, %v12787_v44  ;;  %v12796_v51 = vld [vmem:[#allocation42_spill] sm:$0xff]  ;;  %v12800_v23 = vld [vmem:[#allocation44_spill] sm:$0xff] }
 0x3b1   :  { %12739 = vst [vmem:[#allocation118_spill] sm:$0xff] %v8221_v43  ;;  %v2195_v1 = vmul.f32 %v8201_v39, %v12741_v22  ;;  %v2201_v22 = vmul.f32 %v8201_v39, %v12748_v11  ;;  %v2208_v11 = vmul.f32 %v8201_v39, %v12755_v53  ;;  %v2215_v53 = vmul.f32 %v8201_v39, %v12760_v6  ;;  %v12794_v60 = vld [vmem:[#allocation19_spill] sm:$0xff] }
 0x3b2   :  { %12744 = vst [vmem:[#allocation122_spill] sm:$0xff] %v8231_v7  ;;  %v2216_v43 = vmul.f32 %v8201_v39, %v12761_v12  ;;  %v2217_v7 = vmul.f32 %v8201_v39, %v12762_v20  ;;  %v2222_v6 = vmul.f32 %v8201_v39, %v12767_v58  ;;  %v2223_v12 = vmul.f32 %v8201_v39, %v12768_v48 }
 0x3b3   :  { %v2224_v20 = vmul.f32 %v8201_v39, %v12769_v24  ;;  %v2229_v58 = vmul.f32 %v8201_v39, %v12774_v25  ;;  %v2230_v48 = vmul.f32 %v8201_v39, %v12775_v61  ;;  %v2231_v24 = vmul.f32 %v8201_v39, %v12776_v30  ;;  %12782 = vst [vmem:[#allocation125_spill] sm:$0xff] %v8314_v14  ;;  %v12876_v14 = vld [vmem:[#allocation175_spill] sm:$0xff] }
 0x3b4   :  { %v2236_v25 = vmul.f32 %v8201_v39, %v12781_v2  ;;  %v2237_v61 = vmul.f32 %v5040_v8, %v8201_v39  ;;  %v2238_v30 = vmul.f32 %v5041_v55, %v8201_v39  ;;  %v8326_v2 = vadd.f32 %v2193_v4, %v8061_v5  ;;  %v12783_v39 = vld [vmem:[#allocation18_spill] sm:$0xff]  ;;  %12799 = vst [vmem:[#allocation206_spill] sm:$0xff] %v8362_v16 }
 0x3b5   :  { %v8329_v8 = vadd.f32 %v2194_v56, %v8064_v3  ;;  %v8332_v55 = vadd.f32 %v2195_v1, %v12783_v39  ;;  %v12788_v5 = vld [vmem:[#allocation14_spill] sm:$0xff]  ;;  %v12790_v3 = vld [vmem:[#allocation15_spill] sm:$0xff]  ;;  %v12792_v39 = vld [vmem:[#allocation17_spill] sm:$0xff]  ;;  %v8356_v40 = vadd.f32 %v2203_v27, %v12794_v60  ;;  %v8359_v0 = vadd.f32 %v2204_v26, %v12796_v51 }
 0x3b6   :  { %v8347_v4 = vadd.f32 %v2200_v45, %v12788_v5  ;;  %v8350_v56 = vadd.f32 %v2201_v22, %v12790_v3  ;;  %v8353_v1 = vadd.f32 %v2202_v17, %v12792_v39  ;;  %v8365_v44 = vadd.f32 %v2206_v37, %v12800_v23  ;;  %v12802_v45 = vld [vmem:[#allocation45_spill] sm:$0xff]  ;;  %v12804_v22 = vld [vmem:[#allocation46_spill] sm:$0xff]  ;;  %v12806_v17 = vld [vmem:[#allocation47_spill] sm:$0xff] }
 0x3b7   :  { %12795 = vst [vmem:[#allocation226_spill] sm:$0xff] %v8356_v40  ;;  %v8368_v5 = vadd.f32 %v2207_v57, %v12802_v45  ;;  %v8371_v3 = vadd.f32 %v2208_v11, %v12804_v22  ;;  %v8374_v39 = vadd.f32 %v2209_v50, %v12806_v17  ;;  %v12808_v27 = vld [vmem:[#allocation48_spill] sm:$0xff]  ;;  %v12810_v26 = vld [vmem:[#allocation49_spill] sm:$0xff]  ;;  %v8383_v36 = vadd.f32 %v2212_v13, %v12812_v18  ;;  %v12816_v57 = vld [vmem:[#allocation62_spill] sm:$0xff] }
 0x3b8   :  { %12789 = vst [vmem:[#allocation128_spill] sm:$0xff] %v8347_v4  ;;  %v8377_v60 = vadd.f32 %v2210_v49, %v12808_v27  ;;  %v8380_v51 = vadd.f32 %v2211_v31, %v12810_v26  ;;  %v12814_v37 = vld [vmem:[#allocation53_spill] sm:$0xff]  ;;  %v8389_v45 = vadd.f32 %v2214_v21, %v12816_v57  ;;  %v12820_v50 = vld [vmem:[#allocation72_spill] sm:$0xff]  ;;  %v12822_v49 = vld [vmem:[#allocation75_spill] sm:$0xff] }
 0x3b9   :  { %12791 = vst [vmem:[#allocation131_spill] sm:$0xff] %v8350_v56  ;;  %v8386_v23 = vadd.f32 %v2213_v28, %v12814_v37  ;;  %v12818_v11 = vld [vmem:[#allocation65_spill] sm:$0xff]  ;;  %v8395_v17 = vadd.f32 %v2216_v43, %v12820_v50  ;;  %v8398_v27 = vadd.f32 %v2217_v7, %v12822_v49  ;;  %v12824_v31 = vld [vmem:[#allocation79_spill] sm:$0xff]  ;;  %v12836_v7 = vld [vmem:[#allocation104_spill] sm:$0xff] }
 0x3ba   :  { %12793 = vst [vmem:[#allocation225_spill] sm:$0xff] %v8353_v1  ;;  %v8392_v22 = vadd.f32 %v2215_v53, %v12818_v11  ;;  %v8401_v26 = vadd.f32 %v2218_v62, %v12824_v31  ;;  %v12826_v13 = vld [vmem:[#allocation83_spill] sm:$0xff]  ;;  %v8419_v49 = vadd.f32 %v2224_v20, %v12836_v7  ;;  %v12838_v62 = vld [vmem:[#allocation109_spill] sm:$0xff]  ;;  %v12850_v20 = vld [vmem:[#allocation132_spill] sm:$0xff] }
 0x3bb   :  { %12797 = vst [vmem:[#allocation138_spill] sm:$0xff] %v8359_v0  ;;  %v8404_v18 = vadd.f32 %v2219_v19, %v12826_v13  ;;  %v12828_v28 = vld [vmem:[#allocation87_spill] sm:$0xff]  ;;  %v8422_v31 = vadd.f32 %v2225_v42, %v12838_v62  ;;  %v12840_v19 = vld [vmem:[#allocation114_spill] sm:$0xff]  ;;  %v8440_v7 = vadd.f32 %v2231_v24, %v12850_v20  ;;  %v12911_v40 = vld [vmem:[#allocation220_spill] sm:$0xff] }
 0x3bc   :  { %12801 = vst [vmem:[#allocation141_spill] sm:$0xff] %v8365_v44  ;;  %v8407_v37 = vadd.f32 %v2220_v52, %v12828_v28  ;;  %v12830_v21 = vld [vmem:[#allocation91_spill] sm:$0xff]  ;;  %v8425_v13 = vadd.f32 %v2226_v54, %v12840_v19  ;;  %v12852_v42 = vld [vmem:[#allocation134_spill] sm:$0xff]  ;;  %v12854_v54 = vld [vmem:[#allocation136_spill] sm:$0xff] }
 0x3bd   :  { %12803 = vst [vmem:[#allocation207_spill] sm:$0xff] %v8368_v5  ;;  %v8410_v57 = vadd.f32 %v2221_v10, %v12830_v21  ;;  %v12832_v53 = vld [vmem:[#allocation95_spill] sm:$0xff]  ;;  %v8443_v62 = vadd.f32 %v2232_v9, %v12852_v42  ;;  %v8446_v19 = vadd.f32 %v2233_v32, %v12854_v54  ;;  %v12864_v24 = vld [vmem:[#allocation154_spill] sm:$0xff]  ;;  %v8466_v9 = vld [vmem:[%s11829_s4 + $0x5] ss:$0 sm:$0xff] }
 0x3be   :  { %12805 = vst [vmem:[#allocation144_spill] sm:$0xff] %v8371_v3  ;;  %v8413_v11 = vadd.f32 %v2222_v6, %v12832_v53  ;;  %v12834_v43 = vld [vmem:[#allocation99_spill] sm:$0xff]  ;;  %v12846_v6 = vld [vmem:[#allocation126_spill] sm:$0xff]  ;;  %v8461_v20 = vadd.f32 %v2238_v30, %v12864_v24  ;;  %v12867_v32 = vld [vmem:[#allocation160_spill] sm:$0xff] }
 0x3bf   :  { %12807 = vst [vmem:[#allocation208_spill] sm:$0xff] %v8374_v39  ;;  %v8416_v50 = vadd.f32 %v2223_v12, %v12834_v43  ;;  %v12842_v52 = vld [vmem:[#allocation119_spill] sm:$0xff]  ;;  %v8434_v53 = vadd.f32 %v2229_v58, %v12846_v6  ;;  %v12848_v12 = vld [vmem:[#allocation129_spill] sm:$0xff]  ;;  %v12860_v58 = vld [vmem:[#allocation146_spill] sm:$0xff] }
 0x3c0   :  { %12809 = vst [vmem:[#allocation145_spill] sm:$0xff] %v8377_v60  ;;  %v8428_v28 = vadd.f32 %v2227_v46, %v12842_v52  ;;  %v12844_v10 = vld [vmem:[#allocation123_spill] sm:$0xff]  ;;  %v8437_v43 = vadd.f32 %v2230_v48, %v12848_v12  ;;  %v8455_v6 = vadd.f32 %v2236_v25, %v12860_v58  ;;  %v12862_v48 = vld [vmem:[#allocation150_spill] sm:$0xff]  ;;  %v12874_v58 = vld [vmem:[#allocation169_spill] sm:$0xff] }
 0x3c1   :  { %12811 = vst [vmem:[#allocation148_spill] sm:$0xff] %v8380_v51  ;;  %v8431_v21 = vadd.f32 %v2228_v35, %v12844_v10  ;;  %v12856_v46 = vld [vmem:[#allocation139_spill] sm:$0xff]  ;;  %v12858_v35 = vld [vmem:[#allocation142_spill] sm:$0xff]  ;;  %v8458_v12 = vadd.f32 %v2237_v61, %v12862_v48  ;;  %v2386_v48 = vmul.f32 %v8466_v9, %v12874_v58  ;;  %v12903_v51 = vld [vmem:[#allocation212_spill] sm:$0xff] }
 0x3c2   :  { %12813 = vst [vmem:[#allocation149_spill] sm:$0xff] %v8383_v36  ;;  %v8449_v52 = vadd.f32 %v2234_v59, %v12856_v46  ;;  %v8452_v10 = vadd.f32 %v2235_v29, %v12858_v35  ;;  %v8470_v59 = vmul.f32 %v8466_v9, %v12867_v32  ;;  %v12869_v29 = vld [vmem:[#allocation161_spill] sm:$0xff]  ;;  %v12871_v25 = vld [vmem:[#allocation166_spill] sm:$0xff]  ;;  %v12872_v54 = vld [vmem:[#allocation167_spill] sm:$0xff] }
 0x3c3   :  { %12815 = vst [vmem:[#allocation152_spill] sm:$0xff] %v8386_v23  ;;  %v8474_v42 = vmul.f32 %v8466_v9, %v12869_v29  ;;  %v2383_v61 = vmul.f32 %v8466_v9, %v12871_v25  ;;  %v2384_v30 = vmul.f32 %v8466_v9, %v12872_v54  ;;  %v12873_v46 = vld [vmem:[#allocation168_spill] sm:$0xff]  ;;  %v12875_v24 = vld [vmem:[#allocation174_spill] sm:$0xff]  ;;  %v12902_v36 = vld [vmem:[#allocation211_spill] sm:$0xff] }
 0x3c4   :  { %12817 = vst [vmem:[#allocation153_spill] sm:$0xff] %v8389_v45  ;;  %v2385_v35 = vmul.f32 %v8466_v9, %v12873_v46  ;;  %v2387_v32 = vmul.f32 %v8466_v9, %v12875_v24  ;;  %v12877_v29 = vld [vmem:[#allocation176_spill] sm:$0xff]  ;;  %v2338_v25 = vld [vmem:[#allocation2 + $0x18a] sm:$0xff]  ;;  %v12900_v45 = vld [vmem:[#allocation209_spill] sm:$0xff] }
 0x3c5   :  { %12819 = vst [vmem:[#allocation23_spill] sm:$0xff] %v8392_v22  ;;  %v12899_v22 = vld [vmem:[#allocation205_spill] sm:$0xff]  ;;  %v12901_v23 = vld [vmem:[#allocation210_spill] sm:$0xff]  ;;  %v12906_v3 = vld [vmem:[#allocation215_spill] sm:$0xff] }
 0x3c6   :  { %12821 = vst [vmem:[#allocation25_spill] sm:$0xff] %v8395_v17  ;;  %v12898_v17 = vld [vmem:[#allocation204_spill] sm:$0xff]  ;;  %v12904_v60 = vld [vmem:[#allocation213_spill] sm:$0xff]  ;;  %v12905_v39 = vld [vmem:[#allocation214_spill] sm:$0xff] }
 0x3c7   :  { %12823 = vst [vmem:[#allocation66_spill] sm:$0xff] %v8398_v27  ;;  %v12897_v27 = vld [vmem:[#allocation203_spill] sm:$0xff]  ;;  %v12907_v5 = vld [vmem:[#allocation216_spill] sm:$0xff]  ;;  %v12908_v44 = vld [vmem:[#allocation217_spill] sm:$0xff] }
 0x3c8   :  { %12825 = vst [vmem:[#allocation67_spill] sm:$0xff] %v8401_v26  ;;  %v12896_v26 = vld [vmem:[#allocation202_spill] sm:$0xff]  ;;  %v12910_v0 = vld [vmem:[#allocation219_spill] sm:$0xff] }
 0x3c9   :  { %12827 = vst [vmem:[#allocation76_spill] sm:$0xff] %v8404_v18  ;;  %v12909_v16 = vld [vmem:[#allocation218_spill] sm:$0xff]  ;;  %v12916_v56 = vld [vmem:[#allocation223_spill] sm:$0xff] }
 0x3ca   :  { %12829 = vst [vmem:[#allocation80_spill] sm:$0xff] %v8407_v37 }
 0x3cb   :  { %12831 = vst [vmem:[#allocation84_spill] sm:$0xff] %v8410_v57 }
 0x3cc   :  { %12833 = vst [vmem:[#allocation88_spill] sm:$0xff] %v8413_v11 }
 0x3cd   :  { %12835 = vst [vmem:[#allocation92_spill] sm:$0xff] %v8416_v50 }
 0x3ce   :  { %12837 = vst [vmem:[#allocation96_spill] sm:$0xff] %v8419_v49  ;;  %v2403_v49 = vmul.f32 %v8466_v9, %v2338_v25  ;;  %v2410_v25 = vmul.f32 %v8466_v9, %v12896_v26  ;;  %v2417_v26 = vmul.f32 %v8466_v9, %v12903_v51  ;;  %v2424_v51 = vmul.f32 %v8466_v9, %v12910_v0  ;;  %v5043_v0 = vld [vmem:[#allocation2 + $0x302] sm:$0xff] }
 0x3cf   :  { %12839 = vst [vmem:[#allocation100_spill] sm:$0xff] %v8422_v31  ;;  %v12889_v31 = vld [vmem:[#allocation195_spill] sm:$0xff] }
 0x3d0   :  { %12841 = vst [vmem:[#allocation105_spill] sm:$0xff] %v8425_v13  ;;  %v12888_v13 = vld [vmem:[#allocation194_spill] sm:$0xff] }
 0x3d1   :  { %12843 = vst [vmem:[#allocation110_spill] sm:$0xff] %v8428_v28  ;;  %v12887_v28 = vld [vmem:[#allocation193_spill] sm:$0xff] }
 0x3d2   :  { %12845 = vst [vmem:[#allocation115_spill] sm:$0xff] %v8431_v21  ;;  %v12886_v21 = vld [vmem:[#allocation191_spill] sm:$0xff] }
 0x3d3   :  { %12847 = vst [vmem:[#allocation158_spill] sm:$0xff] %v8434_v53  ;;  %v12885_v53 = vld [vmem:[#allocation190_spill] sm:$0xff] }
 0x3d4   :  { %12849 = vst [vmem:[#allocation159_spill] sm:$0xff] %v8437_v43 }
 0x3d5   :  { %12851 = vst [vmem:[#allocation162_spill] sm:$0xff] %v8440_v7  ;;  %v12884_v7 = vld [vmem:[#allocation189_spill] sm:$0xff] }
 0x3d6   :  { %12853 = vst [vmem:[#allocation163_spill] sm:$0xff] %v8443_v62  ;;  %v12883_v62 = vld [vmem:[#allocation188_spill] sm:$0xff]  ;;  %v2396_v43 = vmul.f32 %v8466_v9, %v12884_v7 }
 0x3d7   :  { %12855 = vst [vmem:[#allocation164_spill] sm:$0xff] %v8446_v19  ;;  %v12882_v19 = vld [vmem:[#allocation185_spill] sm:$0xff]  ;;  %v12890_v7 = vld [vmem:[#allocation196_spill] sm:$0xff] }
 0x3d8   :  { %12857 = vst [vmem:[#allocation165_spill] sm:$0xff] %v8449_v52  ;;  %v12881_v52 = vld [vmem:[#allocation184_spill] sm:$0xff]  ;;  %v2404_v50 = vmul.f32 %v8466_v9, %v12890_v7  ;;  %v2411_v7 = vmul.f32 %v8466_v9, %v12897_v27  ;;  %v2418_v27 = vmul.f32 %v8466_v9, %v12904_v60  ;;  %v8560_v60 = vmul.f32 %v8466_v9, %v12911_v40 }
 0x3d9   :  { %12859 = vst [vmem:[#allocation170_spill] sm:$0xff] %v8452_v10  ;;  %v12880_v10 = vld [vmem:[#allocation183_spill] sm:$0xff]  ;;  %v2393_v24 = vmul.f32 %v8466_v9, %v12881_v52  ;;  %v2400_v52 = vmul.f32 %v8466_v9, %v12888_v13  ;;  %v12894_v13 = vld [vmem:[#allocation200_spill] sm:$0xff]  ;;  %v8579_v40 = vmul.f32 %v5043_v0, %v8466_v9 }
 0x3da   :  { %12861 = vst [vmem:[#allocation171_spill] sm:$0xff] %v8455_v6  ;;  %v12879_v6 = vld [vmem:[#allocation182_spill] sm:$0xff]  ;;  %v2392_v58 = vmul.f32 %v8466_v9, %v12880_v10  ;;  %v2399_v10 = vmul.f32 %v8466_v9, %v12887_v28  ;;  %v12893_v28 = vld [vmem:[#allocation199_spill] sm:$0xff]  ;;  %v2408_v18 = vmul.f32 %v8466_v9, %v12894_v13  ;;  %v2415_v13 = vmul.f32 %v8466_v9, %v12901_v23 }
 0x3db   :  { %12863 = vst [vmem:[#allocation172_spill] sm:$0xff] %v8458_v12  ;;  %v12878_v12 = vld [vmem:[#allocation177_spill] sm:$0xff]  ;;  %v2391_v46 = vmul.f32 %v8466_v9, %v12879_v6  ;;  %v2398_v6 = vmul.f32 %v8466_v9, %v12886_v21  ;;  %v12892_v21 = vld [vmem:[#allocation198_spill] sm:$0xff]  ;;  %v2407_v37 = vmul.f32 %v8466_v9, %v12893_v28  ;;  %v2414_v28 = vmul.f32 %v8466_v9, %v12900_v45 }
 0x3dc   :  { %12865 = vst [vmem:[#allocation173_spill] sm:$0xff] %v8461_v20  ;;  %v2337_v20 = vld [vmem:[#allocation2 + $0x182] sm:$0xff]  ;;  %v2390_v54 = vmul.f32 %v8466_v9, %v12878_v12  ;;  %v2397_v12 = vmul.f32 %v8466_v9, %v12885_v53  ;;  %v2406_v57 = vmul.f32 %v8466_v9, %v12892_v21  ;;  %v2413_v21 = vmul.f32 %v8466_v9, %v12899_v22 }
 0x3dd   :  { %12866 = vst [vmem:[#allocation178_spill] sm:$0xff] %v8466_v9  ;;  %v12891_v53 = vld [vmem:[#allocation197_spill] sm:$0xff]  ;;  %v2420_v22 = vmul.f32 %v8466_v9, %v12906_v3  ;;  %v2421_v45 = vmul.f32 %v8466_v9, %v12907_v5  ;;  %v2422_v23 = vmul.f32 %v8466_v9, %v12908_v44  ;;  %v12915_v3 = vld [vmem:[#allocation222_spill] sm:$0xff]  ;;  %v8572_v44 = vmul.f32 %v8466_v9, %v12916_v56 }
 0x3de   :  { %12868 = vst [vmem:[#allocation179_spill] sm:$0xff] %v8470_v59  ;;  %v2388_v59 = vmul.f32 %v8466_v9, %v12876_v14  ;;  %v2394_v14 = vmul.f32 %v8466_v9, %v12882_v19  ;;  %v2401_v19 = vmul.f32 %v8466_v9, %v12889_v31  ;;  %v2405_v11 = vmul.f32 %v8466_v9, %v12891_v53  ;;  %v12895_v31 = vld [vmem:[#allocation201_spill] sm:$0xff] }
 0x3df   :  { %12870 = vst [vmem:[#allocation180_spill] sm:$0xff] %v8474_v42  ;;  %v2389_v42 = vmul.f32 %v8466_v9, %v12877_v29  ;;  %v2395_v29 = vmul.f32 %v8466_v9, %v12883_v62  ;;  %v2402_v62 = vmul.f32 %v8466_v9, %v2337_v20  ;;  %v2409_v20 = vmul.f32 %v8466_v9, %v12895_v31 }
 0x3e0   :  { %v2412_v53 = vmul.f32 %v8466_v9, %v12898_v17  ;;  %v2416_v31 = vmul.f32 %v8466_v9, %v12902_v36  ;;  %v2419_v17 = vmul.f32 %v8466_v9, %v12905_v39  ;;  %v2423_v36 = vmul.f32 %v8466_v9, %v12909_v16  ;;  %12912 = vst [vmem:[#allocation181_spill] sm:$0xff] %v8560_v60  ;;  %v12913_v39 = vld [vmem:[#allocation221_spill] sm:$0xff]  ;;  %v12917_v16 = vld [vmem:[#allocation224_spill] sm:$0xff]  ;;  %v5044_v60 = vld [vmem:[#allocation2 + $0x30a] sm:$0xff] }
 0x3e1   :  { %v8564_v1 = vmul.f32 %v8466_v9, %v12913_v39  ;;  %v8568_v5 = vmul.f32 %v8466_v9, %v12915_v3  ;;  %v8576_v4 = vmul.f32 %v8466_v9, %v12917_v16  ;;  %v8582_v39 = vmul.f32 %v5044_v60, %v8466_v9 }
 0x3e2   :  { %v8588_v3 = vadd.f32 %v2384_v30, %v8320_v63  ;;  %v8591_v56 = vadd.f32 %v2385_v35, %v8323_v47  ;;  %v8594_v16 = vadd.f32 %v2386_v48, %v8326_v2  ;;  %v8600_v0 = vadd.f32 %v2388_v59, %v8332_v55  ;;  %v12920_v2 = vld [vmem:[#allocation128_spill] sm:$0xff]  ;;  %v12922_v55 = vld [vmem:[#allocation225_spill] sm:$0xff] }
 0x3e3   :  { %12914 = vst [vmem:[#allocation54_spill] sm:$0xff] %v8564_v1  ;;  %v8585_v1 = vadd.f32 %v2383_v61, %v8317_v34  ;;  %v8603_v60 = vadd.f32 %v2389_v42, %v8335_v15  ;;  %v8606_v34 = vadd.f32 %v2390_v54, %v8338_v38  ;;  %v8609_v63 = vadd.f32 %v2391_v46, %v8341_v33  ;;  %v12924_v15 = vld [vmem:[#allocation226_spill] sm:$0xff]  ;;  %v12932_v54 = vld [vmem:[#allocation207_spill] sm:$0xff] }
 0x3e4   :  { %12918 = vst [vmem:[#allocation55_spill] sm:$0xff] %v8576_v4  ;;  %v8597_v4 = vadd.f32 %v2387_v32, %v8329_v8  ;;  %v8612_v47 = vadd.f32 %v2392_v58, %v8344_v41  ;;  %v8615_v61 = vadd.f32 %v2393_v24, %v12920_v2  ;;  %v12921_v8 = vld [vmem:[#allocation131_spill] sm:$0xff]  ;;  %v8621_v59 = vadd.f32 %v2395_v29, %v12922_v55  ;;  %v12926_v38 = vld [vmem:[#allocation138_spill] sm:$0xff]  ;;  %v12930_v41 = vld [vmem:[#allocation141_spill] sm:$0xff] }
 0x3e5   :  { %12919 = vst [vmem:[#allocation56_spill] sm:$0xff] %v8585_v1  ;;  %v8618_v30 = vadd.f32 %v2394_v14, %v12921_v8  ;;  %v8624_v42 = vadd.f32 %v2396_v43, %v12924_v15  ;;  %v8627_v35 = vadd.f32 %v2397_v12, %v12926_v38  ;;  %v12928_v33 = vld [vmem:[#allocation206_spill] sm:$0xff]  ;;  %v8633_v32 = vadd.f32 %v2399_v10, %v12930_v41  ;;  %v12934_v58 = vld [vmem:[#allocation144_spill] sm:$0xff]  ;;  %v12938_v43 = vld [vmem:[#allocation145_spill] sm:$0xff] }
 0x3e6   :  { %12923 = vst [vmem:[#allocation57_spill] sm:$0xff] %v8621_v59  ;;  %v8630_v48 = vadd.f32 %v2398_v6, %v12928_v33  ;;  %v8636_v46 = vadd.f32 %v2400_v52, %v12932_v54  ;;  %v8639_v24 = vadd.f32 %v2401_v19, %v12934_v58  ;;  %v12936_v14 = vld [vmem:[#allocation208_spill] sm:$0xff]  ;;  %v8645_v2 = vadd.f32 %v2403_v49, %v12938_v43  ;;  %v12942_v6 = vld [vmem:[#allocation149_spill] sm:$0xff]  ;;  %v12948_v19 = vld [vmem:[#allocation23_spill] sm:$0xff] }
 0x3e7   :  { %12925 = vst [vmem:[#allocation58_spill] sm:$0xff] %v8624_v42  ;;  %v8642_v29 = vadd.f32 %v2402_v62, %v12936_v14  ;;  %v12940_v12 = vld [vmem:[#allocation148_spill] sm:$0xff]  ;;  %v8651_v55 = vadd.f32 %v2405_v11, %v12942_v6  ;;  %v12946_v52 = vld [vmem:[#allocation153_spill] sm:$0xff]  ;;  %v8660_v33 = vadd.f32 %v2408_v18, %v12948_v19  ;;  %v12952_v49 = vld [vmem:[#allocation66_spill] sm:$0xff] }
 0x3e8   :  { %12927 = vst [vmem:[#allocation59_spill] sm:$0xff] %v8627_v35  ;;  %v8648_v8 = vadd.f32 %v2404_v50, %v12940_v12  ;;  %v12944_v10 = vld [vmem:[#allocation152_spill] sm:$0xff]  ;;  %v8657_v38 = vadd.f32 %v2407_v37, %v12946_v52  ;;  %v12950_v62 = vld [vmem:[#allocation25_spill] sm:$0xff]  ;;  %v8666_v54 = vadd.f32 %v2410_v25, %v12952_v49  ;;  %v12954_v50 = vld [vmem:[#allocation67_spill] sm:$0xff] }
 0x3e9   :  { %12929 = vst [vmem:[#allocation60_spill] sm:$0xff] %v8630_v48  ;;  %v8654_v15 = vadd.f32 %v2406_v57, %v12944_v10  ;;  %v8663_v41 = vadd.f32 %v2409_v20, %v12950_v62  ;;  %v8669_v58 = vadd.f32 %v2411_v7, %v12954_v50  ;;  %v12956_v11 = vld [vmem:[#allocation76_spill] sm:$0xff]  ;;  %v2511_v57 = vld [vmem:[#allocation2 + $0xa8] sm:$0xff]  ;;  %v2512_v25 = vld [vmem:[#allocation2 + $0xb0] sm:$0xff] }
 0x3ea   :  { %12931 = vst [vmem:[#allocation61_spill] sm:$0xff] %v8633_v32  ;;  %v8672_v14 = vadd.f32 %v2412_v53, %v12956_v11  ;;  %v12958_v43 = vld [vmem:[#allocation80_spill] sm:$0xff]  ;;  %v2513_v19 = vld [vmem:[#allocation2 + $0xc0] sm:$0xff]  ;;  %v2514_v7 = vld [vmem:[#allocation2 + $0xc8] sm:$0xff] }
 0x3eb   :  { %12933 = vst [vmem:[#allocation63_spill] sm:$0xff] %v8636_v46  ;;  %v8675_v12 = vadd.f32 %v2413_v21, %v12958_v43  ;;  %v12960_v37 = vld [vmem:[#allocation84_spill] sm:$0xff]  ;;  %v12970_v21 = vld [vmem:[#allocation105_spill] sm:$0xff]  ;;  %v12974_v1 = vld [vmem:[#allocation115_spill] sm:$0xff] }
 0x3ec   :  { %12935 = vst [vmem:[#allocation64_spill] sm:$0xff] %v8639_v24  ;;  %v8678_v6 = vadd.f32 %v2414_v28, %v12960_v37  ;;  %v12962_v18 = vld [vmem:[#allocation88_spill] sm:$0xff]  ;;  %v8693_v43 = vadd.f32 %v2419_v17, %v12970_v21  ;;  %v12972_v28 = vld [vmem:[#allocation110_spill] sm:$0xff]  ;;  %v8699_v9 = vadd.f32 %v2421_v45, %v12974_v1  ;;  %v2520_v17 = vld [vmem:[#allocation2 + $0x110] sm:$0xff] }
 0x3ed   :  { %12937 = vst [vmem:[#allocation68_spill] sm:$0xff] %v8642_v29  ;;  %v8681_v10 = vadd.f32 %v2415_v13, %v12962_v18  ;;  %v12964_v20 = vld [vmem:[#allocation92_spill] sm:$0xff]  ;;  %v8696_v37 = vadd.f32 %v2420_v22, %v12972_v28  ;;  %v2516_v13 = vld [vmem:[#allocation2 + $0xe0] sm:$0xff]  ;;  %v2517_v18 = vld [vmem:[#allocation2 + $0xf0] sm:$0xff] }
 0x3ee   :  { %12939 = vst [vmem:[#allocation69_spill] sm:$0xff] %v8645_v2  ;;  %v8684_v52 = vadd.f32 %v2416_v31, %v12964_v20  ;;  %v2515_v62 = vld [vmem:[#allocation2 + $0xd8] sm:$0xff]  ;;  %v2519_v20 = vld [vmem:[#allocation2 + $0x108] sm:$0xff]  ;;  %v2521_v21 = vld [vmem:[#allocation2 + $0x120] sm:$0xff] }
 0x3ef   :  { %12941 = vst [vmem:[#allocation73_spill] sm:$0xff] %v8648_v8  ;;  %v12966_v49 = vld [vmem:[#allocation96_spill] sm:$0xff]  ;;  %v2522_v22 = vld [vmem:[#allocation2 + $0x128] sm:$0xff]  ;;  %v12982_v28 = vld [vmem:[#allocation163_spill] sm:$0xff] }
 0x3f0   :  { %12943 = vst [vmem:[#allocation74_spill] sm:$0xff] %v8651_v55  ;;  %v8687_v53 = vadd.f32 %v2417_v26, %v12966_v49  ;;  %v12968_v50 = vld [vmem:[#allocation100_spill] sm:$0xff]  ;;  %v12978_v26 = vld [vmem:[#allocation159_spill] sm:$0xff]  ;;  %v12988_v45 = vld [vmem:[#allocation165_spill] sm:$0xff] }
 0x3f1   :  { %12945 = vst [vmem:[#allocation77_spill] sm:$0xff] %v8654_v15  ;;  %v8690_v11 = vadd.f32 %v2418_v27, %v12968_v50  ;;  %v2518_v31 = vld [vmem:[#allocation2 + $0xf8] sm:$0xff]  ;;  %v8705_v49 = vadd.f32 %v2423_v36, %v12978_v26  ;;  %v12980_v27 = vld [vmem:[#allocation162_spill] sm:$0xff]  ;;  %v2524_v26 = vld [vmem:[#allocation2 + $0x140] sm:$0xff] }
 0x3f2   :  { %12947 = vst [vmem:[#allocation78_spill] sm:$0xff] %v8657_v38  ;;  %v8708_v50 = vadd.f32 %v2424_v51, %v12980_v27  ;;  %v12990_v36 = vld [vmem:[#allocation170_spill] sm:$0xff]  ;;  %v2523_v51 = vld [vmem:[#allocation2 + $0x138] sm:$0xff]  ;;  %v2525_v27 = vld [vmem:[#allocation2 + $0x150] sm:$0xff] }
 0x3f3   :  { %12949 = vst [vmem:[#allocation81_spill] sm:$0xff] %v8660_v33  ;;  %v13003_v33 = vld [vmem:[#allocation9_spill] sm:$0xff]  ;;  %v2553_v24 = vld [vmem:[#allocation2 + $0x2d0] sm:$0xff]  ;;  %v2554_v32 = vld [vmem:[#allocation2 + $0x2d8] sm:$0xff] }
 0x3f4   :  { %12951 = vst [vmem:[#allocation82_spill] sm:$0xff] %v8663_v41  ;;  %v13002_v41 = vld [vmem:[#allocation187_spill] sm:$0xff]  ;;  %v2549_v55 = vld [vmem:[#allocation2 + $0x2a0] sm:$0xff]  ;;  %v2555_v48 = vld [vmem:[#allocation2 + $0x2e8] sm:$0xff] }
 0x3f5   :  { %12953 = vst [vmem:[#allocation85_spill] sm:$0xff] %v8666_v54  ;;  %v2547_v54 = vld [vmem:[#allocation2 + $0x288] sm:$0xff]  ;;  %v2552_v29 = vld [vmem:[#allocation2 + $0x2c0] sm:$0xff] }
 0x3f6   :  { %12955 = vst [vmem:[#allocation86_spill] sm:$0xff] %v8669_v58  ;;  %v2545_v58 = vld [vmem:[#allocation2 + $0x270] sm:$0xff] }
 0x3f7   :  { %12957 = vst [vmem:[#allocation89_spill] sm:$0xff] %v8672_v14 }
 0x3f8   :  { %12959 = vst [vmem:[#allocation90_spill] sm:$0xff] %v8675_v12 }
 0x3f9   :  { %12961 = vst [vmem:[#allocation93_spill] sm:$0xff] %v8678_v6  ;;  %v2544_v6 = vld [vmem:[#allocation2 + $0x260] sm:$0xff] }
 0x3fa   :  { %12963 = vst [vmem:[#allocation94_spill] sm:$0xff] %v8681_v10 }
 0x3fb   :  { %12965 = vst [vmem:[#allocation97_spill] sm:$0xff] %v8684_v52  ;;  %v12976_v52 = vld [vmem:[#allocation158_spill] sm:$0xff] }
 0x3fc   :  { %12967 = vst [vmem:[#allocation98_spill] sm:$0xff] %v8687_v53  ;;  %v8702_v10 = vadd.f32 %v2422_v23, %v12976_v52  ;;  %v12986_v53 = vld [vmem:[#allocation54_spill] sm:$0xff]  ;;  %v8720_v23 = vadd.f32 %v8568_v5, %v12988_v45  ;;  %v8724_v52 = vadd.f32 %v8572_v44, %v12990_v36  ;;  %v2526_v5 = vld [vmem:[#allocation2 + $0x158] sm:$0xff]  ;;  %v8741_v44 = vld [vmem:[%s11829_s4 + $0x6] ss:$0 sm:$0xff] }
 0x3fd   :  { %12969 = vst [vmem:[#allocation101_spill] sm:$0xff] %v8690_v11  ;;  %v12985_v11 = vld [vmem:[#allocation164_spill] sm:$0xff]  ;;  %v2527_v45 = vld [vmem:[#allocation2 + $0x168] sm:$0xff]  ;;  %v8744_v36 = vmul.f32 %v8741_v44, %v2511_v57  ;;  %v8759_v57 = vmul.f32 %v8741_v44, %v2516_v13  ;;  %v8777_v13 = vmul.f32 %v8741_v44, %v2522_v22  ;;  %v2590_v12 = vmul.f32 %v8741_v44, %v2525_v27 }
 0x3fe   :  { %12971 = vst [vmem:[#allocation102_spill] sm:$0xff] %v8693_v43  ;;  %v8716_v1 = vadd.f32 %v12986_v53, %v12985_v11  ;;  %v12997_v53 = vld [vmem:[#allocation173_spill] sm:$0xff]  ;;  %v2591_v14 = vmul.f32 %v8741_v44, %v2526_v5  ;;  %v2595_v38 = vmul.f32 %v8741_v44, %v13003_v33  ;;  %v2550_v27 = vld [vmem:[#allocation2 + $0x2a8] sm:$0xff]  ;;  %v2610_v35 = vmul.f32 %v8741_v44, %v2545_v58 }
 0x3ff   :  { %12973 = vst [vmem:[#allocation106_spill] sm:$0xff] %v8696_v37  ;;  %v12983_v37 = vld [vmem:[#allocation181_spill] sm:$0xff]  ;;  %v8736_v11 = vadd.f32 %v8582_v39, %v12997_v53  ;;  %v8750_v39 = vmul.f32 %v8741_v44, %v2513_v19  ;;  %v8756_v53 = vmul.f32 %v8741_v44, %v2515_v62  ;;  %v8768_v19 = vmul.f32 %v8741_v44, %v2519_v20 }
 0x400   :  { %12975 = vst [vmem:[#allocation107_spill] sm:$0xff] %v8699_v9  ;;  %v8712_v43 = vadd.f32 %v12983_v37, %v12982_v28  ;;  %v12995_v37 = vld [vmem:[#allocation172_spill] sm:$0xff]  ;;  %v8771_v62 = vmul.f32 %v8741_v44, %v2520_v17  ;;  %v2589_v20 = vmul.f32 %v8741_v44, %v2524_v26  ;;  %v2592_v17 = vmul.f32 %v8741_v44, %v2527_v45  ;;  %v2548_v26 = vld [vmem:[#allocation2 + $0x290] sm:$0xff] }
 0x401   :  { %12977 = vst [vmem:[#allocation111_spill] sm:$0xff] %v8702_v10  ;;  %v8732_v28 = vadd.f32 %v8579_v40, %v12995_v37  ;;  %v8747_v40 = vmul.f32 %v8741_v44, %v2512_v25  ;;  %v8753_v37 = vmul.f32 %v8741_v44, %v2514_v7  ;;  %v8765_v25 = vmul.f32 %v8741_v44, %v2518_v31  ;;  %v2539_v7 = vld [vmem:[#allocation2 + $0x228] sm:$0xff]  ;;  %v2543_v9 = vld [vmem:[#allocation2 + $0x258] sm:$0xff] }
 0x402   :  { %12979 = vst [vmem:[#allocation112_spill] sm:$0xff] %v8705_v49  ;;  %v12993_v49 = vld [vmem:[#allocation55_spill] sm:$0xff]  ;;  %v2542_v31 = vld [vmem:[#allocation2 + $0x248] sm:$0xff]  ;;  %v2604_v33 = vmul.f32 %v8741_v44, %v2539_v7  ;;  %v2613_v7 = vmul.f32 %v8741_v44, %v2548_v26  ;;  %v2620_v58 = vmul.f32 %v8741_v44, %v2555_v48  ;;  %v8829_v48 = vadd.f32 %v8750_v39, %v8588_v3  ;;  %v13010_v39 = vld [vmem:[#allocation57_spill] sm:$0xff] }
 0x403   :  { %12981 = vst [vmem:[#allocation116_spill] sm:$0xff] %v8708_v50  ;;  %v12992_v50 = vld [vmem:[#allocation171_spill] sm:$0xff]  ;;  %v8849_v3 = vadd.f32 %v8765_v25, %v8603_v60  ;;  %v13016_v25 = vld [vmem:[#allocation60_spill] sm:$0xff] }
 0x404   :  { %12984 = vst [vmem:[#allocation117_spill] sm:$0xff] %v8712_v43  ;;  %v8728_v10 = vadd.f32 %v12993_v49, %v12992_v50  ;;  %v2533_v49 = vld [vmem:[#allocation2 + $0x1e0] sm:$0xff]  ;;  %v2534_v50 = vld [vmem:[#allocation2 + $0x1e8] sm:$0xff]  ;;  %v8774_v43 = vmul.f32 %v8741_v44, %v2521_v21  ;;  %v2546_v21 = vld [vmem:[#allocation2 + $0x278] sm:$0xff] }
 0x405   :  { %12987 = vst [vmem:[#allocation120_spill] sm:$0xff] %v8716_v1  ;;  %v2541_v1 = vld [vmem:[#allocation2 + $0x240] sm:$0xff]  ;;  %v2598_v15 = vmul.f32 %v8741_v44, %v2533_v49  ;;  %v2599_v5 = vmul.f32 %v8741_v44, %v2534_v50  ;;  %v2556_v50 = vld [vmem:[#allocation2 + $0x2f0] sm:$0xff]  ;;  %v2611_v42 = vmul.f32 %v8741_v44, %v2546_v21 }
 0x406   :  { %12989 = vst [vmem:[#allocation121_spill] sm:$0xff] %v8720_v23  ;;  %v2528_v23 = vld [vmem:[#allocation2 + $0x170] sm:$0xff]  ;;  %v2606_v46 = vmul.f32 %v8741_v44, %v2541_v1  ;;  %v2615_v1 = vmul.f32 %v8741_v44, %v2550_v27  ;;  %v2621_v21 = vmul.f32 %v8741_v44, %v2556_v50  ;;  %v5046_v27 = vld [vmem:[#allocation2 + $0x318] sm:$0xff]  ;;  %v8841_v50 = vadd.f32 %v8759_v57, %v8597_v4 }
 0x407   :  { %12991 = vst [vmem:[#allocation124_spill] sm:$0xff] %v8724_v52  ;;  %v2538_v52 = vld [vmem:[#allocation2 + $0x218] sm:$0xff]  ;;  %v2593_v22 = vmul.f32 %v8741_v44, %v2528_v23  ;;  %v13005_v26 = vld [vmem:[#allocation11_spill] sm:$0xff]  ;;  %v8861_v4 = vadd.f32 %v8774_v43, %v8612_v47  ;;  %v8881_v47 = vadd.f32 %v2592_v17, %v13016_v25  ;;  %v13018_v43 = vld [vmem:[#allocation61_spill] sm:$0xff] }
 0x408   :  { %12994 = vst [vmem:[#allocation127_spill] sm:$0xff] %v8728_v10  ;;  %v2535_v10 = vld [vmem:[#allocation2 + $0x1f8] sm:$0xff]  ;;  %v13036_v25 = vld [vmem:[#allocation78_spill] sm:$0xff] }
 0x409   :  { %12996 = vst [vmem:[#allocation130_spill] sm:$0xff] %v8732_v28  ;;  %v2537_v28 = vld [vmem:[#allocation2 + $0x210] sm:$0xff]  ;;  %v2600_v45 = vmul.f32 %v8741_v44, %v2535_v10  ;;  %v2551_v23 = vld [vmem:[#allocation2 + $0x2b8] sm:$0xff]  ;;  %v2607_v10 = vmul.f32 %v8741_v44, %v2542_v31  ;;  %v2617_v31 = vmul.f32 %v8741_v44, %v2552_v29  ;;  %v5047_v29 = vld [vmem:[#allocation2 + $0x320] sm:$0xff] }
 0x40a   :  { %12998 = vst [vmem:[#allocation133_spill] sm:$0xff] %v8736_v11  ;;  %v2536_v11 = vld [vmem:[#allocation2 + $0x200] sm:$0xff]  ;;  %v2602_v2 = vmul.f32 %v8741_v44, %v2537_v28  ;;  %v2609_v28 = vmul.f32 %v8741_v44, %v2544_v6  ;;  %v2616_v59 = vmul.f32 %v8741_v44, %v2551_v23  ;;  %v2619_v6 = vmul.f32 %v8741_v44, %v2554_v32 }
 0x40b   :  { %12999 = vst [vmem:[#allocation135_spill] sm:$0xff] %v8744_v36  ;;  %v8762_v36 = vmul.f32 %v8741_v44, %v2517_v18  ;;  %v8780_v18 = vmul.f32 %v8741_v44, %v2523_v51  ;;  %v2594_v51 = vmul.f32 %v8741_v44, %v13002_v41  ;;  %v2601_v8 = vmul.f32 %v8741_v44, %v2536_v11 }
 0x40c   :  { %13000 = vst [vmem:[#allocation137_spill] sm:$0xff] %v8747_v40  ;;  %v2540_v40 = vld [vmem:[#allocation2 + $0x230] sm:$0xff]  ;;  %v2603_v41 = vmul.f32 %v8741_v44, %v2538_v52  ;;  %v2608_v11 = vmul.f32 %v8741_v44, %v2543_v9  ;;  %v2612_v52 = vmul.f32 %v8741_v44, %v2547_v54  ;;  %v2618_v9 = vmul.f32 %v8741_v44, %v2553_v24 }
 0x40d   :  { %13001 = vst [vmem:[#allocation140_spill] sm:$0xff] %v8780_v18  ;;  %v2605_v49 = vmul.f32 %v8741_v44, %v2540_v40  ;;  %v2614_v40 = vmul.f32 %v8741_v44, %v2549_v55  ;;  %v13004_v18 = vld [vmem:[#allocation21_spill] sm:$0xff]  ;;  %v8819_v55 = vmul.f32 %v8741_v44, %v13005_v26  ;;  %v8822_v23 = vmul.f32 %v5046_v27, %v8741_v44  ;;  %v13025_v27 = vld [vmem:[#allocation26_spill] sm:$0xff] }
 0x40e   :  { %v2622_v54 = vmul.f32 %v8741_v44, %v13004_v18  ;;  %v8825_v24 = vmul.f32 %v5047_v29, %v8741_v44  ;;  %v8833_v32 = vadd.f32 %v8753_v37, %v8591_v56  ;;  %v8837_v18 = vadd.f32 %v8756_v53, %v8594_v16  ;;  %13006 = vst [vmem:[#allocation143_spill] sm:$0xff] %v8861_v4 }
 0x40f   :  { %v8845_v26 = vadd.f32 %v8762_v36, %v8600_v0  ;;  %v8853_v56 = vadd.f32 %v8768_v19, %v8606_v34  ;;  %v8857_v16 = vadd.f32 %v8771_v62, %v8609_v63  ;;  %v8865_v0 = vadd.f32 %v8777_v13, %v8615_v61  ;;  %v13012_v34 = vld [vmem:[#allocation58_spill] sm:$0xff]  ;;  %v13014_v63 = vld [vmem:[#allocation59_spill] sm:$0xff]  ;;  %13017 = vst [vmem:[#allocation27_spill] sm:$0xff] %v8881_v47 }
 0x410   :  { %v8872_v37 = vadd.f32 %v2589_v20, %v13010_v39  ;;  %v8875_v53 = vadd.f32 %v2590_v12, %v13012_v34  ;;  %v8878_v57 = vadd.f32 %v2591_v14, %v13014_v63  ;;  %v8884_v19 = vadd.f32 %v2593_v22, %v13018_v43  ;;  %v13020_v61 = vld [vmem:[#allocation63_spill] sm:$0xff]  ;;  %v13024_v20 = vld [vmem:[#allocation68_spill] sm:$0xff]  ;;  %v13027_v12 = vld [vmem:[#allocation69_spill] sm:$0xff] }
 0x411   :  { %13007 = vst [vmem:[#allocation147_spill] sm:$0xff] %v8865_v0  ;;  %v8887_v62 = vadd.f32 %v2594_v51, %v13020_v61  ;;  %v8894_v29 = vadd.f32 %v13025_v27, %v13024_v20  ;;  %v13030_v39 = vld [vmem:[#allocation73_spill] sm:$0xff]  ;;  %v13032_v34 = vld [vmem:[#allocation74_spill] sm:$0xff] }
 0x412   :  { %13011 = vst [vmem:[#allocation155_spill] sm:$0xff] %v8872_v37  ;;  %v8901_v17 = vadd.f32 %v2598_v15, %v13030_v39  ;;  %v8904_v22 = vadd.f32 %v2599_v5, %v13032_v34  ;;  %v13034_v63 = vld [vmem:[#allocation77_spill] sm:$0xff]  ;;  %v13044_v15 = vld [vmem:[#allocation86_spill] sm:$0xff]  ;;  %v13129_v37 = vld [vmem:[#allocation192_spill] sm:$0xff] }
 0x413   :  { %13013 = vst [vmem:[#allocation157_spill] sm:$0xff] %v8875_v53  ;;  %v8907_v51 = vadd.f32 %v2600_v45, %v13034_v63  ;;  %v13038_v43 = vld [vmem:[#allocation81_spill] sm:$0xff]  ;;  %v2705_v45 = vld [vmem:[#allocation2 + $0xb1] sm:$0xff]  ;;  %v13048_v34 = vld [vmem:[#allocation90_spill] sm:$0xff] }
 0x414   :  { %v13008_v36 = vld [vmem:[#allocation140_spill] sm:$0xff]  ;;  %13015 = vst [vmem:[#allocation18_spill] sm:$0xff] %v8878_v57  ;;  %v8913_v61 = vadd.f32 %v2602_v2, %v13038_v43  ;;  %v13042_v27 = vld [vmem:[#allocation85_spill] sm:$0xff]  ;;  %v8928_v63 = vadd.f32 %v2607_v10, %v13048_v34  ;;  %v13052_v2 = vld [vmem:[#allocation94_spill] sm:$0xff] }
 0x415   :  { %v8869_v60 = vadd.f32 %v13008_v36, %v8618_v30  ;;  %13019 = vst [vmem:[#allocation10_spill] sm:$0xff] %v8884_v19  ;;  %v13022_v30 = vld [vmem:[#allocation64_spill] sm:$0xff]  ;;  %v13046_v5 = vld [vmem:[#allocation89_spill] sm:$0xff]  ;;  %v8934_v43 = vadd.f32 %v2609_v28, %v13052_v2  ;;  %v13060_v10 = vld [vmem:[#allocation102_spill] sm:$0xff] }
 0x416   :  { %13021 = vst [vmem:[#allocation29_spill] sm:$0xff] %v8887_v62  ;;  %v8890_v13 = vadd.f32 %v2595_v38, %v13022_v30  ;;  %v13028_v36 = vld [vmem:[#allocation28_spill] sm:$0xff]  ;;  %v8910_v38 = vadd.f32 %v2601_v8, %v13036_v25  ;;  %v13040_v30 = vld [vmem:[#allocation82_spill] sm:$0xff]  ;;  %v8925_v39 = vadd.f32 %v2606_v46, %v13046_v5  ;;  %v13050_v8 = vld [vmem:[#allocation93_spill] sm:$0xff]  ;;  %v8946_v34 = vadd.f32 %v2613_v7, %v13060_v10 }
 0x417   :  { %13009 = vst [vmem:[#allocation151_spill] sm:$0xff] %v8869_v60  ;;  %v8898_v14 = vadd.f32 %v13028_v36, %v13027_v12  ;;  %v8916_v20 = vadd.f32 %v2603_v41, %v13040_v30  ;;  %v8919_v12 = vadd.f32 %v2604_v33, %v13042_v27  ;;  %v8922_v36 = vadd.f32 %v2605_v49, %v13044_v15  ;;  %v13054_v41 = vld [vmem:[#allocation97_spill] sm:$0xff]  ;;  %v2707_v27 = vld [vmem:[#allocation2 + $0xc9] sm:$0xff]  ;;  %v2710_v28 = vld [vmem:[#allocation2 + $0xf1] sm:$0xff] }
 0x418   :  { %13023 = vst [vmem:[#allocation31_spill] sm:$0xff] %v8890_v13  ;;  %v8931_v25 = vadd.f32 %v2608_v11, %v13050_v8  ;;  %v8937_v30 = vadd.f32 %v2610_v35, %v13054_v41  ;;  %v2706_v33 = vld [vmem:[#allocation2 + $0xc1] sm:$0xff]  ;;  %v2708_v49 = vld [vmem:[#allocation2 + $0xd9] sm:$0xff]  ;;  %v2712_v35 = vld [vmem:[#allocation2 + $0x109] sm:$0xff] }
 0x419   :  { %13026 = vst [vmem:[#allocation14_spill] sm:$0xff] %v8894_v29  ;;  %v2709_v15 = vld [vmem:[#allocation2 + $0xe1] sm:$0xff]  ;;  %v2711_v2 = vld [vmem:[#allocation2 + $0xf9] sm:$0xff]  ;;  %v2713_v41 = vld [vmem:[#allocation2 + $0x111] sm:$0xff] }
 0x41a   :  { %13029 = vst [vmem:[#allocation15_spill] sm:$0xff] %v8898_v14  ;;  %v13058_v5 = vld [vmem:[#allocation101_spill] sm:$0xff]  ;;  %v13062_v11 = vld [vmem:[#allocation106_spill] sm:$0xff]  ;;  %v1410_v29 = vld [vmem:[#allocation2 + $0x30] sm:$0xff] }
 0x41b   :  { %13031 = vst [vmem:[#allocation17_spill] sm:$0xff] %v8901_v17  ;;  %v8949_v8 = vadd.f32 %v2614_v40, %v13062_v11  ;;  %v2714_v7 = vld [vmem:[#allocation2 + $0x121] sm:$0xff]  ;;  %v2715_v10 = vld [vmem:[#allocation2 + $0x129] sm:$0xff]  ;;  %v2716_v40 = vld [vmem:[#allocation2 + $0x139] sm:$0xff] }
 0x41c   :  { %13033 = vst [vmem:[#allocation19_spill] sm:$0xff] %v8904_v22  ;;  %v13072_v11 = vld [vmem:[#allocation117_spill] sm:$0xff]  ;;  %v1407_v17 = vld [vmem:[#allocation2 + $0x8] sm:$0xff] }
 0x41d   :  { %13035 = vst [vmem:[#allocation42_spill] sm:$0xff] %v8907_v51  ;;  %v13097_v51 = vld [vmem:[#allocation122_spill] sm:$0xff] }
 0x41e   :  { %13037 = vst [vmem:[#allocation43_spill] sm:$0xff] %v8910_v38  ;;  %v2737_v38 = vld [vmem:[#allocation2 + $0x261] sm:$0xff]  ;;  %v1536_v14 = vld [vmem:[#allocation2 + $0x9] sm:$0xff] }
 0x41f   :  { %13039 = vst [vmem:[#allocation44_spill] sm:$0xff] %v8913_v61  ;;  %v1729_v13 = vld [vmem:[#allocation2 + $0xa] sm:$0xff]  ;;  %v2742_v62 = vld [vmem:[#allocation2 + $0x2a1] sm:$0xff] }
 0x420   :  { %13041 = vst [vmem:[#allocation45_spill] sm:$0xff] %v8916_v20 }
 0x421   :  { %13043 = vst [vmem:[#allocation46_spill] sm:$0xff] %v8919_v12 }
 0x422   :  { %13045 = vst [vmem:[#allocation47_spill] sm:$0xff] %v8922_v36  ;;  %v13056_v36 = vld [vmem:[#allocation98_spill] sm:$0xff] }
 0x423   :  { %13047 = vst [vmem:[#allocation48_spill] sm:$0xff] %v8925_v39  ;;  %v8940_v46 = vadd.f32 %v2611_v42, %v13056_v36  ;;  %v8943_v39 = vadd.f32 %v2612_v52, %v13058_v5  ;;  %v13068_v42 = vld [vmem:[#allocation112_spill] sm:$0xff] }
 0x424   :  { %13049 = vst [vmem:[#allocation49_spill] sm:$0xff] %v8928_v63  ;;  %v8958_v36 = vadd.f32 %v2617_v31, %v13068_v42  ;;  %v13070_v52 = vld [vmem:[#allocation116_spill] sm:$0xff]  ;;  %v2717_v31 = vld [vmem:[#allocation2 + $0x141] sm:$0xff] }
 0x425   :  { %13051 = vst [vmem:[#allocation52_spill] sm:$0xff] %v8931_v25  ;;  %v13066_v25 = vld [vmem:[#allocation111_spill] sm:$0xff]  ;;  %v8961_v5 = vadd.f32 %v2618_v9, %v13070_v52 }
 0x426   :  { %13053 = vst [vmem:[#allocation53_spill] sm:$0xff] %v8934_v43  ;;  %v8955_v63 = vadd.f32 %v2616_v59, %v13066_v25  ;;  %v13078_v59 = vld [vmem:[#allocation124_spill] sm:$0xff]  ;;  %v2720_v9 = vld [vmem:[#allocation2 + $0x169] sm:$0xff] }
 0x427   :  { %13055 = vst [vmem:[#allocation62_spill] sm:$0xff] %v8937_v30  ;;  %v13064_v30 = vld [vmem:[#allocation107_spill] sm:$0xff]  ;;  %v8973_v25 = vadd.f32 %v2622_v54, %v13078_v59  ;;  %v8990_v54 = vld [vmem:[%s11829_s4 + $0x7] ss:$0 sm:$0xff] }
 0x428   :  { %13057 = vst [vmem:[#allocation65_spill] sm:$0xff] %v8940_v46  ;;  %v8952_v43 = vadd.f32 %v2615_v1, %v13064_v30  ;;  %v13076_v1 = vld [vmem:[#allocation121_spill] sm:$0xff]  ;;  %v2718_v42 = vld [vmem:[#allocation2 + $0x151] sm:$0xff]  ;;  %v9002_v59 = vmul.f32 %v8990_v54, %v2706_v33  ;;  %v9023_v33 = vmul.f32 %v8990_v54, %v2713_v41  ;;  %v9038_v41 = vmul.f32 %v8990_v54, %v2716_v40  ;;  %v2735_v46 = vld [vmem:[#allocation2 + $0x249] sm:$0xff] }
 0x429   :  { %13059 = vst [vmem:[#allocation72_spill] sm:$0xff] %v8943_v39  ;;  %v8970_v30 = vadd.f32 %v2621_v21, %v13076_v1  ;;  %v13080_v52 = vld [vmem:[#allocation127_spill] sm:$0xff]  ;;  %v2728_v1 = vld [vmem:[#allocation2 + $0x1f9] sm:$0xff]  ;;  %v9041_v12 = vmul.f32 %v8990_v54, %v2717_v31  ;;  %v9044_v20 = vmul.f32 %v8990_v54, %v2718_v42 }
 0x42a   :  { %13061 = vst [vmem:[#allocation75_spill] sm:$0xff] %v8946_v34  ;;  %v13074_v34 = vld [vmem:[#allocation120_spill] sm:$0xff]  ;;  %v1406_v42 = vld [vmem:[#allocation2] sm:$0xff] }
 0x42b   :  { %13063 = vst [vmem:[#allocation79_spill] sm:$0xff] %v8949_v8  ;;  %v8964_v8 = vadd.f32 %v2619_v6, %v13072_v11  ;;  %v8967_v39 = vadd.f32 %v2620_v58, %v13074_v34  ;;  %v13084_v58 = vld [vmem:[#allocation133_spill] sm:$0xff]  ;;  %v2721_v21 = vld [vmem:[#allocation2 + $0x171] sm:$0xff]  ;;  %v8993_v11 = vmul.f32 %v8990_v54, %v2705_v45  ;;  %v9008_v45 = vmul.f32 %v8990_v54, %v2708_v49  ;;  %v3915_v49 = vld [vmem:[%s11832_s7 + $0x8] sm:$0xff] }
 0x42c   :  { %13065 = vst [vmem:[#allocation83_spill] sm:$0xff] %v8952_v43  ;;  %v8985_v34 = vadd.f32 %v8825_v24, %v13084_v58  ;;  %v2727_v24 = vld [vmem:[#allocation2 + $0x1e9] sm:$0xff]  ;;  %v9011_v58 = vmul.f32 %v8990_v54, %v2709_v15  ;;  %v2730_v15 = vld [vmem:[#allocation2 + $0x211] sm:$0xff]  ;;  %v2734_v43 = vld [vmem:[#allocation2 + $0x241] sm:$0xff]  ;;  %v9053_v40 = vmul.f32 %v8990_v54, %v2721_v21  ;;  %v9070_v21 = vmul.f32 %v8990_v54, %v2728_v1 }
 0x42d   :  { %13067 = vst [vmem:[#allocation87_spill] sm:$0xff] %v8955_v63  ;;  %v13082_v63 = vld [vmem:[#allocation130_spill] sm:$0xff]  ;;  %v9067_v22 = vmul.f32 %v8990_v54, %v2727_v24  ;;  %v9086_v1 = vld [vmem:[#allocation2 + $0x19] sm:$0xff] }
 0x42e   :  { %13069 = vst [vmem:[#allocation91_spill] sm:$0xff] %v8958_v36  ;;  %v2719_v36 = vld [vmem:[#allocation2 + $0x159] sm:$0xff]  ;;  %v8981_v6 = vadd.f32 %v8822_v23, %v13082_v63  ;;  %v2726_v63 = vld [vmem:[#allocation2 + $0x1e1] sm:$0xff] }
 0x42f   :  { %13071 = vst [vmem:[#allocation95_spill] sm:$0xff] %v8961_v5  ;;  %v8977_v5 = vadd.f32 %v8819_v55, %v13080_v52  ;;  %v3916_v55 = vld [vmem:[%s11832_s7 + $0x10] sm:$0xff]  ;;  %v3917_v23 = vld [vmem:[%s11832_s7 + $0x18] sm:$0xff]  ;;  %v9005_v52 = vmul.f32 %v8990_v54, %v2707_v27  ;;  %v3914_v27 = vld [vmem:[%s11832_s7] sm:$0xff]  ;;  %v9047_v61 = vmul.f32 %v8990_v54, %v2719_v36  ;;  %v9061_v36 = vmul.f32 %v8990_v54, %v13097_v51 }
 0x430   :  { %13073 = vst [vmem:[#allocation99_spill] sm:$0xff] %v8964_v8  ;;  %v2733_v8 = vld [vmem:[#allocation2 + $0x231] sm:$0xff]  ;;  %v3918_v31 = vpack.c.bf16 %v3915_v49, %v3914_v27  ;;  %v9076_v51 = vmul.f32 %v8990_v54, %v2730_v15  ;;  %v9095_v15 = vmul.f32 %v8990_v54, %v2735_v46 }
 0x431   :  { %13075 = vst [vmem:[#allocation104_spill] sm:$0xff] %v8967_v39  ;;  %v3919_v39 = vpack.c.bf16 %v3917_v23, %v3916_v55  ;;  %v13095_v55 = vld [vmem:[#allocation118_spill] sm:$0xff]  ;;  %v9084_v49 = vld [vmem:[#allocation2 + $0x18] sm:$0xff] }
 0x432   :  { %13077 = vst [vmem:[#allocation109_spill] sm:$0xff] %v8970_v30  ;;  %v2732_v30 = vld [vmem:[#allocation2 + $0x229] sm:$0xff]  ;;  %v9057_v23 = vmul.f32 %v8990_v54, %v13095_v55  ;;  %v1535_v55 = vld [vmem:[#allocation2 + $0x1] sm:$0xff]  ;;  %v1411_v46 = vld [vmem:[#allocation2 + $0x38] sm:$0xff] }
 0x433   :  { %13079 = vst [vmem:[#allocation114_spill] sm:$0xff] %v8973_v25  ;;  %v9020_v25 = vmul.f32 %v8990_v54, %v2712_v35  ;;  %v9035_v35 = vmul.f32 %v8990_v54, %v2715_v10  ;;  %v2736_v10 = vld [vmem:[#allocation2 + $0x259] sm:$0xff]  ;;  %4022 = vmatpush.bf16.msra.mxu1 %v3919_v39  ;;  %5008 = vmatpush.bf16.msra.mxu3 %v3919_v39  ;;  %v2738_v39 = vld [vmem:[#allocation2 + $0x271] sm:$0xff] }
 0x434   :  { %13081 = vst [vmem:[#allocation119_spill] sm:$0xff] %v8977_v5  ;;  %v9017_v5 = vmul.f32 %v8990_v54, %v2711_v2  ;;  %v9032_v2 = vmul.f32 %v8990_v54, %v2714_v7  ;;  %v9050_v7 = vmul.f32 %v8990_v54, %v2720_v9  ;;  %v9064_v9 = vmul.f32 %v8990_v54, %v2726_v63 }
 0x435   :  { %13083 = vst [vmem:[#allocation123_spill] sm:$0xff] %v8981_v6  ;;  %v9014_v6 = vmul.f32 %v8990_v54, %v2710_v28  ;;  %v2731_v28 = vld [vmem:[#allocation2 + $0x219] sm:$0xff]  ;;  %v9082_v24 = vmul.f32 %v8990_v54, %v2732_v30  ;;  %v9114_v19 = vmul.f32 %v8990_v54, %v2738_v39 }
 0x436   :  { %13085 = vst [vmem:[#allocation126_spill] sm:$0xff] %v8985_v34  ;;  %v2729_v34 = vld [vmem:[#allocation2 + $0x201] sm:$0xff]  ;;  %v9079_v63 = vmul.f32 %v8990_v54, %v2731_v28  ;;  %v5049_v30 = vld [vmem:[%s11829_s4] ss:$0 sm:$0xff] }
 0x437   :  { %13086 = vst [vmem:[#allocation129_spill] sm:$0xff] %v9023_v33  ;;  %v9073_v27 = vmul.f32 %v8990_v54, %v2729_v34  ;;  %v9092_v34 = vmul.f32 %v8990_v54, %v2734_v43  ;;  %v1471_v28 = vmul.f32 %v5049_v30, %v1406_v42  ;;  %4023 = vmatpush.bf16.msra.mxu1 %v3918_v31  ;;  %v5050_v43 = vld [vmem:[%s11829_s4 + $0x1] ss:$0 sm:$0xff]  ;;  %v2509_v33 = vld [vmem:[#allocation2 + $0x90] sm:$0xff] }
 0x438   :  { %13087 = vst [vmem:[#allocation132_spill] sm:$0xff] %v9032_v2  ;;  %5009 = vmatpush.bf16.msra.mxu3 %v3918_v31  ;;  %v1473_v42 = vmul.f32 %v5049_v30, %v9084_v49  ;;  %v1602_v31 = vmul.f32 %v5050_v43, %v9086_v1  ;;  %v1475_v47 = vmul.f32 %v5049_v30, %v1410_v29  ;;  %v2747_v29 = vld [vmem:[#allocation2 + $0x2d9] sm:$0xff]  ;;  %v13132_v2 = vld [vmem:[#allocation178_spill] sm:$0xff] }
 0x439   :  { %13088 = vst [vmem:[#allocation134_spill] sm:$0xff] %v9035_v35 }
 0x43a   :  { %13089 = vst [vmem:[#allocation136_spill] sm:$0xff] %v9038_v41  ;;  %v1666_v53 = vadd.f32 %v1602_v31, %v1473_v42  ;;  %v9148_v42 = vld [vmem:[#allocation2 + $0x32] sm:$0xff]  ;;  %v1734_v31 = vld [vmem:[#allocation2 + $0x4a] sm:$0xff] }
 0x43b   :  { %13090 = vst [vmem:[#allocation139_spill] sm:$0xff] %v9041_v12  ;;  %v2748_v12 = vld [vmem:[#allocation2 + $0x2e9] sm:$0xff]  ;;  %v13130_v41 = vld [vmem:[#allocation156_spill] sm:$0xff] }
 0x43c   :  { %13091 = vst [vmem:[#allocation142_spill] sm:$0xff] %v9044_v20  ;;  %v2179_v60 = vmul.f32 %v13130_v41, %v9086_v1  ;;  %v9192_v1 = vld [vmem:[#allocation2 + $0x51] sm:$0xff] }
 0x43d   :  { %13092 = vst [vmem:[#allocation146_spill] sm:$0xff] %v9047_v61 }
 0x43e   :  { %13093 = vst [vmem:[#allocation150_spill] sm:$0xff] %v9050_v7 }
 0x43f   :  { %13094 = vst [vmem:[#allocation154_spill] sm:$0xff] %v9053_v40  ;;  %v2743_v40 = vld [vmem:[#allocation2 + $0x2a9] sm:$0xff] }
 0x440   :  { %13096 = vst [vmem:[#allocation160_spill] sm:$0xff] %v9057_v23  ;;  %v1540_v23 = vld [vmem:[#allocation2 + $0x39] sm:$0xff] }
 0x441   :  { %13098 = vst [vmem:[#allocation161_spill] sm:$0xff] %v9061_v36  ;;  %v9089_v36 = vmul.f32 %v8990_v54, %v2733_v8  ;;  %v1600_v8 = vmul.f32 %v5050_v43, %v1535_v55  ;;  %v2744_v55 = vld [vmem:[#allocation2 + $0x2b9] sm:$0xff] }
 0x442   :  { %13099 = vst [vmem:[#allocation166_spill] sm:$0xff] %v9064_v9  ;;  %v2741_v9 = vld [vmem:[#allocation2 + $0x291] sm:$0xff] }
 0x443   :  { %13100 = vst [vmem:[#allocation167_spill] sm:$0xff] %v9067_v22  ;;  %v2740_v22 = vld [vmem:[#allocation2 + $0x289] sm:$0xff]  ;;  %v1664_v20 = vadd.f32 %v1600_v8, %v1471_v28 }
 0x444   :  { %13101 = vst [vmem:[#allocation168_spill] sm:$0xff] %v9070_v21  ;;  %v2739_v21 = vld [vmem:[#allocation2 + $0x279] sm:$0xff] }
 0x445   :  { %13102 = vst [vmem:[#allocation169_spill] sm:$0xff] %v9073_v27  ;;  %v9100_v27 = vld [vmem:[#allocation2 + $0x21] sm:$0xff] }
 0x446   :  { %13103 = vst [vmem:[#allocation174_spill] sm:$0xff] %v9076_v51  ;;  %v1472_v51 = vmul.f32 %v5049_v30, %v1407_v17  ;;  %v1728_v17 = vld [vmem:[#allocation2 + $0x2] sm:$0xff]  ;;  %v1603_v61 = vmul.f32 %v5050_v43, %v9100_v27 }
 0x447   :  { %13104 = vst [vmem:[#allocation175_spill] sm:$0xff] %v9079_v63  ;;  %v1409_v63 = vld [vmem:[#allocation2 + $0x20] sm:$0xff] }
 0x448   :  { %13105 = vst [vmem:[#allocation176_spill] sm:$0xff] %v9082_v24  ;;  %v1539_v24 = vld [vmem:[#allocation2 + $0x31] sm:$0xff]  ;;  %v1474_v7 = vmul.f32 %v5049_v30, %v1409_v63 }
 0x449   :  { %13106 = vst [vmem:[#allocation177_spill] sm:$0xff] %v9089_v36  ;;  %v9109_v36 = vmul.f32 %v8990_v54, %v2737_v38  ;;  %v9123_v38 = vmul.f32 %v8990_v54, %v2741_v9  ;;  %v1604_v57 = vmul.f32 %v5050_v43, %v1539_v24  ;;  %v9132_v9 = vmul.f32 %v8990_v54, %v2742_v62 }
 0x44a   :  { %13107 = vst [vmem:[#allocation182_spill] sm:$0xff] %v9092_v34  ;;  %v1601_v34 = vmul.f32 %v5050_v43, %v1536_v14  ;;  %v9117_v14 = vmul.f32 %v8990_v54, %v2739_v21  ;;  %v9135_v24 = vmul.f32 %v8990_v54, %v2743_v40  ;;  %v1667_v62 = vadd.f32 %v1603_v61, %v1474_v7  ;;  %v5052_v61 = vld [vmem:[%s11829_s4 + $0x3] ss:$0 sm:$0xff] }
 0x44b   :  { %13108 = vst [vmem:[#allocation183_spill] sm:$0xff] %v9095_v15  ;;  %v9106_v15 = vmul.f32 %v8990_v54, %v2736_v10  ;;  %v9120_v10 = vmul.f32 %v8990_v54, %v2740_v22  ;;  %v5051_v22 = vld [vmem:[%s11829_s4 + $0x2] ss:$0 sm:$0xff]  ;;  %v1668_v8 = vadd.f32 %v1604_v57, %v1475_v47  ;;  %v1986_v57 = vmul.f32 %v5052_v61, %v9084_v49 }
 0x44c   :  { %13110 = vst [vmem:[#allocation185_spill] sm:$0xff] %v9109_v36  ;;  %v2745_v36 = vld [vmem:[#allocation2 + $0x2c1] sm:$0xff]  ;;  %v1665_v39 = vadd.f32 %v1601_v34, %v1472_v51  ;;  %v1793_v21 = vmul.f32 %v5051_v22, %v1728_v17  ;;  %v9138_v51 = vmul.f32 %v8990_v54, %v2744_v55  ;;  %v1987_v47 = vmul.f32 %v5052_v61, %v1409_v63 }
 0x44d   :  { %13109 = vst [vmem:[#allocation184_spill] sm:$0xff] %v9106_v15  ;;  %v2746_v15 = vld [vmem:[#allocation2 + $0x2d1] sm:$0xff]  ;;  %v9141_v34 = vmul.f32 %v8990_v54, %v2745_v36  ;;  %v9151_v17 = vld [vmem:[#allocation2 + $0x3a] sm:$0xff]  ;;  %v9160_v7 = vmul.f32 %v8990_v54, %v2747_v29  ;;  %v1799_v63 = vmul.f32 %v5051_v22, %v1734_v31 }
 0x44e   :  { %13111 = vst [vmem:[#allocation188_spill] sm:$0xff] %v9114_v19  ;;  %v9126_v19 = vld [vmem:[#allocation2 + $0x1a] sm:$0xff]  ;;  %v9144_v28 = vmul.f32 %v8990_v54, %v2746_v15  ;;  %v1857_v55 = vadd.f32 %v1793_v21, %v1664_v20  ;;  %v9165_v20 = vmul.f32 %v8990_v54, %v2748_v12  ;;  %v1797_v21 = vmul.f32 %v5051_v22, %v9148_v42  ;;  %v9176_v12 = vld [vmem:[#allocation2 + $0x50] sm:$0xff] }
 0x44f   :  { %13112 = vst [vmem:[#allocation189_spill] sm:$0xff] %v9117_v14  ;;  %v1605_v14 = vmul.f32 %v5050_v43, %v1540_v23  ;;  %v13121_v23 = vld [vmem:[#allocation71_spill] sm:$0xff]  ;;  %v1795_v40 = vmul.f32 %v5051_v22, %v9126_v19  ;;  %v1798_v49 = vmul.f32 %v5051_v22, %v9151_v17 }
 0x450   :  { %13113 = vst [vmem:[#allocation190_spill] sm:$0xff] %v9120_v10  ;;  %v1794_v10 = vmul.f32 %v5051_v22, %v1729_v13  ;;  %v2749_v13 = vld [vmem:[#allocation2 + $0x2f1] sm:$0xff] }
 0x451   :  { %13114 = vst [vmem:[#allocation191_spill] sm:$0xff] %v9123_v38  ;;  %v1476_v38 = vmul.f32 %v5049_v30, %v1411_v46  ;;  %v13120_v30 = vld [vmem:[#allocation51_spill] sm:$0xff]  ;;  %v1731_v46 = vld [vmem:[#allocation2 + $0x22] sm:$0xff] }
 0x452   :  { %13115 = vst [vmem:[#allocation193_spill] sm:$0xff] %v9132_v9  ;;  %v1671_v43 = vadd.f32 %v13121_v23, %v13120_v30  ;;  %v1858_v36 = vadd.f32 %v1794_v10, %v1665_v39  ;;  %v13123_v30 = vld [vmem:[#allocation50_spill] sm:$0xff]  ;;  %v9168_v10 = vmul.f32 %v8990_v54, %v2749_v13  ;;  %v1796_v39 = vmul.f32 %v5051_v22, %v1731_v46  ;;  %v13128_v9 = vld [vmem:[#allocation103_spill] sm:$0xff] }
 0x453   :  { %13116 = vst [vmem:[#allocation194_spill] sm:$0xff] %v9135_v24  ;;  %v1669_v15 = vadd.f32 %v1605_v14, %v1476_v38  ;;  %v13124_v23 = vld [vmem:[#allocation70_spill] sm:$0xff]  ;;  %v13127_v24 = vld [vmem:[#allocation20_spill] sm:$0xff]  ;;  %v1865_v22 = vadd.f32 %v13129_v37, %v13128_v9  ;;  %v5055_v37 = vld [vmem:[%s11829_s4 + $0x4] ss:$0 sm:$0xff] }
 0x454   :  { %13117 = vst [vmem:[#allocation195_spill] sm:$0xff] %v9138_v51  ;;  %v1859_v51 = vadd.f32 %v1795_v40, %v1666_v53  ;;  %v1864_v29 = vadd.f32 %v13127_v24, %v1671_v43  ;;  %v9173_v14 = vld [vmem:[#allocation2 + $0x48] sm:$0xff]  ;;  %v1860_v53 = vadd.f32 %v1796_v39, %v1667_v62  ;;  %v1861_v40 = vadd.f32 %v1797_v21, %v1668_v8 }
 0x455   :  { %13118 = vst [vmem:[#allocation196_spill] sm:$0xff] %v9141_v34  ;;  %v9153_v34 = vld [vmem:[#allocation2 + $0x30] sm:$0xff]  ;;  %v2051_v13 = vadd.f32 %v1987_v47, %v1858_v36  ;;  %v1990_v43 = vmul.f32 %v5052_v61, %v9173_v14  ;;  %v2180_v62 = vmul.f32 %v13130_v41, %v9100_v27  ;;  %v1991_v8 = vmul.f32 %v5052_v61, %v9176_v12  ;;  %v9194_v21 = vld [vmem:[#allocation2 + $0x61] sm:$0xff] }
 0x456   :  { %13119 = vst [vmem:[#allocation197_spill] sm:$0xff] %v9144_v28  ;;  %v1670_v28 = vadd.f32 %v13124_v23, %v13123_v30  ;;  %v1988_v38 = vmul.f32 %v5052_v61, %v9153_v34  ;;  %v2050_v30 = vadd.f32 %v1986_v57, %v1857_v55  ;;  %v9178_v23 = vld [vmem:[#allocation2 + $0x31] sm:$0xff]  ;;  %v5053_v55 = vld [vmem:[#allocation2 + $0x60] sm:$0xff]  ;;  %v5054_v57 = vld [vmem:[#allocation2 + $0x68] sm:$0xff] }
 0x457   :  { %13122 = vst [vmem:[#allocation198_spill] sm:$0xff] %v9160_v7  ;;  %v1924_v7 = vld [vmem:[#allocation2 + $0x38] sm:$0xff]  ;;  %v1992_v36 = vmul.f32 %v5053_v55, %v5052_v61  ;;  %v1993_v47 = vmul.f32 %v5054_v57, %v5052_v61  ;;  %v2181_v9 = vmul.f32 %v5055_v37, %v9178_v23  ;;  %v2118_v39 = vld [vmem:[#allocation2 + $0x49] sm:$0xff]  ;;  %v2244_v27 = vadd.f32 %v2180_v62, %v2051_v13 }
 0x458   :  { %13125 = vst [vmem:[#allocation199_spill] sm:$0xff] %v9165_v20  ;;  %v1863_v20 = vadd.f32 %v1799_v63, %v1670_v28  ;;  %v2052_v31 = vadd.f32 %v1988_v38, %v1859_v51  ;;  %v1989_v24 = vmul.f32 %v5052_v61, %v1924_v7  ;;  %v2117_v28 = vld [vmem:[#allocation2 + $0x39] sm:$0xff]  ;;  %v2243_v41 = vadd.f32 %v2179_v60, %v2050_v30  ;;  %v9196_v61 = vld [vmem:[#allocation2 + $0x69] sm:$0xff] }
 0x459   :  { %13126 = vst [vmem:[#allocation200_spill] sm:$0xff] %v9168_v10  ;;  %v1862_v10 = vadd.f32 %v1798_v49, %v1669_v15  ;;  %v2054_v15 = vadd.f32 %v1990_v43, %v1861_v40  ;;  %v2057_v38 = vadd.f32 %v1993_v47, %v1864_v29  ;;  %v13131_v57 = vld [vmem:[#allocation186_spill] sm:$0xff]  ;;  %v2182_v0 = vmul.f32 %v5055_v37, %v2117_v28 }
 0x45a   :  { %v2053_v51 = vadd.f32 %v1989_v24, %v1860_v53  ;;  %v2056_v63 = vadd.f32 %v1992_v36, %v1863_v20  ;;  %v2245_v55 = vadd.f32 %v2181_v9, %v2052_v31  ;;  %v2058_v35 = vadd.f32 %v13131_v57, %v1865_v22  ;;  %v2311_v30 = vld [vmem:[#allocation2 + $0x4a] sm:$0xff]  ;;  %v9209_v47 = vld [vmem:[#allocation2 + $0x62] sm:$0xff] }
 0x45b   :  { %v2055_v49 = vadd.f32 %v1991_v8, %v1862_v10  ;;  %v2372_v53 = vmul.f32 %v13132_v2, %v9126_v19  ;;  %v2373_v40 = vmul.f32 %v13132_v2, %v1731_v46  ;;  %v2183_v24 = vmul.f32 %v5055_v37, %v2118_v39  ;;  %v9207_v19 = vld [vmem:[#allocation2 + $0x52] sm:$0xff]  ;;  %v9211_v9 = vld [vmem:[#allocation2 + $0x6a] sm:$0xff] }
 0x45c   :  { %v2184_v43 = vmul.f32 %v5055_v37, %v9192_v1  ;;  %v2185_v60 = vmul.f32 %v5055_v37, %v9194_v21  ;;  %v2374_v20 = vmul.f32 %v13132_v2, %v9148_v42  ;;  %v2186_v10 = vmul.f32 %v5055_v37, %v9196_v61 }
 0x45d   :  { %v2246_v29 = vadd.f32 %v2182_v0, %v2053_v51  ;;  %v2436_v13 = vadd.f32 %v2372_v53, %v2243_v41  ;;  %v2437_v22 = vadd.f32 %v2373_v40, %v2244_v27  ;;  %v2247_v31 = vadd.f32 %v2183_v24, %v2054_v15  ;;  %v13133_v51 = vld [vmem:[#allocation108_spill] sm:$0xff]  ;;  %v13135_v27 = vld [vmem:[#allocation113_spill] sm:$0xff] }
 0x45e   :  { %v2248_v62 = vadd.f32 %v2184_v43, %v2055_v49  ;;  %v2249_v8 = vadd.f32 %v2185_v60, %v2056_v63  ;;  %v2438_v46 = vadd.f32 %v2374_v20, %v2245_v55  ;;  %v2250_v36 = vadd.f32 %v2186_v10, %v2057_v38  ;;  %v13134_v41 = vld [vmem:[#allocation16_spill] sm:$0xff]  ;;  %v2505_v60 = vld [vmem:[#allocation2 + $0x60] sm:$0xff] }
 0x45f   :  { %v2375_v57 = vmul.f32 %v13132_v2, %v9151_v17  ;;  %v2566_v0 = vmul.f32 %v8741_v44, %v9153_v34  ;;  %v2567_v37 = vmul.f32 %v8741_v44, %v1924_v7  ;;  %v2251_v15 = vadd.f32 %v13133_v51, %v2058_v35  ;;  %v5056_v7 = vld [vmem:[#allocation2 + $0x7a] sm:$0xff]  ;;  %v2506_v51 = vld [vmem:[#allocation2 + $0x68] sm:$0xff] }
 0x460   :  { %v2252_v49 = vadd.f32 %v13135_v27, %v13134_v41  ;;  %v2376_v63 = vmul.f32 %v13132_v2, %v2311_v30  ;;  %v2568_v38 = vmul.f32 %v8741_v44, %v9173_v14  ;;  %v2377_v55 = vmul.f32 %v13132_v2, %v9207_v19  ;;  %v2507_v41 = vld [vmem:[#allocation2 + $0x78] sm:$0xff] }
 0x461   :  { %v2439_v53 = vadd.f32 %v2375_v57, %v2246_v29  ;;  %v2630_v40 = vadd.f32 %v2566_v0, %v2436_v13  ;;  %v2631_v24 = vadd.f32 %v2567_v37, %v2437_v22  ;;  %v2378_v34 = vmul.f32 %v13132_v2, %v9209_v47 }
 0x462   :  { %v2379_v35 = vmul.f32 %v13132_v2, %v9211_v9  ;;  %v2380_v43 = vmul.f32 %v5056_v7, %v13132_v2  ;;  %v2632_v20 = vadd.f32 %v2568_v38, %v2438_v46  ;;  %v2440_v10 = vadd.f32 %v2376_v63, %v2247_v31  ;;  %v13136_v38 = vld [vmem:[#allocation179_spill] sm:$0xff] }
 0x463   :  { %v2569_v14 = vmul.f32 %v8741_v44, %v9176_v12  ;;  %v2759_v29 = vmul.f32 %v8990_v54, %v9178_v23  ;;  %v2760_v13 = vmul.f32 %v8990_v54, %v2117_v28  ;;  %v2441_v22 = vadd.f32 %v2377_v55, %v2248_v62  ;;  %v2508_v23 = vld [vmem:[#allocation2 + $0x80] sm:$0xff]  ;;  %v13138_v55 = vld [vmem:[#allocation180_spill] sm:$0xff] }
 0x464   :  { %v2442_v57 = vadd.f32 %v2378_v34, %v2249_v8  ;;  %v2443_v0 = vadd.f32 %v2379_v35, %v2250_v36  ;;  %v2761_v37 = vmul.f32 %v8990_v54, %v2118_v39  ;;  %v2570_v2 = vmul.f32 %v8741_v44, %v2505_v60  ;;  %v9245_v39 = vld [vmem:[%s11829_s4 + $0x8] ss:$0 sm:$0xff]  ;;  %v2700_v34 = vld [vmem:[#allocation2 + $0x79] sm:$0xff] }
 0x465   :  { %v2633_v27 = vadd.f32 %v2569_v14, %v2439_v53  ;;  %v2823_v46 = vadd.f32 %v2759_v29, %v2630_v40  ;;  %v2824_v31 = vadd.f32 %v2760_v13, %v2631_v24  ;;  %v2444_v63 = vadd.f32 %v2380_v43, %v2251_v15  ;;  %v2510_v15 = vld [vmem:[#allocation2 + $0x98] sm:$0xff] }
 0x466   :  { %v2445_v7 = vadd.f32 %v13136_v38, %v2252_v49  ;;  %v2571_v12 = vmul.f32 %v8741_v44, %v2506_v51  ;;  %v2825_v4 = vadd.f32 %v2761_v37, %v2632_v20  ;;  %v2634_v28 = vadd.f32 %v2570_v2, %v2440_v10  ;;  %v13137_v49 = vld [vmem:[#allocation125_spill] sm:$0xff]  ;;  %v2704_v2 = vld [vmem:[#allocation2 + $0xa9] sm:$0xff] }
 0x467   :  { %v2762_v62 = vmul.f32 %v8990_v54, %v9192_v1  ;;  %v2952_v8 = vmul.f32 %v9245_v39, %v9148_v42  ;;  %v2953_v36 = vmul.f32 %v9245_v39, %v9151_v17  ;;  %v2446_v53 = vadd.f32 %v13138_v55, %v13137_v49 }
 0x468   :  { %v2572_v40 = vmul.f32 %v8741_v44, %v2507_v41  ;;  %v2635_v24 = vadd.f32 %v2571_v12, %v2441_v22  ;;  %v2954_v1 = vmul.f32 %v9245_v39, %v2311_v30  ;;  %v2763_v35 = vmul.f32 %v8990_v54, %v9194_v21  ;;  %v2701_v22 = vld [vmem:[#allocation2 + $0x81] sm:$0xff] }
 0x469   :  { %v2826_v43 = vadd.f32 %v2762_v62, %v2633_v27  ;;  %v9257_v60 = vadd.f32 %v2952_v8, %v2823_v46  ;;  %v9259_v42 = vadd.f32 %v2953_v36, %v2824_v31  ;;  %v2573_v17 = vmul.f32 %v8741_v44, %v2508_v23  ;;  %v2702_v27 = vld [vmem:[#allocation2 + $0x91] sm:$0xff]  ;;  %v2893_v12 = vld [vmem:[#allocation2 + $0x7a] sm:$0xff]  ;;  %v2894_v62 = vld [vmem:[#allocation2 + $0x82] sm:$0xff] }
 0x46a   :  { %v2574_v20 = vmul.f32 %v8741_v44, %v2509_v33  ;;  %v2764_v10 = vmul.f32 %v8990_v54, %v9196_v61  ;;  %v9265_v51 = vadd.f32 %v2954_v1, %v2825_v4  ;;  %v2575_v30 = vmul.f32 %v8741_v44, %v2510_v15  ;;  %v2703_v61 = vld [vmem:[#allocation2 + $0x99] sm:$0xff]  ;;  %v13139_v31 = vld [vmem:[#allocation135_spill] sm:$0xff] }
 0x46b   :  { %v2636_v14 = vadd.f32 %v2572_v40, %v2442_v57  ;;  %v2827_v29 = vadd.f32 %v2763_v35, %v2634_v28  ;;  %v2955_v21 = vmul.f32 %v9245_v39, %v9207_v19  ;;  %v2637_v13 = vadd.f32 %v2573_v17, %v2443_v0  ;;  %v2896_v17 = vld [vmem:[#allocation2 + $0x9a] sm:$0xff] }
 0x46c   :  { %v2765_v37 = vmul.f32 %v8990_v54, %v2700_v34  ;;  %v2828_v41 = vadd.f32 %v2764_v10, %v2635_v24  ;;  %v2956_v33 = vmul.f32 %v9245_v39, %v9209_v47  ;;  %v3082_v44 = vsel %vm155_vm0, %v9257_v60, 0.0 }
 0x46d   :  { %v9273_v4 = vadd.f32 %v2955_v21, %v2826_v43  ;;  %v3083_v57 = vsel %vm155_vm0, %v9259_v42, 0.0  ;;  %v3085_v19 = vsel %vm155_vm0, %v9265_v51, 0.0  ;;  %v2638_v0 = vadd.f32 %v2574_v20, %v2444_v63 }
 0x46e   :  { %v2639_v46 = vadd.f32 %v2575_v30, %v2445_v7  ;;  %v2640_v38 = vadd.f32 %v13139_v31, %v2446_v53  ;;  %v3084_v47 = vadd.f32 %v3083_v57, %v3082_v44  ;;  %v2766_v23 = vmul.f32 %v8990_v54, %v2701_v22  ;;  %v2895_v53 = vld [vmem:[#allocation2 + $0x92] sm:$0xff]  ;;  %v13141_v22 = vld [vmem:[#allocation137_spill] sm:$0xff]  ;;  %v2897_v57 = vld [vmem:[#allocation2 + $0xaa] sm:$0xff] }
 0x46f   :  { %v2829_v28 = vadd.f32 %v2765_v37, %v2636_v14  ;;  %v2957_v8 = vmul.f32 %v9245_v39, %v9211_v9  ;;  %v9285_v36 = vadd.f32 %v2956_v33, %v2827_v29  ;;  %v2767_v15 = vmul.f32 %v8990_v54, %v2702_v27  ;;  %v5058_v29 = vld [vmem:[#allocation2 + $0x301] sm:$0xff] }
 0x470   :  { %v2768_v49 = vmul.f32 %v8990_v54, %v2703_v61  ;;  %v2769_v63 = vmul.f32 %v8990_v54, %v2704_v2  ;;  %v3086_v7 = vadd.f32 %v3085_v19, %v3084_v47  ;;  %v2830_v55 = vadd.f32 %v2766_v23, %v2637_v13  ;;  %v13140_v13 = vld [vmem:[#allocation56_spill] sm:$0xff] }
 0x471   :  { %v2958_v40 = vmul.f32 %v9245_v39, %v2893_v12  ;;  %v9291_v24 = vadd.f32 %v2957_v8, %v2828_v41  ;;  %v3087_v1 = vsel %vm155_vm0, %v9273_v4, 0.0  ;;  %v2831_v34 = vadd.f32 %v2767_v15, %v2638_v0  ;;  %v2898_v47 = vld [vmem:[#allocation2 + $0xb2] sm:$0xff] }
 0x472   :  { %v2959_v9 = vmul.f32 %v9245_v39, %v2894_v62  ;;  %v3088_v35 = vadd.f32 %v3087_v1, %v3086_v7  ;;  %v3215_v43 = vmul.f32 %v9257_v60, %v9257_v60  ;;  %v3089_v10 = vsel %vm155_vm0, %v9285_v36, 0.0  ;;  %v5059_v62 = vld [vmem:[#allocation2 + $0x309] sm:$0xff] }
 0x473   :  { %v9298_v20 = vadd.f32 %v2958_v40, %v2829_v28  ;;  %v3216_v30 = vmul.f32 %v9259_v42, %v9259_v42  ;;  %v3217_v14 = vmul.f32 %v9265_v51, %v9265_v51  ;;  %v9307_v21 = vmul.f32 %v5058_v29, %v8990_v54  ;;  %v2899_v7 = vld [vmem:[#allocation2 + $0xc2] sm:$0xff] }
 0x474   :  { %v2641_v37 = vadd.f32 %v13141_v22, %v13140_v13  ;;  %v2960_v41 = vmul.f32 %v9245_v39, %v2895_v53  ;;  %v3090_v33 = vadd.f32 %v3089_v10, %v3088_v35  ;;  %v2832_v2 = vadd.f32 %v2768_v49, %v2639_v46  ;;  %v2901_v22 = vld [vmem:[#allocation2 + $0xda] sm:$0xff] }
 0x475   :  { %v2833_v27 = vadd.f32 %v2769_v63, %v2640_v38  ;;  %v9312_v61 = vadd.f32 %v2959_v9, %v2830_v55  ;;  %v3091_v44 = vsel %vm155_vm0, %v9291_v24, 0.0  ;;  %v2961_v19 = vmul.f32 %v9245_v39, %v2896_v17 }
 0x476   :  { %v9317_v0 = vadd.f32 %v2960_v41, %v2831_v34  ;;  %v3092_v31 = vadd.f32 %v3091_v44, %v3090_v33  ;;  %v3279_v12 = vsel %vm155_vm0, %v3215_v43, 0.0  ;;  %v3093_v23 = vsel %vm155_vm0, %v9298_v20, 0.0  ;;  %v2900_v43 = vld [vmem:[#allocation2 + $0xca] sm:$0xff] }
 0x477   :  { %v3218_v46 = vmul.f32 %v9273_v4, %v9273_v4  ;;  %v3280_v38 = vsel %vm155_vm0, %v3216_v30, 0.0  ;;  %v3282_v28 = vsel %vm155_vm0, %v3217_v14, 0.0  ;;  %v9327_v8 = vmul.f32 %v5059_v62, %v8990_v54 }
 0x478   :  { %v2834_v15 = vadd.f32 %v8993_v11, %v2641_v37  ;;  %v3094_v49 = vadd.f32 %v3093_v23, %v3092_v31  ;;  %v3281_v63 = vadd.f32 %v3280_v38, %v3279_v12  ;;  %v2962_v55 = vmul.f32 %v9245_v39, %v2897_v57  ;;  %v2902_v57 = vld [vmem:[#allocation2 + $0xe2] sm:$0xff]  ;;  %v2903_v38 = vld [vmem:[#allocation2 + $0xf2] sm:$0xff] }
 0x479   :  { %v9331_v53 = vadd.f32 %v2961_v19, %v2832_v2  ;;  %v3095_v40 = vsel %vm155_vm0, %v9312_v61, 0.0  ;;  %v3219_v1 = vmul.f32 %v9285_v36, %v9285_v36  ;;  %v2835_v34 = vadd.f32 %v9002_v59, %v8829_v48 }
 0x47a   :  { %v2963_v9 = vmul.f32 %v9245_v39, %v2898_v47  ;;  %v3096_v35 = vadd.f32 %v3095_v40, %v3094_v49  ;;  %v3283_v11 = vadd.f32 %v3282_v28, %v3281_v63  ;;  %v9340_v17 = vadd.f32 %v2962_v55, %v2833_v27  ;;  %v2904_v55 = vld [vmem:[#allocation2 + $0xfa] sm:$0xff] }
 0x47b   :  { %v3097_v10 = vsel %vm155_vm0, %v9317_v0, 0.0  ;;  %v3220_v30 = vmul.f32 %v9291_v24, %v9291_v24  ;;  %v3284_v14 = vsel %vm155_vm0, %v3218_v46, 0.0  ;;  %v2836_v29 = vadd.f32 %v9005_v52, %v8833_v32 }
 0x47c   :  { %v2964_v48 = vmul.f32 %v9245_v39, %v2899_v7  ;;  %v3098_v59 = vadd.f32 %v3097_v10, %v3096_v35  ;;  %v3285_v13 = vadd.f32 %v3284_v14, %v3283_v11  ;;  %v9350_v37 = vadd.f32 %v2963_v9, %v2834_v15 }
 0x47d   :  { %v3099_v41 = vsel %vm155_vm0, %v9331_v53, 0.0  ;;  %v3221_v33 = vmul.f32 %v9298_v20, %v9298_v20  ;;  %v3286_v2 = vsel %vm155_vm0, %v3219_v1, 0.0  ;;  %v2837_v27 = vadd.f32 %v9008_v45, %v8837_v18 }
 0x47e   :  { %v2965_v32 = vmul.f32 %v9245_v39, %v2900_v43  ;;  %v3100_v52 = vadd.f32 %v3099_v41, %v3098_v59  ;;  %v3287_v44 = vadd.f32 %v3286_v2, %v3285_v13  ;;  %v9360_v19 = vadd.f32 %v2964_v48, %v2835_v34  ;;  %v2905_v43 = vld [vmem:[#allocation2 + $0x10a] sm:$0xff]  ;;  %v2906_v13 = vld [vmem:[#allocation2 + $0x112] sm:$0xff] }
 0x47f   :  { %v3101_v31 = vsel %vm155_vm0, %v9340_v17, 0.0  ;;  %v3222_v12 = vmul.f32 %v9312_v61, %v9312_v61  ;;  %v3288_v47 = vsel %vm155_vm0, %v3220_v30, 0.0  ;;  %v2838_v23 = vadd.f32 %v9011_v58, %v8841_v50 }
 0x480   :  { %v2966_v18 = vmul.f32 %v9245_v39, %v2901_v22  ;;  %v3102_v45 = vadd.f32 %v3101_v31, %v3100_v52  ;;  %v3289_v46 = vadd.f32 %v3288_v47, %v3287_v44  ;;  %v9370_v28 = vadd.f32 %v2965_v32, %v2836_v29  ;;  %v2907_v44 = vld [vmem:[#allocation2 + $0x122] sm:$0xff] }
 0x481   :  { %v3103_v62 = vsel %vm155_vm0, %v9350_v37, 0.0  ;;  %v3223_v15 = vmul.f32 %v9317_v0, %v9317_v0  ;;  %v3290_v49 = vsel %vm155_vm0, %v3221_v33, 0.0  ;;  %v2839_v63 = vadd.f32 %v9014_v6, %v8845_v26 }
 0x482   :  { %v2967_v50 = vmul.f32 %v9245_v39, %v2902_v57  ;;  %v3104_v58 = vadd.f32 %v3103_v62, %v3102_v45  ;;  %v3291_v7 = vadd.f32 %v3290_v49, %v3289_v46  ;;  %v9380_v40 = vadd.f32 %v2966_v18, %v2837_v27  ;;  %v13144_v27 = vld [vmem:[#allocation129_spill] sm:$0xff]  ;;  %v13147_v18 = vld [vmem:[#allocation132_spill] sm:$0xff]  ;;  %v2908_v62 = vld [vmem:[#allocation2 + $0x12a] sm:$0xff] }
 0x483   :  { %v3105_v1 = vsel %vm155_vm0, %v9360_v19, 0.0  ;;  %v3224_v34 = vmul.f32 %v9331_v53, %v9331_v53  ;;  %v3292_v9 = vsel %vm155_vm0, %v3222_v12, 0.0  ;;  %v2840_v35 = vadd.f32 %v9017_v5, %v8849_v3 }
 0x484   :  { %v2968_v26 = vmul.f32 %v9245_v39, %v2903_v38  ;;  %v3106_v6 = vadd.f32 %v3105_v1, %v3104_v58  ;;  %v3293_v11 = vadd.f32 %v3292_v9, %v3291_v7  ;;  %v9390_v10 = vadd.f32 %v2967_v50, %v2838_v23  ;;  %v13146_v23 = vld [vmem:[#allocation143_spill] sm:$0xff]  ;;  %v13150_v7 = vld [vmem:[#allocation134_spill] sm:$0xff] }
 0x485   :  { %v3107_v30 = vsel %vm155_vm0, %v9370_v28, 0.0  ;;  %v3225_v14 = vmul.f32 %v9340_v17, %v9340_v17  ;;  %v3294_v29 = vsel %vm155_vm0, %v3223_v15, 0.0  ;;  %v2841_v48 = vadd.f32 %v9020_v25, %v8853_v56  ;;  %v13149_v58 = vld [vmem:[#allocation147_spill] sm:$0xff] }
 0x486   :  { %13142 = vst [vmem:[#allocation201_spill] sm:$0xff] %v9390_v10  ;;  %v2969_v3 = vmul.f32 %v9245_v39, %v2904_v55  ;;  %v3108_v5 = vadd.f32 %v3107_v30, %v3106_v6  ;;  %v3295_v59 = vadd.f32 %v3294_v29, %v3293_v11  ;;  %v9400_v22 = vadd.f32 %v2968_v26, %v2839_v63  ;;  %v13152_v30 = vld [vmem:[#allocation151_spill] sm:$0xff] }
 0x487   :  { %v3109_v41 = vsel %vm155_vm0, %v9380_v40, 0.0  ;;  %v3226_v33 = vmul.f32 %v9350_v37, %v9350_v37  ;;  %v3296_v2 = vsel %vm155_vm0, %v3224_v34, 0.0  ;;  %v2842_v32 = vadd.f32 %v13144_v27, %v8857_v16  ;;  %v13155_v27 = vld [vmem:[#allocation155_spill] sm:$0xff] }
 0x488   :  { %13143 = vst [vmem:[#allocation202_spill] sm:$0xff] %v9400_v22  ;;  %v2970_v56 = vmul.f32 %v9245_v39, %v2905_v43  ;;  %v3110_v25 = vadd.f32 %v3109_v41, %v3108_v5  ;;  %v3297_v52 = vadd.f32 %v3296_v2, %v3295_v59  ;;  %v9410_v57 = vadd.f32 %v2969_v3, %v2840_v35  ;;  %v2909_v35 = vld [vmem:[#allocation2 + $0x13a] sm:$0xff]  ;;  %v2910_v59 = vld [vmem:[#allocation2 + $0x142] sm:$0xff] }
 0x489   :  { %v3111_v31 = vsel %vm155_vm0, %v9390_v10, 0.0  ;;  %v3227_v12 = vmul.f32 %v9360_v19, %v9360_v19  ;;  %v3298_v47 = vsel %vm155_vm0, %v3225_v14, 0.0  ;;  %v2843_v45 = vadd.f32 %v13147_v18, %v13146_v23  ;;  %v13153_v14 = vld [vmem:[#allocation136_spill] sm:$0xff] }
 0x48a   :  { %13145 = vst [vmem:[#allocation203_spill] sm:$0xff] %v9410_v57  ;;  %v2971_v16 = vmul.f32 %v9245_v39, %v2906_v13  ;;  %v3112_v46 = vadd.f32 %v3111_v31, %v3110_v25  ;;  %v3299_v38 = vadd.f32 %v3298_v47, %v3297_v52  ;;  %v9420_v15 = vadd.f32 %v2970_v56, %v2841_v48  ;;  %v2911_v31 = vld [vmem:[#allocation2 + $0x152] sm:$0xff] }
 0x48b   :  { %v3113_v49 = vsel %vm155_vm0, %v9400_v22, 0.0  ;;  %v3228_v63 = vmul.f32 %v9370_v28, %v9370_v28  ;;  %v3300_v50 = vsel %vm155_vm0, %v3226_v33, 0.0  ;;  %v2844_v55 = vadd.f32 %v13150_v7, %v13149_v58 }
 0x48c   :  { %13148 = vst [vmem:[#allocation204_spill] sm:$0xff] %v9420_v15  ;;  %v2972_v1 = vmul.f32 %v9245_v39, %v2907_v44  ;;  %v3114_v34 = vadd.f32 %v3113_v49, %v3112_v46  ;;  %v3301_v9 = vadd.f32 %v3300_v50, %v3299_v38  ;;  %v9430_v26 = vadd.f32 %v2971_v16, %v2842_v32  ;;  %v13156_v32 = vld [vmem:[#allocation139_spill] sm:$0xff]  ;;  %v13159_v16 = vld [vmem:[#allocation142_spill] sm:$0xff] }
 0x48d   :  { %v3115_v6 = vsel %vm155_vm0, %v9410_v57, 0.0  ;;  %v3229_v11 = vmul.f32 %v9380_v40, %v9380_v40  ;;  %v3302_v43 = vsel %vm155_vm0, %v3227_v12, 0.0  ;;  %v2845_v29 = vadd.f32 %v13153_v14, %v13152_v30 }
 0x48e   :  { %13151 = vst [vmem:[#allocation205_spill] sm:$0xff] %v9430_v26  ;;  %v2973_v48 = vmul.f32 %v9245_v39, %v2908_v62  ;;  %v3116_v3 = vadd.f32 %v3115_v6, %v3114_v34  ;;  %v3303_v5 = vadd.f32 %v3302_v43, %v3301_v9  ;;  %v9440_v13 = vadd.f32 %v2972_v1, %v2843_v45  ;;  %v13158_v45 = vld [vmem:[#allocation157_spill] sm:$0xff]  ;;  %v13161_v1 = vld [vmem:[#allocation18_spill] sm:$0xff] }
 0x48f   :  { %v3117_v41 = vsel %vm155_vm0, %v9420_v15, 0.0  ;;  %v3230_v33 = vmul.f32 %v9390_v10, %v9390_v10  ;;  %v3304_v2 = vsel %vm155_vm0, %v3228_v63, 0.0  ;;  %v2846_v56 = vadd.f32 %v13156_v32, %v13155_v27  ;;  %v2912_v63 = vld [vmem:[#allocation2 + $0x15a] sm:$0xff]  ;;  %v13162_v34 = vld [vmem:[#allocation146_spill] sm:$0xff]  ;;  %v2914_v27 = vld [vmem:[#allocation2 + $0x172] sm:$0xff] }
 0x490   :  { %13154 = vst [vmem:[#allocation209_spill] sm:$0xff] %v9440_v13  ;;  %v2974_v25 = vmul.f32 %v9245_v39, %v2909_v35  ;;  %v3118_v52 = vadd.f32 %v3117_v41, %v3116_v3  ;;  %v3305_v44 = vadd.f32 %v3304_v2, %v3303_v5  ;;  %v9450_v12 = vadd.f32 %v2973_v48, %v2844_v55  ;;  %v2913_v43 = vld [vmem:[#allocation2 + $0x16a] sm:$0xff] }
 0x491   :  { %v3119_v47 = vsel %vm155_vm0, %v9430_v26, 0.0  ;;  %v3231_v23 = vmul.f32 %v9400_v22, %v9400_v22  ;;  %v3306_v18 = vsel %vm155_vm0, %v3229_v11, 0.0  ;;  %v2847_v46 = vadd.f32 %v13159_v16, %v13158_v45  ;;  %v13164_v3 = vld [vmem:[#allocation27_spill] sm:$0xff]  ;;  %v13165_v5 = vld [vmem:[#allocation150_spill] sm:$0xff] }
 0x492   :  { %13157 = vst [vmem:[#allocation210_spill] sm:$0xff] %v9450_v12  ;;  %v2975_v38 = vmul.f32 %v9245_v39, %v2910_v59  ;;  %v3120_v62 = vadd.f32 %v3119_v47, %v3118_v52  ;;  %v3307_v49 = vadd.f32 %v3306_v18, %v3305_v44  ;;  %v9460_v50 = vadd.f32 %v2974_v25, %v2845_v29  ;;  %v13167_v44 = vld [vmem:[#allocation10_spill] sm:$0xff] }
 0x493   :  { %v3121_v58 = vsel %vm155_vm0, %v9440_v13, 0.0  ;;  %v3232_v7 = vmul.f32 %v9410_v57, %v9410_v57  ;;  %v3308_v55 = vsel %vm155_vm0, %v3230_v33, 0.0  ;;  %v2848_v9 = vadd.f32 %v13162_v34, %v13161_v1 }
 0x494   :  { %13160 = vst [vmem:[#allocation211_spill] sm:$0xff] %v9460_v50  ;;  %v2976_v35 = vmul.f32 %v9245_v39, %v2911_v31  ;;  %v3122_v6 = vadd.f32 %v3121_v58, %v3120_v62  ;;  %v3309_v11 = vadd.f32 %v3308_v55, %v3307_v49  ;;  %v9470_v30 = vadd.f32 %v2975_v38, %v2846_v56  ;;  %v13168_v31 = vld [vmem:[#allocation154_spill] sm:$0xff]  ;;  %v13170_v49 = vld [vmem:[#allocation29_spill] sm:$0xff] }
 0x495   :  { %v3123_v14 = vsel %vm155_vm0, %v9450_v12, 0.0  ;;  %v3233_v29 = vmul.f32 %v9420_v15, %v9420_v15  ;;  %v3310_v48 = vsel %vm155_vm0, %v3231_v23, 0.0  ;;  %v2849_v59 = vadd.f32 %v13165_v5, %v13164_v3 }
 0x496   :  { %13163 = vst [vmem:[#allocation212_spill] sm:$0xff] %v9470_v30  ;;  %v2977_v41 = vmul.f32 %v9245_v39, %v2912_v63  ;;  %v3124_v33 = vadd.f32 %v3123_v14, %v3122_v6  ;;  %v3311_v2 = vadd.f32 %v3310_v48, %v3309_v11  ;;  %v9480_v32 = vadd.f32 %v2976_v35, %v2847_v46  ;;  %v13171_v63 = vld [vmem:[#allocation160_spill] sm:$0xff]  ;;  %v13173_v11 = vld [vmem:[#allocation31_spill] sm:$0xff] }
 0x497   :  { %v3125_v56 = vsel %vm155_vm0, %v9460_v50, 0.0  ;;  %v3234_v25 = vmul.f32 %v9430_v26, %v9430_v26  ;;  %v3312_v52 = vsel %vm155_vm0, %v3232_v7, 0.0  ;;  %v2850_v47 = vadd.f32 %v13168_v31, %v13167_v44 }
 0x498   :  { %13166 = vst [vmem:[#allocation213_spill] sm:$0xff] %v9480_v32  ;;  %v2978_v23 = vmul.f32 %v9245_v39, %v2913_v43  ;;  %v3126_v18 = vadd.f32 %v3125_v56, %v3124_v33  ;;  %v3313_v45 = vadd.f32 %v3312_v52, %v3311_v2  ;;  %v9490_v16 = vadd.f32 %v2977_v41, %v2848_v9  ;;  %v13174_v43 = vld [vmem:[#allocation161_spill] sm:$0xff]  ;;  %v13177_v56 = vld [vmem:[#allocation30_spill] sm:$0xff] }
 0x499   :  { %v3127_v46 = vsel %vm155_vm0, %v9470_v30, 0.0  ;;  %v3235_v38 = vmul.f32 %v9440_v13, %v9440_v13  ;;  %v3314_v62 = vsel %vm155_vm0, %v3233_v29, 0.0  ;;  %v2851_v58 = vadd.f32 %v13171_v63, %v13170_v49  ;;  %v5060_v29 = vld [vmem:[#allocation2 + $0x182] sm:$0xff]  ;;  %v5061_v52 = vld [vmem:[#allocation2 + $0x18a] sm:$0xff]  ;;  %v13180_v63 = vld [vmem:[#allocation32_spill] sm:$0xff] }
 0x49a   :  { %13169 = vst [vmem:[#allocation214_spill] sm:$0xff] %v9490_v16  ;;  %v2979_v7 = vmul.f32 %v9245_v39, %v2914_v27  ;;  %v3128_v55 = vadd.f32 %v3127_v46, %v3126_v18  ;;  %v3315_v1 = vadd.f32 %v3314_v62, %v3313_v45  ;;  %v9500_v34 = vadd.f32 %v2978_v23, %v2849_v59  ;;  %v13176_v27 = vld [vmem:[#allocation14_spill] sm:$0xff]  ;;  %v5062_v62 = vld [vmem:[#allocation2 + $0x319] sm:$0xff]  ;;  %v13179_v49 = vld [vmem:[#allocation15_spill] sm:$0xff] }
 0x49b   :  { %v3129_v9 = vsel %vm155_vm0, %v9480_v32, 0.0  ;;  %v3236_v35 = vmul.f32 %v9450_v12, %v9450_v12  ;;  %v3316_v6 = vsel %vm155_vm0, %v3234_v25, 0.0  ;;  %v2852_v14 = vadd.f32 %v13174_v43, %v13173_v11  ;;  %v5063_v43 = vld [vmem:[#allocation2 + $0x321] sm:$0xff] }
 0x49c   :  { %13172 = vst [vmem:[#allocation215_spill] sm:$0xff] %v9500_v34  ;;  %v2980_v48 = vmul.f32 %v5060_v29, %v9245_v39  ;;  %v3130_v3 = vadd.f32 %v3129_v9, %v3128_v55  ;;  %v3317_v5 = vadd.f32 %v3316_v6, %v3315_v1  ;;  %v9510_v41 = vadd.f32 %v2979_v7, %v2850_v47  ;;  %v2919_v9 = vld [vmem:[#allocation2 + $0x1e2] sm:$0xff] }
 0x49d   :  { %v3131_v59 = vsel %vm155_vm0, %v9490_v16, 0.0  ;;  %v3237_v33 = vmul.f32 %v9460_v50, %v9460_v50  ;;  %v3318_v2 = vsel %vm155_vm0, %v3235_v38, 0.0  ;;  %v2853_v25 = vadd.f32 %v13177_v56, %v13176_v27  ;;  %v2920_v27 = vld [vmem:[#allocation2 + $0x1ea] sm:$0xff] }
 0x49e   :  { %13175 = vst [vmem:[#allocation216_spill] sm:$0xff] %v9510_v41  ;;  %v2981_v44 = vmul.f32 %v5061_v52, %v9245_v39  ;;  %v3132_v31 = vadd.f32 %v3131_v59, %v3130_v3  ;;  %v3319_v23 = vadd.f32 %v3318_v2, %v3317_v5  ;;  %v9520_v18 = vadd.f32 %v2980_v48, %v2851_v58  ;;  %v13182_v48 = vld [vmem:[#allocation17_spill] sm:$0xff]  ;;  %v13183_v3 = vld [vmem:[#allocation166_spill] sm:$0xff] }
 0x49f   :  { %v3133_v47 = vsel %vm155_vm0, %v9500_v34, 0.0  ;;  %v3238_v45 = vmul.f32 %v9470_v30, %v9470_v30  ;;  %v3320_v46 = vsel %vm155_vm0, %v3236_v35, 0.0  ;;  %v9528_v38 = vmul.f32 %v5062_v62, %v8990_v54 }
 0x4a0   :  { %13178 = vst [vmem:[#allocation217_spill] sm:$0xff] %v9520_v18  ;;  %v2854_v7 = vadd.f32 %v13180_v63, %v13179_v49  ;;  %v3134_v55 = vadd.f32 %v3133_v47, %v3132_v31  ;;  %v3321_v1 = vadd.f32 %v3320_v46, %v3319_v23  ;;  %v9532_v58 = vadd.f32 %v2981_v44, %v2852_v14  ;;  %v13184_v14 = vld [vmem:[#allocation34_spill] sm:$0xff]  ;;  %v13186_v31 = vld [vmem:[#allocation19_spill] sm:$0xff]  ;;  %v2921_v49 = vld [vmem:[#allocation2 + $0x1fa] sm:$0xff] }
 0x4a1   :  { %v3135_v6 = vsel %vm155_vm0, %v9510_v41, 0.0  ;;  %v3239_v11 = vmul.f32 %v9480_v32, %v9480_v32  ;;  %v3322_v35 = vsel %vm155_vm0, %v3237_v33, 0.0  ;;  %v9540_v29 = vmul.f32 %v5063_v43, %v8990_v54  ;;  %v13187_v54 = vld [vmem:[#allocation167_spill] sm:$0xff]  ;;  %v13188_v63 = vld [vmem:[#allocation36_spill] sm:$0xff] }
 0x4a2   :  { %13181 = vst [vmem:[#allocation218_spill] sm:$0xff] %v9532_v58  ;;  %v2855_v5 = vadd.f32 %v13183_v3, %v13182_v48  ;;  %v3136_v59 = vadd.f32 %v3135_v6, %v3134_v55  ;;  %v3323_v2 = vadd.f32 %v3322_v35, %v3321_v1  ;;  %v9545_v56 = vadd.f32 %v13184_v14, %v2853_v25  ;;  %v13191_v35 = vld [vmem:[#allocation168_spill] sm:$0xff] }
 0x4a3   :  { %v3137_v52 = vsel %vm155_vm0, %v9520_v18, 0.0  ;;  %v3240_v44 = vmul.f32 %v9490_v16, %v9490_v16  ;;  %v3324_v33 = vsel %vm155_vm0, %v3238_v45, 0.0  ;;  %v2856_v23 = vadd.f32 %v13187_v54, %v13186_v31  ;;  %v13190_v45 = vld [vmem:[#allocation42_spill] sm:$0xff] }
 0x4a4   :  { %13185 = vst [vmem:[#allocation219_spill] sm:$0xff] %v9545_v56  ;;  %v2984_v47 = vmul.f32 %v9245_v39, %v2919_v9  ;;  %v3138_v46 = vadd.f32 %v3137_v52, %v3136_v59  ;;  %v3325_v62 = vadd.f32 %v3324_v33, %v3323_v2  ;;  %v9556_v55 = vadd.f32 %v13188_v63, %v2854_v7  ;;  %v2922_v59 = vld [vmem:[#allocation2 + $0x202] sm:$0xff]  ;;  %v13192_v33 = vld [vmem:[#allocation43_spill] sm:$0xff] }
 0x4a5   :  { %v3139_v25 = vsel %vm155_vm0, %v9532_v58, 0.0  ;;  %v3241_v1 = vmul.f32 %v9500_v34, %v9500_v34  ;;  %v3326_v6 = vsel %vm155_vm0, %v3239_v11, 0.0  ;;  %v2857_v43 = vadd.f32 %v13191_v35, %v13190_v45  ;;  %v13193_v11 = vld [vmem:[#allocation169_spill] sm:$0xff] }
 0x4a6   :  { %13189 = vst [vmem:[#allocation220_spill] sm:$0xff] %v9556_v55  ;;  %v2985_v48 = vmul.f32 %v9245_v39, %v2920_v27  ;;  %v3140_v9 = vadd.f32 %v3139_v25, %v3138_v46  ;;  %v3327_v3 = vadd.f32 %v3326_v6, %v3325_v62  ;;  %v9566_v2 = vadd.f32 %v2984_v47, %v2855_v5  ;;  %v2923_v46 = vld [vmem:[#allocation2 + $0x212] sm:$0xff] }
 0x4a7   :  { %v3141_v7 = vsel %vm155_vm0, %v9545_v56, 0.0  ;;  %v3242_v14 = vmul.f32 %v9510_v41, %v9510_v41  ;;  %v3328_v52 = vsel %vm155_vm0, %v3240_v44, 0.0  ;;  %v2858_v31 = vadd.f32 %v13193_v11, %v13192_v33  ;;  %v13194_v6 = vld [vmem:[#allocation44_spill] sm:$0xff]  ;;  %v13195_v44 = vld [vmem:[#allocation174_spill] sm:$0xff] }
 0x4a8   :  { %v2986_v54 = vmul.f32 %v9245_v39, %v2921_v49  ;;  %v3142_v63 = vadd.f32 %v3141_v7, %v3140_v9  ;;  %v3329_v27 = vadd.f32 %v3328_v52, %v3327_v3  ;;  %v9576_v62 = vadd.f32 %v2985_v48, %v2856_v23  ;;  %v2924_v9 = vld [vmem:[#allocation2 + $0x21a] sm:$0xff] }
 0x4a9   :  { %v3143_v5 = vsel %vm155_vm0, %v9556_v55, 0.0  ;;  %v3243_v47 = vmul.f32 %v9520_v18, %v9520_v18  ;;  %v3330_v25 = vsel %vm155_vm0, %v3241_v1, 0.0  ;;  %v2859_v45 = vadd.f32 %v13195_v44, %v13194_v6  ;;  %v13196_v52 = vld [vmem:[#allocation45_spill] sm:$0xff]  ;;  %v13197_v1 = vld [vmem:[#allocation175_spill] sm:$0xff] }
 0x4aa   :  { %v2987_v35 = vmul.f32 %v9245_v39, %v2922_v59  ;;  %v3144_v33 = vadd.f32 %v3143_v5, %v3142_v63  ;;  %v3331_v49 = vadd.f32 %v3330_v25, %v3329_v27  ;;  %v9586_v3 = vadd.f32 %v2986_v54, %v2857_v43  ;;  %v2925_v63 = vld [vmem:[#allocation2 + $0x22a] sm:$0xff] }
 0x4ab   :  { %v3145_v23 = vsel %vm155_vm0, %v9566_v2, 0.0  ;;  %v3244_v48 = vmul.f32 %v9532_v58, %v9532_v58  ;;  %v3332_v7 = vsel %vm155_vm0, %v3242_v14, 0.0  ;;  %v2860_v11 = vadd.f32 %v13197_v1, %v13196_v52  ;;  %v13198_v25 = vld [vmem:[#allocation46_spill] sm:$0xff]  ;;  %v13199_v14 = vld [vmem:[#allocation176_spill] sm:$0xff] }
 0x4ac   :  { %v2988_v6 = vmul.f32 %v9245_v39, %v2923_v46  ;;  %v3146_v44 = vadd.f32 %v3145_v23, %v3144_v33  ;;  %v3333_v59 = vadd.f32 %v3332_v7, %v3331_v49  ;;  %v9596_v27 = vadd.f32 %v2987_v35, %v2858_v31  ;;  %v2926_v33 = vld [vmem:[#allocation2 + $0x232] sm:$0xff] }
 0x4ad   :  { %v3147_v43 = vsel %vm155_vm0, %v9576_v62, 0.0  ;;  %v3245_v54 = vmul.f32 %v9545_v56, %v9545_v56  ;;  %v3334_v5 = vsel %vm155_vm0, %v3243_v47, 0.0  ;;  %v2861_v58 = vadd.f32 %v13199_v14, %v13198_v25  ;;  %v13200_v7 = vld [vmem:[#allocation47_spill] sm:$0xff]  ;;  %v13201_v47 = vld [vmem:[#allocation177_spill] sm:$0xff] }
 0x4ae   :  { %v2989_v52 = vmul.f32 %v9245_v39, %v2924_v9  ;;  %v3148_v1 = vadd.f32 %v3147_v43, %v3146_v44  ;;  %v3335_v46 = vadd.f32 %v3334_v5, %v3333_v59  ;;  %v9606_v49 = vadd.f32 %v2988_v6, %v2859_v45  ;;  %v2927_v44 = vld [vmem:[#allocation2 + $0x242] sm:$0xff]  ;;  %v13202_v5 = vld [vmem:[#allocation48_spill] sm:$0xff] }
 0x4af   :  { %v3149_v31 = vsel %vm155_vm0, %v9586_v3, 0.0  ;;  %v3246_v35 = vmul.f32 %v9556_v55, %v9556_v55  ;;  %v3336_v23 = vsel %vm155_vm0, %v3244_v48, 0.0  ;;  %v2862_v56 = vadd.f32 %v13201_v47, %v13200_v7  ;;  %v13203_v48 = vld [vmem:[#allocation182_spill] sm:$0xff] }
 0x4b0   :  { %v2990_v25 = vmul.f32 %v9245_v39, %v2925_v63  ;;  %v3150_v14 = vadd.f32 %v3149_v31, %v3148_v1  ;;  %v3337_v9 = vadd.f32 %v3336_v23, %v3335_v46  ;;  %v9616_v59 = vadd.f32 %v2989_v52, %v2860_v11  ;;  %v2928_v1 = vld [vmem:[#allocation2 + $0x24a] sm:$0xff]  ;;  %v13204_v23 = vld [vmem:[#allocation49_spill] sm:$0xff] }
 0x4b1   :  { %v3151_v45 = vsel %vm155_vm0, %v9596_v27, 0.0  ;;  %v3247_v6 = vmul.f32 %v9566_v2, %v9566_v2  ;;  %v3338_v43 = vsel %vm155_vm0, %v3245_v54, 0.0  ;;  %v2863_v55 = vadd.f32 %v13203_v48, %v13202_v5  ;;  %v13205_v54 = vld [vmem:[#allocation183_spill] sm:$0xff] }
 0x4b2   :  { %v2991_v7 = vmul.f32 %v9245_v39, %v2926_v33  ;;  %v3152_v47 = vadd.f32 %v3151_v45, %v3150_v14  ;;  %v3339_v63 = vadd.f32 %v3338_v43, %v3337_v9  ;;  %v9626_v46 = vadd.f32 %v2990_v25, %v2861_v58  ;;  %v2929_v14 = vld [vmem:[#allocation2 + $0x25a] sm:$0xff] }
 0x4b3   :  { %v3153_v11 = vsel %vm155_vm0, %v9606_v49, 0.0  ;;  %v3248_v52 = vmul.f32 %v9576_v62, %v9576_v62  ;;  %v3340_v31 = vsel %vm155_vm0, %v3246_v35, 0.0  ;;  %v2864_v18 = vadd.f32 %v13205_v54, %v13204_v23  ;;  %v13206_v43 = vld [vmem:[#allocation52_spill] sm:$0xff] }
 0x4b4   :  { %v2992_v5 = vmul.f32 %v9245_v39, %v2927_v44  ;;  %v3154_v48 = vadd.f32 %v3153_v11, %v3152_v47  ;;  %v3341_v33 = vadd.f32 %v3340_v31, %v3339_v63  ;;  %v9636_v9 = vadd.f32 %v2991_v7, %v2862_v56  ;;  %v13207_v35 = vld [vmem:[#allocation184_spill] sm:$0xff]  ;;  %v2930_v47 = vld [vmem:[#allocation2 + $0x262] sm:$0xff] }
 0x4b5   :  { %v3155_v58 = vsel %vm155_vm0, %v9616_v59, 0.0  ;;  %v3249_v25 = vmul.f32 %v9586_v3, %v9586_v3  ;;  %v3342_v45 = vsel %vm155_vm0, %v3247_v6, 0.0  ;;  %v2865_v41 = vadd.f32 %v13207_v35, %v13206_v43  ;;  %v13208_v31 = vld [vmem:[#allocation53_spill] sm:$0xff] }
 0x4b6   :  { %v2993_v23 = vmul.f32 %v9245_v39, %v2928_v1  ;;  %v3156_v54 = vadd.f32 %v3155_v58, %v3154_v48  ;;  %v3343_v44 = vadd.f32 %v3342_v45, %v3341_v33  ;;  %v9646_v63 = vadd.f32 %v2992_v5, %v2863_v55  ;;  %v13209_v6 = vld [vmem:[#allocation185_spill] sm:$0xff]  ;;  %v2931_v48 = vld [vmem:[#allocation2 + $0x272] sm:$0xff]  ;;  %v13210_v45 = vld [vmem:[#allocation62_spill] sm:$0xff] }
 0x4b7   :  { %v3157_v56 = vsel %vm155_vm0, %v9626_v46, 0.0  ;;  %v3250_v7 = vmul.f32 %v9596_v27, %v9596_v27  ;;  %v3344_v11 = vsel %vm155_vm0, %v3248_v52, 0.0  ;;  %v2866_v34 = vadd.f32 %v13209_v6, %v13208_v31  ;;  %v13211_v52 = vld [vmem:[#allocation188_spill] sm:$0xff] }
 0x4b8   :  { %v2994_v43 = vmul.f32 %v9245_v39, %v2929_v14  ;;  %v3158_v35 = vadd.f32 %v3157_v56, %v3156_v54  ;;  %v3345_v1 = vadd.f32 %v3344_v11, %v3343_v44  ;;  %v9656_v33 = vadd.f32 %v2993_v23, %v2864_v18  ;;  %v2932_v54 = vld [vmem:[#allocation2 + $0x27a] sm:$0xff] }
 0x4b9   :  { %v3159_v55 = vsel %vm155_vm0, %v9636_v9, 0.0  ;;  %v3251_v5 = vmul.f32 %v9606_v49, %v9606_v49  ;;  %v3346_v58 = vsel %vm155_vm0, %v3249_v25, 0.0  ;;  %v2867_v16 = vadd.f32 %v13211_v52, %v13210_v45  ;;  %v13212_v11 = vld [vmem:[#allocation65_spill] sm:$0xff] }
 0x4ba   :  { %v2995_v31 = vmul.f32 %v9245_v39, %v2930_v47  ;;  %v3160_v6 = vadd.f32 %v3159_v55, %v3158_v35  ;;  %v3347_v14 = vadd.f32 %v3346_v58, %v3345_v1  ;;  %v9666_v44 = vadd.f32 %v2994_v43, %v2865_v41  ;;  %v13213_v25 = vld [vmem:[#allocation189_spill] sm:$0xff]  ;;  %v2933_v35 = vld [vmem:[#allocation2 + $0x28a] sm:$0xff]  ;;  %v13214_v58 = vld [vmem:[#allocation72_spill] sm:$0xff] }
 0x4bb   :  { %v3161_v18 = vsel %vm155_vm0, %v9646_v63, 0.0  ;;  %v3252_v23 = vmul.f32 %v9616_v59, %v9616_v59  ;;  %v3348_v56 = vsel %vm155_vm0, %v3250_v7, 0.0  ;;  %v2868_v32 = vadd.f32 %v13213_v25, %v13212_v11  ;;  %v13215_v7 = vld [vmem:[#allocation190_spill] sm:$0xff] }
 0x4bc   :  { %v2996_v45 = vmul.f32 %v9245_v39, %v2931_v48  ;;  %v3162_v52 = vadd.f32 %v3161_v18, %v3160_v6  ;;  %v3349_v47 = vadd.f32 %v3348_v56, %v3347_v14  ;;  %v9676_v1 = vadd.f32 %v2995_v31, %v2866_v34  ;;  %v2934_v6 = vld [vmem:[#allocation2 + $0x292] sm:$0xff] }
 0x4bd   :  { %v3163_v41 = vsel %vm155_vm0, %v9656_v33, 0.0  ;;  %v3253_v43 = vmul.f32 %v9626_v46, %v9626_v46  ;;  %v3350_v55 = vsel %vm155_vm0, %v3251_v5, 0.0  ;;  %v2869_v30 = vadd.f32 %v13215_v7, %v13214_v58  ;;  %v13216_v56 = vld [vmem:[#allocation75_spill] sm:$0xff] }
 0x4be   :  { %v2997_v11 = vmul.f32 %v9245_v39, %v2932_v54  ;;  %v3164_v25 = vadd.f32 %v3163_v41, %v3162_v52  ;;  %v3351_v48 = vadd.f32 %v3350_v55, %v3349_v47  ;;  %v9686_v14 = vadd.f32 %v2996_v45, %v2867_v16  ;;  %v13217_v5 = vld [vmem:[#allocation191_spill] sm:$0xff]  ;;  %v2935_v52 = vld [vmem:[#allocation2 + $0x2a2] sm:$0xff] }
 0x4bf   :  { %v3165_v34 = vsel %vm155_vm0, %v9666_v44, 0.0  ;;  %v3254_v31 = vmul.f32 %v9636_v9, %v9636_v9  ;;  %v3352_v18 = vsel %vm155_vm0, %v3252_v23, 0.0  ;;  %v2870_v50 = vadd.f32 %v13217_v5, %v13216_v56  ;;  %v13218_v55 = vld [vmem:[#allocation79_spill] sm:$0xff]  ;;  %v13219_v23 = vld [vmem:[#allocation193_spill] sm:$0xff] }
 0x4c0   :  { %v2998_v58 = vmul.f32 %v9245_v39, %v2933_v35  ;;  %v3166_v7 = vadd.f32 %v3165_v34, %v3164_v25  ;;  %v3353_v54 = vadd.f32 %v3352_v18, %v3351_v48  ;;  %v9696_v47 = vadd.f32 %v2997_v11, %v2868_v32  ;;  %v2936_v25 = vld [vmem:[#allocation2 + $0x2aa] sm:$0xff] }
 0x4c1   :  { %v3167_v16 = vsel %vm155_vm0, %v9676_v1, 0.0  ;;  %v3255_v45 = vmul.f32 %v9646_v63, %v9646_v63  ;;  %v3354_v41 = vsel %vm155_vm0, %v3253_v43, 0.0  ;;  %v2871_v12 = vadd.f32 %v13219_v23, %v13218_v55  ;;  %v13221_v18 = vld [vmem:[#allocation83_spill] sm:$0xff]  ;;  %v13222_v43 = vld [vmem:[#allocation194_spill] sm:$0xff] }
 0x4c2   :  { %v2999_v56 = vmul.f32 %v9245_v39, %v2934_v6  ;;  %v3168_v5 = vadd.f32 %v3167_v16, %v3166_v7  ;;  %v3355_v35 = vadd.f32 %v3354_v41, %v3353_v54  ;;  %v9706_v48 = vadd.f32 %v2998_v58, %v2869_v30  ;;  %v2937_v7 = vld [vmem:[#allocation2 + $0x2ba] sm:$0xff]  ;;  %v13223_v41 = vld [vmem:[#allocation87_spill] sm:$0xff] }
 0x4c3   :  { %v3169_v32 = vsel %vm155_vm0, %v9686_v14, 0.0  ;;  %v3256_v11 = vmul.f32 %v9656_v33, %v9656_v33  ;;  %v3356_v34 = vsel %vm155_vm0, %v3254_v31, 0.0  ;;  %v2872_v13 = vadd.f32 %v13222_v43, %v13221_v18  ;;  %v13224_v31 = vld [vmem:[#allocation195_spill] sm:$0xff] }
 0x4c4   :  { %13220 = vst [vmem:[#allocation221_spill] sm:$0xff] %v9706_v48  ;;  %v3000_v55 = vmul.f32 %v9245_v39, %v2935_v52  ;;  %v3170_v23 = vadd.f32 %v3169_v32, %v3168_v5  ;;  %v3357_v6 = vadd.f32 %v3356_v34, %v3355_v35  ;;  %v9716_v54 = vadd.f32 %v2999_v56, %v2870_v50  ;;  %v2938_v5 = vld [vmem:[#allocation2 + $0x2c2] sm:$0xff]  ;;  %v13225_v34 = vld [vmem:[#allocation91_spill] sm:$0xff] }
 0x4c5   :  { %v3171_v30 = vsel %vm155_vm0, %v9696_v47, 0.0  ;;  %v3257_v58 = vmul.f32 %v9666_v44, %v9666_v44  ;;  %v3358_v16 = vsel %vm155_vm0, %v3255_v45, 0.0  ;;  %v2873_v26 = vadd.f32 %v13224_v31, %v13223_v41  ;;  %v13226_v45 = vld [vmem:[#allocation196_spill] sm:$0xff] }
 0x4c6   :  { %v3001_v18 = vmul.f32 %v9245_v39, %v2936_v25  ;;  %v3172_v43 = vadd.f32 %v3171_v30, %v3170_v23  ;;  %v3359_v52 = vadd.f32 %v3358_v16, %v3357_v6  ;;  %v9726_v35 = vadd.f32 %v3000_v55, %v2871_v12  ;;  %v2939_v23 = vld [vmem:[#allocation2 + $0x2d2] sm:$0xff] }
 0x4c7   :  { %v3173_v50 = vsel %vm155_vm0, %v9706_v48, 0.0  ;;  %v3258_v56 = vmul.f32 %v9676_v1, %v9676_v1  ;;  %v3360_v32 = vsel %vm155_vm0, %v3256_v11, 0.0  ;;  %v2874_v15 = vadd.f32 %v13226_v45, %v13225_v34  ;;  %v13227_v16 = vld [vmem:[#allocation95_spill] sm:$0xff]  ;;  %v13228_v11 = vld [vmem:[#allocation197_spill] sm:$0xff] }
 0x4c8   :  { %v3002_v41 = vmul.f32 %v9245_v39, %v2937_v7  ;;  %v3174_v31 = vadd.f32 %v3173_v50, %v3172_v43  ;;  %v3361_v25 = vadd.f32 %v3360_v32, %v3359_v52  ;;  %v9736_v6 = vadd.f32 %v3001_v18, %v2872_v13  ;;  %v2940_v43 = vld [vmem:[#allocation2 + $0x2da] sm:$0xff]  ;;  %v13230_v32 = vld [vmem:[#allocation99_spill] sm:$0xff] }
 0x4c9   :  { %v3175_v12 = vsel %vm155_vm0, %v9716_v54, 0.0  ;;  %v3259_v55 = vmul.f32 %v9686_v14, %v9686_v14  ;;  %v3362_v30 = vsel %vm155_vm0, %v3257_v58, 0.0  ;;  %v2875_v57 = vadd.f32 %v13228_v11, %v13227_v16  ;;  %v13231_v58 = vld [vmem:[#allocation198_spill] sm:$0xff] }
 0x4ca   :  { %v3003_v34 = vmul.f32 %v9245_v39, %v2938_v5  ;;  %v3176_v45 = vadd.f32 %v3175_v12, %v3174_v31  ;;  %v3363_v7 = vadd.f32 %v3362_v30, %v3361_v25  ;;  %v9746_v52 = vadd.f32 %v3002_v41, %v2873_v26  ;;  %v2941_v31 = vld [vmem:[#allocation2 + $0x2ea] sm:$0xff]  ;;  %v13233_v30 = vld [vmem:[#allocation104_spill] sm:$0xff] }
 0x4cb   :  { %v3177_v13 = vsel %vm155_vm0, %v9726_v35, 0.0  ;;  %v3260_v18 = vmul.f32 %v9696_v47, %v9696_v47  ;;  %v3364_v50 = vsel %vm155_vm0, %v3258_v56, 0.0  ;;  %v2876_v22 = vadd.f32 %v13231_v58, %v13230_v32  ;;  %v13234_v56 = vld [vmem:[#allocation199_spill] sm:$0xff] }
 0x4cc   :  { %13229 = vst [vmem:[#allocation222_spill] sm:$0xff] %v9746_v52  ;;  %v3004_v16 = vmul.f32 %v9245_v39, %v2939_v23  ;;  %v3178_v11 = vadd.f32 %v3177_v13, %v3176_v45  ;;  %v3365_v5 = vadd.f32 %v3364_v50, %v3363_v7  ;;  %v9756_v25 = vadd.f32 %v3003_v34, %v2874_v15  ;;  %v2942_v45 = vld [vmem:[#allocation2 + $0x2f2] sm:$0xff]  ;;  %v13236_v50 = vld [vmem:[#allocation109_spill] sm:$0xff] }
 0x4cd   :  { %v3179_v26 = vsel %vm155_vm0, %v9736_v6, 0.0  ;;  %v3261_v41 = vmul.f32 %v9706_v48, %v9706_v48  ;;  %v3366_v12 = vsel %vm155_vm0, %v3259_v55, 0.0  ;;  %v2877_v10 = vadd.f32 %v13234_v56, %v13233_v30  ;;  %v13237_v55 = vld [vmem:[#allocation200_spill] sm:$0xff] }
 0x4ce   :  { %13232 = vst [vmem:[#allocation223_spill] sm:$0xff] %v9756_v25  ;;  %v3005_v32 = vmul.f32 %v9245_v39, %v2940_v43  ;;  %v3180_v58 = vadd.f32 %v3179_v26, %v3178_v11  ;;  %v3367_v23 = vadd.f32 %v3366_v12, %v3365_v5  ;;  %v9766_v7 = vadd.f32 %v3004_v16, %v2875_v57  ;;  %v13239_v26 = vld [vmem:[#allocation114_spill] sm:$0xff] }
 0x4cf   :  { %v3181_v15 = vsel %vm155_vm0, %v9746_v52, 0.0  ;;  %v3262_v34 = vmul.f32 %v9716_v54, %v9716_v54  ;;  %v3368_v13 = vsel %vm155_vm0, %v3260_v18, 0.0  ;;  %v2878_v48 = vadd.f32 %v13237_v55, %v13236_v50 }
 0x4d0   :  { %13235 = vst [vmem:[#allocation224_spill] sm:$0xff] %v9766_v7  ;;  %v3006_v30 = vmul.f32 %v9245_v39, %v2941_v31  ;;  %v3182_v56 = vadd.f32 %v3181_v15, %v3180_v58  ;;  %v3369_v43 = vadd.f32 %v3368_v13, %v3367_v23  ;;  %v9776_v11 = vadd.f32 %v3005_v32, %v2876_v22  ;;  %v13241_v23 = vld [vmem:[#allocation119_spill] sm:$0xff]  ;;  %v5064_v15 = vld [vmem:[#allocation2 + $0x302] sm:$0xff] }
 0x4d1   :  { %v3183_v57 = vsel %vm155_vm0, %v9756_v25, 0.0  ;;  %v3263_v16 = vmul.f32 %v9726_v35, %v9726_v35  ;;  %v3370_v5 = vsel %vm155_vm0, %v3261_v41, 0.0  ;;  %v2879_v18 = vadd.f32 %v9307_v21, %v13239_v26 }
 0x4d2   :  { %13238 = vst [vmem:[#allocation128_spill] sm:$0xff] %v9776_v11  ;;  %v3007_v12 = vmul.f32 %v9245_v39, %v2942_v45  ;;  %v3184_v50 = vadd.f32 %v3183_v57, %v3182_v56  ;;  %v3371_v55 = vadd.f32 %v3370_v5, %v3369_v43  ;;  %v9786_v31 = vadd.f32 %v3006_v30, %v2877_v10  ;;  %v13242_v57 = vld [vmem:[#allocation123_spill] sm:$0xff] }
 0x4d3   :  { %v3185_v22 = vsel %vm155_vm0, %v9766_v7, 0.0  ;;  %v3264_v32 = vmul.f32 %v9736_v6, %v9736_v6  ;;  %v3372_v58 = vsel %vm155_vm0, %v3262_v34, 0.0  ;;  %v2880_v41 = vadd.f32 %v9327_v8, %v13241_v23  ;;  %v5065_v5 = vld [vmem:[#allocation2 + $0x30a] sm:$0xff] }
 0x4d4   :  { %13240 = vst [vmem:[#allocation131_spill] sm:$0xff] %v9786_v31  ;;  %v3008_v21 = vmul.f32 %v5064_v15, %v9245_v39  ;;  %v3186_v13 = vadd.f32 %v3185_v22, %v3184_v50  ;;  %v3373_v45 = vadd.f32 %v3372_v58, %v3371_v55  ;;  %v9796_v56 = vadd.f32 %v3007_v12, %v2878_v48  ;;  %v13243_v22 = vld [vmem:[#allocation126_spill] sm:$0xff]  ;;  %v5066_v58 = vld [vmem:[#allocation2 + $0x31a] sm:$0xff] }
 0x4d5   :  { %v3187_v10 = vsel %vm155_vm0, %v9776_v11, 0.0  ;;  %v3265_v30 = vmul.f32 %v9746_v52, %v9746_v52  ;;  %v3374_v43 = vsel %vm155_vm0, %v3263_v16, 0.0  ;;  %v2881_v34 = vadd.f32 %v9528_v38, %v13242_v57 }
 0x4d6   :  { %v3009_v8 = vmul.f32 %v5065_v5, %v9245_v39  ;;  %v3188_v26 = vadd.f32 %v3187_v10, %v3186_v13  ;;  %v3375_v23 = vadd.f32 %v3374_v43, %v3373_v45  ;;  %v9806_v50 = vadd.f32 %v3008_v21, %v2879_v18  ;;  %v13244_v10 = vld [vmem:[#allocation33_spill] sm:$0xff] }
 0x4d7   :  { %v3189_v48 = vsel %vm155_vm0, %v9786_v31, 0.0  ;;  %v3266_v12 = vmul.f32 %v9756_v25, %v9756_v25  ;;  %v3376_v55 = vsel %vm155_vm0, %v3264_v32, 0.0  ;;  %v2882_v16 = vadd.f32 %v9540_v29, %v13243_v22  ;;  %v13245_v32 = vld [vmem:[#allocation35_spill] sm:$0xff]  ;;  %v5067_v5 = vld [vmem:[#allocation2 + $0x322] sm:$0xff] }
 0x4d8   :  { %v3010_v38 = vmul.f32 %v5066_v58, %v9245_v39  ;;  %v3190_v15 = vadd.f32 %v3189_v48, %v3188_v26  ;;  %v3377_v57 = vadd.f32 %v3376_v55, %v3375_v23  ;;  %v9816_v13 = vadd.f32 %v3009_v8, %v2880_v41  ;;  %v13246_v48 = vld [vmem:[#allocation38_spill] sm:$0xff] }
 0x4d9   :  { %v3191_v18 = vsel %vm155_vm0, %v9796_v56, 0.0  ;;  %v3267_v21 = vmul.f32 %v9766_v7, %v9766_v7  ;;  %v3378_v45 = vsel %vm155_vm0, %v3265_v30, 0.0  ;;  %v2883_v43 = vadd.f32 %v13245_v32, %v13244_v10  ;;  %v13247_v30 = vld [vmem:[#allocation37_spill] sm:$0xff]  ;;  %v13248_v7 = vld [vmem:[#allocation39_spill] sm:$0xff]  ;;  %v13249_v10 = vld [vmem:[#allocation12_spill] sm:$0xff] }
 0x4da   :  { %v3011_v29 = vmul.f32 %v5067_v5, %v9245_v39  ;;  %v3192_v22 = vadd.f32 %v3191_v18, %v3190_v15  ;;  %v3379_v58 = vadd.f32 %v3378_v45, %v3377_v57  ;;  %v9826_v26 = vadd.f32 %v3010_v38, %v2881_v34  ;;  %v2950_v15 = vld [vmem:[#allocation2 + $0x352] sm:$0xff]  ;;  %v13251_v45 = vld [vmem:[#allocation22_spill] sm:$0xff] }
 0x4db   :  { %v3193_v41 = vsel %vm155_vm0, %v9806_v50, 0.0  ;;  %v3268_v8 = vmul.f32 %v9776_v11, %v9776_v11  ;;  %v3380_v23 = vsel %vm155_vm0, %v3266_v12, 0.0  ;;  %v2693_v55 = vadd.f32 %v13247_v30, %v13246_v48  ;;  %v13250_v12 = vld [vmem:[#allocation40_spill] sm:$0xff] }
 0x4dc   :  { %v2884_v32 = vadd.f32 %v13249_v10, %v13248_v7  ;;  %v3194_v25 = vadd.f32 %v3193_v41, %v3192_v22  ;;  %v3381_v39 = vadd.f32 %v3380_v23, %v3379_v58  ;;  %v9837_v57 = vadd.f32 %v3011_v29, %v2882_v16  ;;  %v5068_v7 = vld [vmem:[%s11829_s4 + $0x8] ss:$0 sm:$0xff]  ;;  %v5069_v22 = vld [vmem:[#allocation2 + $0x33a] sm:$0xff] }
 0x4dd   :  { %v3195_v34 = vsel %vm155_vm0, %v9816_v13, 0.0  ;;  %v3269_v38 = vmul.f32 %v9786_v31, %v9786_v31  ;;  %v3382_v18 = vsel %vm155_vm0, %v3267_v21, 0.0  ;;  %v2885_v5 = vadd.f32 %v13251_v45, %v13250_v12  ;;  %v13252_v29 = vld [vmem:[#allocation41_spill] sm:$0xff]  ;;  %v13253_v10 = vld [vmem:[#allocation24_spill] sm:$0xff] }
 0x4de   :  { %v3013_v58 = vmul.f32 %v5069_v22, %v5068_v7  ;;  %v3196_v41 = vadd.f32 %v3195_v34, %v3194_v25  ;;  %v3383_v16 = vadd.f32 %v3382_v18, %v3381_v39  ;;  %v9850_v23 = vadd.f32 %v13252_v29, %v2883_v43  ;;  %v13254_v22 = vld [vmem:[#allocation13_spill] sm:$0xff] }
 0x4df   :  { %v3197_v48 = vsel %vm155_vm0, %v9826_v26, 0.0  ;;  %v3270_v21 = vmul.f32 %v9796_v56, %v9796_v56  ;;  %v3384_v30 = vsel %vm155_vm0, %v3268_v8, 0.0  ;;  %v2886_v12 = vadd.f32 %v13253_v10, %v2693_v55 }
 0x4e0   :  { %v3015_v45 = vmul.f32 %v5068_v7, %v2950_v15  ;;  %v3198_v31 = vadd.f32 %v3197_v48, %v3196_v41  ;;  %v3385_v11 = vadd.f32 %v3384_v30, %v3383_v16  ;;  %v9858_v52 = vadd.f32 %v3013_v58, %v2884_v32 }
 0x4e1   :  { %v3199_v25 = vsel %vm155_vm0, %v9837_v57, 0.0  ;;  %v3271_v43 = vmul.f32 %v9806_v50, %v9806_v50  ;;  %v3386_v39 = vsel %vm155_vm0, %v3269_v38, 0.0  ;;  %v9866_v29 = vadd.f32 %v13254_v22, %v2885_v5 }
 0x4e2   :  { %v3200_v34 = vadd.f32 %v3199_v25, %v3198_v31  ;;  %v3387_v18 = vadd.f32 %v3386_v39, %v3385_v11  ;;  %v3201_v8 = vsel %vm155_vm0, %v9850_v23, 0.0  ;;  %v3272_v55 = vmul.f32 %v9816_v13, %v9816_v13 }
 0x4e3   :  { %v3388_v32 = vsel %vm155_vm0, %v3270_v21, 0.0  ;;  %v9873_v58 = vadd.f32 %v3015_v45, %v2886_v12  ;;  %v3203_v38 = vsel %vm155_vm0, %v9858_v52, 0.0  ;;  %v3273_v11 = vmul.f32 %v9826_v26, %v9826_v26 }
 0x4e4   :  { %v3202_v15 = vadd.f32 %v3201_v8, %v3200_v34  ;;  %v3389_v7 = vadd.f32 %v3388_v32, %v3387_v18  ;;  %v3390_v31 = vsel %vm155_vm0, %v3271_v43, 0.0  ;;  %v3205_v16 = vsel %vm155_vm0, %v9866_v29, 0.0 }
 0x4e5   :  { %v3274_v48 = vmul.f32 %v9837_v57, %v9837_v57  ;;  %v3392_v21 = vsel %vm155_vm0, %v3272_v55, 0.0  ;;  %v3207_v12 = vsel %vm155_vm0, %v9873_v58, 0.0  ;;  %v3275_v45 = vmul.f32 %v9850_v23, %v9850_v23 }
 0x4e6   :  { %v3204_v5 = vadd.f32 %v3203_v38, %v3202_v15  ;;  %v3391_v41 = vadd.f32 %v3390_v31, %v3389_v7  ;;  %v3394_v25 = vsel %vm155_vm0, %v3273_v11, 0.0  ;;  %v3276_v34 = vmul.f32 %v9858_v52, %v9858_v52 }
 0x4e7   :  { %v3396_v18 = vsel %vm155_vm0, %v3274_v48, 0.0  ;;  %v3277_v55 = vmul.f32 %v9866_v29, %v9866_v29  ;;  %v3398_v32 = vsel %vm155_vm0, %v3275_v45, 0.0  ;;  %v3278_v38 = vmul.f32 %v9873_v58, %v9873_v58 }
 0x4e8   :  { %v3206_v30 = vadd.f32 %v3205_v16, %v3204_v5  ;;  %v3393_v10 = vadd.f32 %v3392_v21, %v3391_v41  ;;  %v3400_v11 = vsel %vm155_vm0, %v3276_v34, 0.0 }
 0x4e9   :  { %v3402_v41 = vsel %vm155_vm0, %v3277_v55, 0.0  ;;  %v3404_v21 = vsel %vm155_vm0, %v3278_v38, 0.0 }
 0x4ea   :  { %v3208_v43 = vadd.f32 %v3207_v12, %v3206_v30  ;;  %v3395_v39 = vadd.f32 %v3394_v25, %v3393_v10 }
 0x4ec   :  { %v3209_v22 = vrot.slane %v3208_v43, 4  ;;  %v3397_v8 = vadd.f32 %v3396_v18, %v3395_v39 }
 0x4ee   :  { %v3210_v15 = vadd.f32 %v3209_v22, %v3208_v43  ;;  %v3399_v7 = vadd.f32 %v3398_v32, %v3397_v8 }
 0x4f0   :  { %v3211_v31 = vrot.slane %v3210_v15, 2  ;;  %v3401_v5 = vadd.f32 %v3400_v11, %v3399_v7 }
 0x4f2   :  { %v3212_v16 = vadd.f32 %v3211_v31, %v3210_v15  ;;  %v3403_v48 = vadd.f32 %v3402_v41, %v3401_v5 }
 0x4f4   :  { %v3213_v30 = vrot.slane %v3212_v16, 1  ;;  %v3405_v10 = vadd.f32 %v3404_v21, %v3403_v48 }
 0x4f6   :  { %v3406_v12 = vrot.slane %v3405_v10, 4  ;;  %v3214_v25 = vadd.f32 %v3213_v30, %v3212_v16  ;;  %v9912_v30 = vld [vmem:[%s11830_s5] ss:$0 sm:$0xff] }
 0x4f8   :  { %v3407_v45 = vadd.f32 %v3406_v12, %v3405_v10  ;;  %v9901_v18 = vmul.f32 0.001953125, %v3214_v25 }
 0x4fa   :  { %v3408_v43 = vrot.slane %v3407_v45, 2  ;;  %v3414_v34 = vmul.f32 %v9901_v18, %v9901_v18  ;;  %v3417_v48 = vsub.f32 %v9257_v60, %v9901_v18  ;;  %v3418_v21 = vsub.f32 %v9259_v42, %v9901_v18  ;;  %v9925_v42 = vld [vmem:[%s11831_s6] ss:$0 sm:$0xff] }
 0x4fb   :  { %v3449_v10 = vsub.f32 %v9566_v2, %v9901_v18  ;;  %v3450_v12 = vsub.f32 %v9576_v62, %v9901_v18 }
 0x4fc   :  { %v3409_v39 = vadd.f32 %v3408_v43, %v3407_v45 }
 0x4fe   :  { %v3410_v22 = vrot.slane %v3409_v39, 1 }
 0x500   :  { %v3411_v8 = vadd.f32 %v3410_v22, %v3409_v39 }
 0x502   :  { %v3413_v32 = vmul.f32 0.001953125, %v3411_v8 }
 0x504   :  { %v3415_v55 = vsub.f32 %v3413_v32, %v3414_v34  ;;  %v3419_v34 = vsub.f32 %v9265_v51, %v9901_v18  ;;  %v3420_v32 = vsub.f32 %v9273_v4, %v9901_v18 }
 0x506   :  { %v3416_v15 = vmax.f32 %v3415_v55, 0.0  ;;  %v3451_v55 = vsub.f32 %v9586_v3, %v9901_v18 }
 0x508   :  { %v3481_v7 = vadd.f32 1e-05, %v3416_v15  ;;  %v3452_v15 = vsub.f32 %v9596_v27, %v9901_v18 }
 0x50a   :  { %5032 = vrsqrt.f32 %v3481_v7  ;;  %vm3488_vm10 = vweird.f32 %v3481_v7 }
 0x510   :  { %v5033_v38 = vpop.eup %5032 }
 0x511   :  { %v3483_v11 = vmul.f32 %v5033_v38, %v3481_v7  ;;  %vm3489_vm9 = vweird.f32 %v5033_v38 }
 0x512   :  { %vm3490_vm11 = vmor %vm3488_vm10, %vm3489_vm9 }
 0x513   :  { %v3484_v31 = vmul.f32 %v5033_v38, %v3483_v11 }
 0x515   :  { %v3485_v5 = vmul.f32 0.5, %v3484_v31 }
 0x517   :  { %v3486_v41 = vsub.f32 1.5, %v3485_v5 }
 0x519   :  { %v3487_v16 = vmul.f32 %v5033_v38, %v3486_v41 }
 0x51b   :  { %v9918_v25 = vsel %vm3490_vm11, %v5033_v38, %v3487_v16 }
 0x51c   :  { %v3492_v45 = vmul.f32 %v9918_v25, %v3417_v48  ;;  %v3493_v60 = vmul.f32 %v9918_v25, %v3418_v21  ;;  %v3524_v43 = vmul.f32 %v9918_v25, %v3449_v10  ;;  %v3525_v39 = vmul.f32 %v9918_v25, %v3450_v12 }
 0x51d   :  { %v3494_v5 = vmul.f32 %v9918_v25, %v3419_v34  ;;  %v3495_v51 = vmul.f32 %v9918_v25, %v3420_v32  ;;  %v3526_v4 = vmul.f32 %v9918_v25, %v3451_v55  ;;  %v3527_v41 = vmul.f32 %v9918_v25, %v3452_v15 }
 0x51e   :  { %v3559_v2 = vmul.f32 %v9912_v30, %v3492_v45  ;;  %v3560_v22 = vmul.f32 %v9912_v30, %v3493_v60  ;;  %v3591_v62 = vmul.f32 %v9912_v30, %v3524_v43  ;;  %v3592_v8 = vmul.f32 %v9912_v30, %v3525_v39 }
 0x51f   :  { %v3561_v39 = vmul.f32 %v9912_v30, %v3494_v5  ;;  %v3422_v5 = vsub.f32 %v9291_v24, %v9901_v18 }
 0x520   :  { %v3626_v7 = vadd.f32 %v9925_v42, %v3559_v2  ;;  %v3627_v38 = vadd.f32 %v9925_v42, %v3560_v22  ;;  %v3658_v11 = vadd.f32 %v9925_v42, %v3591_v62  ;;  %v3659_v31 = vadd.f32 %v9925_v42, %v3592_v8 }
 0x521   :  { %v3562_v2 = vmul.f32 %v9912_v30, %v3495_v51  ;;  %v3593_v22 = vmul.f32 %v9912_v30, %v3526_v4  ;;  %v3594_v62 = vmul.f32 %v9912_v30, %v3527_v41  ;;  %v3628_v8 = vadd.f32 %v9925_v42, %v3561_v39 }
 0x522   :  { %vm3690_vm12 = vcmp.ge.f32.partialorder %v3626_v7, 0.0  ;;  %vm3691_vm13 = vcmp.ge.f32.partialorder %v3627_v38, 0.0  ;;  %v3754_v3 = vmul.f32 0.01, %v3626_v7  ;;  %v3755_v27 = vmul.f32 0.01, %v3627_v38 }
 0x523   :  { %vm3722_vm14 = vcmp.ge.f32.partialorder %v3658_v11, 0.0  ;;  %vm3723_vm15 = vcmp.ge.f32.partialorder %v3659_v31, 0.0  ;;  %v3786_v16 = vmul.f32 0.01, %v3658_v11  ;;  %v3787_v48 = vmul.f32 0.01, %v3659_v31 }
 0x524   :  { %v3818_v21 = vsel %vm3690_vm12, %v3626_v7, %v3754_v3  ;;  %v3819_v10 = vsel %vm3691_vm13, %v3627_v38, %v3755_v27  ;;  %v3629_v34 = vadd.f32 %v9925_v42, %v3562_v2  ;;  %v3660_v32 = vadd.f32 %v9925_v42, %v3593_v22 }
 0x525   :  { %v3882_v12 = vpack.c.bf16 %v3819_v10, %v3818_v21  ;;  %v3850_v45 = vsel %vm3722_vm14, %v3658_v11, %v3786_v16  ;;  %v3851_v60 = vsel %vm3723_vm15, %v3659_v31, %v3787_v48  ;;  %v3661_v55 = vadd.f32 %v9925_v42, %v3594_v62 }
 0x526   :  { %v3898_v43 = vpack.c.bf16 %v3851_v60, %v3850_v45  ;;  %v3756_v15 = vmul.f32 0.01, %v3628_v8  ;;  %v3757_v7 = vmul.f32 0.01, %v3629_v34  ;;  %vm3692_vm1 = vcmp.ge.f32.partialorder %v3628_v8, 0.0 }
 0x527   :  { %4974 = vmatmul.msk.bf16.vlgmr.msra.gmra.mxu1 %vm155_vm0, %v3882_v12  ;;  %vm3693_vm2 = vcmp.ge.f32.partialorder %v3629_v34, 0.0  ;;  %v3788_v38 = vmul.f32 0.01, %v3660_v32  ;;  %v3789_v11 = vmul.f32 0.01, %v3661_v55  ;;  %vm3724_vm3 = vcmp.ge.f32.partialorder %v3660_v32, 0.0 }
 0x528   :  { %4990 = vmatmul.msk.bf16.vlgmr.msra.gmra.mxu3 %vm155_vm0, %v3898_v43  ;;  %vm3725_vm4 = vcmp.ge.f32.partialorder %v3661_v55, 0.0  ;;  %v3421_v31 = vsub.f32 %v9285_v36, %v9901_v18  ;;  %v3453_v51 = vsub.f32 %v9606_v49, %v9901_v18  ;;  %v3454_v4 = vsub.f32 %v9616_v59, %v9901_v18 }
 0x529   :  { %v3820_v41 = vsel %vm3692_vm1, %v3628_v8, %v3756_v15  ;;  %v3821_v3 = vsel %vm3693_vm2, %v3629_v34, %v3757_v7  ;;  %v3497_v16 = vmul.f32 %v9918_v25, %v3422_v5  ;;  %v3852_v48 = vsel %vm3724_vm3, %v3660_v32, %v3788_v38 }
 0x52a   :  { %v3496_v27 = vmul.f32 %v9918_v25, %v3421_v31  ;;  %v3853_v21 = vsel %vm3725_vm4, %v3661_v55, %v3789_v11  ;;  %v3528_v10 = vmul.f32 %v9918_v25, %v3453_v51  ;;  %v3529_v36 = vmul.f32 %v9918_v25, %v3454_v4 }
 0x52b   :  { %v3883_v12 = vpack.c.bf16 %v3821_v3, %v3820_v41  ;;  %v3899_v24 = vpack.c.bf16 %v3853_v21, %v3852_v48  ;;  %v3564_v49 = vmul.f32 %v9912_v30, %v3497_v16  ;;  %v3423_v55 = vsub.f32 %v9298_v20, %v9901_v18 }
 0x52c   :  { %v3563_v45 = vmul.f32 %v9912_v30, %v3496_v27  ;;  %v3595_v59 = vmul.f32 %v9912_v30, %v3528_v10  ;;  %v3596_v60 = vmul.f32 %v9912_v30, %v3529_v36  ;;  %v3424_v15 = vsub.f32 %v9312_v61, %v9901_v18 }
 0x52d   :  { %v3631_v39 = vadd.f32 %v9925_v42, %v3564_v49  ;;  %v3455_v7 = vsub.f32 %v9626_v46, %v9901_v18  ;;  %v3456_v38 = vsub.f32 %v9636_v9, %v9901_v18  ;;  %v3498_v5 = vmul.f32 %v9918_v25, %v3423_v55 }
 0x52e   :  { %v3630_v43 = vadd.f32 %v9925_v42, %v3563_v45  ;;  %v3662_v2 = vadd.f32 %v9925_v42, %v3595_v59  ;;  %v3663_v22 = vadd.f32 %v9925_v42, %v3596_v60  ;;  %v3499_v51 = vmul.f32 %v9918_v25, %v3424_v15 }
 0x52f   :  { %v3759_v8 = vmul.f32 0.01, %v3631_v39  ;;  %vm3695_vm6 = vcmp.ge.f32.partialorder %v3631_v39, 0.0  ;;  %v3530_v3 = vmul.f32 %v9918_v25, %v3455_v7  ;;  %v3531_v20 = vmul.f32 %v9918_v25, %v3456_v38 }
 0x530   :  { %v3758_v62 = vmul.f32 0.01, %v3630_v43  ;;  %vm3694_vm5 = vcmp.ge.f32.partialorder %v3630_v43, 0.0  ;;  %v3790_v34 = vmul.f32 0.01, %v3662_v2  ;;  %vm3726_vm7 = vcmp.ge.f32.partialorder %v3662_v2, 0.0 }
 0x531   :  { %v3791_v32 = vmul.f32 0.01, %v3663_v22  ;;  %vm3727_vm8 = vcmp.ge.f32.partialorder %v3663_v22, 0.0  ;;  %v3823_v31 = vsel %vm3695_vm6, %v3631_v39, %v3759_v8  ;;  %v3565_v16 = vmul.f32 %v9912_v30, %v3498_v5 }
 0x532   :  { %v3822_v11 = vsel %vm3694_vm5, %v3630_v43, %v3758_v62  ;;  %v3854_v4 = vsel %vm3726_vm7, %v3662_v2, %v3790_v34  ;;  %v3566_v46 = vmul.f32 %v9912_v30, %v3499_v51  ;;  %v3597_v9 = vmul.f32 %v9912_v30, %v3530_v3 }
 0x533   :  { %v3855_v41 = vsel %vm3727_vm8, %v3663_v22, %v3791_v32  ;;  %v3884_v27 = vpack.c.bf16 %v3823_v31, %v3822_v11  ;;  %v3598_v48 = vmul.f32 %v9912_v30, %v3531_v20  ;;  %v3632_v21 = vadd.f32 %v9925_v42, %v3565_v16 }
 0x534   :  { %v3900_v61 = vpack.c.bf16 %v3855_v41, %v3854_v4  ;;  %v3633_v10 = vadd.f32 %v9925_v42, %v3566_v46  ;;  %v3664_v36 = vadd.f32 %v9925_v42, %v3597_v9  ;;  %v3425_v60 = vsub.f32 %v9317_v0, %v9901_v18 }
 0x535   :  { %vm3696_vm9 = vcmp.ge.f32.partialorder %v3632_v21, 0.0  ;;  %v3426_v43 = vsub.f32 %v9331_v53, %v9901_v18  ;;  %v3457_v39 = vsub.f32 %v9646_v63, %v9901_v18  ;;  %v3458_v2 = vsub.f32 %v9656_v33, %v9901_v18 }
 0x536   :  { %v3761_v45 = vmul.f32 0.01, %v3633_v10  ;;  %vm3697_vm10 = vcmp.ge.f32.partialorder %v3633_v10, 0.0  ;;  %v3792_v49 = vmul.f32 0.01, %v3664_v36  ;;  %vm3728_vm11 = vcmp.ge.f32.partialorder %v3664_v36, 0.0 }
 0x537   :  { %4975 = vmatmul.msk.bf16.gmra.mxu1 %vm155_vm0, %v3883_v12  ;;  %v3665_v12 = vadd.f32 %v9925_v42, %v3598_v48  ;;  %v3500_v8 = vmul.f32 %v9918_v25, %v3425_v60  ;;  %v3501_v34 = vmul.f32 %v9918_v25, %v3426_v43  ;;  %v3532_v15 = vmul.f32 %v9918_v25, %v3457_v39 }
 0x538   :  { %4991 = vmatmul.msk.bf16.gmra.mxu3 %vm155_vm0, %v3899_v24  ;;  %v3760_v24 = vmul.f32 0.01, %v3632_v21  ;;  %v3825_v62 = vsel %vm3697_vm10, %v3633_v10, %v3761_v45  ;;  %v3856_v32 = vsel %vm3728_vm11, %v3664_v36, %v3792_v49  ;;  %v3533_v0 = vmul.f32 %v9918_v25, %v3458_v2 }
 0x539   :  { %v3793_v59 = vmul.f32 0.01, %v3665_v12  ;;  %vm3729_vm12 = vcmp.ge.f32.partialorder %v3665_v12, 0.0  ;;  %v3567_v38 = vmul.f32 %v9912_v30, %v3500_v8  ;;  %v3568_v63 = vmul.f32 %v9912_v30, %v3501_v34 }
 0x53a   :  { %v3824_v22 = vsel %vm3696_vm9, %v3632_v21, %v3760_v24  ;;  %v3599_v33 = vmul.f32 %v9912_v30, %v3532_v15  ;;  %v3600_v11 = vmul.f32 %v9912_v30, %v3533_v0  ;;  %v3428_v16 = vsub.f32 %v9350_v37, %v9901_v18 }
 0x53b   :  { %v3857_v55 = vsel %vm3729_vm12, %v3665_v12, %v3793_v59  ;;  %v3885_v7 = vpack.c.bf16 %v3825_v62, %v3824_v22  ;;  %v3634_v31 = vadd.f32 %v9925_v42, %v3567_v38  ;;  %v3635_v5 = vadd.f32 %v9925_v42, %v3568_v63 }
 0x53c   :  { %v3901_v53 = vpack.c.bf16 %v3857_v55, %v3856_v32  ;;  %v3666_v51 = vadd.f32 %v9925_v42, %v3599_v33  ;;  %v3667_v4 = vadd.f32 %v9925_v42, %v3600_v11  ;;  %v3459_v46 = vsub.f32 %v9666_v44, %v9901_v18 }
 0x53d   :  { %v3762_v41 = vmul.f32 0.01, %v3634_v31  ;;  %v3763_v3 = vmul.f32 0.01, %v3635_v5  ;;  %vm3698_vm13 = vcmp.ge.f32.partialorder %v3634_v31, 0.0  ;;  %vm3699_vm14 = vcmp.ge.f32.partialorder %v3635_v5, 0.0 }
 0x53e   :  { %v3794_v20 = vmul.f32 0.01, %v3666_v51  ;;  %vm3730_vm15 = vcmp.ge.f32.partialorder %v3666_v51, 0.0  ;;  %vm3731_vm1 = vcmp.ge.f32.partialorder %v3667_v4, 0.0  ;;  %v3460_v9 = vsub.f32 %v9676_v1, %v9901_v18 }
 0x53f   :  { %v3826_v48 = vsel %vm3698_vm13, %v3634_v31, %v3762_v41  ;;  %v3827_v21 = vsel %vm3699_vm14, %v3635_v5, %v3763_v3  ;;  %v3503_v36 = vmul.f32 %v9918_v25, %v3428_v16  ;;  %v3534_v45 = vmul.f32 %v9918_v25, %v3459_v46 }
 0x540   :  { %v3858_v12 = vsel %vm3730_vm15, %v3666_v51, %v3794_v20  ;;  %v3886_v49 = vpack.c.bf16 %v3827_v21, %v3826_v48  ;;  %v3429_v55 = vsub.f32 %v9360_v19, %v9901_v18  ;;  %v3430_v15 = vsub.f32 %v9370_v28, %v9901_v18 }
 0x541   :  { %v3570_v44 = vmul.f32 %v9912_v30, %v3503_v36  ;;  %v3601_v1 = vmul.f32 %v9912_v30, %v3534_v45  ;;  %v3461_v0 = vsub.f32 %v9686_v14, %v9901_v18  ;;  %v3431_v21 = vsub.f32 %v9380_v40, %v9901_v18 }
 0x542   :  { %v3504_v63 = vmul.f32 %v9918_v25, %v3429_v55  ;;  %v3505_v33 = vmul.f32 %v9918_v25, %v3430_v15  ;;  %v3464_v45 = vsub.f32 %v9716_v54, %v9901_v18 }
 0x543   :  { %v3637_v39 = vadd.f32 %v9925_v42, %v3570_v44  ;;  %v3668_v2 = vadd.f32 %v9925_v42, %v3601_v1  ;;  %v3536_v5 = vmul.f32 %v9918_v25, %v3461_v0 }
 0x544   :  { %v3572_v14 = vmul.f32 %v9912_v30, %v3505_v33  ;;  %v3539_v40 = vmul.f32 %v9918_v25, %v3464_v45  ;;  %v13258_v33 = vld [vmem:[#allocation203_spill] sm:$0xff]  ;;  %v13259_v45 = vld [vmem:[#allocation204_spill] sm:$0xff] }
 0x545   :  { %v3765_v8 = vmul.f32 0.01, %v3637_v39  ;;  %vm3701_vm3 = vcmp.ge.f32.partialorder %v3637_v39, 0.0  ;;  %v3796_v34 = vmul.f32 0.01, %v3668_v2  ;;  %vm3732_vm4 = vcmp.ge.f32.partialorder %v3668_v2, 0.0 }
 0x546   :  { %v3639_v20 = vadd.f32 %v9925_v42, %v3572_v14 }
 0x547   :  { %4976 = vmatmul.msk.bf16.gmra.mxu1 %vm155_vm0, %v3884_v27  ;;  %v3795_v27 = vmul.f32 0.01, %v3667_v4  ;;  %v3829_v38 = vsel %vm3701_vm3, %v3637_v39, %v3765_v8  ;;  %v3860_v11 = vsel %vm3732_vm4, %v3668_v2, %v3796_v34 }
 0x548   :  { %4992 = vmatmul.msk.bf16.gmra.mxu3 %vm155_vm0, %v3900_v61  ;;  %v3427_v61 = vsub.f32 %v9340_v17, %v9901_v18  ;;  %v3535_v17 = vmul.f32 %v9918_v25, %v3460_v9  ;;  %v3767_v46 = vmul.f32 0.01, %v3639_v20  ;;  %vm3703_vm7 = vcmp.ge.f32.partialorder %v3639_v20, 0.0 }
 0x549   :  { %v3859_v24 = vsel %vm3731_vm1, %v3667_v4, %v3795_v27  ;;  %v3571_v4 = vmul.f32 %v9912_v30, %v3504_v63 }
 0x54a   :  { %v3502_v10 = vmul.f32 %v9918_v25, %v3427_v61  ;;  %v3902_v37 = vpack.c.bf16 %v3859_v24, %v3858_v12  ;;  %v3602_v60 = vmul.f32 %v9912_v30, %v3535_v17  ;;  %v13256_v12 = vld [vmem:[#allocation221_spill] sm:$0xff] }
 0x54b   :  { %v3638_v3 = vadd.f32 %v9925_v42, %v3571_v4  ;;  %v3463_v24 = vsub.f32 %v13256_v12, %v9901_v18 }
 0x54c   :  { %v3569_v59 = vmul.f32 %v9912_v30, %v3502_v10  ;;  %v3669_v22 = vadd.f32 %v9925_v42, %v3602_v60  ;;  %v13255_v10 = vld [vmem:[#allocation201_spill] sm:$0xff] }
 0x54d   :  { %v3766_v16 = vmul.f32 0.01, %v3638_v3  ;;  %vm3702_vm6 = vcmp.ge.f32.partialorder %v3638_v3, 0.0  ;;  %v3432_v36 = vsub.f32 %v13255_v10, %v9901_v18  ;;  %v3538_v60 = vmul.f32 %v9918_v25, %v3463_v24 }
 0x54e   :  { %v3636_v43 = vadd.f32 %v9925_v42, %v3569_v59  ;;  %v3797_v32 = vmul.f32 0.01, %v3669_v22  ;;  %vm3733_vm5 = vcmp.ge.f32.partialorder %v3669_v22, 0.0 }
 0x54f   :  { %v3830_v17 = vsel %vm3702_vm6, %v3638_v3, %v3766_v16  ;;  %v3507_v59 = vmul.f32 %v9918_v25, %v3432_v36  ;;  %v3605_v54 = vmul.f32 %v9912_v30, %v3538_v60 }
 0x550   :  { %v3764_v62 = vmul.f32 0.01, %v3636_v43  ;;  %vm3700_vm2 = vcmp.ge.f32.partialorder %v3636_v43, 0.0  ;;  %v3861_v31 = vsel %vm3733_vm5, %v3669_v22, %v3797_v32 }
 0x551   :  { %v3903_v28 = vpack.c.bf16 %v3861_v31, %v3860_v11  ;;  %v3574_v22 = vmul.f32 %v9912_v30, %v3507_v59  ;;  %v3672_v32 = vadd.f32 %v9925_v42, %v3605_v54  ;;  %v3434_v11 = vsub.f32 %v13258_v33, %v9901_v18  ;;  %v13261_v59 = vld [vmem:[#allocation222_spill] sm:$0xff] }
 0x552   :  { %v3465_v31 = vsub.f32 %v9726_v35, %v9901_v18 }
 0x553   :  { %v3641_v34 = vadd.f32 %v9925_v42, %v3574_v22  ;;  %vm3736_vm12 = vcmp.ge.f32.partialorder %v3672_v32, 0.0  ;;  %v3509_v4 = vmul.f32 %v9918_v25, %v3434_v11 }
 0x555   :  { %v3769_v0 = vmul.f32 0.01, %v3641_v34  ;;  %vm3705_vm11 = vcmp.ge.f32.partialorder %v3641_v34, 0.0  ;;  %v3576_v35 = vmul.f32 %v9912_v30, %v3509_v4 }
 0x557   :  { %4977 = vmatmul.msk.bf16.gmra.mxu1 %vm155_vm0, %v3885_v7  ;;  %v3462_v7 = vsub.f32 %v9696_v47, %v9901_v18  ;;  %v3603_v47 = vmul.f32 %v9912_v30, %v3536_v5  ;;  %v3466_v5 = vsub.f32 %v9736_v6, %v9901_v18 }
 0x558   :  { %4993 = vmatmul.msk.bf16.gmra.mxu3 %vm155_vm0, %v3901_v53  ;;  %v3828_v53 = vsel %vm3700_vm2, %v3636_v43, %v3764_v62  ;;  %v3606_v62 = vmul.f32 %v9912_v30, %v3539_v40 }
 0x559   :  { %v3537_v19 = vmul.f32 %v9918_v25, %v3462_v7  ;;  %v3887_v51 = vpack.c.bf16 %v3829_v38, %v3828_v53  ;;  %v3670_v27 = vadd.f32 %v9925_v42, %v3603_v47  ;;  %v3800_v7 = vmul.f32 0.01, %v3672_v32  ;;  %v13257_v38 = vld [vmem:[#allocation202_spill] sm:$0xff] }
 0x55a   :  { %v3673_v55 = vadd.f32 %v9925_v42, %v3606_v62  ;;  %v3433_v63 = vsub.f32 %v13257_v38, %v9901_v18  ;;  %v3541_v3 = vmul.f32 %v9918_v25, %v3466_v5 }
 0x55b   :  { %v3604_v41 = vmul.f32 %v9912_v30, %v3537_v19  ;;  %v3798_v9 = vmul.f32 0.01, %v3670_v27  ;;  %vm3734_vm8 = vcmp.ge.f32.partialorder %v3670_v27, 0.0  ;;  %v3864_v14 = vsel %vm3736_vm12, %v3672_v32, %v3800_v7 }
 0x55c   :  { %v3801_v53 = vmul.f32 0.01, %v3673_v55  ;;  %vm3737_vm13 = vcmp.ge.f32.partialorder %v3673_v55, 0.0  ;;  %v3608_v16 = vmul.f32 %v9912_v30, %v3541_v3 }
 0x55d   :  { %v3671_v61 = vadd.f32 %v9925_v42, %v3604_v41  ;;  %v3862_v44 = vsel %vm3734_vm8, %v3670_v27, %v3798_v9  ;;  %v3540_v41 = vmul.f32 %v9918_v25, %v3465_v31  ;;  %v3643_v9 = vadd.f32 %v9925_v42, %v3576_v35 }
 0x55e   :  { %v3865_v47 = vsel %vm3737_vm13, %v3673_v55, %v3801_v53 }
 0x55f   :  { %v3799_v48 = vmul.f32 0.01, %v3671_v61  ;;  %vm3735_vm9 = vcmp.ge.f32.partialorder %v3671_v61, 0.0  ;;  %v3905_v27 = vpack.c.bf16 %v3865_v47, %v3864_v14  ;;  %v3607_v6 = vmul.f32 %v9912_v30, %v3540_v41  ;;  %v13264_v14 = vld [vmem:[#allocation209_spill] sm:$0xff]  ;;  %v13265_v41 = vld [vmem:[#allocation210_spill] sm:$0xff] }
 0x560   :  { %v3771_v36 = vmul.f32 0.01, %v3643_v9  ;;  %vm3707_vm15 = vcmp.ge.f32.partialorder %v3643_v9, 0.0  ;;  %v3437_v47 = vsub.f32 %v13264_v14, %v9901_v18  ;;  %v3438_v3 = vsub.f32 %v13265_v41, %v9901_v18 }
 0x561   :  { %v3863_v1 = vsel %vm3735_vm9, %v3671_v61, %v3799_v48  ;;  %v3674_v48 = vadd.f32 %v9925_v42, %v3607_v6 }
 0x562   :  { %v3904_v39 = vpack.c.bf16 %v3863_v1, %v3862_v44  ;;  %v3467_v44 = vsub.f32 %v13261_v59, %v9901_v18  ;;  %v13262_v1 = vld [vmem:[#allocation223_spill] sm:$0xff] }
 0x563   :  { %v3802_v12 = vmul.f32 0.01, %v3674_v48  ;;  %vm3738_vm1 = vcmp.ge.f32.partialorder %v3674_v48, 0.0  ;;  %v3468_v60 = vsub.f32 %v13262_v1, %v9901_v18 }
 0x564   :  { %v3542_v62 = vmul.f32 %v9918_v25, %v3467_v44 }
 0x565   :  { %v3866_v22 = vsel %vm3738_vm1, %v3674_v48, %v3802_v12 }
 0x566   :  { %v3609_v7 = vmul.f32 %v9912_v30, %v3542_v62 }
 0x567   :  { %4978 = vmatmul.msk.bf16.gmra.mxu1 %vm155_vm0, %v3886_v49  ;;  %v3831_v49 = vsel %vm3703_vm7, %v3639_v20, %v3767_v46 }
 0x568   :  { %4994 = vmatmul.msk.bf16.gmra.mxu3 %vm155_vm0, %v3902_v37  ;;  %v3506_v37 = vmul.f32 %v9918_v25, %v3431_v21  ;;  %v3888_v43 = vpack.c.bf16 %v3831_v49, %v3830_v17  ;;  %v3675_v21 = vadd.f32 %v9925_v42, %v3608_v16  ;;  %v3435_v17 = vsub.f32 %v13259_v45, %v9901_v18  ;;  %v13260_v49 = vld [vmem:[#allocation205_spill] sm:$0xff] }
 0x569   :  { %v3676_v11 = vadd.f32 %v9925_v42, %v3609_v7  ;;  %v13270_v7 = vld [vmem:[#allocation131_spill] sm:$0xff] }
 0x56a   :  { %v3573_v2 = vmul.f32 %v9912_v30, %v3506_v37  ;;  %v3803_v24 = vmul.f32 0.01, %v3675_v21  ;;  %vm3739_vm2 = vcmp.ge.f32.partialorder %v3675_v21, 0.0  ;;  %v3436_v37 = vsub.f32 %v13260_v49, %v9901_v18 }
 0x56b   :  { %vm3740_vm5 = vcmp.ge.f32.partialorder %v3676_v11, 0.0 }
 0x56c   :  { %v3640_v8 = vadd.f32 %v9925_v42, %v3573_v2  ;;  %v3511_v2 = vmul.f32 %v9918_v25, %v3436_v37  ;;  %v3867_v54 = vsel %vm3739_vm2, %v3675_v21, %v3803_v24 }
 0x56d   :  { %v3906_v55 = vpack.c.bf16 %v3867_v54, %v3866_v22 }
 0x56e   :  { %v3768_v15 = vmul.f32 0.01, %v3640_v8  ;;  %vm3704_vm10 = vcmp.ge.f32.partialorder %v3640_v8, 0.0 }
 0x570   :  { %v3832_v19 = vsel %vm3704_vm10, %v3640_v8, %v3768_v15  ;;  %v3543_v8 = vmul.f32 %v9918_v25, %v3468_v60 }
 0x572   :  { %v3610_v53 = vmul.f32 %v9912_v30, %v3543_v8 }
 0x574   :  { %v3677_v31 = vadd.f32 %v9925_v42, %v3610_v53  ;;  %v3471_v53 = vsub.f32 %v13270_v7, %v9901_v18 }
 0x576   :  { %v3805_v4 = vmul.f32 0.01, %v3677_v31  ;;  %vm3741_vm6 = vcmp.ge.f32.partialorder %v3677_v31, 0.0 }
 0x577   :  { %4979 = vmatmul.msk.bf16.gmra.mxu1 %vm155_vm0, %v3887_v51  ;;  %v3833_v51 = vsel %vm3705_vm11, %v3641_v34, %v3769_v0  ;;  %v3578_v0 = vmul.f32 %v9912_v30, %v3511_v2 }
 0x578   :  { %4995 = vmatmul.msk.bf16.gmra.mxu3 %vm155_vm0, %v3903_v28  ;;  %v3508_v28 = vmul.f32 %v9918_v25, %v3433_v63  ;;  %v3889_v20 = vpack.c.bf16 %v3833_v51, %v3832_v19 }
 0x579   :  { %v3645_v63 = vadd.f32 %v9925_v42, %v3578_v0 }
 0x57a   :  { %v3575_v61 = vmul.f32 %v9912_v30, %v3508_v28  ;;  %v3804_v28 = vmul.f32 0.01, %v3676_v11 }
 0x57b   :  { %v3773_v51 = vmul.f32 0.01, %v3645_v63  ;;  %vm3709_vm4 = vcmp.ge.f32.partialorder %v3645_v63, 0.0 }
 0x57c   :  { %v3642_v46 = vadd.f32 %v9925_v42, %v3575_v61  ;;  %v13267_v61 = vld [vmem:[#allocation128_spill] sm:$0xff]  ;;  %v3868_v21 = vsel %vm3740_vm5, %v3676_v11, %v3804_v28 }
 0x57d   :  { %v3470_v35 = vsub.f32 %v13267_v61, %v9901_v18  ;;  %v3837_v16 = vsel %vm3709_vm4, %v3645_v63, %v3773_v51 }
 0x57e   :  { %v3770_v10 = vmul.f32 0.01, %v3642_v46  ;;  %vm3706_vm14 = vcmp.ge.f32.partialorder %v3642_v46, 0.0 }
 0x57f   :  { %v3545_v12 = vmul.f32 %v9918_v25, %v3470_v35 }
 0x580   :  { %v3834_v40 = vsel %vm3706_vm14, %v3642_v46, %v3770_v10  ;;  %v3512_v46 = vmul.f32 %v9918_v25, %v3437_v47  ;;  %v3869_v10 = vsel %vm3741_vm6, %v3677_v31, %v3805_v4  ;;  %v3546_v4 = vmul.f32 %v9918_v25, %v3471_v53 }
 0x581   :  { %v3612_v44 = vmul.f32 %v9912_v30, %v3545_v12 }
 0x582   :  { %v3579_v49 = vmul.f32 %v9912_v30, %v3512_v46  ;;  %v3613_v61 = vmul.f32 %v9912_v30, %v3546_v4 }
 0x584   :  { %v3646_v1 = vadd.f32 %v9925_v42, %v3579_v49  ;;  %v3680_v46 = vadd.f32 %v9925_v42, %v3613_v61  ;;  %v13271_v49 = vld [vmem:[#allocation213_spill] sm:$0xff]  ;;  %v13275_v61 = vld [vmem:[#allocation216_spill] sm:$0xff] }
 0x586   :  { %v3774_v22 = vmul.f32 0.01, %v3646_v1  ;;  %vm3710_vm7 = vcmp.ge.f32.partialorder %v3646_v1, 0.0  ;;  %vm3744_vm13 = vcmp.ge.f32.partialorder %v3680_v46, 0.0 }
 0x587   :  { %4980 = vmatmul.msk.bf16.gmra.mxu1 %vm155_vm0, %v3888_v43  ;;  %v3835_v43 = vsel %vm3707_vm15, %v3643_v9, %v3771_v36  ;;  %v3513_v9 = vmul.f32 %v9918_v25, %v3438_v3 }
 0x588   :  { %4996 = vmatmul.msk.bf16.gmra.mxu3 %vm155_vm0, %v3904_v39  ;;  %v3510_v39 = vmul.f32 %v9918_v25, %v3435_v17  ;;  %v3890_v32 = vpack.c.bf16 %v3835_v43, %v3834_v40  ;;  %v3907_v17 = vpack.c.bf16 %v3869_v10, %v3868_v21  ;;  %v3838_v63 = vsel %vm3710_vm7, %v3646_v1, %v3774_v22 }
 0x589   :  { %v3580_v37 = vmul.f32 %v9912_v30, %v3513_v9  ;;  %v3473_v1 = vsub.f32 %v9806_v50, %v9901_v18 }
 0x58a   :  { %v3577_v15 = vmul.f32 %v9912_v30, %v3510_v39  ;;  %v3679_v39 = vadd.f32 %v9925_v42, %v3612_v44 }
 0x58b   :  { %v3647_v60 = vadd.f32 %v9925_v42, %v3580_v37  ;;  %v3441_v37 = vsub.f32 %v13271_v49, %v9901_v18 }
 0x58c   :  { %v3644_v38 = vadd.f32 %v9925_v42, %v3577_v15  ;;  %v3807_v8 = vmul.f32 0.01, %v3679_v39  ;;  %vm3743_vm10 = vcmp.ge.f32.partialorder %v3679_v39, 0.0  ;;  %v13269_v15 = vld [vmem:[#allocation212_spill] sm:$0xff] }
 0x58d   :  { %v3775_v54 = vmul.f32 0.01, %v3647_v60  ;;  %vm3711_vm8 = vcmp.ge.f32.partialorder %v3647_v60, 0.0  ;;  %v3440_v0 = vsub.f32 %v13269_v15, %v9901_v18  ;;  %v3516_v22 = vmul.f32 %v9918_v25, %v3441_v37 }
 0x58e   :  { %v3772_v19 = vmul.f32 0.01, %v3644_v38  ;;  %vm3708_vm3 = vcmp.ge.f32.partialorder %v3644_v38, 0.0  ;;  %v3871_v28 = vsel %vm3743_vm10, %v3679_v39, %v3807_v8 }
 0x58f   :  { %v3839_v11 = vsel %vm3711_vm8, %v3647_v60, %v3775_v54  ;;  %v3474_v60 = vsub.f32 %v9816_v13, %v9901_v18  ;;  %v3583_v50 = vmul.f32 %v9912_v30, %v3516_v22 }
 0x590   :  { %v3836_v6 = vsel %vm3708_vm3, %v3644_v38, %v3772_v19  ;;  %v3472_v38 = vsub.f32 %v9796_v56, %v9901_v18  ;;  %v3515_v19 = vmul.f32 %v9918_v25, %v3440_v0  ;;  %v3892_v3 = vpack.c.bf16 %v3839_v11, %v3838_v63 }
 0x591   :  { %v3891_v45 = vpack.c.bf16 %v3837_v16, %v3836_v6  ;;  %v3650_v11 = vadd.f32 %v9925_v42, %v3583_v50 }
 0x592   :  { %v3547_v14 = vmul.f32 %v9918_v25, %v3472_v38 }
 0x593   :  { %v3778_v4 = vmul.f32 0.01, %v3650_v11  ;;  %vm3714_vm15 = vcmp.ge.f32.partialorder %v3650_v11, 0.0 }
 0x594   :  { %v3614_v35 = vmul.f32 %v9912_v30, %v3547_v14 }
 0x596   :  { %v3681_v9 = vadd.f32 %v9925_v42, %v3614_v35  ;;  %v3444_v35 = vsub.f32 %v13275_v61, %v9901_v18 }
 0x597   :  { %4981 = vmatmul.msk.bf16.gmra.mxu1 %vm155_vm0, %v3889_v20  ;;  %v13266_v20 = vld [vmem:[#allocation224_spill] sm:$0xff] }
 0x598   :  { %4997 = vmatmul.msk.bf16.gmra.mxu3 %vm155_vm0, %v3905_v27  ;;  %v3469_v27 = vsub.f32 %v13266_v20, %v9901_v18  ;;  %vm3745_vm14 = vcmp.ge.f32.partialorder %v3681_v9, 0.0 }
 0x59a   :  { %v3544_v36 = vmul.f32 %v9918_v25, %v3469_v27  ;;  %v3582_v27 = vmul.f32 %v9912_v30, %v3515_v19 }
 0x59c   :  { %v3611_v59 = vmul.f32 %v9912_v30, %v3544_v36  ;;  %v3649_v16 = vadd.f32 %v9925_v42, %v3582_v27 }
 0x59e   :  { %v3678_v43 = vadd.f32 %v9925_v42, %v3611_v59  ;;  %v3777_v12 = vmul.f32 0.01, %v3649_v16  ;;  %vm3713_vm12 = vcmp.ge.f32.partialorder %v3649_v16, 0.0  ;;  %v13272_v59 = vld [vmem:[#allocation214_spill] sm:$0xff] }
 0x59f   :  { %v3442_v44 = vsub.f32 %v13272_v59, %v9901_v18 }
 0x5a0   :  { %v3806_v62 = vmul.f32 0.01, %v3678_v43  ;;  %vm3742_vm9 = vcmp.ge.f32.partialorder %v3678_v43, 0.0  ;;  %v3841_v39 = vsel %vm3713_vm12, %v3649_v16, %v3777_v12  ;;  %v3476_v16 = vsub.f32 %v9837_v57, %v9901_v18 }
 0x5a1   :  { %v3517_v54 = vmul.f32 %v9918_v25, %v3442_v44 }
 0x5a2   :  { %v3870_v51 = vsel %vm3742_vm9, %v3678_v43, %v3806_v62  ;;  %v3551_v59 = vmul.f32 %v9918_v25, %v3476_v16 }
 0x5a3   :  { %v3908_v20 = vpack.c.bf16 %v3871_v28, %v3870_v51  ;;  %v3584_v13 = vmul.f32 %v9912_v30, %v3517_v54 }
 0x5a4   :  { %v10125_v34 = vpop.f32.mrf.mxu1 }
 0x5a7   :  { %4982 = vmatmul.msk.bf16.gmra.mxu1 %vm155_vm0, %v3890_v32  ;;  %v13268_v32 = vld [vmem:[#allocation211_spill] sm:$0xff] }
 0x5a8   :  { %4998 = vmatmul.msk.bf16.gmra.mxu3 %vm155_vm0, %v3906_v55  ;;  %v3439_v55 = vsub.f32 %v13268_v32, %v9901_v18  ;;  %v3548_v32 = vmul.f32 %v9918_v25, %v3473_v1 }
 0x5aa   :  { %v3514_v31 = vmul.f32 %v9918_v25, %v3439_v55  ;;  %v3549_v55 = vmul.f32 %v9918_v25, %v3474_v60  ;;  %v3615_v53 = vmul.f32 %v9912_v30, %v3548_v32 }
 0x5ab   :  { %v10135_v33 = vpop.f32.mrf.mxu3 }
 0x5ac   :  { %13263 = vst [vmem:[#allocation225_spill] sm:$0xff] %v10135_v33  ;;  %v10139_v5 = vpop.f32.mrf.mxu1  ;;  %v3581_v56 = vmul.f32 %v9912_v30, %v3514_v31  ;;  %v3616_v38 = vmul.f32 %v9912_v30, %v3549_v55  ;;  %v3651_v31 = vadd.f32 %v9925_v42, %v3584_v13  ;;  %v3682_v19 = vadd.f32 %v9925_v42, %v3615_v53  ;;  %v13276_v53 = vld [vmem:[#allocation217_spill] sm:$0xff] }
 0x5ae   :  { %v3648_v6 = vadd.f32 %v9925_v42, %v3581_v56  ;;  %v3683_v51 = vadd.f32 %v9925_v42, %v3616_v38  ;;  %v3779_v14 = vmul.f32 0.01, %v3651_v31  ;;  %vm3715_vm1 = vcmp.ge.f32.partialorder %v3651_v31, 0.0  ;;  %v13274_v56 = vld [vmem:[#allocation215_spill] sm:$0xff] }
 0x5af   :  { %vm3746_vm2 = vcmp.ge.f32.partialorder %v3682_v19, 0.0  ;;  %v3443_v27 = vsub.f32 %v13274_v56, %v9901_v18  ;;  %v3445_v38 = vsub.f32 %v13276_v53, %v9901_v18 }
 0x5b0   :  { %v3776_v36 = vmul.f32 0.01, %v3648_v6  ;;  %vm3712_vm11 = vcmp.ge.f32.partialorder %v3648_v6, 0.0  ;;  %vm3747_vm3 = vcmp.ge.f32.partialorder %v3683_v51, 0.0 }
 0x5b1   :  { %v3518_v12 = vmul.f32 %v9918_v25, %v3443_v27 }
 0x5b2   :  { %v3840_v43 = vsel %vm3712_vm11, %v3648_v6, %v3776_v36  ;;  %v3475_v6 = vsub.f32 %v9826_v26, %v9901_v18  ;;  %v3843_v36 = vsel %vm3715_vm1, %v3651_v31, %v3779_v14 }
 0x5b3   :  { %v10151_v48 = vpop.f32.mrf.mxu3  ;;  %v3893_v0 = vpack.c.bf16 %v3841_v39, %v3840_v43  ;;  %v3585_v57 = vmul.f32 %v9912_v30, %v3518_v12  ;;  %v3618_v39 = vmul.f32 %v9912_v30, %v3551_v59 }
 0x5b4   :  { %v10155_v24 = vpop.f32.mrf.mxu1  ;;  %v3550_v37 = vmul.f32 %v9918_v25, %v3475_v6 }
 0x5b5   :  { %v3652_v22 = vadd.f32 %v9925_v42, %v3585_v57 }
 0x5b6   :  { %v3617_v43 = vmul.f32 %v9912_v30, %v3550_v37 }
 0x5b7   :  { %4983 = vmatmul.msk.bf16.gmra.mxu1 %vm155_vm0, %v3891_v45  ;;  %v3808_v45 = vmul.f32 0.01, %v3680_v46  ;;  %vm3716_vm4 = vcmp.ge.f32.partialorder %v3652_v22, 0.0 }
 0x5b8   :  { %4999 = vmatmul.msk.bf16.gmra.mxu3 %vm155_vm0, %v3907_v17  ;;  %v3809_v17 = vmul.f32 0.01, %v3681_v9 }
 0x5b9   :  { %v3872_v62 = vsel %vm3744_vm13, %v3680_v46, %v3808_v45  ;;  %v3519_v45 = vmul.f32 %v9918_v25, %v3444_v35 }
 0x5ba   :  { %v3873_v8 = vsel %vm3745_vm14, %v3681_v9, %v3809_v17  ;;  %v3842_v9 = vsel %vm3714_vm15, %v3650_v11, %v3778_v4  ;;  %v13277_v11 = vld [vmem:[#allocation218_spill] sm:$0xff] }
 0x5bb   :  { %v10165_v40 = vpop.f32.mrf.mxu3  ;;  %v3909_v7 = vpack.c.bf16 %v3873_v8, %v3872_v62  ;;  %v3894_v26 = vpack.c.bf16 %v3843_v36, %v3842_v9  ;;  %v3586_v60 = vmul.f32 %v9912_v30, %v3519_v45  ;;  %v3684_v62 = vadd.f32 %v9925_v42, %v3617_v43 }
 0x5bc   :  { %v10169_v2 = vpop.f32.mrf.mxu1  ;;  %v3685_v8 = vadd.f32 %v9925_v42, %v3618_v39  ;;  %v3446_v31 = vsub.f32 %v13277_v11, %v9901_v18 }
 0x5bd   :  { %v3653_v54 = vadd.f32 %v9925_v42, %v3586_v60  ;;  %v3812_v50 = vmul.f32 0.01, %v3684_v62  ;;  %vm3748_vm6 = vcmp.ge.f32.partialorder %v3684_v62, 0.0 }
 0x5be   :  { %v3813_v13 = vmul.f32 0.01, %v3685_v8  ;;  %vm3749_vm7 = vcmp.ge.f32.partialorder %v3685_v8, 0.0 }
 0x5bf   :  { %vm3717_vm5 = vcmp.ge.f32.partialorder %v3653_v54, 0.0  ;;  %v3876_v56 = vsel %vm3748_vm6, %v3684_v62, %v3812_v50  ;;  %v13281_v62 = vld [vmem:[#allocation220_spill] sm:$0xff] }
 0x5c0   :  { %v3877_v27 = vsel %vm3749_vm7, %v3685_v8, %v3813_v13  ;;  %v3448_v8 = vsub.f32 %v13281_v62, %v9901_v18 }
 0x5c3   :  { %v10183_v47 = vpop.f32.mrf.mxu3 }
 0x5c4   :  { %v10185_v41 = vpop.f32.mrf.mxu1 }
 0x5c7   :  { %4984 = vmatmul.msk.bf16.gmra.mxu1 %vm155_vm0, %v3892_v3  ;;  %v3810_v3 = vmul.f32 0.01, %v3682_v19 }
 0x5c8   :  { %5000 = vmatmul.msk.bf16.gmra.mxu3 %vm155_vm0, %v3908_v20  ;;  %v3811_v20 = vmul.f32 0.01, %v3683_v51 }
 0x5c9   :  { %v3874_v17 = vsel %vm3746_vm2, %v3682_v19, %v3810_v3  ;;  %v3477_v19 = vsub.f32 %v9850_v23, %v9901_v18  ;;  %v3520_v3 = vmul.f32 %v9918_v25, %v3445_v38  ;;  %v3911_v23 = vpack.c.bf16 %v3877_v27, %v3876_v56 }
 0x5ca   :  { %v3875_v49 = vsel %vm3747_vm3, %v3683_v51, %v3811_v20  ;;  %v3478_v51 = vsub.f32 %v9858_v52, %v9901_v18  ;;  %v3521_v20 = vmul.f32 %v9918_v25, %v3446_v31  ;;  %v3523_v38 = vmul.f32 %v9918_v25, %v3448_v8 }
 0x5cb   :  { %v10199_v10 = vpop.f32.mrf.mxu3  ;;  %v3910_v1 = vpack.c.bf16 %v3875_v49, %v3874_v17  ;;  %v3552_v61 = vmul.f32 %v9918_v25, %v3477_v19  ;;  %v3587_v52 = vmul.f32 %v9912_v30, %v3520_v3 }
 0x5cc   :  { %v10197_v21 = vpop.f32.mrf.mxu1  ;;  %v3553_v35 = vmul.f32 %v9918_v25, %v3478_v51  ;;  %v3588_v36 = vmul.f32 %v9912_v30, %v3521_v20 }
 0x5cd   :  { %v3619_v12 = vmul.f32 %v9912_v30, %v3552_v61  ;;  %v3654_v17 = vadd.f32 %v9925_v42, %v3587_v52  ;;  %v5071_v61 = vld [vmem:[%s11831_s6] ss:$0 sm:$0xff] }
 0x5ce   :  { %v3620_v45 = vmul.f32 %v9912_v30, %v3553_v35  ;;  %v3655_v49 = vadd.f32 %v9925_v42, %v3588_v36 }
 0x5cf   :  { %v3686_v37 = vadd.f32 %v9925_v42, %v3619_v12  ;;  %vm3718_vm8 = vcmp.ge.f32.partialorder %v3654_v17, 0.0 }
 0x5d0   :  { %v3687_v59 = vadd.f32 %v9925_v42, %v3620_v45  ;;  %v3783_v57 = vmul.f32 0.01, %v3655_v49  ;;  %vm3719_vm9 = vcmp.ge.f32.partialorder %v3655_v49, 0.0 }
 0x5d1   :  { %v3814_v60 = vmul.f32 0.01, %v3686_v37  ;;  %vm3750_vm10 = vcmp.ge.f32.partialorder %v3686_v37, 0.0 }
 0x5d2   :  { %v3815_v43 = vmul.f32 0.01, %v3687_v59  ;;  %vm3751_vm11 = vcmp.ge.f32.partialorder %v3687_v59, 0.0  ;;  %v3847_v13 = vsel %vm3719_vm9, %v3655_v49, %v3783_v57 }
 0x5d3   :  { %v10220_v63 = vpop.f32.mrf.mxu3  ;;  %v3878_v11 = vsel %vm3750_vm10, %v3686_v37, %v3814_v60 }
 0x5d4   :  { %v10213_v15 = vpop.f32.mrf.mxu1  ;;  %13273 = vst [vmem:[#allocation226_spill] sm:$0xff] %v10220_v63  ;;  %v3879_v31 = vsel %vm3751_vm11, %v3687_v59, %v3815_v43 }
 0x5d5   :  { %v3912_v3 = vpack.c.bf16 %v3879_v31, %v3878_v11 }
 0x5d7   :  { %4985 = vmatmul.msk.bf16.gmra.mxu1 %vm155_vm0, %v3893_v0  ;;  %v3780_v0 = vmul.f32 0.01, %v3652_v22 }
 0x5d8   :  { %5001 = vmatmul.msk.bf16.gmra.mxu3 %vm155_vm0, %v3909_v7  ;;  %v3781_v7 = vmul.f32 0.01, %v3653_v54 }
 0x5d9   :  { %v3844_v4 = vsel %vm3716_vm4, %v3652_v22, %v3780_v0  ;;  %v13280_v22 = vld [vmem:[#allocation219_spill] sm:$0xff]  ;;  %v3479_v0 = vsub.f32 %v9866_v29, %v9901_v18 }
 0x5da   :  { %v3845_v14 = vsel %vm3717_vm5, %v3653_v54, %v3781_v7  ;;  %v3447_v54 = vsub.f32 %v13280_v22, %v9901_v18  ;;  %v3480_v7 = vsub.f32 %v9873_v58, %v9901_v18  ;;  %v3590_v58 = vmul.f32 %v9912_v30, %v3523_v38  ;;  %v5070_v18 = vld [vmem:[%s11830_s5] ss:$0 sm:$0xff] }
 0x5db   :  { %v10237_v46 = vpop.f32.mrf.mxu3  ;;  %v3895_v16 = vpack.c.bf16 %v3845_v14, %v3844_v4  ;;  %v3554_v19 = vmul.f32 %v9918_v25, %v3479_v0 }
 0x5dc   :  { %v10227_v28 = vpop.f32.mrf.mxu1  ;;  %v3522_v53 = vmul.f32 %v9918_v25, %v3447_v54  ;;  %v3555_v51 = vmul.f32 %v9918_v25, %v3480_v7  ;;  %v3657_v35 = vadd.f32 %v5071_v61, %v3590_v58  ;;  %v4187_v58 = vadd.f32 %v10139_v5, %v10125_v34 }
 0x5dd   :  { %v3621_v20 = vmul.f32 %v5070_v18, %v3554_v19 }
 0x5de   :  { %v3589_v29 = vmul.f32 %v9912_v30, %v3522_v53  ;;  %v3622_v56 = vmul.f32 %v5070_v18, %v3555_v51  ;;  %v3785_v36 = vmul.f32 0.01, %v3657_v35  ;;  %vm3721_vm13 = vcmp.ge.f32.partialorder %v3657_v35, 0.0 }
 0x5df   :  { %v3688_v30 = vadd.f32 %v5071_v61, %v3621_v20  ;;  %v4258_v18 = vmul.f32 %v10155_v24, %v10155_v24  ;;  %v4188_v20 = vadd.f32 %v4187_v58, %v10155_v24 }
 0x5e0   :  { %v3656_v25 = vadd.f32 %v9925_v42, %v3589_v29  ;;  %v3849_v49 = vsel %vm3721_vm13, %v3657_v35, %v3785_v36  ;;  %v4256_v29 = vmul.f32 %v10125_v34, %v10125_v34 }
 0x5e1   :  { %v3816_v12 = vmul.f32 0.01, %v3688_v30  ;;  %vm3752_vm14 = vcmp.ge.f32.partialorder %v3688_v30, 0.0 }
 0x5e2   :  { %v3784_v52 = vmul.f32 0.01, %v3656_v25  ;;  %vm3720_vm12 = vcmp.ge.f32.partialorder %v3656_v25, 0.0 }
 0x5e3   :  { %v10255_v32 = vpop.f32.mrf.mxu3  ;;  %v3880_v42 = vsel %vm3752_vm14, %v3688_v30, %v3816_v12 }
 0x5e4   :  { %v10243_v44 = vpop.f32.mrf.mxu1 }
 0x5e7   :  { %4986 = vmatmul.msk.bf16.gmra.mxu1 %vm155_vm0, %v3894_v26 }
 0x5e8   :  { %5002 = vmatmul.msk.bf16.gmra.mxu3 %vm155_vm0, %v3910_v1  ;;  %v3782_v1 = vmul.f32 0.01, %v3654_v17 }
 0x5ea   :  { %v3846_v50 = vsel %vm3718_vm8, %v3654_v17, %v3782_v1  ;;  %v3848_v17 = vsel %vm3720_vm12, %v3656_v25, %v3784_v52  ;;  %v4259_v25 = vmul.f32 %v10169_v2, %v10169_v2  ;;  %v4260_v52 = vmul.f32 %v10185_v41, %v10185_v41 }
 0x5eb   :  { %v10273_v9 = vpop.f32.mrf.mxu3  ;;  %v3896_v14 = vpack.c.bf16 %v3847_v13, %v3846_v50  ;;  %v3897_v57 = vpack.c.bf16 %v3849_v49, %v3848_v17 }
 0x5ec   :  { %v10257_v55 = vpop.f32.mrf.mxu1  ;;  %13278 = vst [vmem:[#allocation138_spill] sm:$0xff] %v10273_v9 }
 0x5f3   :  { %v10287_v39 = vpop.f32.mrf.mxu3 }
 0x5f4   :  { %v10271_v6 = vpop.f32.mrf.mxu1  ;;  %13279 = vst [vmem:[#allocation206_spill] sm:$0xff] %v10287_v39 }
 0x5f7   :  { %4987 = vmatmul.msk.bf16.gmra.mxu1 %vm155_vm0, %v3895_v16  ;;  %v3689_v16 = vadd.f32 %v5071_v61, %v3622_v56 }
 0x5f8   :  { %5003 = vmatmul.msk.bf16.gmra.mxu3 %vm155_vm0, %v3911_v23 }
 0x5f9   :  { %v3817_v45 = vmul.f32 0.01, %v3689_v16  ;;  %vm3753_vm15 = vcmp.ge.f32.partialorder %v3689_v16, 0.0 }
 0x5fb   :  { %v10310_v27 = vpop.f32.mrf.mxu3  ;;  %v3881_v37 = vsel %vm3753_vm15, %v3689_v16, %v3817_v45  ;;  %v4189_v16 = vadd.f32 %v4188_v20, %v10169_v2  ;;  %v4261_v45 = vmul.f32 %v10197_v21, %v10197_v21 }
 0x5fc   :  { %v10285_v26 = vpop.f32.mrf.mxu1  ;;  %13282 = vst [vmem:[#allocation141_spill] sm:$0xff] %v10310_v27  ;;  %v3913_v60 = vpack.c.bf16 %v3881_v37, %v3880_v42  ;;  %v4262_v42 = vmul.f32 %v10213_v15, %v10213_v15 }
 0x5fd   :  { %v4190_v36 = vadd.f32 %v4189_v16, %v10185_v41 }
 0x5ff   :  { %v4191_v49 = vadd.f32 %v4190_v36, %v10197_v21  ;;  %v4266_v36 = vmul.f32 %v10271_v6, %v10271_v6 }
 0x601   :  { %v4192_v37 = vadd.f32 %v4191_v49, %v10213_v15 }
 0x603   :  { %v10318_v59 = vpop.f32.mrf.mxu3  ;;  %v4193_v58 = vadd.f32 %v4192_v37, %v10227_v28 }
 0x604   :  { %v10301_v4 = vpop.f32.mrf.mxu1 }
 0x607   :  { %4988 = vmatmul.msk.bf16.gmra.mxu1 %vm155_vm0, %v3896_v14 }
 0x608   :  { %5004 = vmatmul.msk.bf16.gmra.mxu3 %vm155_vm0, %v3912_v3  ;;  %v4257_v3 = vmul.f32 %v10139_v5, %v10139_v5 }
 0x60a   :  { %v4320_v56 = vadd.f32 %v4257_v3, %v4256_v29 }
 0x60b   :  { %v10326_v22 = vpop.f32.mrf.mxu3 }
 0x60c   :  { %v10316_v23 = vpop.f32.mrf.mxu1  ;;  %v4321_v30 = vadd.f32 %v4320_v56, %v4258_v18  ;;  %v4264_v18 = vmul.f32 %v10243_v44, %v10243_v44  ;;  %v4194_v56 = vadd.f32 %v4193_v58, %v10243_v44 }
 0x60d   :  { %v4269_v58 = vmul.f32 %v10316_v23, %v10316_v23 }
 0x60e   :  { %v4322_v12 = vadd.f32 %v4321_v30, %v4259_v25  ;;  %v4265_v30 = vmul.f32 %v10257_v55, %v10257_v55 }
 0x610   :  { %v4323_v17 = vadd.f32 %v4322_v12, %v4260_v52  ;;  %v4195_v52 = vadd.f32 %v4194_v56, %v10257_v55 }
 0x613   :  { %v10330_v62 = vpop.f32.mrf.mxu3 }
 0x614   :  { %v10320_v1 = vpop.f32.mrf.mxu1 }
 0x617   :  { %4989 = vmatmul.msk.bf16.gmra.mxu1 %vm155_vm0, %v3897_v57  ;;  %v4324_v57 = vadd.f32 %v4323_v17, %v4261_v45  ;;  %v4196_v45 = vadd.f32 %v4195_v52, %v10271_v6  ;;  %v4267_v17 = vmul.f32 %v10285_v26, %v10285_v26 }
 0x618   :  { %5005 = vmatmul.msk.bf16.gmra.mxu3 %vm155_vm0, %v3913_v60  ;;  %v4263_v60 = vmul.f32 %v10227_v28, %v10227_v28 }
 0x619   :  { %v4325_v29 = vadd.f32 %v4324_v57, %v4262_v42  ;;  %v4197_v37 = vadd.f32 %v4196_v45, %v10285_v26  ;;  %v4268_v57 = vmul.f32 %v10301_v4, %v10301_v4 }
 0x61b   :  { %v10334_v0 = vpop.f32.mrf.mxu3  ;;  %v4326_v25 = vadd.f32 %v4325_v29, %v4263_v60  ;;  %v4198_v29 = vadd.f32 %v4197_v37, %v10301_v4 }
 0x61c   :  { %v10324_v43 = vpop.f32.mrf.mxu1  ;;  %13284 = vst [vmem:[#allocation144_spill] sm:$0xff] %v10334_v0 }
 0x61d   :  { %v4327_v16 = vadd.f32 %v4326_v25, %v4264_v18  ;;  %v4199_v25 = vadd.f32 %v4198_v29, %v10316_v23 }
 0x61f   :  { %v4328_v12 = vadd.f32 %v4327_v16, %v4265_v30  ;;  %v4270_v30 = vmul.f32 %v10320_v1, %v10320_v1  ;;  %v4200_v52 = vadd.f32 %v4199_v25, %v10320_v1 }
 0x621   :  { %v4329_v42 = vadd.f32 %v4328_v12, %v4266_v36  ;;  %v4271_v36 = vmul.f32 %v10324_v43, %v10324_v43 }
 0x623   :  { %v10338_v50 = vpop.f32.mrf.mxu3  ;;  %v4330_v60 = vadd.f32 %v4329_v42, %v4267_v17  ;;  %v4201_v17 = vadd.f32 %v4200_v52, %v10324_v43 }
 0x624   :  { %v10328_v54 = vpop.f32.mrf.mxu1  ;;  %13286 = vst [vmem:[#allocation145_spill] sm:$0xff] %v10338_v50 }
 0x625   :  { %v4331_v56 = vadd.f32 %v4330_v60, %v4268_v57  ;;  %v4272_v42 = vmul.f32 %v10328_v54, %v10328_v54  ;;  %v4202_v57 = vadd.f32 %v4201_v17, %v10328_v54 }
 0x627   :  { %v4332_v16 = vadd.f32 %v4331_v56, %v4269_v58 }
 0x629   :  { %v4333_v45 = vadd.f32 %v4332_v16, %v4270_v30 }
 0x62b   :  { %v10344_v38 = vpop.f32.mrf.mxu3  ;;  %v4334_v37 = vadd.f32 %v4333_v45, %v4271_v36 }
 0x62c   :  { %v10332_v8 = vpop.f32.mrf.mxu1  ;;  %13287 = vst [vmem:[#allocation148_spill] sm:$0xff] %v10344_v38 }
 0x62d   :  { %13283 = vst [vmem:[#allocation207_spill] sm:$0xff] %v10332_v8  ;;  %v4273_v60 = vmul.f32 %v10332_v8, %v10332_v8  ;;  %v4335_v29 = vadd.f32 %v4334_v37, %v4272_v42  ;;  %v4203_v58 = vadd.f32 %v4202_v57, %v10332_v8 }
 0x62f   :  { %v4336_v30 = vadd.f32 %v4335_v29, %v4273_v60 }
 0x633   :  { %v10348_v31 = vpop.f32.mrf.mxu3 }
 0x634   :  { %v10336_v7 = vpop.f32.mrf.mxu1 }
 0x635   :  { %13285 = vst [vmem:[#allocation208_spill] sm:$0xff] %v10336_v7  ;;  %v4274_v56 = vmul.f32 %v10336_v7, %v10336_v7  ;;  %v4204_v16 = vadd.f32 %v4203_v58, %v10336_v7 }
 0x637   :  { %v4337_v45 = vadd.f32 %v4336_v30, %v4274_v56 }
 0x63b   :  { %v10352_v51 = vpop.f32.mrf.mxu3 }
 0x63c   :  { %v10340_v13 = vpop.f32.mrf.mxu1 }
 0x63d   :  { %v4275_v52 = vmul.f32 %v10340_v13, %v10340_v13  ;;  %v4205_v17 = vadd.f32 %v4204_v16, %v10340_v13 }
 0x63f   :  { %v4338_v37 = vadd.f32 %v4337_v45, %v4275_v52 }
 0x643   :  { %v10367_v61 = vpop.f32.mrf.mxu3 }
 0x644   :  { %v10342_v53 = vpop.f32.mrf.mxu1  ;;  %13290 = vst [vmem:[#allocation153_spill] sm:$0xff] %v10367_v61 }
 0x645   :  { %v4276_v42 = vmul.f32 %v10342_v53, %v10342_v53  ;;  %v4206_v57 = vadd.f32 %v4205_v17, %v10342_v53 }
 0x647   :  { %v4339_v60 = vadd.f32 %v4338_v37, %v4276_v42 }
 0x64b   :  { %v10388_v20 = vpop.f32.mrf.mxu3 }
 0x64c   :  { %v10346_v11 = vpop.f32.mrf.mxu1  ;;  %13292 = vst [vmem:[#allocation25_spill] sm:$0xff] %v10388_v20 }
 0x64d   :  { %13288 = vst [vmem:[#allocation149_spill] sm:$0xff] %v10346_v11  ;;  %v4277_v8 = vmul.f32 %v10346_v11, %v10346_v11  ;;  %v4207_v29 = vadd.f32 %v4206_v57, %v10346_v11 }
 0x64f   :  { %v4340_v7 = vadd.f32 %v4339_v60, %v4277_v8 }
 0x653   :  { %v10407_v18 = vpop.f32.mrf.mxu3 }
 0x654   :  { %v10350_v19 = vpop.f32.mrf.mxu1  ;;  %13294 = vst [vmem:[#allocation67_spill] sm:$0xff] %v10407_v18 }
 0x655   :  { %13289 = vst [vmem:[#allocation152_spill] sm:$0xff] %v10350_v19  ;;  %v4278_v58 = vmul.f32 %v10350_v19, %v10350_v19  ;;  %v4208_v56 = vadd.f32 %v4207_v29, %v10350_v19 }
 0x657   :  { %v4341_v45 = vadd.f32 %v4340_v7, %v4278_v58 }
 0x65b   :  { %v10426_v25 = vpop.f32.mrf.mxu3 }
 0x65c   :  { %v10354_v14 = vpop.f32.mrf.mxu1  ;;  %13296 = vst [vmem:[#allocation80_spill] sm:$0xff] %v10426_v25 }
 0x65d   :  { %v4279_v30 = vmul.f32 %v10354_v14, %v10354_v14  ;;  %v4209_v17 = vadd.f32 %v4208_v56, %v10354_v14 }
 0x65f   :  { %v4342_v37 = vadd.f32 %v4341_v45, %v4279_v30 }
 0x663   :  { %v10445_v16 = vpop.f32.mrf.mxu3 }
 0x664   :  { %v10369_v35 = vpop.f32.mrf.mxu1  ;;  %13297 = vst [vmem:[#allocation84_spill] sm:$0xff] %v10445_v16 }
 0x665   :  { %v4280_v42 = vmul.f32 %v10369_v35, %v10369_v35  ;;  %v4210_v57 = vadd.f32 %v4209_v17, %v10369_v35 }
 0x667   :  { %v4343_v60 = vadd.f32 %v4342_v37, %v4280_v42 }
 0x66b   :  { %v10466_v42 = vpop.f32.mrf.mxu3 }
 0x66c   :  { %v10383_v3 = vpop.f32.mrf.mxu1  ;;  %13299 = vst [vmem:[#allocation92_spill] sm:$0xff] %v10466_v42 }
 0x66d   :  { %13291 = vst [vmem:[#allocation23_spill] sm:$0xff] %v10383_v3  ;;  %v4281_v8 = vmul.f32 %v10383_v3, %v10383_v3  ;;  %v4211_v29 = vadd.f32 %v4210_v57, %v10383_v3 }
 0x66f   :  { %v4344_v11 = vadd.f32 %v4343_v60, %v4281_v8 }
 0x674   :  { %v10399_v49 = vpop.f32.mrf.mxu1 }
 0x675   :  { %13293 = vst [vmem:[#allocation66_spill] sm:$0xff] %v10399_v49  ;;  %v4282_v19 = vmul.f32 %v10399_v49, %v10399_v49  ;;  %v4212_v7 = vadd.f32 %v4211_v29, %v10399_v49 }
 0x677   :  { %v4345_v30 = vadd.f32 %v4344_v11, %v4282_v19 }
 0x67c   :  { %v10415_v12 = vpop.f32.mrf.mxu1 }
 0x67d   :  { %13295 = vst [vmem:[#allocation76_spill] sm:$0xff] %v10415_v12  ;;  %v4283_v58 = vmul.f32 %v10415_v12, %v10415_v12  ;;  %v4213_v45 = vadd.f32 %v4212_v7, %v10415_v12 }
 0x67f   :  { %v4346_v37 = vadd.f32 %v4345_v30, %v4283_v58  ;;  %v4288_v30 = vmul.f32 %v10135_v33, %v10135_v33 }
 0x684   :  { %v10431_v36 = vpop.f32.mrf.mxu1 }
 0x685   :  { %v4284_v17 = vmul.f32 %v10431_v36, %v10431_v36  ;;  %v4214_v57 = vadd.f32 %v4213_v45, %v10431_v36 }
 0x687   :  { %v4347_v60 = vadd.f32 %v4346_v37, %v4284_v17  ;;  %v10483_v37 = vpop.f32.mrf.mxu3 }
 0x688   :  { %13301 = vst [vmem:[#allocation100_spill] sm:$0xff] %v10483_v37 }
 0x68c   :  { %v10447_v52 = vpop.f32.mrf.mxu1 }
 0x68d   :  { %v4285_v8 = vmul.f32 %v10447_v52, %v10447_v52  ;;  %v4215_v29 = vadd.f32 %v4214_v57, %v10447_v52  ;;  %v4289_v57 = vmul.f32 %v10151_v48, %v10151_v48 }
 0x68f   :  { %v4348_v11 = vadd.f32 %v4347_v60, %v4285_v8 }
 0x694   :  { %v10461_v56 = vpop.f32.mrf.mxu1 }
 0x695   :  { %13298 = vst [vmem:[#allocation88_spill] sm:$0xff] %v10461_v56  ;;  %v4286_v49 = vmul.f32 %v10461_v56, %v10461_v56  ;;  %v4216_v19 = vadd.f32 %v4215_v29, %v10461_v56  ;;  %v10716_v56 = vld [vmem:[%s11833_s8] ss:$0 sm:$0xff] }
 0x697   :  { %v4349_v12 = vadd.f32 %v4348_v11, %v4286_v49  ;;  %v4290_v49 = vmul.f32 %v10165_v40, %v10165_v40 }
 0x69c   :  { %v10475_v7 = vpop.f32.mrf.mxu1 }
 0x69d   :  { %13300 = vst [vmem:[#allocation96_spill] sm:$0xff] %v10475_v7  ;;  %v4217_v3 = vadd.f32 %v4216_v19, %v10475_v7  ;;  %v4287_v58 = vmul.f32 %v10475_v7, %v10475_v7  ;;  %v4291_v19 = vmul.f32 %v10183_v47, %v10183_v47 }
 0x69f   :  { %v4218_v45 = vadd.f32 %v4217_v3, %v10135_v33  ;;  %v4350_v17 = vadd.f32 %v4349_v12, %v4287_v58  ;;  %v4292_v58 = vmul.f32 %v10199_v10, %v10199_v10 }
 0x6a1   :  { %v4219_v8 = vadd.f32 %v4218_v45, %v10151_v48  ;;  %v4351_v60 = vadd.f32 %v4350_v17, %v4288_v30  ;;  %v4293_v30 = vmul.f32 %v10220_v63, %v10220_v63 }
 0x6a3   :  { %v4220_v29 = vadd.f32 %v4219_v8, %v10165_v40  ;;  %v4352_v11 = vadd.f32 %v4351_v60, %v4289_v57  ;;  %v10500_v8 = vpop.f32.mrf.mxu3  ;;  %v4294_v57 = vmul.f32 %v10237_v46, %v10237_v46 }
 0x6a4   :  { %13302 = vst [vmem:[#allocation105_spill] sm:$0xff] %v10500_v8 }
 0x6a5   :  { %v4221_v3 = vadd.f32 %v4220_v29, %v10183_v47  ;;  %v4353_v12 = vadd.f32 %v4352_v11, %v4290_v49  ;;  %v4295_v29 = vmul.f32 %v10255_v32, %v10255_v32 }
 0x6a7   :  { %v4222_v33 = vadd.f32 %v4221_v3, %v10199_v10  ;;  %v4354_v7 = vadd.f32 %v4353_v12, %v4291_v19  ;;  %v4296_v3 = vmul.f32 %v10273_v9, %v10273_v9  ;;  %v4297_v12 = vmul.f32 %v10287_v39, %v10287_v39 }
 0x6a9   :  { %v4223_v45 = vadd.f32 %v4222_v33, %v10220_v63  ;;  %v4355_v17 = vadd.f32 %v4354_v7, %v4292_v58 }
 0x6ab   :  { %v4224_v60 = vadd.f32 %v4223_v45, %v10237_v46  ;;  %v4356_v49 = vadd.f32 %v4355_v17, %v4293_v30  ;;  %v4298_v30 = vmul.f32 %v10310_v27, %v10310_v27 }
 0x6ad   :  { %v4225_v11 = vadd.f32 %v4224_v60, %v10255_v32  ;;  %v4357_v19 = vadd.f32 %v4356_v49, %v4294_v57  ;;  %v10517_v60 = vpop.f32.mrf.mxu3 }
 0x6ae   :  { %13303 = vst [vmem:[#allocation110_spill] sm:$0xff] %v10517_v60 }
 0x6af   :  { %v4226_v33 = vadd.f32 %v4225_v11, %v10273_v9  ;;  %v4358_v7 = vadd.f32 %v4357_v19, %v4295_v29  ;;  %v4299_v29 = vmul.f32 %v10318_v59, %v10318_v59  ;;  %v13318_v9 = vld [vmem:[#allocation145_spill] sm:$0xff] }
 0x6b1   :  { %v4227_v58 = vadd.f32 %v4226_v33, %v10287_v39  ;;  %v4359_v63 = vadd.f32 %v4358_v7, %v4296_v3  ;;  %v4300_v3 = vmul.f32 %v10326_v22, %v10326_v22  ;;  %v13319_v39 = vld [vmem:[#allocation148_spill] sm:$0xff] }
 0x6b3   :  { %v4228_v45 = vadd.f32 %v4227_v58, %v10310_v27  ;;  %v4360_v17 = vadd.f32 %v4359_v63, %v4297_v12 }
 0x6b5   :  { %v4229_v57 = vadd.f32 %v4228_v45, %v10318_v59  ;;  %v4361_v49 = vadd.f32 %v4360_v17, %v4298_v30  ;;  %v10528_v12 = vpop.f32.mrf.mxu3  ;;  %v4301_v30 = vmul.f32 %v10330_v62, %v10330_v62 }
 0x6b6   :  { %13304 = vst [vmem:[#allocation115_spill] sm:$0xff] %v10528_v12 }
 0x6b7   :  { %v4230_v11 = vadd.f32 %v4229_v57, %v10326_v22  ;;  %v4362_v33 = vadd.f32 %v4361_v49, %v4299_v29  ;;  %v4302_v49 = vmul.f32 %v10334_v0, %v10334_v0 }
 0x6b9   :  { %v4231_v19 = vadd.f32 %v4230_v11, %v10330_v62  ;;  %v4363_v58 = vadd.f32 %v4362_v33, %v4300_v3  ;;  %v4303_v33 = vmul.f32 %v10338_v50, %v10338_v50 }
 0x6bb   :  { %v4232_v7 = vadd.f32 %v4231_v19, %v10334_v0  ;;  %v4364_v17 = vadd.f32 %v4363_v58, %v4301_v30  ;;  %v4304_v58 = vmul.f32 %v10344_v38, %v10344_v38 }
 0x6bd   :  { %v4233_v63 = vadd.f32 %v4232_v7, %v10338_v50  ;;  %v4365_v11 = vadd.f32 %v4364_v17, %v4302_v49  ;;  %v10541_v7 = vpop.f32.mrf.mxu3  ;;  %v4306_v49 = vmul.f32 %v10352_v51, %v10352_v51  ;;  %v4307_v50 = vmul.f32 %v10367_v61, %v10367_v61 }
 0x6be   :  { %13305 = vst [vmem:[#allocation158_spill] sm:$0xff] %v10541_v7 }
 0x6bf   :  { %v4234_v45 = vadd.f32 %v4233_v63, %v10344_v38  ;;  %v4366_v30 = vadd.f32 %v4365_v11, %v4303_v33  ;;  %v4308_v11 = vmul.f32 %v10388_v20, %v10388_v20 }
 0x6c1   :  { %v4235_v57 = vadd.f32 %v4234_v45, %v10348_v31  ;;  %v4305_v45 = vmul.f32 %v10348_v31, %v10348_v31 }
 0x6c3   :  { %v4236_v29 = vadd.f32 %v4235_v57, %v10352_v51  ;;  %v4367_v57 = vadd.f32 %v4366_v30, %v4304_v58  ;;  %v4309_v58 = vmul.f32 %v10407_v18, %v10407_v18 }
 0x6c5   :  { %v4237_v19 = vadd.f32 %v4236_v29, %v10367_v61 }
 0x6c7   :  { %v4238_v3 = vadd.f32 %v4237_v19, %v10388_v20  ;;  %v4368_v19 = vadd.f32 %v4367_v57, %v4305_v45 }
 0x6c9   :  { %v4239_v63 = vadd.f32 %v4238_v3, %v10407_v18  ;;  %v4369_v0 = vadd.f32 %v4368_v19, %v4306_v49 }
 0x6cb   :  { %v4240_v17 = vadd.f32 %v4239_v63, %v10426_v25  ;;  %v4370_v3 = vadd.f32 %v4369_v0, %v4307_v50  ;;  %v10558_v63 = vpop.f32.mrf.mxu3  ;;  %v4312_v50 = vmul.f32 %v10466_v42, %v10466_v42 }
 0x6cc   :  { %13306 = vst [vmem:[#allocation159_spill] sm:$0xff] %v10558_v63 }
 0x6cd   :  { %v4241_v29 = vadd.f32 %v4240_v17, %v10445_v16  ;;  %v4371_v45 = vadd.f32 %v4370_v3, %v4308_v11  ;;  %v4310_v17 = vmul.f32 %v10426_v25, %v10426_v25  ;;  %v4313_v11 = vmul.f32 %v10483_v37, %v10483_v37 }
 0x6cf   :  { %v4242_v38 = vadd.f32 %v4241_v29, %v10466_v42  ;;  %v4372_v49 = vadd.f32 %v4371_v45, %v4309_v58  ;;  %v4311_v29 = vmul.f32 %v10445_v16, %v10445_v16  ;;  %v4314_v58 = vmul.f32 %v10500_v8, %v10500_v8 }
 0x6d1   :  { %v4243_v33 = vadd.f32 %v4242_v38, %v10483_v37  ;;  %v4373_v0 = vadd.f32 %v4372_v49, %v4310_v17 }
 0x6d3   :  { %v4244_v30 = vadd.f32 %v4243_v33, %v10500_v8  ;;  %v4374_v18 = vadd.f32 %v4373_v0, %v4311_v29  ;;  %v4316_v29 = vmul.f32 %v10528_v12, %v10528_v12  ;;  %v4318_v8 = vmul.f32 %v10558_v63, %v10558_v63 }
 0x6d5   :  { %v4245_v57 = vadd.f32 %v4244_v30, %v10517_v60  ;;  %v4375_v3 = vadd.f32 %v4374_v18, %v4312_v50  ;;  %v10575_v30 = vpop.f32.mrf.mxu3  ;;  %v4317_v18 = vmul.f32 %v10541_v7, %v10541_v7 }
 0x6d7   :  { %v4246_v38 = vadd.f32 %v4245_v57, %v10528_v12  ;;  %v4376_v17 = vadd.f32 %v4375_v3, %v4313_v11  ;;  %v4315_v57 = vmul.f32 %v10517_v60, %v10517_v60  ;;  %v4319_v3 = vmul.f32 %v10575_v30, %v10575_v30 }
 0x6d9   :  { %v4247_v19 = vadd.f32 %v4246_v38, %v10541_v7  ;;  %v4377_v38 = vadd.f32 %v4376_v17, %v4314_v58 }
 0x6db   :  { %v4248_v33 = vadd.f32 %v4247_v19, %v10558_v63  ;;  %v4378_v37 = vadd.f32 %v4377_v38, %v4315_v57 }
 0x6dd   :  { %v4249_v45 = vadd.f32 %v4248_v33, %v10575_v30  ;;  %v4379_v19 = vadd.f32 %v4378_v37, %v4316_v29 }
 0x6df   :  { %v4250_v49 = vrot.slane %v4249_v45, 4  ;;  %v4380_v11 = vadd.f32 %v4379_v19, %v4317_v18 }
 0x6e1   :  { %v4251_v0 = vadd.f32 %v4250_v49, %v4249_v45  ;;  %v4381_v60 = vadd.f32 %v4380_v11, %v4318_v8  ;;  %v13324_v11 = vld [vmem:[#allocation110_spill] sm:$0xff] }
 0x6e3   :  { %v4252_v50 = vrot.slane %v4251_v0, 2  ;;  %v4382_v17 = vadd.f32 %v4381_v60, %v4319_v3  ;;  %v10740_v60 = vld [vmem:[%s11834_s9] ss:$0 sm:$0xff]  ;;  %s5128_s9 = smov [#allocation6]  }
 0x6e4   :  { %13327 = vst [vmem:[#allocation162_spill] sm:$0xff] %v10740_v60  ;;  %s4927_s23 = sshll.u32 %s5128_s9, 4  ;;  %s4928_s23 = int_to_ptr.vmem [resolvable:$true] %s4927_s23 }
 0x6e5   :  { %v4253_v33 = vadd.f32 %v4252_v50, %v4251_v0  ;;  %v4383_v42 = vrot.slane %v4382_v17, 4 }
 0x6e7   :  { %v4254_v58 = vrot.slane %v4253_v33, 1  ;;  %v4384_v45 = vadd.f32 %v4383_v42, %v4382_v17  ;;  %v13315_v42 = vld [vmem:[#allocation225_spill] sm:$0xff] }
 0x6e9   :  { %v4255_v12 = vadd.f32 %v4254_v58, %v4253_v33  ;;  %v4385_v57 = vrot.slane %v4384_v45, 2  ;;  %v13314_v33 = vld [vmem:[#allocation96_spill] sm:$0xff]  ;;  %v13325_v58 = vld [vmem:[#allocation115_spill] sm:$0xff] }
 0x6eb   :  { %v4386_v49 = vadd.f32 %v4385_v57, %v4384_v45  ;;  %v10590_v38 = vmul.f32 0.001953125, %v4255_v12  ;;  %v13307_v57 = vld [vmem:[#allocation207_spill] sm:$0xff]  ;;  %v13316_v45 = vld [vmem:[#allocation226_spill] sm:$0xff]  ;;  %v13323_v12 = vld [vmem:[#allocation105_spill] sm:$0xff] }
 0x6ed   :  { %v4387_v7 = vrot.slane %v4386_v49, 1  ;;  %v4391_v29 = vmul.f32 %v10590_v38, %v10590_v38  ;;  %v13328_v27 = vsub.f32 %v10575_v30, %v10590_v38  ;;  %v13330_v61 = vsub.f32 %v10139_v5, %v10590_v38 }
 0x6ee   :  { %v13331_v16 = vsub.f32 %v10155_v24, %v10590_v38  ;;  %v13333_v30 = vsub.f32 %v10185_v41, %v10590_v38  ;;  %v13336_v41 = vsub.f32 %v10227_v28, %v10590_v38 }
 0x6ef   :  { %v4388_v37 = vadd.f32 %v4387_v7, %v4386_v49  ;;  %v13308_v49 = vld [vmem:[#allocation208_spill] sm:$0xff] }
 0x6f0   :  { %v13313_v7 = vld [vmem:[#allocation76_spill] sm:$0xff] }
 0x6f1   :  { %v4390_v0 = vmul.f32 0.001953125, %v4388_v37 }
 0x6f3   :  { %v4392_v18 = vsub.f32 %v4390_v0, %v4391_v29  ;;  %v13309_v0 = vld [vmem:[#allocation149_spill] sm:$0xff]  ;;  %v13312_v29 = vld [vmem:[#allocation66_spill] sm:$0xff] }
 0x6f5   :  { %v4393_v50 = vmax.f32 %v4392_v18, 0.0  ;;  %v13310_v18 = vld [vmem:[#allocation152_spill] sm:$0xff] }
 0x6f7   :  { %v10594_v19 = vadd.f32 1e-05, %v4393_v50  ;;  %v13322_v50 = vld [vmem:[#allocation100_spill] sm:$0xff] }
 0x6f9   :  { %5034 = vrsqrt.f32 %v10594_v19  ;;  %vm4465_vm0 = vweird.f32 %v10594_v19 }
 0x6ff   :  { %v5035_v3 = vpop.eup %5034 }
 0x700   :  { %v4460_v37 = vmul.f32 %v5035_v3, %v10594_v19  ;;  %vm4466_vm1 = vweird.f32 %v5035_v3  ;;  %v13326_v19 = vld [vmem:[#allocation158_spill] sm:$0xff] }
 0x701   :  { %vm4467_vm2 = vmor %vm4465_vm0, %vm4466_vm1 }
 0x702   :  { %v4461_v17 = vmul.f32 %v5035_v3, %v4460_v37 }
 0x704   :  { %v4462_v8 = vmul.f32 0.5, %v4461_v17 }
 0x706   :  { %v4463_v17 = vsub.f32 1.5, %v4462_v8 }
 0x708   :  { %v4464_v37 = vmul.f32 %v5035_v3, %v4463_v17  ;;  %v13321_v17 = vld [vmem:[#allocation92_spill] sm:$0xff] }
 0x70a   :  { %v10729_v25 = vsel %vm4467_vm2, %v5035_v3, %v4464_v37  ;;  %v13329_v37 = vsub.f32 %v10125_v34, %v10590_v38 }
 0x70b   :  { %v4532_v3 = vmul.f32 %v10729_v25, %v13328_v27  ;;  %v10756_v8 = vmul.f32 %v10729_v25, %v13330_v61  ;;  %v10762_v63 = vmul.f32 %v10729_v25, %v13331_v16  ;;  %v13332_v27 = vsub.f32 %v10169_v2, %v10590_v38 }
 0x70c   :  { %v10750_v20 = vmul.f32 %v10729_v25, %v13329_v37  ;;  %v10774_v5 = vmul.f32 %v10729_v25, %v13333_v30  ;;  %v13334_v61 = vsub.f32 %v10197_v21, %v10590_v38  ;;  %v13335_v16 = vsub.f32 %v10213_v15, %v10590_v38 }
 0x70d   :  { %v10768_v34 = vmul.f32 %v10729_v25, %v13332_v27  ;;  %v4599_v37 = vmul.f32 %v10716_v56, %v4532_v3  ;;  %v10793_v27 = vmul.f32 %v10729_v25, %v13336_v41  ;;  %v13337_v21 = vsub.f32 %v10243_v44, %v10590_v38 }
 0x70e   :  { %v10780_v24 = vmul.f32 %v10729_v25, %v13334_v61  ;;  %v10786_v2 = vmul.f32 %v10729_v25, %v13335_v16  ;;  %v13338_v15 = vsub.f32 %v10257_v55, %v10590_v38  ;;  %v13339_v3 = vsub.f32 %v10271_v6, %v10590_v38 }
 0x70f   :  { %v10799_v30 = vmul.f32 %v10729_v25, %v13337_v21  ;;  %v13340_v16 = vsub.f32 %v10285_v26, %v10590_v38  ;;  %v13341_v41 = vsub.f32 %v10301_v4, %v10590_v38  ;;  %v13342_v21 = vsub.f32 %v10316_v23, %v10590_v38 }
 0x710   :  { %v10805_v61 = vmul.f32 %v10729_v25, %v13338_v15  ;;  %v10811_v28 = vmul.f32 %v10729_v25, %v13339_v3  ;;  %v4666_v15 = vadd.f32 %v10740_v60, %v4599_v37  ;;  %v13343_v26 = vsub.f32 %v10320_v1, %v10590_v38 }
 0x711   :  { %v10817_v44 = vmul.f32 %v10729_v25, %v13340_v16  ;;  %v10823_v55 = vmul.f32 %v10729_v25, %v13341_v41  ;;  %v10829_v6 = vmul.f32 %v10729_v25, %v13342_v21  ;;  %v13344_v4 = vsub.f32 %v10324_v43, %v10590_v38 }
 0x712   :  { %v10836_v3 = vmul.f32 %v10729_v25, %v13343_v26  ;;  %v13345_v23 = vsub.f32 %v10328_v54, %v10590_v38  ;;  %v13346_v37 = vsub.f32 %v13307_v57, %v10590_v38  ;;  %v13347_v21 = vsub.f32 %v13308_v49, %v10590_v38 }
 0x713   :  { %v10842_v16 = vmul.f32 %v10729_v25, %v13344_v4  ;;  %v13348_v26 = vsub.f32 %v10340_v13, %v10590_v38  ;;  %v13349_v4 = vsub.f32 %v10342_v53, %v10590_v38  ;;  %vm4730_vm3 = vcmp.ge.f32.partialorder %v4666_v15, 0.0 }
 0x714   :  { %v10848_v41 = vmul.f32 %v10729_v25, %v13345_v23  ;;  %v10854_v1 = vmul.f32 %v10729_v25, %v13346_v37  ;;  %v10860_v43 = vmul.f32 %v10729_v25, %v13347_v21  ;;  %v4794_v23 = vmul.f32 0.01, %v4666_v15 }
 0x715   :  { %v10866_v54 = vmul.f32 %v10729_v25, %v13348_v26  ;;  %v10872_v57 = vmul.f32 %v10729_v25, %v13349_v4  ;;  %v13350_v49 = vsub.f32 %v13309_v0, %v10590_v38  ;;  %v13351_v13 = vsub.f32 %v13310_v18, %v10590_v38 }
 0x716   :  { %v13352_v53 = vsub.f32 %v10354_v14, %v10590_v38  ;;  %v13354_v4 = vsub.f32 %v10369_v35, %v10590_v38 }
 0x717   :  { %v10878_v37 = vmul.f32 %v10729_v25, %v13350_v49  ;;  %v10884_v21 = vmul.f32 %v10729_v25, %v13351_v13  ;;  %v13355_v49 = vld [vmem:[#allocation23_spill] sm:$0xff]  ;;  %v13357_v13 = vsub.f32 %v13312_v29, %v10590_v38 }
 0x718   :  { %v10890_v26 = vmul.f32 %v10729_v25, %v13352_v53  ;;  %v10896_v0 = vmul.f32 %v10729_v25, %v13354_v4  ;;  %v13356_v60 = vsub.f32 %v13355_v49, %v10590_v38  ;;  %v4858_v53 = vsel %vm4730_vm3, %v4666_v15, %v4794_v23  ;;  %v13361_v15 = vld [vmem:[#allocation88_spill] sm:$0xff] }
 0x719   :  { %v10908_v14 = vmul.f32 %v10729_v25, %v13357_v13  ;;  %v13359_v4 = vsub.f32 %v10431_v36, %v10590_v38  ;;  %4922 = vst [vmem:[#allocation6 + $0x1f8] sm:$0xff] %v4858_v53  ;;  %v13362_v23 = vsub.f32 %v13361_v15, %v10590_v38  ;;  %v13364_v13 = vsub.f32 %v13315_v42, %v10590_v38 }
 0x71a   :  { %13353 = vst [vmem:[#allocation163_spill] sm:$0xff] %v10890_v26  ;;  %v10902_v18 = vmul.f32 %v10729_v25, %v13356_v60  ;;  %v13358_v26 = vsub.f32 %v13313_v7, %v10590_v38  ;;  %v13360_v60 = vsub.f32 %v10447_v52, %v10590_v38  ;;  %v13365_v53 = vsub.f32 %v10151_v48, %v10590_v38 }
 0x71b   :  { %v10920_v49 = vmul.f32 %v10729_v25, %v13359_v4  ;;  %v10932_v7 = vmul.f32 %v10729_v25, %v13362_v23  ;;  %v10944_v52 = vmul.f32 %v10729_v25, %v13364_v13  ;;  %v13367_v15 = vsub.f32 %v10183_v47, %v10590_v38 }
 0x71c   :  { %v10914_v35 = vmul.f32 %v10729_v25, %v13358_v26  ;;  %v10926_v29 = vmul.f32 %v10729_v25, %v13360_v60  ;;  %v13363_v26 = vsub.f32 %v13314_v33, %v10590_v38  ;;  %v10950_v4 = vmul.f32 %v10729_v25, %v13365_v53 }
 0x71d   :  { %v13366_v60 = vsub.f32 %v10165_v40, %v10590_v38  ;;  %v10962_v42 = vmul.f32 %v10729_v25, %v13367_v15  ;;  %v13368_v23 = vsub.f32 %v10199_v10, %v10590_v38  ;;  %v13370_v13 = vsub.f32 %v10237_v46, %v10590_v38 }
 0x71e   :  { %v10938_v36 = vmul.f32 %v10729_v25, %v13363_v26  ;;  %v13369_v26 = vsub.f32 %v13316_v45, %v10590_v38  ;;  %v13372_v53 = vsub.f32 %v10255_v32, %v10590_v38 }
 0x71f   :  { %v10956_v33 = vmul.f32 %v10729_v25, %v13366_v60  ;;  %v10968_v48 = vmul.f32 %v10729_v25, %v13368_v23  ;;  %v10980_v47 = vmul.f32 %v10729_v25, %v13370_v13  ;;  %v13373_v60 = vld [vmem:[#allocation138_spill] sm:$0xff]  ;;  %v13377_v13 = vld [vmem:[#allocation141_spill] sm:$0xff] }
 0x720   :  { %v10974_v40 = vmul.f32 %v10729_v25, %v13369_v26  ;;  %v10986_v10 = vmul.f32 %v10729_v25, %v13372_v53  ;;  %v13374_v15 = vsub.f32 %v13373_v60, %v10590_v38  ;;  %v13375_v23 = vld [vmem:[#allocation206_spill] sm:$0xff]  ;;  %v13380_v53 = vsub.f32 %v10318_v59, %v10590_v38 }
 0x721   :  { %13371 = vst [vmem:[#allocation181_spill] sm:$0xff] %v10980_v47  ;;  %v13376_v26 = vsub.f32 %v13375_v23, %v10590_v38  ;;  %v13378_v47 = vsub.f32 %v13377_v13, %v10590_v38 }
 0x722   :  { %v10992_v45 = vmul.f32 %v10729_v25, %v13374_v15  ;;  %v11010_v60 = vmul.f32 %v10729_v25, %v13380_v53  ;;  %v13381_v15 = vsub.f32 %v10326_v22, %v10590_v38  ;;  %v13385_v53 = vsub.f32 %v13318_v9, %v10590_v38 }
 0x723   :  { %v10998_v46 = vmul.f32 %v10729_v25, %v13376_v26  ;;  %v11004_v32 = vmul.f32 %v10729_v25, %v13378_v47  ;;  %v13382_v26 = vsub.f32 %v10330_v62, %v10590_v38  ;;  %v13383_v47 = vld [vmem:[#allocation144_spill] sm:$0xff] }
 0x724   :  { %v11016_v23 = vmul.f32 %v10729_v25, %v13381_v15  ;;  %v11034_v22 = vmul.f32 %v10729_v25, %v13385_v53  ;;  %v13387_v15 = vsub.f32 %v13319_v39, %v10590_v38  ;;  %v13393_v53 = vld [vmem:[#allocation153_spill] sm:$0xff] }
 0x725   :  { %13379 = vst [vmem:[#allocation164_spill] sm:$0xff] %v11004_v32  ;;  %v11022_v13 = vmul.f32 %v10729_v25, %v13382_v26  ;;  %v13384_v32 = vsub.f32 %v13383_v47, %v10590_v38  ;;  %v13389_v26 = vsub.f32 %v10348_v31, %v10590_v38 }
 0x726   :  { %13386 = vst [vmem:[#allocation54_spill] sm:$0xff] %v11034_v22  ;;  %v11040_v62 = vmul.f32 %v10729_v25, %v13387_v15  ;;  %v13394_v22 = vsub.f32 %v13393_v53, %v10590_v38  ;;  %v13396_v15 = vld [vmem:[#allocation25_spill] sm:$0xff] }
 0x727   :  { %v11028_v59 = vmul.f32 %v10729_v25, %v13384_v32  ;;  %v11046_v47 = vmul.f32 %v10729_v25, %v13389_v26  ;;  %v13391_v32 = vsub.f32 %v10352_v51, %v10590_v38  ;;  %v13398_v26 = vld [vmem:[#allocation67_spill] sm:$0xff] }
 0x728   :  { %13388 = vst [vmem:[#allocation165_spill] sm:$0xff] %v11040_v62  ;;  %v11058_v39 = vmul.f32 %v10729_v25, %v13394_v22  ;;  %v13397_v62 = vsub.f32 %v13396_v15, %v10590_v38  ;;  %v13402_v22 = vld [vmem:[#allocation84_spill] sm:$0xff] }
 0x729   :  { %13390 = vst [vmem:[#allocation170_spill] sm:$0xff] %v11046_v47  ;;  %v11052_v9 = vmul.f32 %v10729_v25, %v13391_v32  ;;  %v13399_v47 = vsub.f32 %v13398_v26, %v10590_v38  ;;  %v13400_v32 = vld [vmem:[#allocation80_spill] sm:$0xff] }
 0x72a   :  { %13395 = vst [vmem:[#allocation55_spill] sm:$0xff] %v11058_v39  ;;  %v11064_v31 = vmul.f32 %v10729_v25, %v13397_v62  ;;  %v13403_v39 = vsub.f32 %v13402_v22, %v10590_v38  ;;  %v13404_v62 = vsub.f32 %v13321_v17, %v10590_v38 }
 0x72b   :  { %13392 = vst [vmem:[#allocation171_spill] sm:$0xff] %v11052_v9  ;;  %v11070_v51 = vmul.f32 %v10729_v25, %v13399_v47  ;;  %v13401_v9 = vsub.f32 %v13400_v32, %v10590_v38  ;;  %v13405_v47 = vsub.f32 %v13322_v50, %v10590_v38 }
 0x72c   :  { %v11082_v15 = vmul.f32 %v10729_v25, %v13403_v39  ;;  %v11088_v26 = vmul.f32 %v10729_v25, %v13404_v62  ;;  %v13408_v39 = vsub.f32 %v13324_v11, %v10590_v38  ;;  %v13409_v62 = vsub.f32 %v13325_v58, %v10590_v38 }
 0x72d   :  { %v11076_v53 = vmul.f32 %v10729_v25, %v13401_v9  ;;  %v11094_v32 = vmul.f32 %v10729_v25, %v13405_v47  ;;  %v13406_v9 = vsub.f32 %v13323_v12, %v10590_v38  ;;  %v13410_v47 = vsub.f32 %v13326_v19, %v10590_v38 }
 0x72e   :  { %v11106_v17 = vmul.f32 %v10729_v25, %v13408_v39  ;;  %v11112_v50 = vmul.f32 %v10729_v25, %v13409_v62  ;;  %v11128_v39 = vmul.f32 %v10716_v56, %v10750_v20  ;;  %v11132_v58 = vmul.f32 %v10716_v56, %v10756_v8 }
 0x72f   :  { %v11100_v22 = vmul.f32 %v10729_v25, %v13406_v9  ;;  %v11118_v12 = vmul.f32 %v10729_v25, %v13410_v47  ;;  %v13411_v9 = vld [vmem:[#allocation159_spill] sm:$0xff]  ;;  %v11136_v19 = vmul.f32 %v10716_v56, %v10762_v63  ;;  %v11140_v62 = vmul.f32 %v10716_v56, %v10768_v34  ;;  %v13414_v47 = vld [vmem:[#allocation181_spill] sm:$0xff] }
 0x730   :  { %v11148_v20 = vmul.f32 %v10716_v56, %v10780_v24  ;;  %v11156_v63 = vmul.f32 %v10716_v56, %v10793_v27  ;;  %v11160_v8 = vmul.f32 %v10716_v56, %v10799_v30  ;;  %v11164_v34 = vmul.f32 %v10716_v56, %v10805_v61 }
 0x731   :  { %13407 = vst [vmem:[#allocation172_spill] sm:$0xff] %v11100_v22  ;;  %v13412_v22 = vsub.f32 %v13411_v9, %v10590_v38  ;;  %v11152_v38 = vmul.f32 %v10716_v56, %v10786_v2  ;;  %v11172_v24 = vmul.f32 %v10716_v56, %v10817_v44  ;;  %v11176_v2 = vmul.f32 %v10716_v56, %v10823_v55  ;;  %v13415_v9 = vld [vmem:[#allocation164_spill] sm:$0xff] }
 0x732   :  { %v11180_v27 = vmul.f32 %v10716_v56, %v10829_v6  ;;  %v11184_v30 = vmul.f32 %v10716_v56, %v10836_v3  ;;  %v11188_v61 = vmul.f32 %v10716_v56, %v10842_v16  ;;  %v11196_v44 = vmul.f32 %v10716_v56, %v10854_v1  ;;  %v13413_v1 = vld [vmem:[#allocation163_spill] sm:$0xff] }
 0x733   :  { %v11124_v11 = vmul.f32 %v10729_v25, %v13412_v22  ;;  %v11144_v25 = vmul.f32 %v10716_v56, %v10774_v5  ;;  %v11168_v5 = vmul.f32 %v10716_v56, %v10811_v28  ;;  %v11192_v28 = vmul.f32 %v10716_v56, %v10848_v41 }
 0x734   :  { %v11200_v55 = vmul.f32 %v10716_v56, %v10860_v43  ;;  %v11204_v6 = vmul.f32 %v10716_v56, %v10866_v54  ;;  %v11208_v3 = vmul.f32 %v10716_v56, %v10872_v57  ;;  %v11212_v16 = vmul.f32 %v10716_v56, %v10878_v37 }
 0x735   :  { %v11216_v41 = vmul.f32 %v10716_v56, %v10884_v21  ;;  %v11220_v43 = vmul.f32 %v10716_v56, %v13413_v1  ;;  %v11224_v54 = vmul.f32 %v10716_v56, %v10896_v0  ;;  %v11228_v57 = vmul.f32 %v10716_v56, %v10902_v18 }
 0x736   :  { %v11232_v37 = vmul.f32 %v10716_v56, %v10908_v14  ;;  %v11236_v21 = vmul.f32 %v10716_v56, %v10914_v35  ;;  %v11240_v22 = vmul.f32 %v10716_v56, %v10920_v49  ;;  %v11244_v0 = vmul.f32 %v10716_v56, %v10926_v29 }
 0x737   :  { %v11248_v18 = vmul.f32 %v10716_v56, %v10932_v7  ;;  %v11252_v14 = vmul.f32 %v10716_v56, %v10938_v36  ;;  %v11256_v35 = vmul.f32 %v10716_v56, %v10944_v52  ;;  %v11260_v49 = vmul.f32 %v10716_v56, %v10950_v4 }
 0x738   :  { %v11264_v29 = vmul.f32 %v10716_v56, %v10956_v33  ;;  %v11268_v7 = vmul.f32 %v10716_v56, %v10962_v42  ;;  %v11272_v36 = vmul.f32 %v10716_v56, %v10968_v48  ;;  %v11276_v52 = vmul.f32 %v10716_v56, %v10974_v40 }
 0x739   :  { %v11280_v4 = vmul.f32 %v10716_v56, %v13414_v47  ;;  %v11284_v33 = vmul.f32 %v10716_v56, %v10986_v10  ;;  %v11288_v42 = vmul.f32 %v10716_v56, %v10992_v45  ;;  %v11292_v48 = vmul.f32 %v10716_v56, %v10998_v46  ;;  %v13420_v47 = vld [vmem:[#allocation54_spill] sm:$0xff] }
 0x73a   :  { %v11296_v40 = vmul.f32 %v10716_v56, %v13415_v9  ;;  %v11300_v1 = vmul.f32 %v10716_v56, %v11010_v60  ;;  %v11304_v10 = vmul.f32 %v10716_v56, %v11016_v23  ;;  %v11308_v45 = vmul.f32 %v10716_v56, %v11022_v13 }
 0x73b   :  { %v11312_v46 = vmul.f32 %v10716_v56, %v11028_v59  ;;  %v11316_v9 = vmul.f32 %v10716_v56, %v13420_v47  ;;  %v11336_v47 = vmul.f32 %v10716_v56, %v11064_v31  ;;  %v11356_v31 = vmul.f32 %v10716_v56, %v11094_v32 }
 0x73c   :  { %13416 = vst [vmem:[#allocation173_spill] sm:$0xff] %v11296_v40  ;;  %v13421_v40 = vld [vmem:[#allocation165_spill] sm:$0xff]  ;;  %v11376_v32 = vmul.f32 %v10716_v56, %v11124_v11 }
 0x73d   :  { %13417 = vst [vmem:[#allocation187_spill] sm:$0xff] %v11300_v1  ;;  %v11320_v60 = vmul.f32 %v10716_v56, %v13421_v40  ;;  %v13422_v1 = vld [vmem:[#allocation170_spill] sm:$0xff]  ;;  %v11340_v40 = vmul.f32 %v10716_v56, %v11070_v51 }
 0x73e   :  { %13418 = vst [vmem:[#allocation9_spill] sm:$0xff] %v11304_v10  ;;  %v11324_v23 = vmul.f32 %v10716_v56, %v13422_v1  ;;  %v13423_v10 = vld [vmem:[#allocation171_spill] sm:$0xff]  ;;  %v11344_v1 = vmul.f32 %v10716_v56, %v11076_v53  ;;  %v11364_v53 = vmul.f32 %v10716_v56, %v11106_v17 }
 0x73f   :  { %13419 = vst [vmem:[#allocation21_spill] sm:$0xff] %v11308_v45  ;;  %v11328_v13 = vmul.f32 %v10716_v56, %v13423_v10  ;;  %v13424_v45 = vld [vmem:[#allocation55_spill] sm:$0xff]  ;;  %v11348_v10 = vmul.f32 %v10716_v56, %v11082_v15  ;;  %v11368_v15 = vmul.f32 %v10716_v56, %v11112_v50 }
 0x740   :  { %v11332_v59 = vmul.f32 %v10716_v56, %v13424_v45  ;;  %13425 = vst [vmem:[#allocation11_spill] sm:$0xff] %v11336_v47  ;;  %v11352_v45 = vmul.f32 %v10716_v56, %v11088_v26  ;;  %v13427_v47 = vld [vmem:[#allocation172_spill] sm:$0xff]  ;;  %v11372_v26 = vmul.f32 %v10716_v56, %v11118_v12 }
 0x741   :  { %13426 = vst [vmem:[#allocation140_spill] sm:$0xff] %v11356_v31  ;;  %v11360_v51 = vmul.f32 %v10716_v56, %v13427_v47  ;;  %v13428_v31 = vld [vmem:[#allocation162_spill] sm:$0xff] }
 0x742   :  { %v11380_v47 = vadd.f32 %v13428_v31, %v11128_v39  ;;  %v11384_v17 = vadd.f32 %v13428_v31, %v11132_v58  ;;  %v11388_v50 = vadd.f32 %v13428_v31, %v11136_v19  ;;  %v11392_v12 = vadd.f32 %v13428_v31, %v11140_v62 }
 0x743   :  { %v11396_v56 = vadd.f32 %v13428_v31, %v11144_v25  ;;  %v11400_v11 = vadd.f32 %v13428_v31, %v11148_v20  ;;  %v11404_v39 = vadd.f32 %v13428_v31, %v11152_v38  ;;  %v11408_v58 = vadd.f32 %v13428_v31, %v11156_v63 }
 0x744   :  { %v11412_v19 = vadd.f32 %v13428_v31, %v11160_v8  ;;  %v11416_v62 = vadd.f32 %v13428_v31, %v11164_v34  ;;  %v11420_v25 = vadd.f32 %v13428_v31, %v11168_v5  ;;  %v11424_v20 = vadd.f32 %v13428_v31, %v11172_v24 }
 0x745   :  { %v11428_v38 = vadd.f32 %v13428_v31, %v11176_v2  ;;  %v11432_v63 = vadd.f32 %v13428_v31, %v11180_v27  ;;  %v11436_v8 = vadd.f32 %v13428_v31, %v11184_v30  ;;  %v11440_v34 = vadd.f32 %v13428_v31, %v11188_v61 }
 0x746   :  { %v11444_v5 = vadd.f32 %v13428_v31, %v11192_v28  ;;  %v11448_v24 = vadd.f32 %v13428_v31, %v11196_v44  ;;  %v11452_v2 = vadd.f32 %v13428_v31, %v11200_v55  ;;  %v11456_v27 = vadd.f32 %v13428_v31, %v11204_v6 }
 0x747   :  { %v11460_v30 = vadd.f32 %v13428_v31, %v11208_v3  ;;  %v11464_v61 = vadd.f32 %v13428_v31, %v11212_v16  ;;  %v11468_v28 = vadd.f32 %v13428_v31, %v11216_v41  ;;  %v11472_v44 = vadd.f32 %v13428_v31, %v11220_v43 }
 0x748   :  { %v11476_v55 = vadd.f32 %v13428_v31, %v11224_v54  ;;  %v11480_v6 = vadd.f32 %v13428_v31, %v11228_v57  ;;  %v11484_v3 = vadd.f32 %v13428_v31, %v11232_v37  ;;  %v11488_v16 = vadd.f32 %v13428_v31, %v11236_v21 }
 0x749   :  { %v11492_v41 = vadd.f32 %v13428_v31, %v11240_v22  ;;  %v11496_v43 = vadd.f32 %v13428_v31, %v11244_v0  ;;  %v11500_v54 = vadd.f32 %v13428_v31, %v11248_v18  ;;  %v11504_v57 = vadd.f32 %v13428_v31, %v11252_v14 }
 0x74a   :  { %v11508_v37 = vadd.f32 %v13428_v31, %v11256_v35  ;;  %v11512_v21 = vadd.f32 %v13428_v31, %v11260_v49  ;;  %v11516_v22 = vadd.f32 %v13428_v31, %v11264_v29  ;;  %v11520_v0 = vadd.f32 %v13428_v31, %v11268_v7 }
 0x74b   :  { %v11524_v18 = vadd.f32 %v13428_v31, %v11272_v36  ;;  %v11528_v14 = vadd.f32 %v13428_v31, %v11276_v52  ;;  %v11532_v35 = vadd.f32 %v13428_v31, %v11280_v4  ;;  %v11536_v49 = vadd.f32 %v13428_v31, %v11284_v33  ;;  %v13432_v36 = vld [vmem:[#allocation173_spill] sm:$0xff] }
 0x74c   :  { %v11540_v29 = vadd.f32 %v13428_v31, %v11288_v42  ;;  %v11544_v7 = vadd.f32 %v13428_v31, %v11292_v48  ;;  %v11548_v52 = vadd.f32 %v13428_v31, %v13432_v36  ;;  %v11564_v48 = vadd.f32 %v13428_v31, %v11312_v46 }
 0x74d   :  { %13429 = vst [vmem:[#allocation57_spill] sm:$0xff] %v11528_v14  ;;  %v13433_v14 = vld [vmem:[#allocation187_spill] sm:$0xff]  ;;  %v11568_v36 = vadd.f32 %v13428_v31, %v11316_v9  ;;  %v11584_v46 = vadd.f32 %v13428_v31, %v11332_v59  ;;  %v11604_v59 = vadd.f32 %v13428_v31, %v11352_v45  ;;  %v11624_v45 = vadd.f32 %v13428_v31, %v11372_v26 }
 0x74e   :  { %13430 = vst [vmem:[#allocation58_spill] sm:$0xff] %v11532_v35  ;;  %v11552_v4 = vadd.f32 %v13428_v31, %v13433_v14  ;;  %v13434_v35 = vld [vmem:[#allocation9_spill] sm:$0xff]  ;;  %v11572_v14 = vadd.f32 %v13428_v31, %v11320_v60  ;;  %v11592_v60 = vadd.f32 %v13428_v31, %v11340_v40  ;;  %v11612_v40 = vadd.f32 %v13428_v31, %v11360_v51 }
 0x74f   :  { %13431 = vst [vmem:[#allocation59_spill] sm:$0xff] %v11536_v49  ;;  %v11556_v33 = vadd.f32 %v13428_v31, %v13434_v35  ;;  %v13435_v49 = vld [vmem:[#allocation21_spill] sm:$0xff]  ;;  %v11576_v35 = vadd.f32 %v13428_v31, %v11324_v23  ;;  %v11596_v23 = vadd.f32 %v13428_v31, %v11344_v1  ;;  %v11616_v1 = vadd.f32 %v13428_v31, %v11364_v53 }
 0x750   :  { %v11560_v42 = vadd.f32 %v13428_v31, %v13435_v49  ;;  %13436 = vst [vmem:[#allocation60_spill] sm:$0xff] %v11564_v48  ;;  %v11580_v49 = vadd.f32 %v13428_v31, %v11328_v13  ;;  %v13438_v48 = vld [vmem:[#allocation11_spill] sm:$0xff]  ;;  %v11600_v13 = vadd.f32 %v13428_v31, %v11348_v10  ;;  %v11620_v10 = vadd.f32 %v13428_v31, %v11368_v15 }
 0x751   :  { %13437 = vst [vmem:[#allocation61_spill] sm:$0xff] %v11584_v46  ;;  %v11588_v9 = vadd.f32 %v13428_v31, %v13438_v48  ;;  %v13439_v46 = vld [vmem:[#allocation140_spill] sm:$0xff]  ;;  %vm4667_vm4 = vcmp.ge.f32.partialorder %v11380_v47, 0.0  ;;  %v4732_v51 = vmul.f32 0.01, %v11384_v17  ;;  %vm4668_vm5 = vcmp.ge.f32.partialorder %v11384_v17, 0.0 }
 0x752   :  { %v11608_v48 = vadd.f32 %v13428_v31, %v13439_v46  ;;  %13441 = vst [vmem:[#allocation64_spill] sm:$0xff] %v11612_v40  ;;  %v11628_v46 = vadd.f32 %v13428_v31, %v11376_v32  ;;  %v4733_v53 = vmul.f32 0.01, %v11388_v50  ;;  %vm4669_vm6 = vcmp.ge.f32.partialorder %v11388_v50, 0.0 }
 0x753   :  { %13442 = vst [vmem:[#allocation68_spill] sm:$0xff] %v11616_v1  ;;  %v4734_v15 = vmul.f32 0.01, %v11392_v12  ;;  %vm4670_vm7 = vcmp.ge.f32.partialorder %v11392_v12, 0.0  ;;  %v4735_v26 = vmul.f32 0.01, %v11396_v56 }
 0x754   :  { %13440 = vst [vmem:[#allocation63_spill] sm:$0xff] %v11608_v48  ;;  %v4731_v48 = vmul.f32 0.01, %v11380_v47  ;;  %vm4671_vm8 = vcmp.ge.f32.partialorder %v11396_v56, 0.0  ;;  %v4736_v32 = vmul.f32 0.01, %v11400_v11 }
 0x755   :  { %13443 = vst [vmem:[#allocation26_spill] sm:$0xff] %v11620_v10  ;;  %vm4672_vm9 = vcmp.ge.f32.partialorder %v11400_v11, 0.0  ;;  %v4797_v10 = vsel %vm4669_vm6, %v11388_v50, %v4733_v53  ;;  %vm4673_vm10 = vcmp.ge.f32.partialorder %v11404_v39, 0.0  ;;  %v4738_v1 = vmul.f32 0.01, %v11408_v58 }
 0x756   :  { %13444 = vst [vmem:[#allocation69_spill] sm:$0xff] %v11624_v45  ;;  %v4795_v31 = vsel %vm4667_vm4, %v11380_v47, %v4731_v48  ;;  %v4737_v45 = vmul.f32 0.01, %v11404_v39  ;;  %v4798_v40 = vsel %vm4670_vm7, %v11392_v12, %v4734_v15  ;;  %vm4674_vm11 = vcmp.ge.f32.partialorder %v11408_v58, 0.0 }
 0x757   :  { %13445 = vst [vmem:[#allocation28_spill] sm:$0xff] %v11628_v46  ;;  %v4796_v46 = vsel %vm4668_vm5, %v11384_v17, %v4732_v51  ;;  %v4739_v47 = vmul.f32 0.01, %v11412_v19  ;;  %v4799_v48 = vsel %vm4671_vm8, %v11396_v56, %v4735_v26  ;;  %vm4675_vm12 = vcmp.ge.f32.partialorder %v11412_v19, 0.0 }
 0x758   :  { %4859 = vst [vmem:[#allocation6] sm:$0xff] %v4795_v31  ;;  %v4740_v17 = vmul.f32 0.01, %v11416_v62  ;;  %v4800_v50 = vsel %vm4672_vm9, %v11400_v11, %v4736_v32  ;;  %vm4676_vm13 = vcmp.ge.f32.partialorder %v11416_v62, 0.0  ;;  %v4741_v51 = vmul.f32 0.01, %v11420_v25 }
 0x759   :  { %4860 = vst [vmem:[#allocation6 + $0x8] sm:$0xff] %v4796_v46  ;;  %v4801_v12 = vsel %vm4673_vm10, %v11404_v39, %v4737_v45  ;;  %vm4677_vm14 = vcmp.ge.f32.partialorder %v11420_v25, 0.0  ;;  %v4742_v53 = vmul.f32 0.01, %v11424_v20  ;;  %v4802_v56 = vsel %vm4674_vm11, %v11408_v58, %v4738_v1 }
 0x75a   :  { %4861 = vst [vmem:[#allocation6 + $0x10] sm:$0xff] %v4797_v10  ;;  %vm4678_vm15 = vcmp.ge.f32.partialorder %v11424_v20, 0.0  ;;  %v4743_v46 = vmul.f32 0.01, %v11428_v38  ;;  %v4803_v11 = vsel %vm4675_vm12, %v11412_v19, %v4739_v47  ;;  %vm4679_vm0 = vcmp.ge.f32.partialorder %v11428_v38, 0.0 }
 0x75b   :  { %4862 = vst [vmem:[#allocation6 + $0x18] sm:$0xff] %v4798_v40  ;;  %v4744_v10 = vmul.f32 0.01, %v11432_v63  ;;  %v4804_v39 = vsel %vm4676_vm13, %v11416_v62, %v4740_v17  ;;  %vm4680_vm1 = vcmp.ge.f32.partialorder %v11432_v63, 0.0  ;;  %v4745_v40 = vmul.f32 0.01, %v11436_v8 }
 0x75c   :  { %4863 = vst [vmem:[#allocation6 + $0x20] sm:$0xff] %v4799_v48  ;;  %v4805_v58 = vsel %vm4677_vm14, %v11420_v25, %v4741_v51  ;;  %vm4681_vm2 = vcmp.ge.f32.partialorder %v11436_v8, 0.0  ;;  %v4746_v1 = vmul.f32 0.01, %v11440_v34  ;;  %v4806_v19 = vsel %vm4678_vm15, %v11424_v20, %v4742_v53 }
 0x75d   :  { %4864 = vst [vmem:[#allocation6 + $0x28] sm:$0xff] %v4800_v50  ;;  %vm4682_vm3 = vcmp.ge.f32.partialorder %v11440_v34, 0.0  ;;  %v4747_v45 = vmul.f32 0.01, %v11444_v5  ;;  %v4807_v62 = vsel %vm4679_vm0, %v11428_v38, %v4743_v46  ;;  %vm4683_vm4 = vcmp.ge.f32.partialorder %v11444_v5, 0.0 }
 0x75e   :  { %4865 = vst [vmem:[#allocation6 + $0x30] sm:$0xff] %v4801_v12  ;;  %v4748_v15 = vmul.f32 0.01, %v11448_v24  ;;  %v4808_v25 = vsel %vm4680_vm1, %v11432_v63, %v4744_v10  ;;  %vm4684_vm5 = vcmp.ge.f32.partialorder %v11448_v24, 0.0  ;;  %v4749_v26 = vmul.f32 0.01, %v11452_v2 }
 0x75f   :  { %4866 = vst [vmem:[#allocation6 + $0x38] sm:$0xff] %v4802_v56  ;;  %v4809_v20 = vsel %vm4681_vm2, %v11436_v8, %v4745_v40  ;;  %vm4685_vm6 = vcmp.ge.f32.partialorder %v11452_v2, 0.0  ;;  %v4750_v31 = vmul.f32 0.01, %v11456_v27  ;;  %v4810_v38 = vsel %vm4682_vm3, %v11440_v34, %v4746_v1 }
 0x760   :  { %4867 = vst [vmem:[#allocation6 + $0x40] sm:$0xff] %v4803_v11  ;;  %vm4686_vm7 = vcmp.ge.f32.partialorder %v11456_v27, 0.0  ;;  %v4751_v32 = vmul.f32 0.01, %v11460_v30  ;;  %v4811_v63 = vsel %vm4683_vm4, %v11444_v5, %v4747_v45  ;;  %vm4687_vm8 = vcmp.ge.f32.partialorder %v11460_v30, 0.0  ;;  %v13446_v45 = vld [vmem:[#allocation57_spill] sm:$0xff] }
 0x761   :  { %4868 = vst [vmem:[#allocation6 + $0x48] sm:$0xff] %v4804_v39  ;;  %v4752_v47 = vmul.f32 0.01, %v11464_v61  ;;  %v4812_v8 = vsel %vm4684_vm5, %v11448_v24, %v4748_v15  ;;  %vm4688_vm9 = vcmp.ge.f32.partialorder %v11464_v61, 0.0  ;;  %v4753_v48 = vmul.f32 0.01, %v11468_v28 }
 0x762   :  { %4869 = vst [vmem:[#allocation6 + $0x50] sm:$0xff] %v4805_v58  ;;  %v4813_v34 = vsel %vm4685_vm6, %v11452_v2, %v4749_v26  ;;  %vm4689_vm10 = vcmp.ge.f32.partialorder %v11468_v28, 0.0  ;;  %v4754_v17 = vmul.f32 0.01, %v11472_v44  ;;  %v4814_v5 = vsel %vm4686_vm7, %v11456_v27, %v4750_v31  ;;  %v13447_v15 = vld [vmem:[#allocation58_spill] sm:$0xff]  ;;  %v13448_v26 = vld [vmem:[#allocation59_spill] sm:$0xff] }
 0x763   :  { %4870 = vst [vmem:[#allocation6 + $0x58] sm:$0xff] %v4806_v19  ;;  %vm4690_vm11 = vcmp.ge.f32.partialorder %v11472_v44, 0.0  ;;  %v4755_v50 = vmul.f32 0.01, %v11476_v55  ;;  %v4815_v24 = vsel %vm4687_vm8, %v11460_v30, %v4751_v32  ;;  %vm4691_vm12 = vcmp.ge.f32.partialorder %v11476_v55, 0.0 }
 0x764   :  { %4871 = vst [vmem:[#allocation6 + $0x60] sm:$0xff] %v4807_v62  ;;  %v4756_v51 = vmul.f32 0.01, %v11480_v6  ;;  %v4816_v2 = vsel %vm4688_vm9, %v11464_v61, %v4752_v47  ;;  %vm4692_vm13 = vcmp.ge.f32.partialorder %v11480_v6, 0.0  ;;  %v4757_v12 = vmul.f32 0.01, %v11484_v3 }
 0x765   :  { %4872 = vst [vmem:[#allocation6 + $0x68] sm:$0xff] %v4808_v25  ;;  %v4817_v27 = vsel %vm4689_vm10, %v11468_v28, %v4753_v48  ;;  %vm4693_vm14 = vcmp.ge.f32.partialorder %v11484_v3, 0.0  ;;  %v4758_v53 = vmul.f32 0.01, %v11488_v16  ;;  %v4818_v30 = vsel %vm4690_vm11, %v11472_v44, %v4754_v17  ;;  %v13449_v17 = vld [vmem:[#allocation60_spill] sm:$0xff] }
 0x766   :  { %4873 = vst [vmem:[#allocation6 + $0x70] sm:$0xff] %v4809_v20  ;;  %vm4694_vm15 = vcmp.ge.f32.partialorder %v11488_v16, 0.0  ;;  %v4759_v56 = vmul.f32 0.01, %v11492_v41  ;;  %v4819_v61 = vsel %vm4691_vm12, %v11476_v55, %v4755_v50  ;;  %vm4695_vm0 = vcmp.ge.f32.partialorder %v11492_v41, 0.0 }
 0x767   :  { %4874 = vst [vmem:[#allocation6 + $0x78] sm:$0xff] %v4810_v38  ;;  %v4760_v46 = vmul.f32 0.01, %v11496_v43  ;;  %v4820_v28 = vsel %vm4692_vm13, %v11480_v6, %v4756_v51  ;;  %vm4696_vm1 = vcmp.ge.f32.partialorder %v11496_v43, 0.0  ;;  %v4761_v11 = vmul.f32 0.01, %v11500_v54 }
 0x768   :  { %4875 = vst [vmem:[#allocation6 + $0x80] sm:$0xff] %v4811_v63  ;;  %v4821_v44 = vsel %vm4693_vm14, %v11484_v3, %v4757_v12  ;;  %vm4697_vm2 = vcmp.ge.f32.partialorder %v11500_v54, 0.0  ;;  %v4762_v10 = vmul.f32 0.01, %v11504_v57  ;;  %v4822_v55 = vsel %vm4694_vm15, %v11488_v16, %v4758_v53 }
 0x769   :  { %4876 = vst [vmem:[#allocation6 + $0x88] sm:$0xff] %v4812_v8  ;;  %vm4698_vm3 = vcmp.ge.f32.partialorder %v11504_v57, 0.0  ;;  %v4763_v39 = vmul.f32 0.01, %v11508_v37  ;;  %v4823_v6 = vsel %vm4695_vm0, %v11492_v41, %v4759_v56  ;;  %vm4699_vm4 = vcmp.ge.f32.partialorder %v11508_v37, 0.0 }
 0x76a   :  { %4877 = vst [vmem:[#allocation6 + $0x90] sm:$0xff] %v4813_v34  ;;  %v4764_v40 = vmul.f32 0.01, %v11512_v21  ;;  %v4824_v3 = vsel %vm4696_vm1, %v11496_v43, %v4760_v46  ;;  %vm4700_vm5 = vcmp.ge.f32.partialorder %v11512_v21, 0.0  ;;  %v4765_v58 = vmul.f32 0.01, %v11516_v22 }
 0x76b   :  { %4878 = vst [vmem:[#allocation6 + $0x98] sm:$0xff] %v4814_v5  ;;  %v4825_v16 = vsel %vm4697_vm2, %v11500_v54, %v4761_v11  ;;  %vm4701_vm6 = vcmp.ge.f32.partialorder %v11516_v22, 0.0  ;;  %v4766_v1 = vmul.f32 0.01, %v11520_v0  ;;  %v4826_v41 = vsel %vm4698_vm3, %v11504_v57, %v4762_v10 }
 0x76c   :  { %4879 = vst [vmem:[#allocation6 + $0xa0] sm:$0xff] %v4815_v24  ;;  %vm4702_vm7 = vcmp.ge.f32.partialorder %v11520_v0, 0.0  ;;  %v4767_v19 = vmul.f32 0.01, %v11524_v18  ;;  %v4827_v43 = vsel %vm4699_vm4, %v11508_v37, %v4763_v39  ;;  %vm4703_vm8 = vcmp.ge.f32.partialorder %v11524_v18, 0.0 }
 0x76d   :  { %4880 = vst [vmem:[#allocation6 + $0xa8] sm:$0xff] %v4816_v2  ;;  %v4768_v62 = vmul.f32 0.01, %v13446_v45  ;;  %v4828_v54 = vsel %vm4700_vm5, %v11512_v21, %v4764_v40  ;;  %vm4704_vm9 = vcmp.ge.f32.partialorder %v13446_v45, 0.0  ;;  %v4769_v25 = vmul.f32 0.01, %v13447_v15 }
 0x76e   :  { %4881 = vst [vmem:[#allocation6 + $0xb0] sm:$0xff] %v4817_v27  ;;  %v4829_v57 = vsel %vm4701_vm6, %v11516_v22, %v4765_v58  ;;  %vm4705_vm10 = vcmp.ge.f32.partialorder %v13447_v15, 0.0  ;;  %v4770_v20 = vmul.f32 0.01, %v13448_v26  ;;  %v4830_v37 = vsel %vm4702_vm7, %v11520_v0, %v4766_v1  ;;  %v13450_v27 = vld [vmem:[#allocation61_spill] sm:$0xff]  ;;  %v13453_v40 = vld [vmem:[#allocation68_spill] sm:$0xff] }
 0x76f   :  { %4882 = vst [vmem:[#allocation6 + $0xb8] sm:$0xff] %v4818_v30  ;;  %vm4706_vm11 = vcmp.ge.f32.partialorder %v13448_v26, 0.0  ;;  %v4771_v31 = vmul.f32 0.01, %v11540_v29  ;;  %v4831_v21 = vsel %vm4703_vm8, %v11524_v18, %v4767_v19  ;;  %vm4707_vm12 = vcmp.ge.f32.partialorder %v11540_v29, 0.0  ;;  %v13454_v58 = vld [vmem:[#allocation26_spill] sm:$0xff] }
 0x770   :  { %4883 = vst [vmem:[#allocation6 + $0xc0] sm:$0xff] %v4819_v61  ;;  %v4772_v38 = vmul.f32 0.01, %v11544_v7  ;;  %v4832_v22 = vsel %vm4704_vm9, %v13446_v45, %v4768_v62  ;;  %vm4708_vm13 = vcmp.ge.f32.partialorder %v11544_v7, 0.0  ;;  %v4773_v32 = vmul.f32 0.01, %v11548_v52 }
 0x771   :  { %4884 = vst [vmem:[#allocation6 + $0xc8] sm:$0xff] %v4820_v28  ;;  %v4833_v0 = vsel %vm4705_vm10, %v13447_v15, %v4769_v25  ;;  %vm4709_vm14 = vcmp.ge.f32.partialorder %v11548_v52, 0.0  ;;  %v4774_v63 = vmul.f32 0.01, %v11552_v4  ;;  %v4834_v18 = vsel %vm4706_vm11, %v13448_v26, %v4770_v20  ;;  %v13455_v1 = vld [vmem:[#allocation69_spill] sm:$0xff]  ;;  %v13456_v19 = vld [vmem:[#allocation28_spill] sm:$0xff] }
 0x772   :  { %4885 = vst [vmem:[#allocation6 + $0xd0] sm:$0xff] %v4821_v44  ;;  %vm4710_vm15 = vcmp.ge.f32.partialorder %v11552_v4, 0.0  ;;  %v4775_v47 = vmul.f32 0.01, %v11556_v33  ;;  %v4835_v8 = vsel %vm4707_vm12, %v11540_v29, %v4771_v31  ;;  %vm4711_vm0 = vcmp.ge.f32.partialorder %v11556_v33, 0.0  ;;  %v13451_v44 = vld [vmem:[#allocation63_spill] sm:$0xff] }
 0x773   :  { %4886 = vst [vmem:[#allocation6 + $0xd8] sm:$0xff] %v4822_v55  ;;  %v4776_v48 = vmul.f32 0.01, %v11560_v42  ;;  %v4836_v34 = vsel %vm4708_vm13, %v11544_v7, %v4772_v38  ;;  %vm4712_vm1 = vcmp.ge.f32.partialorder %v11560_v42, 0.0  ;;  %v4777_v5 = vmul.f32 0.01, %v13449_v17 }
 0x774   :  { %4887 = vst [vmem:[#allocation6 + $0xe0] sm:$0xff] %v4823_v6  ;;  %v4837_v50 = vsel %vm4709_vm14, %v11548_v52, %v4773_v32  ;;  %vm4713_vm2 = vcmp.ge.f32.partialorder %v13449_v17, 0.0  ;;  %v4778_v24 = vmul.f32 0.01, %v11568_v36  ;;  %v4838_v29 = vsel %vm4710_vm15, %v11552_v4, %v4774_v63  ;;  %v13452_v55 = vld [vmem:[#allocation64_spill] sm:$0xff] }
 0x775   :  { %4888 = vst [vmem:[#allocation6 + $0xe8] sm:$0xff] %v4824_v3  ;;  %vm4714_vm3 = vcmp.ge.f32.partialorder %v11568_v36, 0.0  ;;  %v4779_v51 = vmul.f32 0.01, %v11572_v14  ;;  %v4839_v7 = vsel %vm4711_vm0, %v11556_v33, %v4775_v47  ;;  %vm4715_vm4 = vcmp.ge.f32.partialorder %v11572_v14, 0.0 }
 0x776   :  { %4889 = vst [vmem:[#allocation6 + $0xf0] sm:$0xff] %v4825_v16  ;;  %v4780_v2 = vmul.f32 0.01, %v11576_v35  ;;  %v4840_v52 = vsel %vm4712_vm1, %v11560_v42, %v4776_v48  ;;  %vm4716_vm5 = vcmp.ge.f32.partialorder %v11576_v35, 0.0  ;;  %v4781_v12 = vmul.f32 0.01, %v11580_v49 }
 0x777   :  { %4890 = vst [vmem:[#allocation6 + $0xf8] sm:$0xff] %v4826_v41  ;;  %v4841_v4 = vsel %vm4713_vm2, %v13449_v17, %v4777_v5  ;;  %vm4717_vm6 = vcmp.ge.f32.partialorder %v11580_v49, 0.0  ;;  %v4782_v53 = vmul.f32 0.01, %v13450_v27  ;;  %v4842_v33 = vsel %vm4714_vm3, %v11568_v36, %v4778_v24 }
 0x778   :  { %4891 = vst [vmem:[#allocation6 + $0x100] sm:$0xff] %v4827_v43  ;;  %vm4718_vm7 = vcmp.ge.f32.partialorder %v13450_v27, 0.0  ;;  %v4783_v30 = vmul.f32 0.01, %v11588_v9  ;;  %v4843_v42 = vsel %vm4715_vm4, %v11572_v14, %v4779_v51  ;;  %vm4719_vm8 = vcmp.ge.f32.partialorder %v11588_v9, 0.0 }
 0x779   :  { %4892 = vst [vmem:[#allocation6 + $0x108] sm:$0xff] %v4828_v54  ;;  %v4784_v56 = vmul.f32 0.01, %v11592_v60  ;;  %v4844_v61 = vsel %vm4716_vm5, %v11576_v35, %v4780_v2  ;;  %vm4720_vm9 = vcmp.ge.f32.partialorder %v11592_v60, 0.0  ;;  %v4785_v46 = vmul.f32 0.01, %v11596_v23 }
 0x77a   :  { %4893 = vst [vmem:[#allocation6 + $0x110] sm:$0xff] %v4829_v57  ;;  %v4845_v36 = vsel %vm4717_vm6, %v11580_v49, %v4781_v12  ;;  %vm4721_vm10 = vcmp.ge.f32.partialorder %v11596_v23, 0.0  ;;  %v4786_v28 = vmul.f32 0.01, %v11600_v13  ;;  %v4846_v14 = vsel %vm4718_vm7, %v13450_v27, %v4782_v53 }
 0x77b   :  { %4894 = vst [vmem:[#allocation6 + $0x118] sm:$0xff] %v4830_v37  ;;  %vm4722_vm11 = vcmp.ge.f32.partialorder %v11600_v13, 0.0  ;;  %v4787_v11 = vmul.f32 0.01, %v11604_v59  ;;  %v4847_v35 = vsel %vm4719_vm8, %v11588_v9, %v4783_v30  ;;  %vm4723_vm12 = vcmp.ge.f32.partialorder %v11604_v59, 0.0 }
 0x77c   :  { %4895 = vst [vmem:[#allocation6 + $0x120] sm:$0xff] %v4831_v21  ;;  %v4788_v10 = vmul.f32 0.01, %v13451_v44  ;;  %v4848_v49 = vsel %vm4720_vm9, %v11592_v60, %v4784_v56  ;;  %vm4724_vm13 = vcmp.ge.f32.partialorder %v13451_v44, 0.0  ;;  %v4789_v39 = vmul.f32 0.01, %v13452_v55 }
 0x77d   :  { %4896 = vst [vmem:[#allocation6 + $0x128] sm:$0xff] %v4832_v22  ;;  %v4849_v6 = vsel %vm4721_vm10, %v11596_v23, %v4785_v46  ;;  %vm4725_vm14 = vcmp.ge.f32.partialorder %v13452_v55, 0.0  ;;  %v4790_v3 = vmul.f32 0.01, %v13453_v40  ;;  %v4850_v9 = vsel %vm4722_vm11, %v11600_v13, %v4786_v28 }
 0x77e   :  { %4897 = vst [vmem:[#allocation6 + $0x130] sm:$0xff] %v4833_v0  ;;  %vm4726_vm15 = vcmp.ge.f32.partialorder %v13453_v40, 0.0  ;;  %v4791_v16 = vmul.f32 0.01, %v13454_v58  ;;  %v4851_v60 = vsel %vm4723_vm12, %v11604_v59, %v4787_v11  ;;  %vm4727_vm0 = vcmp.ge.f32.partialorder %v13454_v58, 0.0 }
 0x77f   :  { %4898 = vst [vmem:[#allocation6 + $0x138] sm:$0xff] %v4834_v18  ;;  %v4792_v41 = vmul.f32 0.01, %v13455_v1  ;;  %v4852_v23 = vsel %vm4724_vm13, %v13451_v44, %v4788_v10  ;;  %vm4728_vm1 = vcmp.ge.f32.partialorder %v13455_v1, 0.0  ;;  %v4793_v43 = vmul.f32 0.01, %v13456_v19 }
 0x780   :  { %4899 = vst [vmem:[#allocation6 + $0x140] sm:$0xff] %v4835_v8  ;;  %v4853_v13 = vsel %vm4725_vm14, %v13452_v55, %v4789_v39  ;;  %vm4729_vm2 = vcmp.ge.f32.partialorder %v13456_v19, 0.0  ;;  %v4854_v45 = vsel %vm4726_vm15, %v13453_v40, %v4790_v3  ;;  %v4855_v59 = vsel %vm4727_vm0, %v13454_v58, %v4791_v16 }
 0x781   :  { %4900 = vst [vmem:[#allocation6 + $0x148] sm:$0xff] %v4836_v34  ;;  %v4856_v62 = vsel %vm4728_vm1, %v13455_v1, %v4792_v41  ;;  %v4857_v54 = vsel %vm4729_vm2, %v13456_v19, %v4793_v43 }
 0x782   :  { %4901 = vst [vmem:[#allocation6 + $0x150] sm:$0xff] %v4837_v50 }
 0x783   :  { %4902 = vst [vmem:[#allocation6 + $0x158] sm:$0xff] %v4838_v29 }
 0x784   :  { %4903 = vst [vmem:[#allocation6 + $0x160] sm:$0xff] %v4839_v7 }
 0x785   :  { %4904 = vst [vmem:[#allocation6 + $0x168] sm:$0xff] %v4840_v52 }
 0x786   :  { %4905 = vst [vmem:[#allocation6 + $0x170] sm:$0xff] %v4841_v4 }
 0x787   :  { %4906 = vst [vmem:[#allocation6 + $0x178] sm:$0xff] %v4842_v33 }
 0x788   :  { %4907 = vst [vmem:[#allocation6 + $0x180] sm:$0xff] %v4843_v42 }
 0x789   :  { %4908 = vst [vmem:[#allocation6 + $0x188] sm:$0xff] %v4844_v61 }
 0x78a   :  { %4909 = vst [vmem:[#allocation6 + $0x190] sm:$0xff] %v4845_v36 }
 0x78b   :  { %4910 = vst [vmem:[#allocation6 + $0x198] sm:$0xff] %v4846_v14 }
 0x78c   :  { %4911 = vst [vmem:[#allocation6 + $0x1a0] sm:$0xff] %v4847_v35 }
 0x78d   :  { %4912 = vst [vmem:[#allocation6 + $0x1a8] sm:$0xff] %v4848_v49 }
 0x78e   :  { %4913 = vst [vmem:[#allocation6 + $0x1b0] sm:$0xff] %v4849_v6 }
 0x78f   :  { %4914 = vst [vmem:[#allocation6 + $0x1b8] sm:$0xff] %v4850_v9 }
 0x790   :  { %4915 = vst [vmem:[#allocation6 + $0x1c0] sm:$0xff] %v4851_v60 }
 0x791   :  { %4916 = vst [vmem:[#allocation6 + $0x1c8] sm:$0xff] %v4852_v23 }
 0x792   :  { %4917 = vst [vmem:[#allocation6 + $0x1d0] sm:$0xff] %v4853_v13 }
 0x793   :  { %4918 = vst [vmem:[#allocation6 + $0x1d8] sm:$0xff] %v4854_v45 }
 0x794   :  { %4919 = vst [vmem:[#allocation6 + $0x1e0] sm:$0xff] %v4855_v59 }
 0x795   :  { %4920 = vst [vmem:[#allocation6 + $0x1e8] sm:$0xff] %v4856_v62 }
 0x796   :  { %4921 = vst [vmem:[#allocation6 + $0x1f0] sm:$0xff] %v4857_v54 }
 0x797   :  { %4935 = dma.vmem_to_hbm [thread:$0]  %s4928_s23, 8192, %s4930_s24, [#allocation5], %s5125_s18, %s5125_s18, %s5126_s19  }
 0x798   :  { %5122 = dma.done.wait [#allocation5], 8192  }
 0x799   :  { %5123 = vsyncadd [#allocation5], 4294959104 }
 0x79a   :  { %4940 = vsyncpa [#allocation4], 1 }
 0x79b   :  { %4941 = vsyncpa [#allocation5], 1 }

</bundles_post_ra>
